<compile_context>
chip_gen: v7x
topology: tpu7x:2x2x1
jax: 0.10.0
libtpu: 0.0.40
codegen_flags: <defaults>
</compile_context>

<pallas_src>
import math

import jax
import jax.numpy as jnp
from jax.experimental import pallas as pl
from jax.experimental.pallas import tpu as pltpu


def _gelu_tanh(v):
    # TODO(synk): tanh-approximate GELU (F.gelu default is exact erf GELU).
    c = math.sqrt(2.0 / math.pi)
    return 0.5 * v * (1.0 + jnp.tanh(c * (v + 0.044715 * v * v * v)))


def _make_decoder_kernel(num_layers, n_heads, d_model, d_ff, matmul_dtype):
    assert d_model % n_heads == 0
    head_dim = d_model // n_heads

    def layernorm(v, g, b, eps=1e-5):
        mu = jnp.mean(v, axis=-1, keepdims=True)
        c = v - mu
        var = jnp.mean(c * c, axis=-1, keepdims=True)
        return c * jax.lax.rsqrt(var + eps) * g + b

    def mm(a, b):
        # bf16 MXU operands, f32 accumulate.
        return jnp.dot(a.astype(matmul_dtype), b.astype(matmul_dtype),
                       preferred_element_type=jnp.float32)

    def mm_nt(a, b):
        # a @ b.T without materializing the transpose.
        return jax.lax.dot_general(
            a.astype(matmul_dtype), b.astype(matmul_dtype),
            dimension_numbers=(((1,), (1,)), ((), ())),
            preferred_element_type=jnp.float32)

    def softmax_rows(s):
        s = s - jnp.max(s, axis=-1, keepdims=True)
        p = jnp.exp(s)
        return p * pl.reciprocal(jnp.sum(p, axis=-1, keepdims=True), approx=True)

    def attention(q, k, v, w_o, b_o, causal_bias):
        # q: (L, D), k/v: (S, D); 1/sqrt(head_dim) already folded into q.
        # Per-head output-projection accumulation: no head concat, Wo sliced on
        # the sublane (row) axis which is cheap.
        out = None
        for h in range(n_heads):                      # static unroll over heads
            sl = slice(h * head_dim, (h + 1) * head_dim)
            s = mm_nt(q[:, sl], k[:, sl])             # (L, S)
            if causal_bias is not None:
                s = s + causal_bias
            p = softmax_rows(s)
            ctx_h = mm(p, v[:, sl])                   # (L, head_dim)
            term = mm(ctx_h, w_o[sl, :])              # (L, d_model)
            out = term if out is None else out + term
        return out + b_o

    def kernel(x_ref, cross_ref,
               w_sqkv_ref, b_sqkv_ref, w_so_ref, b_so_ref,
               w_cq_ref, b_cq_ref, w_ckv_ref, b_ckv_ref, w_co_ref, b_co_ref,
               w_ff1_ref, b_ff1_ref, w_ff2_ref, b_ff2_ref,
               ln_g_ref, ln_b_ref, fin_g_ref, fin_b_ref,
               o_ref):
        D = d_model
        h = x_ref[0].astype(jnp.float32)        # (L, D)
        cr = cross_ref[0].astype(jnp.float32)   # (S, D)
        L = h.shape[0]

        # Causal additive bias, built ONCE and reused by every self-attention layer
        # (Python-float scalar only -> no captured array constants).
        row = jax.lax.broadcasted_iota(jnp.int32, (L, L), 0)
        col = jax.lax.broadcasted_iota(jnp.int32, (L, L), 1)
        causal_bias = (col > row).astype(jnp.float32) * (-1e30)

        for l in range(num_layers):              # static unroll over layers
            # ---- self attention (ProbAttention with u == L_Q -> dense causal) ----
            qkv = mm(h, w_sqkv_ref[l]) + b_sqkv_ref[l]            # (L, 3D), one matmul
            sa = attention(qkv[:, 0:D], qkv[:, D:2 * D], qkv[:, 2 * D:3 * D],
                           w_so_ref[l], b_so_ref[l], causal_bias)
            h = layernorm(h + sa, ln_g_ref[l, 0], ln_b_ref[l, 0])

            # ---- cross attention (FullAttention, no mask) ----
            q = mm(h, w_cq_ref[l]) + b_cq_ref[l]                  # (L, D)
            kv = mm(cr, w_ckv_ref[l]) + b_ckv_ref[l]              # (S, 2D), one matmul
            ca = attention(q, kv[:, 0:D], kv[:, D:2 * D],
                           w_co_ref[l], b_co_ref[l], None)
            h = layernorm(h + ca, ln_g_ref[l, 1], ln_b_ref[l, 1])

            # ---- position-wise FFN (1x1 convs) ----
            y = mm(h, w_ff1_ref[l]) + b_ff1_ref[l]
            y = _gelu_tanh(y)                     # TODO(synk): exact erf GELU
            y = mm(y, w_ff2_ref[l]) + b_ff2_ref[l]
            h = layernorm(h + y, ln_g_ref[l, 2], ln_b_ref[l, 2])

        h = layernorm(h, fin_g_ref[...], fin_b_ref[...])
        o_ref[0, :, :] = h.astype(o_ref.dtype)   # single full-tile store

    return kernel


def informer_decoder_forward(x, cross, params, *, n_heads, factor=5,
                             x_mask=None, cross_mask=None,
                             matmul_dtype=jnp.bfloat16):
    """JAX/Pallas equivalent of InformerDecoderWrapper.forward (inference)."""
    # ProbAttention (mask_flag=True) builds its own causal ProbMask and ignores x_mask;
    # FullAttention (mask_flag=False) ignores cross_mask — so both masks are unused.
    del x_mask, cross_mask

    B, L, D = x.shape
    Bc, S, Dc = cross.shape
    assert Bc == B and Dc == D
    num_layers = params["w_self_qkv"].shape[0]
    d_ff = params["w_ff1"].shape[-1]

    n_top = factor * int(math.ceil(math.log(L)))
    if n_top < L:
        # TODO(synk): ProbSparse top-u path (u < L_Q) not implemented.
        raise NotImplementedError("ProbSparse top-u path (u < L_Q) not implemented")

    kernel = _make_decoder_kernel(num_layers, n_heads, D, d_ff, matmul_dtype)

    def _whole(a):  # full-array block, constant index_map -> VMEM-resident weights
        nd = a.ndim
        return pl.BlockSpec(a.shape, lambda b, _nd=nd: (0,) * _nd)

    weights = (params["w_self_qkv"], params["b_self_qkv"],
               params["w_self_o"], params["b_self_o"],
               params["w_cross_q"], params["b_cross_q"],
               params["w_cross_kv"], params["b_cross_kv"],
               params["w_cross_o"], params["b_cross_o"],
               params["w_ff1"], params["b_ff1"],
               params["w_ff2"], params["b_ff2"],
               params["ln_g"], params["ln_b"],
               params["final_g"], params["final_b"])

    return pl.pallas_call(
        kernel,
        out_shape=jax.ShapeDtypeStruct((B, L, D), x.dtype),
        grid=(B,),
        in_specs=[
            pl.BlockSpec((1, L, D), lambda b: (b, 0, 0)),
            pl.BlockSpec((1, S, D), lambda b: (b, 0, 0)),
        ] + [_whole(w) for w in weights],
        out_specs=pl.BlockSpec((1, L, D), lambda b: (b, 0, 0)),
        compiler_params=pltpu.CompilerParams(
            dimension_semantics=("parallel",)),   # B>=2 keeps both v7x TCs busy
    )(x, cross, *weights)


def _init_params(key, num_layers, d_model, d_ff, n_heads, weight_dtype=jnp.bfloat16):
    """Deterministic parameters in the kernel's fused (in, out) layout.

    The 1/sqrt(head_dim) attention scale is folded into Wq/bq; matmul weights are
    stored in bf16 (halves VMEM/DMA bytes, native MXU rate), biases/LN stay f32.
    """
    head_dim = d_model // n_heads
    scale = 1.0 / math.sqrt(head_dim)
    ks = jax.random.split(key, 24)
    s = 0.1
    nl, D = num_layers, d_model

    def nrm(k, shape):
        return s * jax.random.normal(k, shape, jnp.float32)

    w_sq, w_sk, w_sv, w_so = (nrm(ks[i], (nl, D, D)) for i in range(4))
    b_sq, b_sk, b_sv, b_so = (nrm(ks[4 + i], (nl, 1, D)) for i in range(4))
    w_cq, w_ck, w_cv, w_co = (nrm(ks[8 + i], (nl, D, D)) for i in range(4))
    b_cq, b_ck, b_cv, b_co = (nrm(ks[12 + i], (nl, 1, D)) for i in range(4))
    w_ff1 = nrm(ks[16], (nl, D, d_ff)); b_ff1 = nrm(ks[17], (nl, 1, d_ff))
    w_ff2 = nrm(ks[18], (nl, d_ff, D)); b_ff2 = nrm(ks[19], (nl, 1, D))
    ln_g = 1.0 + nrm(ks[20], (nl, 3, 1, D)); ln_b = nrm(ks[21], (nl, 3, 1, D))
    fin_g = 1.0 + nrm(ks[22], (1, D)); fin_b = nrm(ks[23], (1, D))

    wdt = weight_dtype
    return {
        "w_self_qkv": jnp.concatenate([w_sq * scale, w_sk, w_sv], axis=-1).astype(wdt),
        "b_self_qkv": jnp.concatenate([b_sq * scale, b_sk, b_sv], axis=-1),
        "w_self_o": w_so.astype(wdt), "b_self_o": b_so,
        "w_cross_q": (w_cq * scale).astype(wdt), "b_cross_q": b_cq * scale,
        "w_cross_kv": jnp.concatenate([w_ck, w_cv], axis=-1).astype(wdt),
        "b_cross_kv": jnp.concatenate([b_ck, b_cv], axis=-1),
        "w_cross_o": w_co.astype(wdt), "b_cross_o": b_co,
        "w_ff1": w_ff1.astype(wdt), "b_ff1": b_ff1,
        "w_ff2": w_ff2.astype(wdt), "b_ff2": b_ff2,
        "ln_g": ln_g, "ln_b": ln_b,
        "final_g": fin_g, "final_b": fin_b,
    }


def _reference_forward(x, cross, params, n_heads):
    """Pure-JAX f32 reference (same rounded weights) for a correctness check."""
    D = x.shape[-1]
    f32 = lambda a: a.astype(jnp.float32)

    def ln(v, g, b, eps=1e-5):
        mu = v.mean(-1, keepdims=True)
        c = v - mu
        return c * jax.lax.rsqrt((c * c).mean(-1, keepdims=True) + eps) * g + b

    def mha(xq, xkv, wq, bq, wk, bk, wv, bv, wo, bo, causal):
        q = xq @ wq + bq   # scale already folded into wq/bq
        k = xkv @ wk + bk
        v = xkv @ wv + bv
        B, L, _ = q.shape
        S = k.shape[1]
        H = n_heads
        E = D // H
        qh = q.reshape(B, L, H, E)
        kh = k.reshape(B, S, H, E)
        vh = v.reshape(B, S, H, E)
        sc = jnp.einsum("blhe,bshe->bhls", qh, kh)
        if causal:
            mask = jnp.triu(jnp.ones((L, S), bool), 1)
            sc = jnp.where(mask[None, None], -1e30, sc)
        p = jax.nn.softmax(sc, axis=-1)
        ctx = jnp.einsum("bhls,bshe->blhe", p, vh).reshape(B, L, D)
        return ctx @ wo + bo

    h = f32(x)
    cr = f32(cross)
    nl = params["w_self_qkv"].shape[0]
    for l in range(nl):
        wqkv = f32(params["w_self_qkv"][l]); bqkv = params["b_self_qkv"][l]
        sa = mha(h, h,
                 wqkv[:, 0:D], bqkv[:, 0:D],
                 wqkv[:, D:2 * D], bqkv[:, D:2 * D],
                 wqkv[:, 2 * D:3 * D], bqkv[:, 2 * D:3 * D],
                 f32(params["w_self_o"][l]), params["b_self_o"][l], True)
        h = ln(h + sa, params["ln_g"][l, 0], params["ln_b"][l, 0])

        wkv = f32(params["w_cross_kv"][l]); bkv = params["b_cross_kv"][l]
        ca = mha(h, cr,
                 f32(params["w_cross_q"][l]), params["b_cross_q"][l],
                 wkv[:, 0:D], bkv[:, 0:D],
                 wkv[:, D:2 * D], bkv[:, D:2 * D],
                 f32(params["w_cross_o"][l]), params["b_cross_o"][l], False)
        h = ln(h + ca, params["ln_g"][l, 1], params["ln_b"][l, 1])

        y = h @ f32(params["w_ff1"][l]) + params["b_ff1"][l]
        y = _gelu_tanh(y)
        y = y @ f32(params["w_ff2"][l]) + params["b_ff2"][l]
        h = ln(h + y, params["ln_g"][l, 2], params["ln_b"][l, 2])
    h = ln(h, params["final_g"], params["final_b"])
    return h.astype(x.dtype)


if __name__ == "__main__":
    # Small, deterministic shapes consistent with the module.
    B = 2
    L = 8            # decoder (target) sequence length
    S = 12           # encoder (cross) sequence length
    hidden_dim = 32  # d_model
    n_heads = 8      # head_dim = 4
    d_ff = 64
    decoder_layer_num = 3
    factor = 5       # factor*ceil(ln 8) = 15 >= 8  -> ProbSparse == dense causal attn

    key = jax.random.PRNGKey(0)
    kx, kc, kp = jax.random.split(key, 3)
    x = jax.random.normal(kx, (B, L, hidden_dim), jnp.float32)
    cross = jax.random.normal(kc, (B, S, hidden_dim), jnp.float32)
    params = _init_params(kp, decoder_layer_num, hidden_dim, d_ff, n_heads)

    out = informer_decoder_forward(x, cross, params, n_heads=n_heads, factor=factor)
    out = jax.block_until_ready(out)

    ref = _reference_forward(x, cross, params, n_heads)

    assert out.shape == (B, L, hidden_dim), out.shape
    assert out.dtype == x.dtype
    # Tolerance covers bf16 MXU operands + approximate reciprocal in softmax.
    max_err = float(jnp.max(jnp.abs(out - ref)))
    assert max_err < 2e-2, f"mismatch, max abs err {max_err}"

    print("KERNEL_OK")
</pallas_src>

<mosaic_0001>
module attributes {stable_mosaic.version = 11 : i64} {
  func.func @kernel(%arg0: i32, %arg1: memref<1x8x32xf32, #tpu.memory_space<vmem>>, %arg2: memref<1x12x32xf32, #tpu.memory_space<vmem>>, %arg3: memref<3x32x96xbf16, #tpu.memory_space<vmem>>, %arg4: memref<3x1x96xf32, #tpu.memory_space<vmem>>, %arg5: memref<3x32x32xbf16, #tpu.memory_space<vmem>>, %arg6: memref<3x1x32xf32, #tpu.memory_space<vmem>>, %arg7: memref<3x32x32xbf16, #tpu.memory_space<vmem>>, %arg8: memref<3x1x32xf32, #tpu.memory_space<vmem>>, %arg9: memref<3x32x64xbf16, #tpu.memory_space<vmem>>, %arg10: memref<3x1x64xf32, #tpu.memory_space<vmem>>, %arg11: memref<3x32x32xbf16, #tpu.memory_space<vmem>>, %arg12: memref<3x1x32xf32, #tpu.memory_space<vmem>>, %arg13: memref<3x32x64xbf16, #tpu.memory_space<vmem>>, %arg14: memref<3x1x64xf32, #tpu.memory_space<vmem>>, %arg15: memref<3x64x32xbf16, #tpu.memory_space<vmem>>, %arg16: memref<3x1x32xf32, #tpu.memory_space<vmem>>, %arg17: memref<3x3x1x32xf32, #tpu.memory_space<vmem>>, %arg18: memref<3x3x1x32xf32, #tpu.memory_space<vmem>>, %arg19: memref<1x32xf32, #tpu.memory_space<vmem>>, %arg20: memref<1x32xf32, #tpu.memory_space<vmem>>, %arg21: memref<1x8x32xf32, #tpu.memory_space<vmem>>) attributes {dimension_semantics = [#tpu.dimension_semantics<parallel>], iteration_bounds = array<i64: 2>, scalar_prefetch = 0 : i64, scratch_operands = 0 : i64, tpu.core_type = #tpu.core_type<tc>, window_params = [{transform_indices = @transform_0, window_bounds = array<i64: 1, 8, 32>}, {transform_indices = @transform_1, window_bounds = array<i64: 1, 12, 32>}, {pipeline_mode = #tpu.pipeline_mode<synchronous>, transform_indices = @transform_2, window_bounds = array<i64: 3, 32, 96>}, {pipeline_mode = #tpu.pipeline_mode<synchronous>, transform_indices = @transform_3, window_bounds = array<i64: 3, 1, 96>}, {pipeline_mode = #tpu.pipeline_mode<synchronous>, transform_indices = @transform_4, window_bounds = array<i64: 3, 32, 32>}, {pipeline_mode = #tpu.pipeline_mode<synchronous>, transform_indices = @transform_5, window_bounds = array<i64: 3, 1, 32>}, {pipeline_mode = #tpu.pipeline_mode<synchronous>, transform_indices = @transform_6, window_bounds = array<i64: 3, 32, 32>}, {pipeline_mode = #tpu.pipeline_mode<synchronous>, transform_indices = @transform_7, window_bounds = array<i64: 3, 1, 32>}, {pipeline_mode = #tpu.pipeline_mode<synchronous>, transform_indices = @transform_8, window_bounds = array<i64: 3, 32, 64>}, {pipeline_mode = #tpu.pipeline_mode<synchronous>, transform_indices = @transform_9, window_bounds = array<i64: 3, 1, 64>}, {pipeline_mode = #tpu.pipeline_mode<synchronous>, transform_indices = @transform_10, window_bounds = array<i64: 3, 32, 32>}, {pipeline_mode = #tpu.pipeline_mode<synchronous>, transform_indices = @transform_11, window_bounds = array<i64: 3, 1, 32>}, {pipeline_mode = #tpu.pipeline_mode<synchronous>, transform_indices = @transform_12, window_bounds = array<i64: 3, 32, 64>}, {pipeline_mode = #tpu.pipeline_mode<synchronous>, transform_indices = @transform_13, window_bounds = array<i64: 3, 1, 64>}, {pipeline_mode = #tpu.pipeline_mode<synchronous>, transform_indices = @transform_14, window_bounds = array<i64: 3, 64, 32>}, {pipeline_mode = #tpu.pipeline_mode<synchronous>, transform_indices = @transform_15, window_bounds = array<i64: 3, 1, 32>}, {pipeline_mode = #tpu.pipeline_mode<synchronous>, transform_indices = @transform_16, window_bounds = array<i64: 3, 3, 1, 32>}, {pipeline_mode = #tpu.pipeline_mode<synchronous>, transform_indices = @transform_17, window_bounds = array<i64: 3, 3, 1, 32>}, {pipeline_mode = #tpu.pipeline_mode<synchronous>, transform_indices = @transform_18, window_bounds = array<i64: 1, 32>}, {pipeline_mode = #tpu.pipeline_mode<synchronous>, transform_indices = @transform_19, window_bounds = array<i64: 1, 32>}, {transform_indices = @transform_20, window_bounds = array<i64: 1, 8, 32>}]} {
    %c0 = arith.constant 0 : index
    %c0_0 = arith.constant 0 : index
    %c0_1 = arith.constant 0 : index
    %0 = vector.load %arg1[%c0, %c0_0, %c0_1] : memref<1x8x32xf32, #tpu.memory_space<vmem>>, vector<1x8x32xf32>
    %1 = vector.shape_cast %0 : vector<1x8x32xf32> to vector<8x32xf32>
    %c0_2 = arith.constant 0 : index
    %c0_3 = arith.constant 0 : index
    %c0_4 = arith.constant 0 : index
    %2 = vector.load %arg2[%c0_2, %c0_3, %c0_4] : memref<1x12x32xf32, #tpu.memory_space<vmem>>, vector<1x12x32xf32>
    %3 = vector.shape_cast %2 : vector<1x12x32xf32> to vector<12x32xf32>
    %4 = tpu.iota {dimensions = array<i32: 0>} : vector<8x8xi32>
    %5 = tpu.iota {dimensions = array<i32: 1>} : vector<8x8xi32>
    %6 = arith.cmpi sgt, %5, %4 : vector<8x8xi32>
    %7 = arith.extui %6 : vector<8x8xi1> to vector<8x8xi32>
    %8 = arith.sitofp %7 : vector<8x8xi32> to vector<8x8xf32>
    %cst = arith.constant -1.000000e+30 : f32
    %9 = vector.broadcast %cst : f32 to vector<8x8xf32>
    %10 = arith.mulf %8, %9 : vector<8x8xf32>
    %c0_5 = arith.constant 0 : index
    %c0_6 = arith.constant 0 : index
    %c0_7 = arith.constant 0 : index
    %11 = vector.load %arg3[%c0_5, %c0_6, %c0_7] : memref<3x32x96xbf16, #tpu.memory_space<vmem>>, vector<1x32x96xbf16>
    %12 = vector.shape_cast %11 : vector<1x32x96xbf16> to vector<32x96xbf16>
    %13 = arith.truncf %1 : vector<8x32xf32> to vector<8x32xbf16>
    %cst_8 = arith.constant dense<0.000000e+00> : vector<8x96xf32>
    %14 = tpu.matmul %13, %12, %cst_8 {dimension_numbers = #tpu.dot_dimension_numbers<[1], [0], [0], [1], [0, 0, 1, 1], [], []>} : vector<8x32xbf16>, vector<32x96xbf16>, vector<8x96xf32> -> vector<8x96xf32>
    %c0_9 = arith.constant 0 : index
    %c0_10 = arith.constant 0 : index
    %c0_11 = arith.constant 0 : index
    %15 = vector.load %arg4[%c0_9, %c0_10, %c0_11] : memref<3x1x96xf32, #tpu.memory_space<vmem>>, vector<1x1x96xf32>
    %16 = vector.shape_cast %15 : vector<1x1x96xf32> to vector<1x96xf32>
    %17 = vector.broadcast %16 : vector<1x96xf32> to vector<8x96xf32>
    %18 = arith.addf %14, %17 : vector<8x96xf32>
    %19 = vector.extract_strided_slice %18 {offsets = [0, 0], sizes = [8, 32], strides = [1, 1]} : vector<8x96xf32> to vector<8x32xf32>
    %20 = vector.extract_strided_slice %18 {offsets = [0, 32], sizes = [8, 32], strides = [1, 1]} : vector<8x96xf32> to vector<8x32xf32>
    %21 = vector.extract_strided_slice %18 {offsets = [0, 64], sizes = [8, 32], strides = [1, 1]} : vector<8x96xf32> to vector<8x32xf32>
    %c0_12 = arith.constant 0 : index
    %c0_13 = arith.constant 0 : index
    %c0_14 = arith.constant 0 : index
    %22 = vector.load %arg5[%c0_12, %c0_13, %c0_14] : memref<3x32x32xbf16, #tpu.memory_space<vmem>>, vector<1x32x32xbf16>
    %23 = vector.shape_cast %22 : vector<1x32x32xbf16> to vector<32x32xbf16>
    %c0_15 = arith.constant 0 : index
    %c0_16 = arith.constant 0 : index
    %c0_17 = arith.constant 0 : index
    %24 = vector.load %arg6[%c0_15, %c0_16, %c0_17] : memref<3x1x32xf32, #tpu.memory_space<vmem>>, vector<1x1x32xf32>
    %25 = vector.shape_cast %24 : vector<1x1x32xf32> to vector<1x32xf32>
    %26 = vector.extract_strided_slice %19 {offsets = [0, 0], sizes = [8, 4], strides = [1, 1]} : vector<8x32xf32> to vector<8x4xf32>
    %27 = vector.extract_strided_slice %20 {offsets = [0, 0], sizes = [8, 4], strides = [1, 1]} : vector<8x32xf32> to vector<8x4xf32>
    %28 = arith.truncf %26 : vector<8x4xf32> to vector<8x4xbf16>
    %29 = arith.truncf %27 : vector<8x4xf32> to vector<8x4xbf16>
    %cst_18 = arith.constant dense<0.000000e+00> : vector<8x8xf32>
    %30 = tpu.matmul %28, %29, %cst_18 {dimension_numbers = #tpu.dot_dimension_numbers<[1], [1], [0], [0], [0, 0, 1, 0], [], []>} : vector<8x4xbf16>, vector<8x4xbf16>, vector<8x8xf32> -> vector<8x8xf32>
    %31 = arith.addf %30, %10 : vector<8x8xf32>
    %cst_19 = arith.constant dense<0xFF800000> : vector<8xf32>
    %32 = vector.multi_reduction <maximumf>, %31, %cst_19 [1] : vector<8x8xf32> to vector<8xf32>
    %33 = vector.shape_cast %32 : vector<8xf32> to vector<8x1xf32>
    %34 = vector.broadcast %33 : vector<8x1xf32> to vector<8x8xf32>
    %35 = arith.subf %31, %34 : vector<8x8xf32>
    %36 = math.exp %35 : vector<8x8xf32>
    %cst_20 = arith.constant dense<0.000000e+00> : vector<8xf32>
    %37 = vector.multi_reduction <add>, %36, %cst_20 [1] : vector<8x8xf32> to vector<8xf32>
    %38 = vector.shape_cast %37 : vector<8xf32> to vector<8x1xf32>
    %39 = tpu.reciprocal %38 {approx = true} : vector<8x1xf32> -> vector<8x1xf32>
    %40 = vector.broadcast %39 : vector<8x1xf32> to vector<8x8xf32>
    %41 = arith.mulf %36, %40 : vector<8x8xf32>
    %42 = vector.extract_strided_slice %21 {offsets = [0, 0], sizes = [8, 4], strides = [1, 1]} : vector<8x32xf32> to vector<8x4xf32>
    %43 = arith.truncf %41 : vector<8x8xf32> to vector<8x8xbf16>
    %44 = arith.truncf %42 : vector<8x4xf32> to vector<8x4xbf16>
    %cst_21 = arith.constant dense<0.000000e+00> : vector<8x4xf32>
    %45 = tpu.matmul %43, %44, %cst_21 {dimension_numbers = #tpu.dot_dimension_numbers<[1], [0], [0], [1], [0, 0, 1, 1], [], []>} : vector<8x8xbf16>, vector<8x4xbf16>, vector<8x4xf32> -> vector<8x4xf32>
    %46 = vector.extract_strided_slice %23 {offsets = [0, 0], sizes = [4, 32], strides = [1, 1]} : vector<32x32xbf16> to vector<4x32xbf16>
    %47 = arith.truncf %45 : vector<8x4xf32> to vector<8x4xbf16>
    %cst_22 = arith.constant dense<0.000000e+00> : vector<8x32xf32>
    %48 = tpu.matmul %47, %46, %cst_22 {dimension_numbers = #tpu.dot_dimension_numbers<[1], [0], [0], [1], [0, 0, 1, 1], [], []>} : vector<8x4xbf16>, vector<4x32xbf16>, vector<8x32xf32> -> vector<8x32xf32>
    %49 = vector.extract_strided_slice %19 {offsets = [0, 4], sizes = [8, 4], strides = [1, 1]} : vector<8x32xf32> to vector<8x4xf32>
    %50 = vector.extract_strided_slice %20 {offsets = [0, 4], sizes = [8, 4], strides = [1, 1]} : vector<8x32xf32> to vector<8x4xf32>
    %51 = arith.truncf %49 : vector<8x4xf32> to vector<8x4xbf16>
    %52 = arith.truncf %50 : vector<8x4xf32> to vector<8x4xbf16>
    %cst_23 = arith.constant dense<0.000000e+00> : vector<8x8xf32>
    %53 = tpu.matmul %51, %52, %cst_23 {dimension_numbers = #tpu.dot_dimension_numbers<[1], [1], [0], [0], [0, 0, 1, 0], [], []>} : vector<8x4xbf16>, vector<8x4xbf16>, vector<8x8xf32> -> vector<8x8xf32>
    %54 = arith.addf %53, %10 : vector<8x8xf32>
    %cst_24 = arith.constant dense<0xFF800000> : vector<8xf32>
    %55 = vector.multi_reduction <maximumf>, %54, %cst_24 [1] : vector<8x8xf32> to vector<8xf32>
    %56 = vector.shape_cast %55 : vector<8xf32> to vector<8x1xf32>
    %57 = vector.broadcast %56 : vector<8x1xf32> to vector<8x8xf32>
    %58 = arith.subf %54, %57 : vector<8x8xf32>
    %59 = math.exp %58 : vector<8x8xf32>
    %cst_25 = arith.constant dense<0.000000e+00> : vector<8xf32>
    %60 = vector.multi_reduction <add>, %59, %cst_25 [1] : vector<8x8xf32> to vector<8xf32>
    %61 = vector.shape_cast %60 : vector<8xf32> to vector<8x1xf32>
    %62 = tpu.reciprocal %61 {approx = true} : vector<8x1xf32> -> vector<8x1xf32>
    %63 = vector.broadcast %62 : vector<8x1xf32> to vector<8x8xf32>
    %64 = arith.mulf %59, %63 : vector<8x8xf32>
    %65 = vector.extract_strided_slice %21 {offsets = [0, 4], sizes = [8, 4], strides = [1, 1]} : vector<8x32xf32> to vector<8x4xf32>
    %66 = arith.truncf %64 : vector<8x8xf32> to vector<8x8xbf16>
    %67 = arith.truncf %65 : vector<8x4xf32> to vector<8x4xbf16>
    %cst_26 = arith.constant dense<0.000000e+00> : vector<8x4xf32>
    %68 = tpu.matmul %66, %67, %cst_26 {dimension_numbers = #tpu.dot_dimension_numbers<[1], [0], [0], [1], [0, 0, 1, 1], [], []>} : vector<8x8xbf16>, vector<8x4xbf16>, vector<8x4xf32> -> vector<8x4xf32>
    %69 = vector.extract_strided_slice %23 {offsets = [4, 0], sizes = [4, 32], strides = [1, 1]} : vector<32x32xbf16> to vector<4x32xbf16>
    %70 = arith.truncf %68 : vector<8x4xf32> to vector<8x4xbf16>
    %cst_27 = arith.constant dense<0.000000e+00> : vector<8x32xf32>
    %71 = tpu.matmul %70, %69, %cst_27 {dimension_numbers = #tpu.dot_dimension_numbers<[1], [0], [0], [1], [0, 0, 1, 1], [], []>} : vector<8x4xbf16>, vector<4x32xbf16>, vector<8x32xf32> -> vector<8x32xf32>
    %72 = arith.addf %48, %71 : vector<8x32xf32>
    %73 = vector.extract_strided_slice %19 {offsets = [0, 8], sizes = [8, 4], strides = [1, 1]} : vector<8x32xf32> to vector<8x4xf32>
    %74 = vector.extract_strided_slice %20 {offsets = [0, 8], sizes = [8, 4], strides = [1, 1]} : vector<8x32xf32> to vector<8x4xf32>
    %75 = arith.truncf %73 : vector<8x4xf32> to vector<8x4xbf16>
    %76 = arith.truncf %74 : vector<8x4xf32> to vector<8x4xbf16>
    %cst_28 = arith.constant dense<0.000000e+00> : vector<8x8xf32>
    %77 = tpu.matmul %75, %76, %cst_28 {dimension_numbers = #tpu.dot_dimension_numbers<[1], [1], [0], [0], [0, 0, 1, 0], [], []>} : vector<8x4xbf16>, vector<8x4xbf16>, vector<8x8xf32> -> vector<8x8xf32>
    %78 = arith.addf %77, %10 : vector<8x8xf32>
    %cst_29 = arith.constant dense<0xFF800000> : vector<8xf32>
    %79 = vector.multi_reduction <maximumf>, %78, %cst_29 [1] : vector<8x8xf32> to vector<8xf32>
    %80 = vector.shape_cast %79 : vector<8xf32> to vector<8x1xf32>
    %81 = vector.broadcast %80 : vector<8x1xf32> to vector<8x8xf32>
    %82 = arith.subf %78, %81 : vector<8x8xf32>
    %83 = math.exp %82 : vector<8x8xf32>
    %cst_30 = arith.constant dense<0.000000e+00> : vector<8xf32>
    %84 = vector.multi_reduction <add>, %83, %cst_30 [1] : vector<8x8xf32> to vector<8xf32>
    %85 = vector.shape_cast %84 : vector<8xf32> to vector<8x1xf32>
    %86 = tpu.reciprocal %85 {approx = true} : vector<8x1xf32> -> vector<8x1xf32>
    %87 = vector.broadcast %86 : vector<8x1xf32> to vector<8x8xf32>
    %88 = arith.mulf %83, %87 : vector<8x8xf32>
    %89 = vector.extract_strided_slice %21 {offsets = [0, 8], sizes = [8, 4], strides = [1, 1]} : vector<8x32xf32> to vector<8x4xf32>
    %90 = arith.truncf %88 : vector<8x8xf32> to vector<8x8xbf16>
    %91 = arith.truncf %89 : vector<8x4xf32> to vector<8x4xbf16>
    %cst_31 = arith.constant dense<0.000000e+00> : vector<8x4xf32>
    %92 = tpu.matmul %90, %91, %cst_31 {dimension_numbers = #tpu.dot_dimension_numbers<[1], [0], [0], [1], [0, 0, 1, 1], [], []>} : vector<8x8xbf16>, vector<8x4xbf16>, vector<8x4xf32> -> vector<8x4xf32>
    %93 = vector.extract_strided_slice %23 {offsets = [8, 0], sizes = [4, 32], strides = [1, 1]} : vector<32x32xbf16> to vector<4x32xbf16>
    %94 = arith.truncf %92 : vector<8x4xf32> to vector<8x4xbf16>
    %cst_32 = arith.constant dense<0.000000e+00> : vector<8x32xf32>
    %95 = tpu.matmul %94, %93, %cst_32 {dimension_numbers = #tpu.dot_dimension_numbers<[1], [0], [0], [1], [0, 0, 1, 1], [], []>} : vector<8x4xbf16>, vector<4x32xbf16>, vector<8x32xf32> -> vector<8x32xf32>
    %96 = arith.addf %72, %95 : vector<8x32xf32>
    %97 = vector.extract_strided_slice %19 {offsets = [0, 12], sizes = [8, 4], strides = [1, 1]} : vector<8x32xf32> to vector<8x4xf32>
    %98 = vector.extract_strided_slice %20 {offsets = [0, 12], sizes = [8, 4], strides = [1, 1]} : vector<8x32xf32> to vector<8x4xf32>
    %99 = arith.truncf %97 : vector<8x4xf32> to vector<8x4xbf16>
    %100 = arith.truncf %98 : vector<8x4xf32> to vector<8x4xbf16>
    %cst_33 = arith.constant dense<0.000000e+00> : vector<8x8xf32>
    %101 = tpu.matmul %99, %100, %cst_33 {dimension_numbers = #tpu.dot_dimension_numbers<[1], [1], [0], [0], [0, 0, 1, 0], [], []>} : vector<8x4xbf16>, vector<8x4xbf16>, vector<8x8xf32> -> vector<8x8xf32>
    %102 = arith.addf %101, %10 : vector<8x8xf32>
    %cst_34 = arith.constant dense<0xFF800000> : vector<8xf32>
    %103 = vector.multi_reduction <maximumf>, %102, %cst_34 [1] : vector<8x8xf32> to vector<8xf32>
    %104 = vector.shape_cast %103 : vector<8xf32> to vector<8x1xf32>
    %105 = vector.broadcast %104 : vector<8x1xf32> to vector<8x8xf32>
    %106 = arith.subf %102, %105 : vector<8x8xf32>
    %107 = math.exp %106 : vector<8x8xf32>
    %cst_35 = arith.constant dense<0.000000e+00> : vector<8xf32>
    %108 = vector.multi_reduction <add>, %107, %cst_35 [1] : vector<8x8xf32> to vector<8xf32>
    %109 = vector.shape_cast %108 : vector<8xf32> to vector<8x1xf32>
    %110 = tpu.reciprocal %109 {approx = true} : vector<8x1xf32> -> vector<8x1xf32>
    %111 = vector.broadcast %110 : vector<8x1xf32> to vector<8x8xf32>
    %112 = arith.mulf %107, %111 : vector<8x8xf32>
    %113 = vector.extract_strided_slice %21 {offsets = [0, 12], sizes = [8, 4], strides = [1, 1]} : vector<8x32xf32> to vector<8x4xf32>
    %114 = arith.truncf %112 : vector<8x8xf32> to vector<8x8xbf16>
    %115 = arith.truncf %113 : vector<8x4xf32> to vector<8x4xbf16>
    %cst_36 = arith.constant dense<0.000000e+00> : vector<8x4xf32>
    %116 = tpu.matmul %114, %115, %cst_36 {dimension_numbers = #tpu.dot_dimension_numbers<[1], [0], [0], [1], [0, 0, 1, 1], [], []>} : vector<8x8xbf16>, vector<8x4xbf16>, vector<8x4xf32> -> vector<8x4xf32>
    %117 = vector.extract_strided_slice %23 {offsets = [12, 0], sizes = [4, 32], strides = [1, 1]} : vector<32x32xbf16> to vector<4x32xbf16>
    %118 = arith.truncf %116 : vector<8x4xf32> to vector<8x4xbf16>
    %cst_37 = arith.constant dense<0.000000e+00> : vector<8x32xf32>
    %119 = tpu.matmul %118, %117, %cst_37 {dimension_numbers = #tpu.dot_dimension_numbers<[1], [0], [0], [1], [0, 0, 1, 1], [], []>} : vector<8x4xbf16>, vector<4x32xbf16>, vector<8x32xf32> -> vector<8x32xf32>
    %120 = arith.addf %96, %119 : vector<8x32xf32>
    %121 = vector.extract_strided_slice %19 {offsets = [0, 16], sizes = [8, 4], strides = [1, 1]} : vector<8x32xf32> to vector<8x4xf32>
    %122 = vector.extract_strided_slice %20 {offsets = [0, 16], sizes = [8, 4], strides = [1, 1]} : vector<8x32xf32> to vector<8x4xf32>
    %123 = arith.truncf %121 : vector<8x4xf32> to vector<8x4xbf16>
    %124 = arith.truncf %122 : vector<8x4xf32> to vector<8x4xbf16>
    %cst_38 = arith.constant dense<0.000000e+00> : vector<8x8xf32>
    %125 = tpu.matmul %123, %124, %cst_38 {dimension_numbers = #tpu.dot_dimension_numbers<[1], [1], [0], [0], [0, 0, 1, 0], [], []>} : vector<8x4xbf16>, vector<8x4xbf16>, vector<8x8xf32> -> vector<8x8xf32>
    %126 = arith.addf %125, %10 : vector<8x8xf32>
    %cst_39 = arith.constant dense<0xFF800000> : vector<8xf32>
    %127 = vector.multi_reduction <maximumf>, %126, %cst_39 [1] : vector<8x8xf32> to vector<8xf32>
    %128 = vector.shape_cast %127 : vector<8xf32> to vector<8x1xf32>
    %129 = vector.broadcast %128 : vector<8x1xf32> to vector<8x8xf32>
    %130 = arith.subf %126, %129 : vector<8x8xf32>
    %131 = math.exp %130 : vector<8x8xf32>
    %cst_40 = arith.constant dense<0.000000e+00> : vector<8xf32>
    %132 = vector.multi_reduction <add>, %131, %cst_40 [1] : vector<8x8xf32> to vector<8xf32>
    %133 = vector.shape_cast %132 : vector<8xf32> to vector<8x1xf32>
    %134 = tpu.reciprocal %133 {approx = true} : vector<8x1xf32> -> vector<8x1xf32>
    %135 = vector.broadcast %134 : vector<8x1xf32> to vector<8x8xf32>
    %136 = arith.mulf %131, %135 : vector<8x8xf32>
    %137 = vector.extract_strided_slice %21 {offsets = [0, 16], sizes = [8, 4], strides = [1, 1]} : vector<8x32xf32> to vector<8x4xf32>
    %138 = arith.truncf %136 : vector<8x8xf32> to vector<8x8xbf16>
    %139 = arith.truncf %137 : vector<8x4xf32> to vector<8x4xbf16>
    %cst_41 = arith.constant dense<0.000000e+00> : vector<8x4xf32>
    %140 = tpu.matmul %138, %139, %cst_41 {dimension_numbers = #tpu.dot_dimension_numbers<[1], [0], [0], [1], [0, 0, 1, 1], [], []>} : vector<8x8xbf16>, vector<8x4xbf16>, vector<8x4xf32> -> vector<8x4xf32>
    %141 = vector.extract_strided_slice %23 {offsets = [16, 0], sizes = [4, 32], strides = [1, 1]} : vector<32x32xbf16> to vector<4x32xbf16>
    %142 = arith.truncf %140 : vector<8x4xf32> to vector<8x4xbf16>
    %cst_42 = arith.constant dense<0.000000e+00> : vector<8x32xf32>
    %143 = tpu.matmul %142, %141, %cst_42 {dimension_numbers = #tpu.dot_dimension_numbers<[1], [0], [0], [1], [0, 0, 1, 1], [], []>} : vector<8x4xbf16>, vector<4x32xbf16>, vector<8x32xf32> -> vector<8x32xf32>
    %144 = arith.addf %120, %143 : vector<8x32xf32>
    %145 = vector.extract_strided_slice %19 {offsets = [0, 20], sizes = [8, 4], strides = [1, 1]} : vector<8x32xf32> to vector<8x4xf32>
    %146 = vector.extract_strided_slice %20 {offsets = [0, 20], sizes = [8, 4], strides = [1, 1]} : vector<8x32xf32> to vector<8x4xf32>
    %147 = arith.truncf %145 : vector<8x4xf32> to vector<8x4xbf16>
    %148 = arith.truncf %146 : vector<8x4xf32> to vector<8x4xbf16>
    %cst_43 = arith.constant dense<0.000000e+00> : vector<8x8xf32>
    %149 = tpu.matmul %147, %148, %cst_43 {dimension_numbers = #tpu.dot_dimension_numbers<[1], [1], [0], [0], [0, 0, 1, 0], [], []>} : vector<8x4xbf16>, vector<8x4xbf16>, vector<8x8xf32> -> vector<8x8xf32>
    %150 = arith.addf %149, %10 : vector<8x8xf32>
    %cst_44 = arith.constant dense<0xFF800000> : vector<8xf32>
    %151 = vector.multi_reduction <maximumf>, %150, %cst_44 [1] : vector<8x8xf32> to vector<8xf32>
    %152 = vector.shape_cast %151 : vector<8xf32> to vector<8x1xf32>
    %153 = vector.broadcast %152 : vector<8x1xf32> to vector<8x8xf32>
    %154 = arith.subf %150, %153 : vector<8x8xf32>
    %155 = math.exp %154 : vector<8x8xf32>
    %cst_45 = arith.constant dense<0.000000e+00> : vector<8xf32>
    %156 = vector.multi_reduction <add>, %155, %cst_45 [1] : vector<8x8xf32> to vector<8xf32>
    %157 = vector.shape_cast %156 : vector<8xf32> to vector<8x1xf32>
    %158 = tpu.reciprocal %157 {approx = true} : vector<8x1xf32> -> vector<8x1xf32>
    %159 = vector.broadcast %158 : vector<8x1xf32> to vector<8x8xf32>
    %160 = arith.mulf %155, %159 : vector<8x8xf32>
    %161 = vector.extract_strided_slice %21 {offsets = [0, 20], sizes = [8, 4], strides = [1, 1]} : vector<8x32xf32> to vector<8x4xf32>
    %162 = arith.truncf %160 : vector<8x8xf32> to vector<8x8xbf16>
    %163 = arith.truncf %161 : vector<8x4xf32> to vector<8x4xbf16>
    %cst_46 = arith.constant dense<0.000000e+00> : vector<8x4xf32>
    %164 = tpu.matmul %162, %163, %cst_46 {dimension_numbers = #tpu.dot_dimension_numbers<[1], [0], [0], [1], [0, 0, 1, 1], [], []>} : vector<8x8xbf16>, vector<8x4xbf16>, vector<8x4xf32> -> vector<8x4xf32>
    %165 = vector.extract_strided_slice %23 {offsets = [20, 0], sizes = [4, 32], strides = [1, 1]} : vector<32x32xbf16> to vector<4x32xbf16>
    %166 = arith.truncf %164 : vector<8x4xf32> to vector<8x4xbf16>
    %cst_47 = arith.constant dense<0.000000e+00> : vector<8x32xf32>
    %167 = tpu.matmul %166, %165, %cst_47 {dimension_numbers = #tpu.dot_dimension_numbers<[1], [0], [0], [1], [0, 0, 1, 1], [], []>} : vector<8x4xbf16>, vector<4x32xbf16>, vector<8x32xf32> -> vector<8x32xf32>
    %168 = arith.addf %144, %167 : vector<8x32xf32>
    %169 = vector.extract_strided_slice %19 {offsets = [0, 24], sizes = [8, 4], strides = [1, 1]} : vector<8x32xf32> to vector<8x4xf32>
    %170 = vector.extract_strided_slice %20 {offsets = [0, 24], sizes = [8, 4], strides = [1, 1]} : vector<8x32xf32> to vector<8x4xf32>
    %171 = arith.truncf %169 : vector<8x4xf32> to vector<8x4xbf16>
    %172 = arith.truncf %170 : vector<8x4xf32> to vector<8x4xbf16>
    %cst_48 = arith.constant dense<0.000000e+00> : vector<8x8xf32>
    %173 = tpu.matmul %171, %172, %cst_48 {dimension_numbers = #tpu.dot_dimension_numbers<[1], [1], [0], [0], [0, 0, 1, 0], [], []>} : vector<8x4xbf16>, vector<8x4xbf16>, vector<8x8xf32> -> vector<8x8xf32>
    %174 = arith.addf %173, %10 : vector<8x8xf32>
    %cst_49 = arith.constant dense<0xFF800000> : vector<8xf32>
    %175 = vector.multi_reduction <maximumf>, %174, %cst_49 [1] : vector<8x8xf32> to vector<8xf32>
    %176 = vector.shape_cast %175 : vector<8xf32> to vector<8x1xf32>
    %177 = vector.broadcast %176 : vector<8x1xf32> to vector<8x8xf32>
    %178 = arith.subf %174, %177 : vector<8x8xf32>
    %179 = math.exp %178 : vector<8x8xf32>
    %cst_50 = arith.constant dense<0.000000e+00> : vector<8xf32>
    %180 = vector.multi_reduction <add>, %179, %cst_50 [1] : vector<8x8xf32> to vector<8xf32>
    %181 = vector.shape_cast %180 : vector<8xf32> to vector<8x1xf32>
    %182 = tpu.reciprocal %181 {approx = true} : vector<8x1xf32> -> vector<8x1xf32>
    %183 = vector.broadcast %182 : vector<8x1xf32> to vector<8x8xf32>
    %184 = arith.mulf %179, %183 : vector<8x8xf32>
    %185 = vector.extract_strided_slice %21 {offsets = [0, 24], sizes = [8, 4], strides = [1, 1]} : vector<8x32xf32> to vector<8x4xf32>
    %186 = arith.truncf %184 : vector<8x8xf32> to vector<8x8xbf16>
    %187 = arith.truncf %185 : vector<8x4xf32> to vector<8x4xbf16>
    %cst_51 = arith.constant dense<0.000000e+00> : vector<8x4xf32>
    %188 = tpu.matmul %186, %187, %cst_51 {dimension_numbers = #tpu.dot_dimension_numbers<[1], [0], [0], [1], [0, 0, 1, 1], [], []>} : vector<8x8xbf16>, vector<8x4xbf16>, vector<8x4xf32> -> vector<8x4xf32>
    %189 = vector.extract_strided_slice %23 {offsets = [24, 0], sizes = [4, 32], strides = [1, 1]} : vector<32x32xbf16> to vector<4x32xbf16>
    %190 = arith.truncf %188 : vector<8x4xf32> to vector<8x4xbf16>
    %cst_52 = arith.constant dense<0.000000e+00> : vector<8x32xf32>
    %191 = tpu.matmul %190, %189, %cst_52 {dimension_numbers = #tpu.dot_dimension_numbers<[1], [0], [0], [1], [0, 0, 1, 1], [], []>} : vector<8x4xbf16>, vector<4x32xbf16>, vector<8x32xf32> -> vector<8x32xf32>
    %192 = arith.addf %168, %191 : vector<8x32xf32>
    %193 = vector.extract_strided_slice %19 {offsets = [0, 28], sizes = [8, 4], strides = [1, 1]} : vector<8x32xf32> to vector<8x4xf32>
    %194 = vector.extract_strided_slice %20 {offsets = [0, 28], sizes = [8, 4], strides = [1, 1]} : vector<8x32xf32> to vector<8x4xf32>
    %195 = arith.truncf %193 : vector<8x4xf32> to vector<8x4xbf16>
    %196 = arith.truncf %194 : vector<8x4xf32> to vector<8x4xbf16>
    %cst_53 = arith.constant dense<0.000000e+00> : vector<8x8xf32>
    %197 = tpu.matmul %195, %196, %cst_53 {dimension_numbers = #tpu.dot_dimension_numbers<[1], [1], [0], [0], [0, 0, 1, 0], [], []>} : vector<8x4xbf16>, vector<8x4xbf16>, vector<8x8xf32> -> vector<8x8xf32>
    %198 = arith.addf %197, %10 : vector<8x8xf32>
    %cst_54 = arith.constant dense<0xFF800000> : vector<8xf32>
    %199 = vector.multi_reduction <maximumf>, %198, %cst_54 [1] : vector<8x8xf32> to vector<8xf32>
    %200 = vector.shape_cast %199 : vector<8xf32> to vector<8x1xf32>
    %201 = vector.broadcast %200 : vector<8x1xf32> to vector<8x8xf32>
    %202 = arith.subf %198, %201 : vector<8x8xf32>
    %203 = math.exp %202 : vector<8x8xf32>
    %cst_55 = arith.constant dense<0.000000e+00> : vector<8xf32>
    %204 = vector.multi_reduction <add>, %203, %cst_55 [1] : vector<8x8xf32> to vector<8xf32>
    %205 = vector.shape_cast %204 : vector<8xf32> to vector<8x1xf32>
    %206 = tpu.reciprocal %205 {approx = true} : vector<8x1xf32> -> vector<8x1xf32>
    %207 = vector.broadcast %206 : vector<8x1xf32> to vector<8x8xf32>
    %208 = arith.mulf %203, %207 : vector<8x8xf32>
    %209 = vector.extract_strided_slice %21 {offsets = [0, 28], sizes = [8, 4], strides = [1, 1]} : vector<8x32xf32> to vector<8x4xf32>
    %210 = arith.truncf %208 : vector<8x8xf32> to vector<8x8xbf16>
    %211 = arith.truncf %209 : vector<8x4xf32> to vector<8x4xbf16>
    %cst_56 = arith.constant dense<0.000000e+00> : vector<8x4xf32>
    %212 = tpu.matmul %210, %211, %cst_56 {dimension_numbers = #tpu.dot_dimension_numbers<[1], [0], [0], [1], [0, 0, 1, 1], [], []>} : vector<8x8xbf16>, vector<8x4xbf16>, vector<8x4xf32> -> vector<8x4xf32>
    %213 = vector.extract_strided_slice %23 {offsets = [28, 0], sizes = [4, 32], strides = [1, 1]} : vector<32x32xbf16> to vector<4x32xbf16>
    %214 = arith.truncf %212 : vector<8x4xf32> to vector<8x4xbf16>
    %cst_57 = arith.constant dense<0.000000e+00> : vector<8x32xf32>
    %215 = tpu.matmul %214, %213, %cst_57 {dimension_numbers = #tpu.dot_dimension_numbers<[1], [0], [0], [1], [0, 0, 1, 1], [], []>} : vector<8x4xbf16>, vector<4x32xbf16>, vector<8x32xf32> -> vector<8x32xf32>
    %216 = arith.addf %192, %215 : vector<8x32xf32>
    %217 = vector.broadcast %25 : vector<1x32xf32> to vector<8x32xf32>
    %218 = arith.addf %216, %217 : vector<8x32xf32>
    %219 = arith.addf %1, %218 : vector<8x32xf32>
    %c0_58 = arith.constant 0 : index
    %c0_59 = arith.constant 0 : index
    %c0_60 = arith.constant 0 : index
    %c0_61 = arith.constant 0 : index
    %220 = vector.load %arg17[%c0_58, %c0_59, %c0_60, %c0_61] : memref<3x3x1x32xf32, #tpu.memory_space<vmem>>, vector<1x1x1x32xf32>
    %221 = vector.shape_cast %220 : vector<1x1x1x32xf32> to vector<1x32xf32>
    %c0_62 = arith.constant 0 : index
    %c0_63 = arith.constant 0 : index
    %c0_64 = arith.constant 0 : index
    %c0_65 = arith.constant 0 : index
    %222 = vector.load %arg18[%c0_62, %c0_63, %c0_64, %c0_65] : memref<3x3x1x32xf32, #tpu.memory_space<vmem>>, vector<1x1x1x32xf32>
    %223 = vector.shape_cast %222 : vector<1x1x1x32xf32> to vector<1x32xf32>
    %cst_66 = arith.constant dense<0.000000e+00> : vector<8xf32>
    %224 = vector.multi_reduction <add>, %219, %cst_66 [1] : vector<8x32xf32> to vector<8xf32>
    %225 = vector.shape_cast %224 : vector<8xf32> to vector<8x1xf32>
    %cst_67 = arith.constant 3.200000e+01 : f32
    %226 = vector.broadcast %cst_67 : f32 to vector<8x1xf32>
    %227 = arith.divf %225, %226 : vector<8x1xf32>
    %228 = vector.broadcast %227 : vector<8x1xf32> to vector<8x32xf32>
    %229 = arith.subf %219, %228 : vector<8x32xf32>
    %230 = arith.mulf %229, %229 : vector<8x32xf32>
    %cst_68 = arith.constant dense<0.000000e+00> : vector<8xf32>
    %231 = vector.multi_reduction <add>, %230, %cst_68 [1] : vector<8x32xf32> to vector<8xf32>
    %232 = vector.shape_cast %231 : vector<8xf32> to vector<8x1xf32>
    %cst_69 = arith.constant 3.200000e+01 : f32
    %233 = vector.broadcast %cst_69 : f32 to vector<8x1xf32>
    %234 = arith.divf %232, %233 : vector<8x1xf32>
    %cst_70 = arith.constant 9.99999974E-6 : f32
    %235 = vector.broadcast %cst_70 : f32 to vector<8x1xf32>
    %236 = arith.addf %234, %235 : vector<8x1xf32>
    %237 = math.rsqrt %236 : vector<8x1xf32>
    %238 = vector.broadcast %237 : vector<8x1xf32> to vector<8x32xf32>
    %239 = arith.mulf %229, %238 : vector<8x32xf32>
    %240 = vector.broadcast %221 : vector<1x32xf32> to vector<8x32xf32>
    %241 = arith.mulf %239, %240 : vector<8x32xf32>
    %242 = vector.broadcast %223 : vector<1x32xf32> to vector<8x32xf32>
    %243 = arith.addf %241, %242 : vector<8x32xf32>
    %c0_71 = arith.constant 0 : index
    %c0_72 = arith.constant 0 : index
    %c0_73 = arith.constant 0 : index
    %244 = vector.load %arg7[%c0_71, %c0_72, %c0_73] : memref<3x32x32xbf16, #tpu.memory_space<vmem>>, vector<1x32x32xbf16>
    %245 = vector.shape_cast %244 : vector<1x32x32xbf16> to vector<32x32xbf16>
    %246 = arith.truncf %243 : vector<8x32xf32> to vector<8x32xbf16>
    %cst_74 = arith.constant dense<0.000000e+00> : vector<8x32xf32>
    %247 = tpu.matmul %246, %245, %cst_74 {dimension_numbers = #tpu.dot_dimension_numbers<[1], [0], [0], [1], [0, 0, 1, 1], [], []>} : vector<8x32xbf16>, vector<32x32xbf16>, vector<8x32xf32> -> vector<8x32xf32>
    %c0_75 = arith.constant 0 : index
    %c0_76 = arith.constant 0 : index
    %c0_77 = arith.constant 0 : index
    %248 = vector.load %arg8[%c0_75, %c0_76, %c0_77] : memref<3x1x32xf32, #tpu.memory_space<vmem>>, vector<1x1x32xf32>
    %249 = vector.shape_cast %248 : vector<1x1x32xf32> to vector<1x32xf32>
    %250 = vector.broadcast %249 : vector<1x32xf32> to vector<8x32xf32>
    %251 = arith.addf %247, %250 : vector<8x32xf32>
    %c0_78 = arith.constant 0 : index
    %c0_79 = arith.constant 0 : index
    %c0_80 = arith.constant 0 : index
    %252 = vector.load %arg9[%c0_78, %c0_79, %c0_80] : memref<3x32x64xbf16, #tpu.memory_space<vmem>>, vector<1x32x64xbf16>
    %253 = vector.shape_cast %252 : vector<1x32x64xbf16> to vector<32x64xbf16>
    %254 = arith.truncf %3 : vector<12x32xf32> to vector<12x32xbf16>
    %cst_81 = arith.constant dense<0.000000e+00> : vector<12x64xf32>
    %255 = tpu.matmul %254, %253, %cst_81 {dimension_numbers = #tpu.dot_dimension_numbers<[1], [0], [0], [1], [0, 0, 1, 1], [], []>} : vector<12x32xbf16>, vector<32x64xbf16>, vector<12x64xf32> -> vector<12x64xf32>
    %c0_82 = arith.constant 0 : index
    %c0_83 = arith.constant 0 : index
    %c0_84 = arith.constant 0 : index
    %256 = vector.load %arg10[%c0_82, %c0_83, %c0_84] : memref<3x1x64xf32, #tpu.memory_space<vmem>>, vector<1x1x64xf32>
    %257 = vector.shape_cast %256 : vector<1x1x64xf32> to vector<1x64xf32>
    %258 = vector.broadcast %257 : vector<1x64xf32> to vector<12x64xf32>
    %259 = arith.addf %255, %258 : vector<12x64xf32>
    %260 = vector.extract_strided_slice %259 {offsets = [0, 0], sizes = [12, 32], strides = [1, 1]} : vector<12x64xf32> to vector<12x32xf32>
    %261 = vector.extract_strided_slice %259 {offsets = [0, 32], sizes = [12, 32], strides = [1, 1]} : vector<12x64xf32> to vector<12x32xf32>
    %c0_85 = arith.constant 0 : index
    %c0_86 = arith.constant 0 : index
    %c0_87 = arith.constant 0 : index
    %262 = vector.load %arg11[%c0_85, %c0_86, %c0_87] : memref<3x32x32xbf16, #tpu.memory_space<vmem>>, vector<1x32x32xbf16>
    %263 = vector.shape_cast %262 : vector<1x32x32xbf16> to vector<32x32xbf16>
    %c0_88 = arith.constant 0 : index
    %c0_89 = arith.constant 0 : index
    %c0_90 = arith.constant 0 : index
    %264 = vector.load %arg12[%c0_88, %c0_89, %c0_90] : memref<3x1x32xf32, #tpu.memory_space<vmem>>, vector<1x1x32xf32>
    %265 = vector.shape_cast %264 : vector<1x1x32xf32> to vector<1x32xf32>
    %266 = vector.extract_strided_slice %251 {offsets = [0, 0], sizes = [8, 4], strides = [1, 1]} : vector<8x32xf32> to vector<8x4xf32>
    %267 = vector.extract_strided_slice %260 {offsets = [0, 0], sizes = [12, 4], strides = [1, 1]} : vector<12x32xf32> to vector<12x4xf32>
    %268 = arith.truncf %266 : vector<8x4xf32> to vector<8x4xbf16>
    %269 = arith.truncf %267 : vector<12x4xf32> to vector<12x4xbf16>
    %cst_91 = arith.constant dense<0.000000e+00> : vector<8x12xf32>
    %270 = tpu.matmul %268, %269, %cst_91 {dimension_numbers = #tpu.dot_dimension_numbers<[1], [1], [0], [0], [0, 0, 1, 0], [], []>} : vector<8x4xbf16>, vector<12x4xbf16>, vector<8x12xf32> -> vector<8x12xf32>
    %cst_92 = arith.constant dense<0xFF800000> : vector<8xf32>
    %271 = vector.multi_reduction <maximumf>, %270, %cst_92 [1] : vector<8x12xf32> to vector<8xf32>
    %272 = vector.shape_cast %271 : vector<8xf32> to vector<8x1xf32>
    %273 = vector.broadcast %272 : vector<8x1xf32> to vector<8x12xf32>
    %274 = arith.subf %270, %273 : vector<8x12xf32>
    %275 = math.exp %274 : vector<8x12xf32>
    %cst_93 = arith.constant dense<0.000000e+00> : vector<8xf32>
    %276 = vector.multi_reduction <add>, %275, %cst_93 [1] : vector<8x12xf32> to vector<8xf32>
    %277 = vector.shape_cast %276 : vector<8xf32> to vector<8x1xf32>
    %278 = tpu.reciprocal %277 {approx = true} : vector<8x1xf32> -> vector<8x1xf32>
    %279 = vector.broadcast %278 : vector<8x1xf32> to vector<8x12xf32>
    %280 = arith.mulf %275, %279 : vector<8x12xf32>
    %281 = vector.extract_strided_slice %261 {offsets = [0, 0], sizes = [12, 4], strides = [1, 1]} : vector<12x32xf32> to vector<12x4xf32>
    %282 = arith.truncf %280 : vector<8x12xf32> to vector<8x12xbf16>
    %283 = arith.truncf %281 : vector<12x4xf32> to vector<12x4xbf16>
    %cst_94 = arith.constant dense<0.000000e+00> : vector<8x4xf32>
    %284 = tpu.matmul %282, %283, %cst_94 {dimension_numbers = #tpu.dot_dimension_numbers<[1], [0], [0], [1], [0, 0, 1, 1], [], []>} : vector<8x12xbf16>, vector<12x4xbf16>, vector<8x4xf32> -> vector<8x4xf32>
    %285 = vector.extract_strided_slice %263 {offsets = [0, 0], sizes = [4, 32], strides = [1, 1]} : vector<32x32xbf16> to vector<4x32xbf16>
    %286 = arith.truncf %284 : vector<8x4xf32> to vector<8x4xbf16>
    %cst_95 = arith.constant dense<0.000000e+00> : vector<8x32xf32>
    %287 = tpu.matmul %286, %285, %cst_95 {dimension_numbers = #tpu.dot_dimension_numbers<[1], [0], [0], [1], [0, 0, 1, 1], [], []>} : vector<8x4xbf16>, vector<4x32xbf16>, vector<8x32xf32> -> vector<8x32xf32>
    %288 = vector.extract_strided_slice %251 {offsets = [0, 4], sizes = [8, 4], strides = [1, 1]} : vector<8x32xf32> to vector<8x4xf32>
    %289 = vector.extract_strided_slice %260 {offsets = [0, 4], sizes = [12, 4], strides = [1, 1]} : vector<12x32xf32> to vector<12x4xf32>
    %290 = arith.truncf %288 : vector<8x4xf32> to vector<8x4xbf16>
    %291 = arith.truncf %289 : vector<12x4xf32> to vector<12x4xbf16>
    %cst_96 = arith.constant dense<0.000000e+00> : vector<8x12xf32>
    %292 = tpu.matmul %290, %291, %cst_96 {dimension_numbers = #tpu.dot_dimension_numbers<[1], [1], [0], [0], [0, 0, 1, 0], [], []>} : vector<8x4xbf16>, vector<12x4xbf16>, vector<8x12xf32> -> vector<8x12xf32>
    %cst_97 = arith.constant dense<0xFF800000> : vector<8xf32>
    %293 = vector.multi_reduction <maximumf>, %292, %cst_97 [1] : vector<8x12xf32> to vector<8xf32>
    %294 = vector.shape_cast %293 : vector<8xf32> to vector<8x1xf32>
    %295 = vector.broadcast %294 : vector<8x1xf32> to vector<8x12xf32>
    %296 = arith.subf %292, %295 : vector<8x12xf32>
    %297 = math.exp %296 : vector<8x12xf32>
    %cst_98 = arith.constant dense<0.000000e+00> : vector<8xf32>
    %298 = vector.multi_reduction <add>, %297, %cst_98 [1] : vector<8x12xf32> to vector<8xf32>
    %299 = vector.shape_cast %298 : vector<8xf32> to vector<8x1xf32>
    %300 = tpu.reciprocal %299 {approx = true} : vector<8x1xf32> -> vector<8x1xf32>
    %301 = vector.broadcast %300 : vector<8x1xf32> to vector<8x12xf32>
    %302 = arith.mulf %297, %301 : vector<8x12xf32>
    %303 = vector.extract_strided_slice %261 {offsets = [0, 4], sizes = [12, 4], strides = [1, 1]} : vector<12x32xf32> to vector<12x4xf32>
    %304 = arith.truncf %302 : vector<8x12xf32> to vector<8x12xbf16>
    %305 = arith.truncf %303 : vector<12x4xf32> to vector<12x4xbf16>
    %cst_99 = arith.constant dense<0.000000e+00> : vector<8x4xf32>
    %306 = tpu.matmul %304, %305, %cst_99 {dimension_numbers = #tpu.dot_dimension_numbers<[1], [0], [0], [1], [0, 0, 1, 1], [], []>} : vector<8x12xbf16>, vector<12x4xbf16>, vector<8x4xf32> -> vector<8x4xf32>
    %307 = vector.extract_strided_slice %263 {offsets = [4, 0], sizes = [4, 32], strides = [1, 1]} : vector<32x32xbf16> to vector<4x32xbf16>
    %308 = arith.truncf %306 : vector<8x4xf32> to vector<8x4xbf16>
    %cst_100 = arith.constant dense<0.000000e+00> : vector<8x32xf32>
    %309 = tpu.matmul %308, %307, %cst_100 {dimension_numbers = #tpu.dot_dimension_numbers<[1], [0], [0], [1], [0, 0, 1, 1], [], []>} : vector<8x4xbf16>, vector<4x32xbf16>, vector<8x32xf32> -> vector<8x32xf32>
    %310 = arith.addf %287, %309 : vector<8x32xf32>
    %311 = vector.extract_strided_slice %251 {offsets = [0, 8], sizes = [8, 4], strides = [1, 1]} : vector<8x32xf32> to vector<8x4xf32>
    %312 = vector.extract_strided_slice %260 {offsets = [0, 8], sizes = [12, 4], strides = [1, 1]} : vector<12x32xf32> to vector<12x4xf32>
    %313 = arith.truncf %311 : vector<8x4xf32> to vector<8x4xbf16>
    %314 = arith.truncf %312 : vector<12x4xf32> to vector<12x4xbf16>
    %cst_101 = arith.constant dense<0.000000e+00> : vector<8x12xf32>
    %315 = tpu.matmul %313, %314, %cst_101 {dimension_numbers = #tpu.dot_dimension_numbers<[1], [1], [0], [0], [0, 0, 1, 0], [], []>} : vector<8x4xbf16>, vector<12x4xbf16>, vector<8x12xf32> -> vector<8x12xf32>
    %cst_102 = arith.constant dense<0xFF800000> : vector<8xf32>
    %316 = vector.multi_reduction <maximumf>, %315, %cst_102 [1] : vector<8x12xf32> to vector<8xf32>
    %317 = vector.shape_cast %316 : vector<8xf32> to vector<8x1xf32>
    %318 = vector.broadcast %317 : vector<8x1xf32> to vector<8x12xf32>
    %319 = arith.subf %315, %318 : vector<8x12xf32>
    %320 = math.exp %319 : vector<8x12xf32>
    %cst_103 = arith.constant dense<0.000000e+00> : vector<8xf32>
    %321 = vector.multi_reduction <add>, %320, %cst_103 [1] : vector<8x12xf32> to vector<8xf32>
    %322 = vector.shape_cast %321 : vector<8xf32> to vector<8x1xf32>
    %323 = tpu.reciprocal %322 {approx = true} : vector<8x1xf32> -> vector<8x1xf32>
    %324 = vector.broadcast %323 : vector<8x1xf32> to vector<8x12xf32>
    %325 = arith.mulf %320, %324 : vector<8x12xf32>
    %326 = vector.extract_strided_slice %261 {offsets = [0, 8], sizes = [12, 4], strides = [1, 1]} : vector<12x32xf32> to vector<12x4xf32>
    %327 = arith.truncf %325 : vector<8x12xf32> to vector<8x12xbf16>
    %328 = arith.truncf %326 : vector<12x4xf32> to vector<12x4xbf16>
    %cst_104 = arith.constant dense<0.000000e+00> : vector<8x4xf32>
    %329 = tpu.matmul %327, %328, %cst_104 {dimension_numbers = #tpu.dot_dimension_numbers<[1], [0], [0], [1], [0, 0, 1, 1], [], []>} : vector<8x12xbf16>, vector<12x4xbf16>, vector<8x4xf32> -> vector<8x4xf32>
    %330 = vector.extract_strided_slice %263 {offsets = [8, 0], sizes = [4, 32], strides = [1, 1]} : vector<32x32xbf16> to vector<4x32xbf16>
    %331 = arith.truncf %329 : vector<8x4xf32> to vector<8x4xbf16>
    %cst_105 = arith.constant dense<0.000000e+00> : vector<8x32xf32>
    %332 = tpu.matmul %331, %330, %cst_105 {dimension_numbers = #tpu.dot_dimension_numbers<[1], [0], [0], [1], [0, 0, 1, 1], [], []>} : vector<8x4xbf16>, vector<4x32xbf16>, vector<8x32xf32> -> vector<8x32xf32>
    %333 = arith.addf %310, %332 : vector<8x32xf32>
    %334 = vector.extract_strided_slice %251 {offsets = [0, 12], sizes = [8, 4], strides = [1, 1]} : vector<8x32xf32> to vector<8x4xf32>
    %335 = vector.extract_strided_slice %260 {offsets = [0, 12], sizes = [12, 4], strides = [1, 1]} : vector<12x32xf32> to vector<12x4xf32>
    %336 = arith.truncf %334 : vector<8x4xf32> to vector<8x4xbf16>
    %337 = arith.truncf %335 : vector<12x4xf32> to vector<12x4xbf16>
    %cst_106 = arith.constant dense<0.000000e+00> : vector<8x12xf32>
    %338 = tpu.matmul %336, %337, %cst_106 {dimension_numbers = #tpu.dot_dimension_numbers<[1], [1], [0], [0], [0, 0, 1, 0], [], []>} : vector<8x4xbf16>, vector<12x4xbf16>, vector<8x12xf32> -> vector<8x12xf32>
    %cst_107 = arith.constant dense<0xFF800000> : vector<8xf32>
    %339 = vector.multi_reduction <maximumf>, %338, %cst_107 [1] : vector<8x12xf32> to vector<8xf32>
    %340 = vector.shape_cast %339 : vector<8xf32> to vector<8x1xf32>
    %341 = vector.broadcast %340 : vector<8x1xf32> to vector<8x12xf32>
    %342 = arith.subf %338, %341 : vector<8x12xf32>
    %343 = math.exp %342 : vector<8x12xf32>
    %cst_108 = arith.constant dense<0.000000e+00> : vector<8xf32>
    %344 = vector.multi_reduction <add>, %343, %cst_108 [1] : vector<8x12xf32> to vector<8xf32>
    %345 = vector.shape_cast %344 : vector<8xf32> to vector<8x1xf32>
    %346 = tpu.reciprocal %345 {approx = true} : vector<8x1xf32> -> vector<8x1xf32>
    %347 = vector.broadcast %346 : vector<8x1xf32> to vector<8x12xf32>
    %348 = arith.mulf %343, %347 : vector<8x12xf32>
    %349 = vector.extract_strided_slice %261 {offsets = [0, 12], sizes = [12, 4], strides = [1, 1]} : vector<12x32xf32> to vector<12x4xf32>
    %350 = arith.truncf %348 : vector<8x12xf32> to vector<8x12xbf16>
    %351 = arith.truncf %349 : vector<12x4xf32> to vector<12x4xbf16>
    %cst_109 = arith.constant dense<0.000000e+00> : vector<8x4xf32>
    %352 = tpu.matmul %350, %351, %cst_109 {dimension_numbers = #tpu.dot_dimension_numbers<[1], [0], [0], [1], [0, 0, 1, 1], [], []>} : vector<8x12xbf16>, vector<12x4xbf16>, vector<8x4xf32> -> vector<8x4xf32>
    %353 = vector.extract_strided_slice %263 {offsets = [12, 0], sizes = [4, 32], strides = [1, 1]} : vector<32x32xbf16> to vector<4x32xbf16>
    %354 = arith.truncf %352 : vector<8x4xf32> to vector<8x4xbf16>
    %cst_110 = arith.constant dense<0.000000e+00> : vector<8x32xf32>
    %355 = tpu.matmul %354, %353, %cst_110 {dimension_numbers = #tpu.dot_dimension_numbers<[1], [0], [0], [1], [0, 0, 1, 1], [], []>} : vector<8x4xbf16>, vector<4x32xbf16>, vector<8x32xf32> -> vector<8x32xf32>
    %356 = arith.addf %333, %355 : vector<8x32xf32>
    %357 = vector.extract_strided_slice %251 {offsets = [0, 16], sizes = [8, 4], strides = [1, 1]} : vector<8x32xf32> to vector<8x4xf32>
    %358 = vector.extract_strided_slice %260 {offsets = [0, 16], sizes = [12, 4], strides = [1, 1]} : vector<12x32xf32> to vector<12x4xf32>
    %359 = arith.truncf %357 : vector<8x4xf32> to vector<8x4xbf16>
    %360 = arith.truncf %358 : vector<12x4xf32> to vector<12x4xbf16>
    %cst_111 = arith.constant dense<0.000000e+00> : vector<8x12xf32>
    %361 = tpu.matmul %359, %360, %cst_111 {dimension_numbers = #tpu.dot_dimension_numbers<[1], [1], [0], [0], [0, 0, 1, 0], [], []>} : vector<8x4xbf16>, vector<12x4xbf16>, vector<8x12xf32> -> vector<8x12xf32>
    %cst_112 = arith.constant dense<0xFF800000> : vector<8xf32>
    %362 = vector.multi_reduction <maximumf>, %361, %cst_112 [1] : vector<8x12xf32> to vector<8xf32>
    %363 = vector.shape_cast %362 : vector<8xf32> to vector<8x1xf32>
    %364 = vector.broadcast %363 : vector<8x1xf32> to vector<8x12xf32>
    %365 = arith.subf %361, %364 : vector<8x12xf32>
    %366 = math.exp %365 : vector<8x12xf32>
    %cst_113 = arith.constant dense<0.000000e+00> : vector<8xf32>
    %367 = vector.multi_reduction <add>, %366, %cst_113 [1] : vector<8x12xf32> to vector<8xf32>
    %368 = vector.shape_cast %367 : vector<8xf32> to vector<8x1xf32>
    %369 = tpu.reciprocal %368 {approx = true} : vector<8x1xf32> -> vector<8x1xf32>
    %370 = vector.broadcast %369 : vector<8x1xf32> to vector<8x12xf32>
    %371 = arith.mulf %366, %370 : vector<8x12xf32>
    %372 = vector.extract_strided_slice %261 {offsets = [0, 16], sizes = [12, 4], strides = [1, 1]} : vector<12x32xf32> to vector<12x4xf32>
    %373 = arith.truncf %371 : vector<8x12xf32> to vector<8x12xbf16>
    %374 = arith.truncf %372 : vector<12x4xf32> to vector<12x4xbf16>
    %cst_114 = arith.constant dense<0.000000e+00> : vector<8x4xf32>
    %375 = tpu.matmul %373, %374, %cst_114 {dimension_numbers = #tpu.dot_dimension_numbers<[1], [0], [0], [1], [0, 0, 1, 1], [], []>} : vector<8x12xbf16>, vector<12x4xbf16>, vector<8x4xf32> -> vector<8x4xf32>
    %376 = vector.extract_strided_slice %263 {offsets = [16, 0], sizes = [4, 32], strides = [1, 1]} : vector<32x32xbf16> to vector<4x32xbf16>
    %377 = arith.truncf %375 : vector<8x4xf32> to vector<8x4xbf16>
    %cst_115 = arith.constant dense<0.000000e+00> : vector<8x32xf32>
    %378 = tpu.matmul %377, %376, %cst_115 {dimension_numbers = #tpu.dot_dimension_numbers<[1], [0], [0], [1], [0, 0, 1, 1], [], []>} : vector<8x4xbf16>, vector<4x32xbf16>, vector<8x32xf32> -> vector<8x32xf32>
    %379 = arith.addf %356, %378 : vector<8x32xf32>
    %380 = vector.extract_strided_slice %251 {offsets = [0, 20], sizes = [8, 4], strides = [1, 1]} : vector<8x32xf32> to vector<8x4xf32>
    %381 = vector.extract_strided_slice %260 {offsets = [0, 20], sizes = [12, 4], strides = [1, 1]} : vector<12x32xf32> to vector<12x4xf32>
    %382 = arith.truncf %380 : vector<8x4xf32> to vector<8x4xbf16>
    %383 = arith.truncf %381 : vector<12x4xf32> to vector<12x4xbf16>
    %cst_116 = arith.constant dense<0.000000e+00> : vector<8x12xf32>
    %384 = tpu.matmul %382, %383, %cst_116 {dimension_numbers = #tpu.dot_dimension_numbers<[1], [1], [0], [0], [0, 0, 1, 0], [], []>} : vector<8x4xbf16>, vector<12x4xbf16>, vector<8x12xf32> -> vector<8x12xf32>
    %cst_117 = arith.constant dense<0xFF800000> : vector<8xf32>
    %385 = vector.multi_reduction <maximumf>, %384, %cst_117 [1] : vector<8x12xf32> to vector<8xf32>
    %386 = vector.shape_cast %385 : vector<8xf32> to vector<8x1xf32>
    %387 = vector.broadcast %386 : vector<8x1xf32> to vector<8x12xf32>
    %388 = arith.subf %384, %387 : vector<8x12xf32>
    %389 = math.exp %388 : vector<8x12xf32>
    %cst_118 = arith.constant dense<0.000000e+00> : vector<8xf32>
    %390 = vector.multi_reduction <add>, %389, %cst_118 [1] : vector<8x12xf32> to vector<8xf32>
    %391 = vector.shape_cast %390 : vector<8xf32> to vector<8x1xf32>
    %392 = tpu.reciprocal %391 {approx = true} : vector<8x1xf32> -> vector<8x1xf32>
    %393 = vector.broadcast %392 : vector<8x1xf32> to vector<8x12xf32>
    %394 = arith.mulf %389, %393 : vector<8x12xf32>
    %395 = vector.extract_strided_slice %261 {offsets = [0, 20], sizes = [12, 4], strides = [1, 1]} : vector<12x32xf32> to vector<12x4xf32>
    %396 = arith.truncf %394 : vector<8x12xf32> to vector<8x12xbf16>
    %397 = arith.truncf %395 : vector<12x4xf32> to vector<12x4xbf16>
    %cst_119 = arith.constant dense<0.000000e+00> : vector<8x4xf32>
    %398 = tpu.matmul %396, %397, %cst_119 {dimension_numbers = #tpu.dot_dimension_numbers<[1], [0], [0], [1], [0, 0, 1, 1], [], []>} : vector<8x12xbf16>, vector<12x4xbf16>, vector<8x4xf32> -> vector<8x4xf32>
    %399 = vector.extract_strided_slice %263 {offsets = [20, 0], sizes = [4, 32], strides = [1, 1]} : vector<32x32xbf16> to vector<4x32xbf16>
    %400 = arith.truncf %398 : vector<8x4xf32> to vector<8x4xbf16>
    %cst_120 = arith.constant dense<0.000000e+00> : vector<8x32xf32>
    %401 = tpu.matmul %400, %399, %cst_120 {dimension_numbers = #tpu.dot_dimension_numbers<[1], [0], [0], [1], [0, 0, 1, 1], [], []>} : vector<8x4xbf16>, vector<4x32xbf16>, vector<8x32xf32> -> vector<8x32xf32>
    %402 = arith.addf %379, %401 : vector<8x32xf32>
    %403 = vector.extract_strided_slice %251 {offsets = [0, 24], sizes = [8, 4], strides = [1, 1]} : vector<8x32xf32> to vector<8x4xf32>
    %404 = vector.extract_strided_slice %260 {offsets = [0, 24], sizes = [12, 4], strides = [1, 1]} : vector<12x32xf32> to vector<12x4xf32>
    %405 = arith.truncf %403 : vector<8x4xf32> to vector<8x4xbf16>
    %406 = arith.truncf %404 : vector<12x4xf32> to vector<12x4xbf16>
    %cst_121 = arith.constant dense<0.000000e+00> : vector<8x12xf32>
    %407 = tpu.matmul %405, %406, %cst_121 {dimension_numbers = #tpu.dot_dimension_numbers<[1], [1], [0], [0], [0, 0, 1, 0], [], []>} : vector<8x4xbf16>, vector<12x4xbf16>, vector<8x12xf32> -> vector<8x12xf32>
    %cst_122 = arith.constant dense<0xFF800000> : vector<8xf32>
    %408 = vector.multi_reduction <maximumf>, %407, %cst_122 [1] : vector<8x12xf32> to vector<8xf32>
    %409 = vector.shape_cast %408 : vector<8xf32> to vector<8x1xf32>
    %410 = vector.broadcast %409 : vector<8x1xf32> to vector<8x12xf32>
    %411 = arith.subf %407, %410 : vector<8x12xf32>
    %412 = math.exp %411 : vector<8x12xf32>
    %cst_123 = arith.constant dense<0.000000e+00> : vector<8xf32>
    %413 = vector.multi_reduction <add>, %412, %cst_123 [1] : vector<8x12xf32> to vector<8xf32>
    %414 = vector.shape_cast %413 : vector<8xf32> to vector<8x1xf32>
    %415 = tpu.reciprocal %414 {approx = true} : vector<8x1xf32> -> vector<8x1xf32>
    %416 = vector.broadcast %415 : vector<8x1xf32> to vector<8x12xf32>
    %417 = arith.mulf %412, %416 : vector<8x12xf32>
    %418 = vector.extract_strided_slice %261 {offsets = [0, 24], sizes = [12, 4], strides = [1, 1]} : vector<12x32xf32> to vector<12x4xf32>
    %419 = arith.truncf %417 : vector<8x12xf32> to vector<8x12xbf16>
    %420 = arith.truncf %418 : vector<12x4xf32> to vector<12x4xbf16>
    %cst_124 = arith.constant dense<0.000000e+00> : vector<8x4xf32>
    %421 = tpu.matmul %419, %420, %cst_124 {dimension_numbers = #tpu.dot_dimension_numbers<[1], [0], [0], [1], [0, 0, 1, 1], [], []>} : vector<8x12xbf16>, vector<12x4xbf16>, vector<8x4xf32> -> vector<8x4xf32>
    %422 = vector.extract_strided_slice %263 {offsets = [24, 0], sizes = [4, 32], strides = [1, 1]} : vector<32x32xbf16> to vector<4x32xbf16>
    %423 = arith.truncf %421 : vector<8x4xf32> to vector<8x4xbf16>
    %cst_125 = arith.constant dense<0.000000e+00> : vector<8x32xf32>
    %424 = tpu.matmul %423, %422, %cst_125 {dimension_numbers = #tpu.dot_dimension_numbers<[1], [0], [0], [1], [0, 0, 1, 1], [], []>} : vector<8x4xbf16>, vector<4x32xbf16>, vector<8x32xf32> -> vector<8x32xf32>
    %425 = arith.addf %402, %424 : vector<8x32xf32>
    %426 = vector.extract_strided_slice %251 {offsets = [0, 28], sizes = [8, 4], strides = [1, 1]} : vector<8x32xf32> to vector<8x4xf32>
    %427 = vector.extract_strided_slice %260 {offsets = [0, 28], sizes = [12, 4], strides = [1, 1]} : vector<12x32xf32> to vector<12x4xf32>
    %428 = arith.truncf %426 : vector<8x4xf32> to vector<8x4xbf16>
    %429 = arith.truncf %427 : vector<12x4xf32> to vector<12x4xbf16>
    %cst_126 = arith.constant dense<0.000000e+00> : vector<8x12xf32>
    %430 = tpu.matmul %428, %429, %cst_126 {dimension_numbers = #tpu.dot_dimension_numbers<[1], [1], [0], [0], [0, 0, 1, 0], [], []>} : vector<8x4xbf16>, vector<12x4xbf16>, vector<8x12xf32> -> vector<8x12xf32>
    %cst_127 = arith.constant dense<0xFF800000> : vector<8xf32>
    %431 = vector.multi_reduction <maximumf>, %430, %cst_127 [1] : vector<8x12xf32> to vector<8xf32>
    %432 = vector.shape_cast %431 : vector<8xf32> to vector<8x1xf32>
    %433 = vector.broadcast %432 : vector<8x1xf32> to vector<8x12xf32>
    %434 = arith.subf %430, %433 : vector<8x12xf32>
    %435 = math.exp %434 : vector<8x12xf32>
    %cst_128 = arith.constant dense<0.000000e+00> : vector<8xf32>
    %436 = vector.multi_reduction <add>, %435, %cst_128 [1] : vector<8x12xf32> to vector<8xf32>
    %437 = vector.shape_cast %436 : vector<8xf32> to vector<8x1xf32>
    %438 = tpu.reciprocal %437 {approx = true} : vector<8x1xf32> -> vector<8x1xf32>
    %439 = vector.broadcast %438 : vector<8x1xf32> to vector<8x12xf32>
    %440 = arith.mulf %435, %439 : vector<8x12xf32>
    %441 = vector.extract_strided_slice %261 {offsets = [0, 28], sizes = [12, 4], strides = [1, 1]} : vector<12x32xf32> to vector<12x4xf32>
    %442 = arith.truncf %440 : vector<8x12xf32> to vector<8x12xbf16>
    %443 = arith.truncf %441 : vector<12x4xf32> to vector<12x4xbf16>
    %cst_129 = arith.constant dense<0.000000e+00> : vector<8x4xf32>
    %444 = tpu.matmul %442, %443, %cst_129 {dimension_numbers = #tpu.dot_dimension_numbers<[1], [0], [0], [1], [0, 0, 1, 1], [], []>} : vector<8x12xbf16>, vector<12x4xbf16>, vector<8x4xf32> -> vector<8x4xf32>
    %445 = vector.extract_strided_slice %263 {offsets = [28, 0], sizes = [4, 32], strides = [1, 1]} : vector<32x32xbf16> to vector<4x32xbf16>
    %446 = arith.truncf %444 : vector<8x4xf32> to vector<8x4xbf16>
    %cst_130 = arith.constant dense<0.000000e+00> : vector<8x32xf32>
    %447 = tpu.matmul %446, %445, %cst_130 {dimension_numbers = #tpu.dot_dimension_numbers<[1], [0], [0], [1], [0, 0, 1, 1], [], []>} : vector<8x4xbf16>, vector<4x32xbf16>, vector<8x32xf32> -> vector<8x32xf32>
    %448 = arith.addf %425, %447 : vector<8x32xf32>
    %449 = vector.broadcast %265 : vector<1x32xf32> to vector<8x32xf32>
    %450 = arith.addf %448, %449 : vector<8x32xf32>
    %451 = arith.addf %243, %450 : vector<8x32xf32>
    %c0_131 = arith.constant 0 : index
    %c1 = arith.constant 1 : index
    %c0_132 = arith.constant 0 : index
    %c0_133 = arith.constant 0 : index
    %452 = vector.load %arg17[%c0_131, %c1, %c0_132, %c0_133] : memref<3x3x1x32xf32, #tpu.memory_space<vmem>>, vector<1x1x1x32xf32>
    %453 = vector.shape_cast %452 : vector<1x1x1x32xf32> to vector<1x32xf32>
    %c0_134 = arith.constant 0 : index
    %c1_135 = arith.constant 1 : index
    %c0_136 = arith.constant 0 : index
    %c0_137 = arith.constant 0 : index
    %454 = vector.load %arg18[%c0_134, %c1_135, %c0_136, %c0_137] : memref<3x3x1x32xf32, #tpu.memory_space<vmem>>, vector<1x1x1x32xf32>
    %455 = vector.shape_cast %454 : vector<1x1x1x32xf32> to vector<1x32xf32>
    %cst_138 = arith.constant dense<0.000000e+00> : vector<8xf32>
    %456 = vector.multi_reduction <add>, %451, %cst_138 [1] : vector<8x32xf32> to vector<8xf32>
    %457 = vector.shape_cast %456 : vector<8xf32> to vector<8x1xf32>
    %cst_139 = arith.constant 3.200000e+01 : f32
    %458 = vector.broadcast %cst_139 : f32 to vector<8x1xf32>
    %459 = arith.divf %457, %458 : vector<8x1xf32>
    %460 = vector.broadcast %459 : vector<8x1xf32> to vector<8x32xf32>
    %461 = arith.subf %451, %460 : vector<8x32xf32>
    %462 = arith.mulf %461, %461 : vector<8x32xf32>
    %cst_140 = arith.constant dense<0.000000e+00> : vector<8xf32>
    %463 = vector.multi_reduction <add>, %462, %cst_140 [1] : vector<8x32xf32> to vector<8xf32>
    %464 = vector.shape_cast %463 : vector<8xf32> to vector<8x1xf32>
    %cst_141 = arith.constant 3.200000e+01 : f32
    %465 = vector.broadcast %cst_141 : f32 to vector<8x1xf32>
    %466 = arith.divf %464, %465 : vector<8x1xf32>
    %cst_142 = arith.constant 9.99999974E-6 : f32
    %467 = vector.broadcast %cst_142 : f32 to vector<8x1xf32>
    %468 = arith.addf %466, %467 : vector<8x1xf32>
    %469 = math.rsqrt %468 : vector<8x1xf32>
    %470 = vector.broadcast %469 : vector<8x1xf32> to vector<8x32xf32>
    %471 = arith.mulf %461, %470 : vector<8x32xf32>
    %472 = vector.broadcast %453 : vector<1x32xf32> to vector<8x32xf32>
    %473 = arith.mulf %471, %472 : vector<8x32xf32>
    %474 = vector.broadcast %455 : vector<1x32xf32> to vector<8x32xf32>
    %475 = arith.addf %473, %474 : vector<8x32xf32>
    %c0_143 = arith.constant 0 : index
    %c0_144 = arith.constant 0 : index
    %c0_145 = arith.constant 0 : index
    %476 = vector.load %arg13[%c0_143, %c0_144, %c0_145] : memref<3x32x64xbf16, #tpu.memory_space<vmem>>, vector<1x32x64xbf16>
    %477 = vector.shape_cast %476 : vector<1x32x64xbf16> to vector<32x64xbf16>
    %478 = arith.truncf %475 : vector<8x32xf32> to vector<8x32xbf16>
    %cst_146 = arith.constant dense<0.000000e+00> : vector<8x64xf32>
    %479 = tpu.matmul %478, %477, %cst_146 {dimension_numbers = #tpu.dot_dimension_numbers<[1], [0], [0], [1], [0, 0, 1, 1], [], []>} : vector<8x32xbf16>, vector<32x64xbf16>, vector<8x64xf32> -> vector<8x64xf32>
    %c0_147 = arith.constant 0 : index
    %c0_148 = arith.constant 0 : index
    %c0_149 = arith.constant 0 : index
    %480 = vector.load %arg14[%c0_147, %c0_148, %c0_149] : memref<3x1x64xf32, #tpu.memory_space<vmem>>, vector<1x1x64xf32>
    %481 = vector.shape_cast %480 : vector<1x1x64xf32> to vector<1x64xf32>
    %482 = vector.broadcast %481 : vector<1x64xf32> to vector<8x64xf32>
    %483 = arith.addf %479, %482 : vector<8x64xf32>
    %cst_150 = arith.constant 5.000000e-01 : f32
    %484 = vector.broadcast %cst_150 : f32 to vector<8x64xf32>
    %485 = arith.mulf %484, %483 : vector<8x64xf32>
    %cst_151 = arith.constant 4.471500e-02 : f32
    %486 = vector.broadcast %cst_151 : f32 to vector<8x64xf32>
    %487 = arith.mulf %486, %483 : vector<8x64xf32>
    %488 = arith.mulf %487, %483 : vector<8x64xf32>
    %489 = arith.mulf %488, %483 : vector<8x64xf32>
    %490 = arith.addf %483, %489 : vector<8x64xf32>
    %cst_152 = arith.constant 0.797884583 : f32
    %491 = vector.broadcast %cst_152 : f32 to vector<8x64xf32>
    %492 = arith.mulf %491, %490 : vector<8x64xf32>
    %493 = math.tanh %492 : vector<8x64xf32>
    %cst_153 = arith.constant 1.000000e+00 : f32
    %494 = vector.broadcast %cst_153 : f32 to vector<8x64xf32>
    %495 = arith.addf %494, %493 : vector<8x64xf32>
    %496 = arith.mulf %485, %495 : vector<8x64xf32>
    %c0_154 = arith.constant 0 : index
    %c0_155 = arith.constant 0 : index
    %c0_156 = arith.constant 0 : index
    %497 = vector.load %arg15[%c0_154, %c0_155, %c0_156] : memref<3x64x32xbf16, #tpu.memory_space<vmem>>, vector<1x64x32xbf16>
    %498 = vector.shape_cast %497 : vector<1x64x32xbf16> to vector<64x32xbf16>
    %499 = arith.truncf %496 : vector<8x64xf32> to vector<8x64xbf16>
    %cst_157 = arith.constant dense<0.000000e+00> : vector<8x32xf32>
    %500 = tpu.matmul %499, %498, %cst_157 {dimension_numbers = #tpu.dot_dimension_numbers<[1], [0], [0], [1], [0, 0, 1, 1], [], []>} : vector<8x64xbf16>, vector<64x32xbf16>, vector<8x32xf32> -> vector<8x32xf32>
    %c0_158 = arith.constant 0 : index
    %c0_159 = arith.constant 0 : index
    %c0_160 = arith.constant 0 : index
    %501 = vector.load %arg16[%c0_158, %c0_159, %c0_160] : memref<3x1x32xf32, #tpu.memory_space<vmem>>, vector<1x1x32xf32>
    %502 = vector.shape_cast %501 : vector<1x1x32xf32> to vector<1x32xf32>
    %503 = vector.broadcast %502 : vector<1x32xf32> to vector<8x32xf32>
    %504 = arith.addf %500, %503 : vector<8x32xf32>
    %505 = arith.addf %475, %504 : vector<8x32xf32>
    %c0_161 = arith.constant 0 : index
    %c2 = arith.constant 2 : index
    %c0_162 = arith.constant 0 : index
    %c0_163 = arith.constant 0 : index
    %506 = vector.load %arg17[%c0_161, %c2, %c0_162, %c0_163] : memref<3x3x1x32xf32, #tpu.memory_space<vmem>>, vector<1x1x1x32xf32>
    %507 = vector.shape_cast %506 : vector<1x1x1x32xf32> to vector<1x32xf32>
    %c0_164 = arith.constant 0 : index
    %c2_165 = arith.constant 2 : index
    %c0_166 = arith.constant 0 : index
    %c0_167 = arith.constant 0 : index
    %508 = vector.load %arg18[%c0_164, %c2_165, %c0_166, %c0_167] : memref<3x3x1x32xf32, #tpu.memory_space<vmem>>, vector<1x1x1x32xf32>
    %509 = vector.shape_cast %508 : vector<1x1x1x32xf32> to vector<1x32xf32>
    %cst_168 = arith.constant dense<0.000000e+00> : vector<8xf32>
    %510 = vector.multi_reduction <add>, %505, %cst_168 [1] : vector<8x32xf32> to vector<8xf32>
    %511 = vector.shape_cast %510 : vector<8xf32> to vector<8x1xf32>
    %cst_169 = arith.constant 3.200000e+01 : f32
    %512 = vector.broadcast %cst_169 : f32 to vector<8x1xf32>
    %513 = arith.divf %511, %512 : vector<8x1xf32>
    %514 = vector.broadcast %513 : vector<8x1xf32> to vector<8x32xf32>
    %515 = arith.subf %505, %514 : vector<8x32xf32>
    %516 = arith.mulf %515, %515 : vector<8x32xf32>
    %cst_170 = arith.constant dense<0.000000e+00> : vector<8xf32>
    %517 = vector.multi_reduction <add>, %516, %cst_170 [1] : vector<8x32xf32> to vector<8xf32>
    %518 = vector.shape_cast %517 : vector<8xf32> to vector<8x1xf32>
    %cst_171 = arith.constant 3.200000e+01 : f32
    %519 = vector.broadcast %cst_171 : f32 to vector<8x1xf32>
    %520 = arith.divf %518, %519 : vector<8x1xf32>
    %cst_172 = arith.constant 9.99999974E-6 : f32
    %521 = vector.broadcast %cst_172 : f32 to vector<8x1xf32>
    %522 = arith.addf %520, %521 : vector<8x1xf32>
    %523 = math.rsqrt %522 : vector<8x1xf32>
    %524 = vector.broadcast %523 : vector<8x1xf32> to vector<8x32xf32>
    %525 = arith.mulf %515, %524 : vector<8x32xf32>
    %526 = vector.broadcast %507 : vector<1x32xf32> to vector<8x32xf32>
    %527 = arith.mulf %525, %526 : vector<8x32xf32>
    %528 = vector.broadcast %509 : vector<1x32xf32> to vector<8x32xf32>
    %529 = arith.addf %527, %528 : vector<8x32xf32>
    %c1_173 = arith.constant 1 : index
    %c0_174 = arith.constant 0 : index
    %c0_175 = arith.constant 0 : index
    %530 = vector.load %arg3[%c1_173, %c0_174, %c0_175] : memref<3x32x96xbf16, #tpu.memory_space<vmem>>, vector<1x32x96xbf16>
    %531 = vector.shape_cast %530 : vector<1x32x96xbf16> to vector<32x96xbf16>
    %532 = arith.truncf %529 : vector<8x32xf32> to vector<8x32xbf16>
    %cst_176 = arith.constant dense<0.000000e+00> : vector<8x96xf32>
    %533 = tpu.matmul %532, %531, %cst_176 {dimension_numbers = #tpu.dot_dimension_numbers<[1], [0], [0], [1], [0, 0, 1, 1], [], []>} : vector<8x32xbf16>, vector<32x96xbf16>, vector<8x96xf32> -> vector<8x96xf32>
    %c1_177 = arith.constant 1 : index
    %c0_178 = arith.constant 0 : index
    %c0_179 = arith.constant 0 : index
    %534 = vector.load %arg4[%c1_177, %c0_178, %c0_179] : memref<3x1x96xf32, #tpu.memory_space<vmem>>, vector<1x1x96xf32>
    %535 = vector.shape_cast %534 : vector<1x1x96xf32> to vector<1x96xf32>
    %536 = vector.broadcast %535 : vector<1x96xf32> to vector<8x96xf32>
    %537 = arith.addf %533, %536 : vector<8x96xf32>
    %538 = vector.extract_strided_slice %537 {offsets = [0, 0], sizes = [8, 32], strides = [1, 1]} : vector<8x96xf32> to vector<8x32xf32>
    %539 = vector.extract_strided_slice %537 {offsets = [0, 32], sizes = [8, 32], strides = [1, 1]} : vector<8x96xf32> to vector<8x32xf32>
    %540 = vector.extract_strided_slice %537 {offsets = [0, 64], sizes = [8, 32], strides = [1, 1]} : vector<8x96xf32> to vector<8x32xf32>
    %c1_180 = arith.constant 1 : index
    %c0_181 = arith.constant 0 : index
    %c0_182 = arith.constant 0 : index
    %541 = vector.load %arg5[%c1_180, %c0_181, %c0_182] : memref<3x32x32xbf16, #tpu.memory_space<vmem>>, vector<1x32x32xbf16>
    %542 = vector.shape_cast %541 : vector<1x32x32xbf16> to vector<32x32xbf16>
    %c1_183 = arith.constant 1 : index
    %c0_184 = arith.constant 0 : index
    %c0_185 = arith.constant 0 : index
    %543 = vector.load %arg6[%c1_183, %c0_184, %c0_185] : memref<3x1x32xf32, #tpu.memory_space<vmem>>, vector<1x1x32xf32>
    %544 = vector.shape_cast %543 : vector<1x1x32xf32> to vector<1x32xf32>
    %545 = vector.extract_strided_slice %538 {offsets = [0, 0], sizes = [8, 4], strides = [1, 1]} : vector<8x32xf32> to vector<8x4xf32>
    %546 = vector.extract_strided_slice %539 {offsets = [0, 0], sizes = [8, 4], strides = [1, 1]} : vector<8x32xf32> to vector<8x4xf32>
    %547 = arith.truncf %545 : vector<8x4xf32> to vector<8x4xbf16>
    %548 = arith.truncf %546 : vector<8x4xf32> to vector<8x4xbf16>
    %cst_186 = arith.constant dense<0.000000e+00> : vector<8x8xf32>
    %549 = tpu.matmul %547, %548, %cst_186 {dimension_numbers = #tpu.dot_dimension_numbers<[1], [1], [0], [0], [0, 0, 1, 0], [], []>} : vector<8x4xbf16>, vector<8x4xbf16>, vector<8x8xf32> -> vector<8x8xf32>
    %550 = arith.addf %549, %10 : vector<8x8xf32>
    %cst_187 = arith.constant dense<0xFF800000> : vector<8xf32>
    %551 = vector.multi_reduction <maximumf>, %550, %cst_187 [1] : vector<8x8xf32> to vector<8xf32>
    %552 = vector.shape_cast %551 : vector<8xf32> to vector<8x1xf32>
    %553 = vector.broadcast %552 : vector<8x1xf32> to vector<8x8xf32>
    %554 = arith.subf %550, %553 : vector<8x8xf32>
    %555 = math.exp %554 : vector<8x8xf32>
    %cst_188 = arith.constant dense<0.000000e+00> : vector<8xf32>
    %556 = vector.multi_reduction <add>, %555, %cst_188 [1] : vector<8x8xf32> to vector<8xf32>
    %557 = vector.shape_cast %556 : vector<8xf32> to vector<8x1xf32>
    %558 = tpu.reciprocal %557 {approx = true} : vector<8x1xf32> -> vector<8x1xf32>
    %559 = vector.broadcast %558 : vector<8x1xf32> to vector<8x8xf32>
    %560 = arith.mulf %555, %559 : vector<8x8xf32>
    %561 = vector.extract_strided_slice %540 {offsets = [0, 0], sizes = [8, 4], strides = [1, 1]} : vector<8x32xf32> to vector<8x4xf32>
    %562 = arith.truncf %560 : vector<8x8xf32> to vector<8x8xbf16>
    %563 = arith.truncf %561 : vector<8x4xf32> to vector<8x4xbf16>
    %cst_189 = arith.constant dense<0.000000e+00> : vector<8x4xf32>
    %564 = tpu.matmul %562, %563, %cst_189 {dimension_numbers = #tpu.dot_dimension_numbers<[1], [0], [0], [1], [0, 0, 1, 1], [], []>} : vector<8x8xbf16>, vector<8x4xbf16>, vector<8x4xf32> -> vector<8x4xf32>
    %565 = vector.extract_strided_slice %542 {offsets = [0, 0], sizes = [4, 32], strides = [1, 1]} : vector<32x32xbf16> to vector<4x32xbf16>
    %566 = arith.truncf %564 : vector<8x4xf32> to vector<8x4xbf16>
    %cst_190 = arith.constant dense<0.000000e+00> : vector<8x32xf32>
    %567 = tpu.matmul %566, %565, %cst_190 {dimension_numbers = #tpu.dot_dimension_numbers<[1], [0], [0], [1], [0, 0, 1, 1], [], []>} : vector<8x4xbf16>, vector<4x32xbf16>, vector<8x32xf32> -> vector<8x32xf32>
    %568 = vector.extract_strided_slice %538 {offsets = [0, 4], sizes = [8, 4], strides = [1, 1]} : vector<8x32xf32> to vector<8x4xf32>
    %569 = vector.extract_strided_slice %539 {offsets = [0, 4], sizes = [8, 4], strides = [1, 1]} : vector<8x32xf32> to vector<8x4xf32>
    %570 = arith.truncf %568 : vector<8x4xf32> to vector<8x4xbf16>
    %571 = arith.truncf %569 : vector<8x4xf32> to vector<8x4xbf16>
    %cst_191 = arith.constant dense<0.000000e+00> : vector<8x8xf32>
    %572 = tpu.matmul %570, %571, %cst_191 {dimension_numbers = #tpu.dot_dimension_numbers<[1], [1], [0], [0], [0, 0, 1, 0], [], []>} : vector<8x4xbf16>, vector<8x4xbf16>, vector<8x8xf32> -> vector<8x8xf32>
    %573 = arith.addf %572, %10 : vector<8x8xf32>
    %cst_192 = arith.constant dense<0xFF800000> : vector<8xf32>
    %574 = vector.multi_reduction <maximumf>, %573, %cst_192 [1] : vector<8x8xf32> to vector<8xf32>
    %575 = vector.shape_cast %574 : vector<8xf32> to vector<8x1xf32>
    %576 = vector.broadcast %575 : vector<8x1xf32> to vector<8x8xf32>
    %577 = arith.subf %573, %576 : vector<8x8xf32>
    %578 = math.exp %577 : vector<8x8xf32>
    %cst_193 = arith.constant dense<0.000000e+00> : vector<8xf32>
    %579 = vector.multi_reduction <add>, %578, %cst_193 [1] : vector<8x8xf32> to vector<8xf32>
    %580 = vector.shape_cast %579 : vector<8xf32> to vector<8x1xf32>
    %581 = tpu.reciprocal %580 {approx = true} : vector<8x1xf32> -> vector<8x1xf32>
    %582 = vector.broadcast %581 : vector<8x1xf32> to vector<8x8xf32>
    %583 = arith.mulf %578, %582 : vector<8x8xf32>
    %584 = vector.extract_strided_slice %540 {offsets = [0, 4], sizes = [8, 4], strides = [1, 1]} : vector<8x32xf32> to vector<8x4xf32>
    %585 = arith.truncf %583 : vector<8x8xf32> to vector<8x8xbf16>
    %586 = arith.truncf %584 : vector<8x4xf32> to vector<8x4xbf16>
    %cst_194 = arith.constant dense<0.000000e+00> : vector<8x4xf32>
    %587 = tpu.matmul %585, %586, %cst_194 {dimension_numbers = #tpu.dot_dimension_numbers<[1], [0], [0], [1], [0, 0, 1, 1], [], []>} : vector<8x8xbf16>, vector<8x4xbf16>, vector<8x4xf32> -> vector<8x4xf32>
    %588 = vector.extract_strided_slice %542 {offsets = [4, 0], sizes = [4, 32], strides = [1, 1]} : vector<32x32xbf16> to vector<4x32xbf16>
    %589 = arith.truncf %587 : vector<8x4xf32> to vector<8x4xbf16>
    %cst_195 = arith.constant dense<0.000000e+00> : vector<8x32xf32>
    %590 = tpu.matmul %589, %588, %cst_195 {dimension_numbers = #tpu.dot_dimension_numbers<[1], [0], [0], [1], [0, 0, 1, 1], [], []>} : vector<8x4xbf16>, vector<4x32xbf16>, vector<8x32xf32> -> vector<8x32xf32>
    %591 = arith.addf %567, %590 : vector<8x32xf32>
    %592 = vector.extract_strided_slice %538 {offsets = [0, 8], sizes = [8, 4], strides = [1, 1]} : vector<8x32xf32> to vector<8x4xf32>
    %593 = vector.extract_strided_slice %539 {offsets = [0, 8], sizes = [8, 4], strides = [1, 1]} : vector<8x32xf32> to vector<8x4xf32>
    %594 = arith.truncf %592 : vector<8x4xf32> to vector<8x4xbf16>
    %595 = arith.truncf %593 : vector<8x4xf32> to vector<8x4xbf16>
    %cst_196 = arith.constant dense<0.000000e+00> : vector<8x8xf32>
    %596 = tpu.matmul %594, %595, %cst_196 {dimension_numbers = #tpu.dot_dimension_numbers<[1], [1], [0], [0], [0, 0, 1, 0], [], []>} : vector<8x4xbf16>, vector<8x4xbf16>, vector<8x8xf32> -> vector<8x8xf32>
    %597 = arith.addf %596, %10 : vector<8x8xf32>
    %cst_197 = arith.constant dense<0xFF800000> : vector<8xf32>
    %598 = vector.multi_reduction <maximumf>, %597, %cst_197 [1] : vector<8x8xf32> to vector<8xf32>
    %599 = vector.shape_cast %598 : vector<8xf32> to vector<8x1xf32>
    %600 = vector.broadcast %599 : vector<8x1xf32> to vector<8x8xf32>
    %601 = arith.subf %597, %600 : vector<8x8xf32>
    %602 = math.exp %601 : vector<8x8xf32>
    %cst_198 = arith.constant dense<0.000000e+00> : vector<8xf32>
    %603 = vector.multi_reduction <add>, %602, %cst_198 [1] : vector<8x8xf32> to vector<8xf32>
    %604 = vector.shape_cast %603 : vector<8xf32> to vector<8x1xf32>
    %605 = tpu.reciprocal %604 {approx = true} : vector<8x1xf32> -> vector<8x1xf32>
    %606 = vector.broadcast %605 : vector<8x1xf32> to vector<8x8xf32>
    %607 = arith.mulf %602, %606 : vector<8x8xf32>
    %608 = vector.extract_strided_slice %540 {offsets = [0, 8], sizes = [8, 4], strides = [1, 1]} : vector<8x32xf32> to vector<8x4xf32>
    %609 = arith.truncf %607 : vector<8x8xf32> to vector<8x8xbf16>
    %610 = arith.truncf %608 : vector<8x4xf32> to vector<8x4xbf16>
    %cst_199 = arith.constant dense<0.000000e+00> : vector<8x4xf32>
    %611 = tpu.matmul %609, %610, %cst_199 {dimension_numbers = #tpu.dot_dimension_numbers<[1], [0], [0], [1], [0, 0, 1, 1], [], []>} : vector<8x8xbf16>, vector<8x4xbf16>, vector<8x4xf32> -> vector<8x4xf32>
    %612 = vector.extract_strided_slice %542 {offsets = [8, 0], sizes = [4, 32], strides = [1, 1]} : vector<32x32xbf16> to vector<4x32xbf16>
    %613 = arith.truncf %611 : vector<8x4xf32> to vector<8x4xbf16>
    %cst_200 = arith.constant dense<0.000000e+00> : vector<8x32xf32>
    %614 = tpu.matmul %613, %612, %cst_200 {dimension_numbers = #tpu.dot_dimension_numbers<[1], [0], [0], [1], [0, 0, 1, 1], [], []>} : vector<8x4xbf16>, vector<4x32xbf16>, vector<8x32xf32> -> vector<8x32xf32>
    %615 = arith.addf %591, %614 : vector<8x32xf32>
    %616 = vector.extract_strided_slice %538 {offsets = [0, 12], sizes = [8, 4], strides = [1, 1]} : vector<8x32xf32> to vector<8x4xf32>
    %617 = vector.extract_strided_slice %539 {offsets = [0, 12], sizes = [8, 4], strides = [1, 1]} : vector<8x32xf32> to vector<8x4xf32>
    %618 = arith.truncf %616 : vector<8x4xf32> to vector<8x4xbf16>
    %619 = arith.truncf %617 : vector<8x4xf32> to vector<8x4xbf16>
    %cst_201 = arith.constant dense<0.000000e+00> : vector<8x8xf32>
    %620 = tpu.matmul %618, %619, %cst_201 {dimension_numbers = #tpu.dot_dimension_numbers<[1], [1], [0], [0], [0, 0, 1, 0], [], []>} : vector<8x4xbf16>, vector<8x4xbf16>, vector<8x8xf32> -> vector<8x8xf32>
    %621 = arith.addf %620, %10 : vector<8x8xf32>
    %cst_202 = arith.constant dense<0xFF800000> : vector<8xf32>
    %622 = vector.multi_reduction <maximumf>, %621, %cst_202 [1] : vector<8x8xf32> to vector<8xf32>
    %623 = vector.shape_cast %622 : vector<8xf32> to vector<8x1xf32>
    %624 = vector.broadcast %623 : vector<8x1xf32> to vector<8x8xf32>
    %625 = arith.subf %621, %624 : vector<8x8xf32>
    %626 = math.exp %625 : vector<8x8xf32>
    %cst_203 = arith.constant dense<0.000000e+00> : vector<8xf32>
    %627 = vector.multi_reduction <add>, %626, %cst_203 [1] : vector<8x8xf32> to vector<8xf32>
    %628 = vector.shape_cast %627 : vector<8xf32> to vector<8x1xf32>
    %629 = tpu.reciprocal %628 {approx = true} : vector<8x1xf32> -> vector<8x1xf32>
    %630 = vector.broadcast %629 : vector<8x1xf32> to vector<8x8xf32>
    %631 = arith.mulf %626, %630 : vector<8x8xf32>
    %632 = vector.extract_strided_slice %540 {offsets = [0, 12], sizes = [8, 4], strides = [1, 1]} : vector<8x32xf32> to vector<8x4xf32>
    %633 = arith.truncf %631 : vector<8x8xf32> to vector<8x8xbf16>
    %634 = arith.truncf %632 : vector<8x4xf32> to vector<8x4xbf16>
    %cst_204 = arith.constant dense<0.000000e+00> : vector<8x4xf32>
    %635 = tpu.matmul %633, %634, %cst_204 {dimension_numbers = #tpu.dot_dimension_numbers<[1], [0], [0], [1], [0, 0, 1, 1], [], []>} : vector<8x8xbf16>, vector<8x4xbf16>, vector<8x4xf32> -> vector<8x4xf32>
    %636 = vector.extract_strided_slice %542 {offsets = [12, 0], sizes = [4, 32], strides = [1, 1]} : vector<32x32xbf16> to vector<4x32xbf16>
    %637 = arith.truncf %635 : vector<8x4xf32> to vector<8x4xbf16>
    %cst_205 = arith.constant dense<0.000000e+00> : vector<8x32xf32>
    %638 = tpu.matmul %637, %636, %cst_205 {dimension_numbers = #tpu.dot_dimension_numbers<[1], [0], [0], [1], [0, 0, 1, 1], [], []>} : vector<8x4xbf16>, vector<4x32xbf16>, vector<8x32xf32> -> vector<8x32xf32>
    %639 = arith.addf %615, %638 : vector<8x32xf32>
    %640 = vector.extract_strided_slice %538 {offsets = [0, 16], sizes = [8, 4], strides = [1, 1]} : vector<8x32xf32> to vector<8x4xf32>
    %641 = vector.extract_strided_slice %539 {offsets = [0, 16], sizes = [8, 4], strides = [1, 1]} : vector<8x32xf32> to vector<8x4xf32>
    %642 = arith.truncf %640 : vector<8x4xf32> to vector<8x4xbf16>
    %643 = arith.truncf %641 : vector<8x4xf32> to vector<8x4xbf16>
    %cst_206 = arith.constant dense<0.000000e+00> : vector<8x8xf32>
    %644 = tpu.matmul %642, %643, %cst_206 {dimension_numbers = #tpu.dot_dimension_numbers<[1], [1], [0], [0], [0, 0, 1, 0], [], []>} : vector<8x4xbf16>, vector<8x4xbf16>, vector<8x8xf32> -> vector<8x8xf32>
    %645 = arith.addf %644, %10 : vector<8x8xf32>
    %cst_207 = arith.constant dense<0xFF800000> : vector<8xf32>
    %646 = vector.multi_reduction <maximumf>, %645, %cst_207 [1] : vector<8x8xf32> to vector<8xf32>
    %647 = vector.shape_cast %646 : vector<8xf32> to vector<8x1xf32>
    %648 = vector.broadcast %647 : vector<8x1xf32> to vector<8x8xf32>
    %649 = arith.subf %645, %648 : vector<8x8xf32>
    %650 = math.exp %649 : vector<8x8xf32>
    %cst_208 = arith.constant dense<0.000000e+00> : vector<8xf32>
    %651 = vector.multi_reduction <add>, %650, %cst_208 [1] : vector<8x8xf32> to vector<8xf32>
    %652 = vector.shape_cast %651 : vector<8xf32> to vector<8x1xf32>
    %653 = tpu.reciprocal %652 {approx = true} : vector<8x1xf32> -> vector<8x1xf32>
    %654 = vector.broadcast %653 : vector<8x1xf32> to vector<8x8xf32>
    %655 = arith.mulf %650, %654 : vector<8x8xf32>
    %656 = vector.extract_strided_slice %540 {offsets = [0, 16], sizes = [8, 4], strides = [1, 1]} : vector<8x32xf32> to vector<8x4xf32>
    %657 = arith.truncf %655 : vector<8x8xf32> to vector<8x8xbf16>
    %658 = arith.truncf %656 : vector<8x4xf32> to vector<8x4xbf16>
    %cst_209 = arith.constant dense<0.000000e+00> : vector<8x4xf32>
    %659 = tpu.matmul %657, %658, %cst_209 {dimension_numbers = #tpu.dot_dimension_numbers<[1], [0], [0], [1], [0, 0, 1, 1], [], []>} : vector<8x8xbf16>, vector<8x4xbf16>, vector<8x4xf32> -> vector<8x4xf32>
    %660 = vector.extract_strided_slice %542 {offsets = [16, 0], sizes = [4, 32], strides = [1, 1]} : vector<32x32xbf16> to vector<4x32xbf16>
    %661 = arith.truncf %659 : vector<8x4xf32> to vector<8x4xbf16>
    %cst_210 = arith.constant dense<0.000000e+00> : vector<8x32xf32>
    %662 = tpu.matmul %661, %660, %cst_210 {dimension_numbers = #tpu.dot_dimension_numbers<[1], [0], [0], [1], [0, 0, 1, 1], [], []>} : vector<8x4xbf16>, vector<4x32xbf16>, vector<8x32xf32> -> vector<8x32xf32>
    %663 = arith.addf %639, %662 : vector<8x32xf32>
    %664 = vector.extract_strided_slice %538 {offsets = [0, 20], sizes = [8, 4], strides = [1, 1]} : vector<8x32xf32> to vector<8x4xf32>
    %665 = vector.extract_strided_slice %539 {offsets = [0, 20], sizes = [8, 4], strides = [1, 1]} : vector<8x32xf32> to vector<8x4xf32>
    %666 = arith.truncf %664 : vector<8x4xf32> to vector<8x4xbf16>
    %667 = arith.truncf %665 : vector<8x4xf32> to vector<8x4xbf16>
    %cst_211 = arith.constant dense<0.000000e+00> : vector<8x8xf32>
    %668 = tpu.matmul %666, %667, %cst_211 {dimension_numbers = #tpu.dot_dimension_numbers<[1], [1], [0], [0], [0, 0, 1, 0], [], []>} : vector<8x4xbf16>, vector<8x4xbf16>, vector<8x8xf32> -> vector<8x8xf32>
    %669 = arith.addf %668, %10 : vector<8x8xf32>
    %cst_212 = arith.constant dense<0xFF800000> : vector<8xf32>
    %670 = vector.multi_reduction <maximumf>, %669, %cst_212 [1] : vector<8x8xf32> to vector<8xf32>
    %671 = vector.shape_cast %670 : vector<8xf32> to vector<8x1xf32>
    %672 = vector.broadcast %671 : vector<8x1xf32> to vector<8x8xf32>
    %673 = arith.subf %669, %672 : vector<8x8xf32>
    %674 = math.exp %673 : vector<8x8xf32>
    %cst_213 = arith.constant dense<0.000000e+00> : vector<8xf32>
    %675 = vector.multi_reduction <add>, %674, %cst_213 [1] : vector<8x8xf32> to vector<8xf32>
    %676 = vector.shape_cast %675 : vector<8xf32> to vector<8x1xf32>
    %677 = tpu.reciprocal %676 {approx = true} : vector<8x1xf32> -> vector<8x1xf32>
    %678 = vector.broadcast %677 : vector<8x1xf32> to vector<8x8xf32>
    %679 = arith.mulf %674, %678 : vector<8x8xf32>
    %680 = vector.extract_strided_slice %540 {offsets = [0, 20], sizes = [8, 4], strides = [1, 1]} : vector<8x32xf32> to vector<8x4xf32>
    %681 = arith.truncf %679 : vector<8x8xf32> to vector<8x8xbf16>
    %682 = arith.truncf %680 : vector<8x4xf32> to vector<8x4xbf16>
    %cst_214 = arith.constant dense<0.000000e+00> : vector<8x4xf32>
    %683 = tpu.matmul %681, %682, %cst_214 {dimension_numbers = #tpu.dot_dimension_numbers<[1], [0], [0], [1], [0, 0, 1, 1], [], []>} : vector<8x8xbf16>, vector<8x4xbf16>, vector<8x4xf32> -> vector<8x4xf32>
    %684 = vector.extract_strided_slice %542 {offsets = [20, 0], sizes = [4, 32], strides = [1, 1]} : vector<32x32xbf16> to vector<4x32xbf16>
    %685 = arith.truncf %683 : vector<8x4xf32> to vector<8x4xbf16>
    %cst_215 = arith.constant dense<0.000000e+00> : vector<8x32xf32>
    %686 = tpu.matmul %685, %684, %cst_215 {dimension_numbers = #tpu.dot_dimension_numbers<[1], [0], [0], [1], [0, 0, 1, 1], [], []>} : vector<8x4xbf16>, vector<4x32xbf16>, vector<8x32xf32> -> vector<8x32xf32>
    %687 = arith.addf %663, %686 : vector<8x32xf32>
    %688 = vector.extract_strided_slice %538 {offsets = [0, 24], sizes = [8, 4], strides = [1, 1]} : vector<8x32xf32> to vector<8x4xf32>
    %689 = vector.extract_strided_slice %539 {offsets = [0, 24], sizes = [8, 4], strides = [1, 1]} : vector<8x32xf32> to vector<8x4xf32>
    %690 = arith.truncf %688 : vector<8x4xf32> to vector<8x4xbf16>
    %691 = arith.truncf %689 : vector<8x4xf32> to vector<8x4xbf16>
    %cst_216 = arith.constant dense<0.000000e+00> : vector<8x8xf32>
    %692 = tpu.matmul %690, %691, %cst_216 {dimension_numbers = #tpu.dot_dimension_numbers<[1], [1], [0], [0], [0, 0, 1, 0], [], []>} : vector<8x4xbf16>, vector<8x4xbf16>, vector<8x8xf32> -> vector<8x8xf32>
    %693 = arith.addf %692, %10 : vector<8x8xf32>
    %cst_217 = arith.constant dense<0xFF800000> : vector<8xf32>
    %694 = vector.multi_reduction <maximumf>, %693, %cst_217 [1] : vector<8x8xf32> to vector<8xf32>
    %695 = vector.shape_cast %694 : vector<8xf32> to vector<8x1xf32>
    %696 = vector.broadcast %695 : vector<8x1xf32> to vector<8x8xf32>
    %697 = arith.subf %693, %696 : vector<8x8xf32>
    %698 = math.exp %697 : vector<8x8xf32>
    %cst_218 = arith.constant dense<0.000000e+00> : vector<8xf32>
    %699 = vector.multi_reduction <add>, %698, %cst_218 [1] : vector<8x8xf32> to vector<8xf32>
    %700 = vector.shape_cast %699 : vector<8xf32> to vector<8x1xf32>
    %701 = tpu.reciprocal %700 {approx = true} : vector<8x1xf32> -> vector<8x1xf32>
    %702 = vector.broadcast %701 : vector<8x1xf32> to vector<8x8xf32>
    %703 = arith.mulf %698, %702 : vector<8x8xf32>
    %704 = vector.extract_strided_slice %540 {offsets = [0, 24], sizes = [8, 4], strides = [1, 1]} : vector<8x32xf32> to vector<8x4xf32>
    %705 = arith.truncf %703 : vector<8x8xf32> to vector<8x8xbf16>
    %706 = arith.truncf %704 : vector<8x4xf32> to vector<8x4xbf16>
    %cst_219 = arith.constant dense<0.000000e+00> : vector<8x4xf32>
    %707 = tpu.matmul %705, %706, %cst_219 {dimension_numbers = #tpu.dot_dimension_numbers<[1], [0], [0], [1], [0, 0, 1, 1], [], []>} : vector<8x8xbf16>, vector<8x4xbf16>, vector<8x4xf32> -> vector<8x4xf32>
    %708 = vector.extract_strided_slice %542 {offsets = [24, 0], sizes = [4, 32], strides = [1, 1]} : vector<32x32xbf16> to vector<4x32xbf16>
    %709 = arith.truncf %707 : vector<8x4xf32> to vector<8x4xbf16>
    %cst_220 = arith.constant dense<0.000000e+00> : vector<8x32xf32>
    %710 = tpu.matmul %709, %708, %cst_220 {dimension_numbers = #tpu.dot_dimension_numbers<[1], [0], [0], [1], [0, 0, 1, 1], [], []>} : vector<8x4xbf16>, vector<4x32xbf16>, vector<8x32xf32> -> vector<8x32xf32>
    %711 = arith.addf %687, %710 : vector<8x32xf32>
    %712 = vector.extract_strided_slice %538 {offsets = [0, 28], sizes = [8, 4], strides = [1, 1]} : vector<8x32xf32> to vector<8x4xf32>
    %713 = vector.extract_strided_slice %539 {offsets = [0, 28], sizes = [8, 4], strides = [1, 1]} : vector<8x32xf32> to vector<8x4xf32>
    %714 = arith.truncf %712 : vector<8x4xf32> to vector<8x4xbf16>
    %715 = arith.truncf %713 : vector<8x4xf32> to vector<8x4xbf16>
    %cst_221 = arith.constant dense<0.000000e+00> : vector<8x8xf32>
    %716 = tpu.matmul %714, %715, %cst_221 {dimension_numbers = #tpu.dot_dimension_numbers<[1], [1], [0], [0], [0, 0, 1, 0], [], []>} : vector<8x4xbf16>, vector<8x4xbf16>, vector<8x8xf32> -> vector<8x8xf32>
    %717 = arith.addf %716, %10 : vector<8x8xf32>
    %cst_222 = arith.constant dense<0xFF800000> : vector<8xf32>
    %718 = vector.multi_reduction <maximumf>, %717, %cst_222 [1] : vector<8x8xf32> to vector<8xf32>
    %719 = vector.shape_cast %718 : vector<8xf32> to vector<8x1xf32>
    %720 = vector.broadcast %719 : vector<8x1xf32> to vector<8x8xf32>
    %721 = arith.subf %717, %720 : vector<8x8xf32>
    %722 = math.exp %721 : vector<8x8xf32>
    %cst_223 = arith.constant dense<0.000000e+00> : vector<8xf32>
    %723 = vector.multi_reduction <add>, %722, %cst_223 [1] : vector<8x8xf32> to vector<8xf32>
    %724 = vector.shape_cast %723 : vector<8xf32> to vector<8x1xf32>
    %725 = tpu.reciprocal %724 {approx = true} : vector<8x1xf32> -> vector<8x1xf32>
    %726 = vector.broadcast %725 : vector<8x1xf32> to vector<8x8xf32>
    %727 = arith.mulf %722, %726 : vector<8x8xf32>
    %728 = vector.extract_strided_slice %540 {offsets = [0, 28], sizes = [8, 4], strides = [1, 1]} : vector<8x32xf32> to vector<8x4xf32>
    %729 = arith.truncf %727 : vector<8x8xf32> to vector<8x8xbf16>
    %730 = arith.truncf %728 : vector<8x4xf32> to vector<8x4xbf16>
    %cst_224 = arith.constant dense<0.000000e+00> : vector<8x4xf32>
    %731 = tpu.matmul %729, %730, %cst_224 {dimension_numbers = #tpu.dot_dimension_numbers<[1], [0], [0], [1], [0, 0, 1, 1], [], []>} : vector<8x8xbf16>, vector<8x4xbf16>, vector<8x4xf32> -> vector<8x4xf32>
    %732 = vector.extract_strided_slice %542 {offsets = [28, 0], sizes = [4, 32], strides = [1, 1]} : vector<32x32xbf16> to vector<4x32xbf16>
    %733 = arith.truncf %731 : vector<8x4xf32> to vector<8x4xbf16>
    %cst_225 = arith.constant dense<0.000000e+00> : vector<8x32xf32>
    %734 = tpu.matmul %733, %732, %cst_225 {dimension_numbers = #tpu.dot_dimension_numbers<[1], [0], [0], [1], [0, 0, 1, 1], [], []>} : vector<8x4xbf16>, vector<4x32xbf16>, vector<8x32xf32> -> vector<8x32xf32>
    %735 = arith.addf %711, %734 : vector<8x32xf32>
    %736 = vector.broadcast %544 : vector<1x32xf32> to vector<8x32xf32>
    %737 = arith.addf %735, %736 : vector<8x32xf32>
    %738 = arith.addf %529, %737 : vector<8x32xf32>
    %c1_226 = arith.constant 1 : index
    %c0_227 = arith.constant 0 : index
    %c0_228 = arith.constant 0 : index
    %c0_229 = arith.constant 0 : index
    %739 = vector.load %arg17[%c1_226, %c0_227, %c0_228, %c0_229] : memref<3x3x1x32xf32, #tpu.memory_space<vmem>>, vector<1x1x1x32xf32>
    %740 = vector.shape_cast %739 : vector<1x1x1x32xf32> to vector<1x32xf32>
    %c1_230 = arith.constant 1 : index
    %c0_231 = arith.constant 0 : index
    %c0_232 = arith.constant 0 : index
    %c0_233 = arith.constant 0 : index
    %741 = vector.load %arg18[%c1_230, %c0_231, %c0_232, %c0_233] : memref<3x3x1x32xf32, #tpu.memory_space<vmem>>, vector<1x1x1x32xf32>
    %742 = vector.shape_cast %741 : vector<1x1x1x32xf32> to vector<1x32xf32>
    %cst_234 = arith.constant dense<0.000000e+00> : vector<8xf32>
    %743 = vector.multi_reduction <add>, %738, %cst_234 [1] : vector<8x32xf32> to vector<8xf32>
    %744 = vector.shape_cast %743 : vector<8xf32> to vector<8x1xf32>
    %cst_235 = arith.constant 3.200000e+01 : f32
    %745 = vector.broadcast %cst_235 : f32 to vector<8x1xf32>
    %746 = arith.divf %744, %745 : vector<8x1xf32>
    %747 = vector.broadcast %746 : vector<8x1xf32> to vector<8x32xf32>
    %748 = arith.subf %738, %747 : vector<8x32xf32>
    %749 = arith.mulf %748, %748 : vector<8x32xf32>
    %cst_236 = arith.constant dense<0.000000e+00> : vector<8xf32>
    %750 = vector.multi_reduction <add>, %749, %cst_236 [1] : vector<8x32xf32> to vector<8xf32>
    %751 = vector.shape_cast %750 : vector<8xf32> to vector<8x1xf32>
    %cst_237 = arith.constant 3.200000e+01 : f32
    %752 = vector.broadcast %cst_237 : f32 to vector<8x1xf32>
    %753 = arith.divf %751, %752 : vector<8x1xf32>
    %cst_238 = arith.constant 9.99999974E-6 : f32
    %754 = vector.broadcast %cst_238 : f32 to vector<8x1xf32>
    %755 = arith.addf %753, %754 : vector<8x1xf32>
    %756 = math.rsqrt %755 : vector<8x1xf32>
    %757 = vector.broadcast %756 : vector<8x1xf32> to vector<8x32xf32>
    %758 = arith.mulf %748, %757 : vector<8x32xf32>
    %759 = vector.broadcast %740 : vector<1x32xf32> to vector<8x32xf32>
    %760 = arith.mulf %758, %759 : vector<8x32xf32>
    %761 = vector.broadcast %742 : vector<1x32xf32> to vector<8x32xf32>
    %762 = arith.addf %760, %761 : vector<8x32xf32>
    %c1_239 = arith.constant 1 : index
    %c0_240 = arith.constant 0 : index
    %c0_241 = arith.constant 0 : index
    %763 = vector.load %arg7[%c1_239, %c0_240, %c0_241] : memref<3x32x32xbf16, #tpu.memory_space<vmem>>, vector<1x32x32xbf16>
    %764 = vector.shape_cast %763 : vector<1x32x32xbf16> to vector<32x32xbf16>
    %765 = arith.truncf %762 : vector<8x32xf32> to vector<8x32xbf16>
    %cst_242 = arith.constant dense<0.000000e+00> : vector<8x32xf32>
    %766 = tpu.matmul %765, %764, %cst_242 {dimension_numbers = #tpu.dot_dimension_numbers<[1], [0], [0], [1], [0, 0, 1, 1], [], []>} : vector<8x32xbf16>, vector<32x32xbf16>, vector<8x32xf32> -> vector<8x32xf32>
    %c1_243 = arith.constant 1 : index
    %c0_244 = arith.constant 0 : index
    %c0_245 = arith.constant 0 : index
    %767 = vector.load %arg8[%c1_243, %c0_244, %c0_245] : memref<3x1x32xf32, #tpu.memory_space<vmem>>, vector<1x1x32xf32>
    %768 = vector.shape_cast %767 : vector<1x1x32xf32> to vector<1x32xf32>
    %769 = vector.broadcast %768 : vector<1x32xf32> to vector<8x32xf32>
    %770 = arith.addf %766, %769 : vector<8x32xf32>
    %c1_246 = arith.constant 1 : index
    %c0_247 = arith.constant 0 : index
    %c0_248 = arith.constant 0 : index
    %771 = vector.load %arg9[%c1_246, %c0_247, %c0_248] : memref<3x32x64xbf16, #tpu.memory_space<vmem>>, vector<1x32x64xbf16>
    %772 = vector.shape_cast %771 : vector<1x32x64xbf16> to vector<32x64xbf16>
    %773 = arith.truncf %3 : vector<12x32xf32> to vector<12x32xbf16>
    %cst_249 = arith.constant dense<0.000000e+00> : vector<12x64xf32>
    %774 = tpu.matmul %773, %772, %cst_249 {dimension_numbers = #tpu.dot_dimension_numbers<[1], [0], [0], [1], [0, 0, 1, 1], [], []>} : vector<12x32xbf16>, vector<32x64xbf16>, vector<12x64xf32> -> vector<12x64xf32>
    %c1_250 = arith.constant 1 : index
    %c0_251 = arith.constant 0 : index
    %c0_252 = arith.constant 0 : index
    %775 = vector.load %arg10[%c1_250, %c0_251, %c0_252] : memref<3x1x64xf32, #tpu.memory_space<vmem>>, vector<1x1x64xf32>
    %776 = vector.shape_cast %775 : vector<1x1x64xf32> to vector<1x64xf32>
    %777 = vector.broadcast %776 : vector<1x64xf32> to vector<12x64xf32>
    %778 = arith.addf %774, %777 : vector<12x64xf32>
    %779 = vector.extract_strided_slice %778 {offsets = [0, 0], sizes = [12, 32], strides = [1, 1]} : vector<12x64xf32> to vector<12x32xf32>
    %780 = vector.extract_strided_slice %778 {offsets = [0, 32], sizes = [12, 32], strides = [1, 1]} : vector<12x64xf32> to vector<12x32xf32>
    %c1_253 = arith.constant 1 : index
    %c0_254 = arith.constant 0 : index
    %c0_255 = arith.constant 0 : index
    %781 = vector.load %arg11[%c1_253, %c0_254, %c0_255] : memref<3x32x32xbf16, #tpu.memory_space<vmem>>, vector<1x32x32xbf16>
    %782 = vector.shape_cast %781 : vector<1x32x32xbf16> to vector<32x32xbf16>
    %c1_256 = arith.constant 1 : index
    %c0_257 = arith.constant 0 : index
    %c0_258 = arith.constant 0 : index
    %783 = vector.load %arg12[%c1_256, %c0_257, %c0_258] : memref<3x1x32xf32, #tpu.memory_space<vmem>>, vector<1x1x32xf32>
    %784 = vector.shape_cast %783 : vector<1x1x32xf32> to vector<1x32xf32>
    %785 = vector.extract_strided_slice %770 {offsets = [0, 0], sizes = [8, 4], strides = [1, 1]} : vector<8x32xf32> to vector<8x4xf32>
    %786 = vector.extract_strided_slice %779 {offsets = [0, 0], sizes = [12, 4], strides = [1, 1]} : vector<12x32xf32> to vector<12x4xf32>
    %787 = arith.truncf %785 : vector<8x4xf32> to vector<8x4xbf16>
    %788 = arith.truncf %786 : vector<12x4xf32> to vector<12x4xbf16>
    %cst_259 = arith.constant dense<0.000000e+00> : vector<8x12xf32>
    %789 = tpu.matmul %787, %788, %cst_259 {dimension_numbers = #tpu.dot_dimension_numbers<[1], [1], [0], [0], [0, 0, 1, 0], [], []>} : vector<8x4xbf16>, vector<12x4xbf16>, vector<8x12xf32> -> vector<8x12xf32>
    %cst_260 = arith.constant dense<0xFF800000> : vector<8xf32>
    %790 = vector.multi_reduction <maximumf>, %789, %cst_260 [1] : vector<8x12xf32> to vector<8xf32>
    %791 = vector.shape_cast %790 : vector<8xf32> to vector<8x1xf32>
    %792 = vector.broadcast %791 : vector<8x1xf32> to vector<8x12xf32>
    %793 = arith.subf %789, %792 : vector<8x12xf32>
    %794 = math.exp %793 : vector<8x12xf32>
    %cst_261 = arith.constant dense<0.000000e+00> : vector<8xf32>
    %795 = vector.multi_reduction <add>, %794, %cst_261 [1] : vector<8x12xf32> to vector<8xf32>
    %796 = vector.shape_cast %795 : vector<8xf32> to vector<8x1xf32>
    %797 = tpu.reciprocal %796 {approx = true} : vector<8x1xf32> -> vector<8x1xf32>
    %798 = vector.broadcast %797 : vector<8x1xf32> to vector<8x12xf32>
    %799 = arith.mulf %794, %798 : vector<8x12xf32>
    %800 = vector.extract_strided_slice %780 {offsets = [0, 0], sizes = [12, 4], strides = [1, 1]} : vector<12x32xf32> to vector<12x4xf32>
    %801 = arith.truncf %799 : vector<8x12xf32> to vector<8x12xbf16>
    %802 = arith.truncf %800 : vector<12x4xf32> to vector<12x4xbf16>
    %cst_262 = arith.constant dense<0.000000e+00> : vector<8x4xf32>
    %803 = tpu.matmul %801, %802, %cst_262 {dimension_numbers = #tpu.dot_dimension_numbers<[1], [0], [0], [1], [0, 0, 1, 1], [], []>} : vector<8x12xbf16>, vector<12x4xbf16>, vector<8x4xf32> -> vector<8x4xf32>
    %804 = vector.extract_strided_slice %782 {offsets = [0, 0], sizes = [4, 32], strides = [1, 1]} : vector<32x32xbf16> to vector<4x32xbf16>
    %805 = arith.truncf %803 : vector<8x4xf32> to vector<8x4xbf16>
    %cst_263 = arith.constant dense<0.000000e+00> : vector<8x32xf32>
    %806 = tpu.matmul %805, %804, %cst_263 {dimension_numbers = #tpu.dot_dimension_numbers<[1], [0], [0], [1], [0, 0, 1, 1], [], []>} : vector<8x4xbf16>, vector<4x32xbf16>, vector<8x32xf32> -> vector<8x32xf32>
    %807 = vector.extract_strided_slice %770 {offsets = [0, 4], sizes = [8, 4], strides = [1, 1]} : vector<8x32xf32> to vector<8x4xf32>
    %808 = vector.extract_strided_slice %779 {offsets = [0, 4], sizes = [12, 4], strides = [1, 1]} : vector<12x32xf32> to vector<12x4xf32>
    %809 = arith.truncf %807 : vector<8x4xf32> to vector<8x4xbf16>
    %810 = arith.truncf %808 : vector<12x4xf32> to vector<12x4xbf16>
    %cst_264 = arith.constant dense<0.000000e+00> : vector<8x12xf32>
    %811 = tpu.matmul %809, %810, %cst_264 {dimension_numbers = #tpu.dot_dimension_numbers<[1], [1], [0], [0], [0, 0, 1, 0], [], []>} : vector<8x4xbf16>, vector<12x4xbf16>, vector<8x12xf32> -> vector<8x12xf32>
    %cst_265 = arith.constant dense<0xFF800000> : vector<8xf32>
    %812 = vector.multi_reduction <maximumf>, %811, %cst_265 [1] : vector<8x12xf32> to vector<8xf32>
    %813 = vector.shape_cast %812 : vector<8xf32> to vector<8x1xf32>
    %814 = vector.broadcast %813 : vector<8x1xf32> to vector<8x12xf32>
    %815 = arith.subf %811, %814 : vector<8x12xf32>
    %816 = math.exp %815 : vector<8x12xf32>
    %cst_266 = arith.constant dense<0.000000e+00> : vector<8xf32>
    %817 = vector.multi_reduction <add>, %816, %cst_266 [1] : vector<8x12xf32> to vector<8xf32>
    %818 = vector.shape_cast %817 : vector<8xf32> to vector<8x1xf32>
    %819 = tpu.reciprocal %818 {approx = true} : vector<8x1xf32> -> vector<8x1xf32>
    %820 = vector.broadcast %819 : vector<8x1xf32> to vector<8x12xf32>
    %821 = arith.mulf %816, %820 : vector<8x12xf32>
    %822 = vector.extract_strided_slice %780 {offsets = [0, 4], sizes = [12, 4], strides = [1, 1]} : vector<12x32xf32> to vector<12x4xf32>
    %823 = arith.truncf %821 : vector<8x12xf32> to vector<8x12xbf16>
    %824 = arith.truncf %822 : vector<12x4xf32> to vector<12x4xbf16>
    %cst_267 = arith.constant dense<0.000000e+00> : vector<8x4xf32>
    %825 = tpu.matmul %823, %824, %cst_267 {dimension_numbers = #tpu.dot_dimension_numbers<[1], [0], [0], [1], [0, 0, 1, 1], [], []>} : vector<8x12xbf16>, vector<12x4xbf16>, vector<8x4xf32> -> vector<8x4xf32>
    %826 = vector.extract_strided_slice %782 {offsets = [4, 0], sizes = [4, 32], strides = [1, 1]} : vector<32x32xbf16> to vector<4x32xbf16>
    %827 = arith.truncf %825 : vector<8x4xf32> to vector<8x4xbf16>
    %cst_268 = arith.constant dense<0.000000e+00> : vector<8x32xf32>
    %828 = tpu.matmul %827, %826, %cst_268 {dimension_numbers = #tpu.dot_dimension_numbers<[1], [0], [0], [1], [0, 0, 1, 1], [], []>} : vector<8x4xbf16>, vector<4x32xbf16>, vector<8x32xf32> -> vector<8x32xf32>
    %829 = arith.addf %806, %828 : vector<8x32xf32>
    %830 = vector.extract_strided_slice %770 {offsets = [0, 8], sizes = [8, 4], strides = [1, 1]} : vector<8x32xf32> to vector<8x4xf32>
    %831 = vector.extract_strided_slice %779 {offsets = [0, 8], sizes = [12, 4], strides = [1, 1]} : vector<12x32xf32> to vector<12x4xf32>
    %832 = arith.truncf %830 : vector<8x4xf32> to vector<8x4xbf16>
    %833 = arith.truncf %831 : vector<12x4xf32> to vector<12x4xbf16>
    %cst_269 = arith.constant dense<0.000000e+00> : vector<8x12xf32>
    %834 = tpu.matmul %832, %833, %cst_269 {dimension_numbers = #tpu.dot_dimension_numbers<[1], [1], [0], [0], [0, 0, 1, 0], [], []>} : vector<8x4xbf16>, vector<12x4xbf16>, vector<8x12xf32> -> vector<8x12xf32>
    %cst_270 = arith.constant dense<0xFF800000> : vector<8xf32>
    %835 = vector.multi_reduction <maximumf>, %834, %cst_270 [1] : vector<8x12xf32> to vector<8xf32>
    %836 = vector.shape_cast %835 : vector<8xf32> to vector<8x1xf32>
    %837 = vector.broadcast %836 : vector<8x1xf32> to vector<8x12xf32>
    %838 = arith.subf %834, %837 : vector<8x12xf32>
    %839 = math.exp %838 : vector<8x12xf32>
    %cst_271 = arith.constant dense<0.000000e+00> : vector<8xf32>
    %840 = vector.multi_reduction <add>, %839, %cst_271 [1] : vector<8x12xf32> to vector<8xf32>
    %841 = vector.shape_cast %840 : vector<8xf32> to vector<8x1xf32>
    %842 = tpu.reciprocal %841 {approx = true} : vector<8x1xf32> -> vector<8x1xf32>
    %843 = vector.broadcast %842 : vector<8x1xf32> to vector<8x12xf32>
    %844 = arith.mulf %839, %843 : vector<8x12xf32>
    %845 = vector.extract_strided_slice %780 {offsets = [0, 8], sizes = [12, 4], strides = [1, 1]} : vector<12x32xf32> to vector<12x4xf32>
    %846 = arith.truncf %844 : vector<8x12xf32> to vector<8x12xbf16>
    %847 = arith.truncf %845 : vector<12x4xf32> to vector<12x4xbf16>
    %cst_272 = arith.constant dense<0.000000e+00> : vector<8x4xf32>
    %848 = tpu.matmul %846, %847, %cst_272 {dimension_numbers = #tpu.dot_dimension_numbers<[1], [0], [0], [1], [0, 0, 1, 1], [], []>} : vector<8x12xbf16>, vector<12x4xbf16>, vector<8x4xf32> -> vector<8x4xf32>
    %849 = vector.extract_strided_slice %782 {offsets = [8, 0], sizes = [4, 32], strides = [1, 1]} : vector<32x32xbf16> to vector<4x32xbf16>
    %850 = arith.truncf %848 : vector<8x4xf32> to vector<8x4xbf16>
    %cst_273 = arith.constant dense<0.000000e+00> : vector<8x32xf32>
    %851 = tpu.matmul %850, %849, %cst_273 {dimension_numbers = #tpu.dot_dimension_numbers<[1], [0], [0], [1], [0, 0, 1, 1], [], []>} : vector<8x4xbf16>, vector<4x32xbf16>, vector<8x32xf32> -> vector<8x32xf32>
    %852 = arith.addf %829, %851 : vector<8x32xf32>
    %853 = vector.extract_strided_slice %770 {offsets = [0, 12], sizes = [8, 4], strides = [1, 1]} : vector<8x32xf32> to vector<8x4xf32>
    %854 = vector.extract_strided_slice %779 {offsets = [0, 12], sizes = [12, 4], strides = [1, 1]} : vector<12x32xf32> to vector<12x4xf32>
    %855 = arith.truncf %853 : vector<8x4xf32> to vector<8x4xbf16>
    %856 = arith.truncf %854 : vector<12x4xf32> to vector<12x4xbf16>
    %cst_274 = arith.constant dense<0.000000e+00> : vector<8x12xf32>
    %857 = tpu.matmul %855, %856, %cst_274 {dimension_numbers = #tpu.dot_dimension_numbers<[1], [1], [0], [0], [0, 0, 1, 0], [], []>} : vector<8x4xbf16>, vector<12x4xbf16>, vector<8x12xf32> -> vector<8x12xf32>
    %cst_275 = arith.constant dense<0xFF800000> : vector<8xf32>
    %858 = vector.multi_reduction <maximumf>, %857, %cst_275 [1] : vector<8x12xf32> to vector<8xf32>
    %859 = vector.shape_cast %858 : vector<8xf32> to vector<8x1xf32>
    %860 = vector.broadcast %859 : vector<8x1xf32> to vector<8x12xf32>
    %861 = arith.subf %857, %860 : vector<8x12xf32>
    %862 = math.exp %861 : vector<8x12xf32>
    %cst_276 = arith.constant dense<0.000000e+00> : vector<8xf32>
    %863 = vector.multi_reduction <add>, %862, %cst_276 [1] : vector<8x12xf32> to vector<8xf32>
    %864 = vector.shape_cast %863 : vector<8xf32> to vector<8x1xf32>
    %865 = tpu.reciprocal %864 {approx = true} : vector<8x1xf32> -> vector<8x1xf32>
    %866 = vector.broadcast %865 : vector<8x1xf32> to vector<8x12xf32>
    %867 = arith.mulf %862, %866 : vector<8x12xf32>
    %868 = vector.extract_strided_slice %780 {offsets = [0, 12], sizes = [12, 4], strides = [1, 1]} : vector<12x32xf32> to vector<12x4xf32>
    %869 = arith.truncf %867 : vector<8x12xf32> to vector<8x12xbf16>
    %870 = arith.truncf %868 : vector<12x4xf32> to vector<12x4xbf16>
    %cst_277 = arith.constant dense<0.000000e+00> : vector<8x4xf32>
    %871 = tpu.matmul %869, %870, %cst_277 {dimension_numbers = #tpu.dot_dimension_numbers<[1], [0], [0], [1], [0, 0, 1, 1], [], []>} : vector<8x12xbf16>, vector<12x4xbf16>, vector<8x4xf32> -> vector<8x4xf32>
    %872 = vector.extract_strided_slice %782 {offsets = [12, 0], sizes = [4, 32], strides = [1, 1]} : vector<32x32xbf16> to vector<4x32xbf16>
    %873 = arith.truncf %871 : vector<8x4xf32> to vector<8x4xbf16>
    %cst_278 = arith.constant dense<0.000000e+00> : vector<8x32xf32>
    %874 = tpu.matmul %873, %872, %cst_278 {dimension_numbers = #tpu.dot_dimension_numbers<[1], [0], [0], [1], [0, 0, 1, 1], [], []>} : vector<8x4xbf16>, vector<4x32xbf16>, vector<8x32xf32> -> vector<8x32xf32>
    %875 = arith.addf %852, %874 : vector<8x32xf32>
    %876 = vector.extract_strided_slice %770 {offsets = [0, 16], sizes = [8, 4], strides = [1, 1]} : vector<8x32xf32> to vector<8x4xf32>
    %877 = vector.extract_strided_slice %779 {offsets = [0, 16], sizes = [12, 4], strides = [1, 1]} : vector<12x32xf32> to vector<12x4xf32>
    %878 = arith.truncf %876 : vector<8x4xf32> to vector<8x4xbf16>
    %879 = arith.truncf %877 : vector<12x4xf32> to vector<12x4xbf16>
    %cst_279 = arith.constant dense<0.000000e+00> : vector<8x12xf32>
    %880 = tpu.matmul %878, %879, %cst_279 {dimension_numbers = #tpu.dot_dimension_numbers<[1], [1], [0], [0], [0, 0, 1, 0], [], []>} : vector<8x4xbf16>, vector<12x4xbf16>, vector<8x12xf32> -> vector<8x12xf32>
    %cst_280 = arith.constant dense<0xFF800000> : vector<8xf32>
    %881 = vector.multi_reduction <maximumf>, %880, %cst_280 [1] : vector<8x12xf32> to vector<8xf32>
    %882 = vector.shape_cast %881 : vector<8xf32> to vector<8x1xf32>
    %883 = vector.broadcast %882 : vector<8x1xf32> to vector<8x12xf32>
    %884 = arith.subf %880, %883 : vector<8x12xf32>
    %885 = math.exp %884 : vector<8x12xf32>
    %cst_281 = arith.constant dense<0.000000e+00> : vector<8xf32>
    %886 = vector.multi_reduction <add>, %885, %cst_281 [1] : vector<8x12xf32> to vector<8xf32>
    %887 = vector.shape_cast %886 : vector<8xf32> to vector<8x1xf32>
    %888 = tpu.reciprocal %887 {approx = true} : vector<8x1xf32> -> vector<8x1xf32>
    %889 = vector.broadcast %888 : vector<8x1xf32> to vector<8x12xf32>
    %890 = arith.mulf %885, %889 : vector<8x12xf32>
    %891 = vector.extract_strided_slice %780 {offsets = [0, 16], sizes = [12, 4], strides = [1, 1]} : vector<12x32xf32> to vector<12x4xf32>
    %892 = arith.truncf %890 : vector<8x12xf32> to vector<8x12xbf16>
    %893 = arith.truncf %891 : vector<12x4xf32> to vector<12x4xbf16>
    %cst_282 = arith.constant dense<0.000000e+00> : vector<8x4xf32>
    %894 = tpu.matmul %892, %893, %cst_282 {dimension_numbers = #tpu.dot_dimension_numbers<[1], [0], [0], [1], [0, 0, 1, 1], [], []>} : vector<8x12xbf16>, vector<12x4xbf16>, vector<8x4xf32> -> vector<8x4xf32>
    %895 = vector.extract_strided_slice %782 {offsets = [16, 0], sizes = [4, 32], strides = [1, 1]} : vector<32x32xbf16> to vector<4x32xbf16>
    %896 = arith.truncf %894 : vector<8x4xf32> to vector<8x4xbf16>
    %cst_283 = arith.constant dense<0.000000e+00> : vector<8x32xf32>
    %897 = tpu.matmul %896, %895, %cst_283 {dimension_numbers = #tpu.dot_dimension_numbers<[1], [0], [0], [1], [0, 0, 1, 1], [], []>} : vector<8x4xbf16>, vector<4x32xbf16>, vector<8x32xf32> -> vector<8x32xf32>
    %898 = arith.addf %875, %897 : vector<8x32xf32>
    %899 = vector.extract_strided_slice %770 {offsets = [0, 20], sizes = [8, 4], strides = [1, 1]} : vector<8x32xf32> to vector<8x4xf32>
    %900 = vector.extract_strided_slice %779 {offsets = [0, 20], sizes = [12, 4], strides = [1, 1]} : vector<12x32xf32> to vector<12x4xf32>
    %901 = arith.truncf %899 : vector<8x4xf32> to vector<8x4xbf16>
    %902 = arith.truncf %900 : vector<12x4xf32> to vector<12x4xbf16>
    %cst_284 = arith.constant dense<0.000000e+00> : vector<8x12xf32>
    %903 = tpu.matmul %901, %902, %cst_284 {dimension_numbers = #tpu.dot_dimension_numbers<[1], [1], [0], [0], [0, 0, 1, 0], [], []>} : vector<8x4xbf16>, vector<12x4xbf16>, vector<8x12xf32> -> vector<8x12xf32>
    %cst_285 = arith.constant dense<0xFF800000> : vector<8xf32>
    %904 = vector.multi_reduction <maximumf>, %903, %cst_285 [1] : vector<8x12xf32> to vector<8xf32>
    %905 = vector.shape_cast %904 : vector<8xf32> to vector<8x1xf32>
    %906 = vector.broadcast %905 : vector<8x1xf32> to vector<8x12xf32>
    %907 = arith.subf %903, %906 : vector<8x12xf32>
    %908 = math.exp %907 : vector<8x12xf32>
    %cst_286 = arith.constant dense<0.000000e+00> : vector<8xf32>
    %909 = vector.multi_reduction <add>, %908, %cst_286 [1] : vector<8x12xf32> to vector<8xf32>
    %910 = vector.shape_cast %909 : vector<8xf32> to vector<8x1xf32>
    %911 = tpu.reciprocal %910 {approx = true} : vector<8x1xf32> -> vector<8x1xf32>
    %912 = vector.broadcast %911 : vector<8x1xf32> to vector<8x12xf32>
    %913 = arith.mulf %908, %912 : vector<8x12xf32>
    %914 = vector.extract_strided_slice %780 {offsets = [0, 20], sizes = [12, 4], strides = [1, 1]} : vector<12x32xf32> to vector<12x4xf32>
    %915 = arith.truncf %913 : vector<8x12xf32> to vector<8x12xbf16>
    %916 = arith.truncf %914 : vector<12x4xf32> to vector<12x4xbf16>
    %cst_287 = arith.constant dense<0.000000e+00> : vector<8x4xf32>
    %917 = tpu.matmul %915, %916, %cst_287 {dimension_numbers = #tpu.dot_dimension_numbers<[1], [0], [0], [1], [0, 0, 1, 1], [], []>} : vector<8x12xbf16>, vector<12x4xbf16>, vector<8x4xf32> -> vector<8x4xf32>
    %918 = vector.extract_strided_slice %782 {offsets = [20, 0], sizes = [4, 32], strides = [1, 1]} : vector<32x32xbf16> to vector<4x32xbf16>
    %919 = arith.truncf %917 : vector<8x4xf32> to vector<8x4xbf16>
    %cst_288 = arith.constant dense<0.000000e+00> : vector<8x32xf32>
    %920 = tpu.matmul %919, %918, %cst_288 {dimension_numbers = #tpu.dot_dimension_numbers<[1], [0], [0], [1], [0, 0, 1, 1], [], []>} : vector<8x4xbf16>, vector<4x32xbf16>, vector<8x32xf32> -> vector<8x32xf32>
    %921 = arith.addf %898, %920 : vector<8x32xf32>
    %922 = vector.extract_strided_slice %770 {offsets = [0, 24], sizes = [8, 4], strides = [1, 1]} : vector<8x32xf32> to vector<8x4xf32>
    %923 = vector.extract_strided_slice %779 {offsets = [0, 24], sizes = [12, 4], strides = [1, 1]} : vector<12x32xf32> to vector<12x4xf32>
    %924 = arith.truncf %922 : vector<8x4xf32> to vector<8x4xbf16>
    %925 = arith.truncf %923 : vector<12x4xf32> to vector<12x4xbf16>
    %cst_289 = arith.constant dense<0.000000e+00> : vector<8x12xf32>
    %926 = tpu.matmul %924, %925, %cst_289 {dimension_numbers = #tpu.dot_dimension_numbers<[1], [1], [0], [0], [0, 0, 1, 0], [], []>} : vector<8x4xbf16>, vector<12x4xbf16>, vector<8x12xf32> -> vector<8x12xf32>
    %cst_290 = arith.constant dense<0xFF800000> : vector<8xf32>
    %927 = vector.multi_reduction <maximumf>, %926, %cst_290 [1] : vector<8x12xf32> to vector<8xf32>
    %928 = vector.shape_cast %927 : vector<8xf32> to vector<8x1xf32>
    %929 = vector.broadcast %928 : vector<8x1xf32> to vector<8x12xf32>
    %930 = arith.subf %926, %929 : vector<8x12xf32>
    %931 = math.exp %930 : vector<8x12xf32>
    %cst_291 = arith.constant dense<0.000000e+00> : vector<8xf32>
    %932 = vector.multi_reduction <add>, %931, %cst_291 [1] : vector<8x12xf32> to vector<8xf32>
    %933 = vector.shape_cast %932 : vector<8xf32> to vector<8x1xf32>
    %934 = tpu.reciprocal %933 {approx = true} : vector<8x1xf32> -> vector<8x1xf32>
    %935 = vector.broadcast %934 : vector<8x1xf32> to vector<8x12xf32>
    %936 = arith.mulf %931, %935 : vector<8x12xf32>
    %937 = vector.extract_strided_slice %780 {offsets = [0, 24], sizes = [12, 4], strides = [1, 1]} : vector<12x32xf32> to vector<12x4xf32>
    %938 = arith.truncf %936 : vector<8x12xf32> to vector<8x12xbf16>
    %939 = arith.truncf %937 : vector<12x4xf32> to vector<12x4xbf16>
    %cst_292 = arith.constant dense<0.000000e+00> : vector<8x4xf32>
    %940 = tpu.matmul %938, %939, %cst_292 {dimension_numbers = #tpu.dot_dimension_numbers<[1], [0], [0], [1], [0, 0, 1, 1], [], []>} : vector<8x12xbf16>, vector<12x4xbf16>, vector<8x4xf32> -> vector<8x4xf32>
    %941 = vector.extract_strided_slice %782 {offsets = [24, 0], sizes = [4, 32], strides = [1, 1]} : vector<32x32xbf16> to vector<4x32xbf16>
    %942 = arith.truncf %940 : vector<8x4xf32> to vector<8x4xbf16>
    %cst_293 = arith.constant dense<0.000000e+00> : vector<8x32xf32>
    %943 = tpu.matmul %942, %941, %cst_293 {dimension_numbers = #tpu.dot_dimension_numbers<[1], [0], [0], [1], [0, 0, 1, 1], [], []>} : vector<8x4xbf16>, vector<4x32xbf16>, vector<8x32xf32> -> vector<8x32xf32>
    %944 = arith.addf %921, %943 : vector<8x32xf32>
    %945 = vector.extract_strided_slice %770 {offsets = [0, 28], sizes = [8, 4], strides = [1, 1]} : vector<8x32xf32> to vector<8x4xf32>
    %946 = vector.extract_strided_slice %779 {offsets = [0, 28], sizes = [12, 4], strides = [1, 1]} : vector<12x32xf32> to vector<12x4xf32>
    %947 = arith.truncf %945 : vector<8x4xf32> to vector<8x4xbf16>
    %948 = arith.truncf %946 : vector<12x4xf32> to vector<12x4xbf16>
    %cst_294 = arith.constant dense<0.000000e+00> : vector<8x12xf32>
    %949 = tpu.matmul %947, %948, %cst_294 {dimension_numbers = #tpu.dot_dimension_numbers<[1], [1], [0], [0], [0, 0, 1, 0], [], []>} : vector<8x4xbf16>, vector<12x4xbf16>, vector<8x12xf32> -> vector<8x12xf32>
    %cst_295 = arith.constant dense<0xFF800000> : vector<8xf32>
    %950 = vector.multi_reduction <maximumf>, %949, %cst_295 [1] : vector<8x12xf32> to vector<8xf32>
    %951 = vector.shape_cast %950 : vector<8xf32> to vector<8x1xf32>
    %952 = vector.broadcast %951 : vector<8x1xf32> to vector<8x12xf32>
    %953 = arith.subf %949, %952 : vector<8x12xf32>
    %954 = math.exp %953 : vector<8x12xf32>
    %cst_296 = arith.constant dense<0.000000e+00> : vector<8xf32>
    %955 = vector.multi_reduction <add>, %954, %cst_296 [1] : vector<8x12xf32> to vector<8xf32>
    %956 = vector.shape_cast %955 : vector<8xf32> to vector<8x1xf32>
    %957 = tpu.reciprocal %956 {approx = true} : vector<8x1xf32> -> vector<8x1xf32>
    %958 = vector.broadcast %957 : vector<8x1xf32> to vector<8x12xf32>
    %959 = arith.mulf %954, %958 : vector<8x12xf32>
    %960 = vector.extract_strided_slice %780 {offsets = [0, 28], sizes = [12, 4], strides = [1, 1]} : vector<12x32xf32> to vector<12x4xf32>
    %961 = arith.truncf %959 : vector<8x12xf32> to vector<8x12xbf16>
    %962 = arith.truncf %960 : vector<12x4xf32> to vector<12x4xbf16>
    %cst_297 = arith.constant dense<0.000000e+00> : vector<8x4xf32>
    %963 = tpu.matmul %961, %962, %cst_297 {dimension_numbers = #tpu.dot_dimension_numbers<[1], [0], [0], [1], [0, 0, 1, 1], [], []>} : vector<8x12xbf16>, vector<12x4xbf16>, vector<8x4xf32> -> vector<8x4xf32>
    %964 = vector.extract_strided_slice %782 {offsets = [28, 0], sizes = [4, 32], strides = [1, 1]} : vector<32x32xbf16> to vector<4x32xbf16>
    %965 = arith.truncf %963 : vector<8x4xf32> to vector<8x4xbf16>
    %cst_298 = arith.constant dense<0.000000e+00> : vector<8x32xf32>
    %966 = tpu.matmul %965, %964, %cst_298 {dimension_numbers = #tpu.dot_dimension_numbers<[1], [0], [0], [1], [0, 0, 1, 1], [], []>} : vector<8x4xbf16>, vector<4x32xbf16>, vector<8x32xf32> -> vector<8x32xf32>
    %967 = arith.addf %944, %966 : vector<8x32xf32>
    %968 = vector.broadcast %784 : vector<1x32xf32> to vector<8x32xf32>
    %969 = arith.addf %967, %968 : vector<8x32xf32>
    %970 = arith.addf %762, %969 : vector<8x32xf32>
    %c1_299 = arith.constant 1 : index
    %c1_300 = arith.constant 1 : index
    %c0_301 = arith.constant 0 : index
    %c0_302 = arith.constant 0 : index
    %971 = vector.load %arg17[%c1_299, %c1_300, %c0_301, %c0_302] : memref<3x3x1x32xf32, #tpu.memory_space<vmem>>, vector<1x1x1x32xf32>
    %972 = vector.shape_cast %971 : vector<1x1x1x32xf32> to vector<1x32xf32>
    %c1_303 = arith.constant 1 : index
    %c1_304 = arith.constant 1 : index
    %c0_305 = arith.constant 0 : index
    %c0_306 = arith.constant 0 : index
    %973 = vector.load %arg18[%c1_303, %c1_304, %c0_305, %c0_306] : memref<3x3x1x32xf32, #tpu.memory_space<vmem>>, vector<1x1x1x32xf32>
    %974 = vector.shape_cast %973 : vector<1x1x1x32xf32> to vector<1x32xf32>
    %cst_307 = arith.constant dense<0.000000e+00> : vector<8xf32>
    %975 = vector.multi_reduction <add>, %970, %cst_307 [1] : vector<8x32xf32> to vector<8xf32>
    %976 = vector.shape_cast %975 : vector<8xf32> to vector<8x1xf32>
    %cst_308 = arith.constant 3.200000e+01 : f32
    %977 = vector.broadcast %cst_308 : f32 to vector<8x1xf32>
    %978 = arith.divf %976, %977 : vector<8x1xf32>
    %979 = vector.broadcast %978 : vector<8x1xf32> to vector<8x32xf32>
    %980 = arith.subf %970, %979 : vector<8x32xf32>
    %981 = arith.mulf %980, %980 : vector<8x32xf32>
    %cst_309 = arith.constant dense<0.000000e+00> : vector<8xf32>
    %982 = vector.multi_reduction <add>, %981, %cst_309 [1] : vector<8x32xf32> to vector<8xf32>
    %983 = vector.shape_cast %982 : vector<8xf32> to vector<8x1xf32>
    %cst_310 = arith.constant 3.200000e+01 : f32
    %984 = vector.broadcast %cst_310 : f32 to vector<8x1xf32>
    %985 = arith.divf %983, %984 : vector<8x1xf32>
    %cst_311 = arith.constant 9.99999974E-6 : f32
    %986 = vector.broadcast %cst_311 : f32 to vector<8x1xf32>
    %987 = arith.addf %985, %986 : vector<8x1xf32>
    %988 = math.rsqrt %987 : vector<8x1xf32>
    %989 = vector.broadcast %988 : vector<8x1xf32> to vector<8x32xf32>
    %990 = arith.mulf %980, %989 : vector<8x32xf32>
    %991 = vector.broadcast %972 : vector<1x32xf32> to vector<8x32xf32>
    %992 = arith.mulf %990, %991 : vector<8x32xf32>
    %993 = vector.broadcast %974 : vector<1x32xf32> to vector<8x32xf32>
    %994 = arith.addf %992, %993 : vector<8x32xf32>
    %c1_312 = arith.constant 1 : index
    %c0_313 = arith.constant 0 : index
    %c0_314 = arith.constant 0 : index
    %995 = vector.load %arg13[%c1_312, %c0_313, %c0_314] : memref<3x32x64xbf16, #tpu.memory_space<vmem>>, vector<1x32x64xbf16>
    %996 = vector.shape_cast %995 : vector<1x32x64xbf16> to vector<32x64xbf16>
    %997 = arith.truncf %994 : vector<8x32xf32> to vector<8x32xbf16>
    %cst_315 = arith.constant dense<0.000000e+00> : vector<8x64xf32>
    %998 = tpu.matmul %997, %996, %cst_315 {dimension_numbers = #tpu.dot_dimension_numbers<[1], [0], [0], [1], [0, 0, 1, 1], [], []>} : vector<8x32xbf16>, vector<32x64xbf16>, vector<8x64xf32> -> vector<8x64xf32>
    %c1_316 = arith.constant 1 : index
    %c0_317 = arith.constant 0 : index
    %c0_318 = arith.constant 0 : index
    %999 = vector.load %arg14[%c1_316, %c0_317, %c0_318] : memref<3x1x64xf32, #tpu.memory_space<vmem>>, vector<1x1x64xf32>
    %1000 = vector.shape_cast %999 : vector<1x1x64xf32> to vector<1x64xf32>
    %1001 = vector.broadcast %1000 : vector<1x64xf32> to vector<8x64xf32>
    %1002 = arith.addf %998, %1001 : vector<8x64xf32>
    %cst_319 = arith.constant 5.000000e-01 : f32
    %1003 = vector.broadcast %cst_319 : f32 to vector<8x64xf32>
    %1004 = arith.mulf %1003, %1002 : vector<8x64xf32>
    %cst_320 = arith.constant 4.471500e-02 : f32
    %1005 = vector.broadcast %cst_320 : f32 to vector<8x64xf32>
    %1006 = arith.mulf %1005, %1002 : vector<8x64xf32>
    %1007 = arith.mulf %1006, %1002 : vector<8x64xf32>
    %1008 = arith.mulf %1007, %1002 : vector<8x64xf32>
    %1009 = arith.addf %1002, %1008 : vector<8x64xf32>
    %cst_321 = arith.constant 0.797884583 : f32
    %1010 = vector.broadcast %cst_321 : f32 to vector<8x64xf32>
    %1011 = arith.mulf %1010, %1009 : vector<8x64xf32>
    %1012 = math.tanh %1011 : vector<8x64xf32>
    %cst_322 = arith.constant 1.000000e+00 : f32
    %1013 = vector.broadcast %cst_322 : f32 to vector<8x64xf32>
    %1014 = arith.addf %1013, %1012 : vector<8x64xf32>
    %1015 = arith.mulf %1004, %1014 : vector<8x64xf32>
    %c1_323 = arith.constant 1 : index
    %c0_324 = arith.constant 0 : index
    %c0_325 = arith.constant 0 : index
    %1016 = vector.load %arg15[%c1_323, %c0_324, %c0_325] : memref<3x64x32xbf16, #tpu.memory_space<vmem>>, vector<1x64x32xbf16>
    %1017 = vector.shape_cast %1016 : vector<1x64x32xbf16> to vector<64x32xbf16>
    %1018 = arith.truncf %1015 : vector<8x64xf32> to vector<8x64xbf16>
    %cst_326 = arith.constant dense<0.000000e+00> : vector<8x32xf32>
    %1019 = tpu.matmul %1018, %1017, %cst_326 {dimension_numbers = #tpu.dot_dimension_numbers<[1], [0], [0], [1], [0, 0, 1, 1], [], []>} : vector<8x64xbf16>, vector<64x32xbf16>, vector<8x32xf32> -> vector<8x32xf32>
    %c1_327 = arith.constant 1 : index
    %c0_328 = arith.constant 0 : index
    %c0_329 = arith.constant 0 : index
    %1020 = vector.load %arg16[%c1_327, %c0_328, %c0_329] : memref<3x1x32xf32, #tpu.memory_space<vmem>>, vector<1x1x32xf32>
    %1021 = vector.shape_cast %1020 : vector<1x1x32xf32> to vector<1x32xf32>
    %1022 = vector.broadcast %1021 : vector<1x32xf32> to vector<8x32xf32>
    %1023 = arith.addf %1019, %1022 : vector<8x32xf32>
    %1024 = arith.addf %994, %1023 : vector<8x32xf32>
    %c1_330 = arith.constant 1 : index
    %c2_331 = arith.constant 2 : index
    %c0_332 = arith.constant 0 : index
    %c0_333 = arith.constant 0 : index
    %1025 = vector.load %arg17[%c1_330, %c2_331, %c0_332, %c0_333] : memref<3x3x1x32xf32, #tpu.memory_space<vmem>>, vector<1x1x1x32xf32>
    %1026 = vector.shape_cast %1025 : vector<1x1x1x32xf32> to vector<1x32xf32>
    %c1_334 = arith.constant 1 : index
    %c2_335 = arith.constant 2 : index
    %c0_336 = arith.constant 0 : index
    %c0_337 = arith.constant 0 : index
    %1027 = vector.load %arg18[%c1_334, %c2_335, %c0_336, %c0_337] : memref<3x3x1x32xf32, #tpu.memory_space<vmem>>, vector<1x1x1x32xf32>
    %1028 = vector.shape_cast %1027 : vector<1x1x1x32xf32> to vector<1x32xf32>
    %cst_338 = arith.constant dense<0.000000e+00> : vector<8xf32>
    %1029 = vector.multi_reduction <add>, %1024, %cst_338 [1] : vector<8x32xf32> to vector<8xf32>
    %1030 = vector.shape_cast %1029 : vector<8xf32> to vector<8x1xf32>
    %cst_339 = arith.constant 3.200000e+01 : f32
    %1031 = vector.broadcast %cst_339 : f32 to vector<8x1xf32>
    %1032 = arith.divf %1030, %1031 : vector<8x1xf32>
    %1033 = vector.broadcast %1032 : vector<8x1xf32> to vector<8x32xf32>
    %1034 = arith.subf %1024, %1033 : vector<8x32xf32>
    %1035 = arith.mulf %1034, %1034 : vector<8x32xf32>
    %cst_340 = arith.constant dense<0.000000e+00> : vector<8xf32>
    %1036 = vector.multi_reduction <add>, %1035, %cst_340 [1] : vector<8x32xf32> to vector<8xf32>
    %1037 = vector.shape_cast %1036 : vector<8xf32> to vector<8x1xf32>
    %cst_341 = arith.constant 3.200000e+01 : f32
    %1038 = vector.broadcast %cst_341 : f32 to vector<8x1xf32>
    %1039 = arith.divf %1037, %1038 : vector<8x1xf32>
    %cst_342 = arith.constant 9.99999974E-6 : f32
    %1040 = vector.broadcast %cst_342 : f32 to vector<8x1xf32>
    %1041 = arith.addf %1039, %1040 : vector<8x1xf32>
    %1042 = math.rsqrt %1041 : vector<8x1xf32>
    %1043 = vector.broadcast %1042 : vector<8x1xf32> to vector<8x32xf32>
    %1044 = arith.mulf %1034, %1043 : vector<8x32xf32>
    %1045 = vector.broadcast %1026 : vector<1x32xf32> to vector<8x32xf32>
    %1046 = arith.mulf %1044, %1045 : vector<8x32xf32>
    %1047 = vector.broadcast %1028 : vector<1x32xf32> to vector<8x32xf32>
    %1048 = arith.addf %1046, %1047 : vector<8x32xf32>
    %c2_343 = arith.constant 2 : index
    %c0_344 = arith.constant 0 : index
    %c0_345 = arith.constant 0 : index
    %1049 = vector.load %arg3[%c2_343, %c0_344, %c0_345] : memref<3x32x96xbf16, #tpu.memory_space<vmem>>, vector<1x32x96xbf16>
    %1050 = vector.shape_cast %1049 : vector<1x32x96xbf16> to vector<32x96xbf16>
    %1051 = arith.truncf %1048 : vector<8x32xf32> to vector<8x32xbf16>
    %cst_346 = arith.constant dense<0.000000e+00> : vector<8x96xf32>
    %1052 = tpu.matmul %1051, %1050, %cst_346 {dimension_numbers = #tpu.dot_dimension_numbers<[1], [0], [0], [1], [0, 0, 1, 1], [], []>} : vector<8x32xbf16>, vector<32x96xbf16>, vector<8x96xf32> -> vector<8x96xf32>
    %c2_347 = arith.constant 2 : index
    %c0_348 = arith.constant 0 : index
    %c0_349 = arith.constant 0 : index
    %1053 = vector.load %arg4[%c2_347, %c0_348, %c0_349] : memref<3x1x96xf32, #tpu.memory_space<vmem>>, vector<1x1x96xf32>
    %1054 = vector.shape_cast %1053 : vector<1x1x96xf32> to vector<1x96xf32>
    %1055 = vector.broadcast %1054 : vector<1x96xf32> to vector<8x96xf32>
    %1056 = arith.addf %1052, %1055 : vector<8x96xf32>
    %1057 = vector.extract_strided_slice %1056 {offsets = [0, 0], sizes = [8, 32], strides = [1, 1]} : vector<8x96xf32> to vector<8x32xf32>
    %1058 = vector.extract_strided_slice %1056 {offsets = [0, 32], sizes = [8, 32], strides = [1, 1]} : vector<8x96xf32> to vector<8x32xf32>
    %1059 = vector.extract_strided_slice %1056 {offsets = [0, 64], sizes = [8, 32], strides = [1, 1]} : vector<8x96xf32> to vector<8x32xf32>
    %c2_350 = arith.constant 2 : index
    %c0_351 = arith.constant 0 : index
    %c0_352 = arith.constant 0 : index
    %1060 = vector.load %arg5[%c2_350, %c0_351, %c0_352] : memref<3x32x32xbf16, #tpu.memory_space<vmem>>, vector<1x32x32xbf16>
    %1061 = vector.shape_cast %1060 : vector<1x32x32xbf16> to vector<32x32xbf16>
    %c2_353 = arith.constant 2 : index
    %c0_354 = arith.constant 0 : index
    %c0_355 = arith.constant 0 : index
    %1062 = vector.load %arg6[%c2_353, %c0_354, %c0_355] : memref<3x1x32xf32, #tpu.memory_space<vmem>>, vector<1x1x32xf32>
    %1063 = vector.shape_cast %1062 : vector<1x1x32xf32> to vector<1x32xf32>
    %1064 = vector.extract_strided_slice %1057 {offsets = [0, 0], sizes = [8, 4], strides = [1, 1]} : vector<8x32xf32> to vector<8x4xf32>
    %1065 = vector.extract_strided_slice %1058 {offsets = [0, 0], sizes = [8, 4], strides = [1, 1]} : vector<8x32xf32> to vector<8x4xf32>
    %1066 = arith.truncf %1064 : vector<8x4xf32> to vector<8x4xbf16>
    %1067 = arith.truncf %1065 : vector<8x4xf32> to vector<8x4xbf16>
    %cst_356 = arith.constant dense<0.000000e+00> : vector<8x8xf32>
    %1068 = tpu.matmul %1066, %1067, %cst_356 {dimension_numbers = #tpu.dot_dimension_numbers<[1], [1], [0], [0], [0, 0, 1, 0], [], []>} : vector<8x4xbf16>, vector<8x4xbf16>, vector<8x8xf32> -> vector<8x8xf32>
    %1069 = arith.addf %1068, %10 : vector<8x8xf32>
    %cst_357 = arith.constant dense<0xFF800000> : vector<8xf32>
    %1070 = vector.multi_reduction <maximumf>, %1069, %cst_357 [1] : vector<8x8xf32> to vector<8xf32>
    %1071 = vector.shape_cast %1070 : vector<8xf32> to vector<8x1xf32>
    %1072 = vector.broadcast %1071 : vector<8x1xf32> to vector<8x8xf32>
    %1073 = arith.subf %1069, %1072 : vector<8x8xf32>
    %1074 = math.exp %1073 : vector<8x8xf32>
    %cst_358 = arith.constant dense<0.000000e+00> : vector<8xf32>
    %1075 = vector.multi_reduction <add>, %1074, %cst_358 [1] : vector<8x8xf32> to vector<8xf32>
    %1076 = vector.shape_cast %1075 : vector<8xf32> to vector<8x1xf32>
    %1077 = tpu.reciprocal %1076 {approx = true} : vector<8x1xf32> -> vector<8x1xf32>
    %1078 = vector.broadcast %1077 : vector<8x1xf32> to vector<8x8xf32>
    %1079 = arith.mulf %1074, %1078 : vector<8x8xf32>
    %1080 = vector.extract_strided_slice %1059 {offsets = [0, 0], sizes = [8, 4], strides = [1, 1]} : vector<8x32xf32> to vector<8x4xf32>
    %1081 = arith.truncf %1079 : vector<8x8xf32> to vector<8x8xbf16>
    %1082 = arith.truncf %1080 : vector<8x4xf32> to vector<8x4xbf16>
    %cst_359 = arith.constant dense<0.000000e+00> : vector<8x4xf32>
    %1083 = tpu.matmul %1081, %1082, %cst_359 {dimension_numbers = #tpu.dot_dimension_numbers<[1], [0], [0], [1], [0, 0, 1, 1], [], []>} : vector<8x8xbf16>, vector<8x4xbf16>, vector<8x4xf32> -> vector<8x4xf32>
    %1084 = vector.extract_strided_slice %1061 {offsets = [0, 0], sizes = [4, 32], strides = [1, 1]} : vector<32x32xbf16> to vector<4x32xbf16>
    %1085 = arith.truncf %1083 : vector<8x4xf32> to vector<8x4xbf16>
    %cst_360 = arith.constant dense<0.000000e+00> : vector<8x32xf32>
    %1086 = tpu.matmul %1085, %1084, %cst_360 {dimension_numbers = #tpu.dot_dimension_numbers<[1], [0], [0], [1], [0, 0, 1, 1], [], []>} : vector<8x4xbf16>, vector<4x32xbf16>, vector<8x32xf32> -> vector<8x32xf32>
    %1087 = vector.extract_strided_slice %1057 {offsets = [0, 4], sizes = [8, 4], strides = [1, 1]} : vector<8x32xf32> to vector<8x4xf32>
    %1088 = vector.extract_strided_slice %1058 {offsets = [0, 4], sizes = [8, 4], strides = [1, 1]} : vector<8x32xf32> to vector<8x4xf32>
    %1089 = arith.truncf %1087 : vector<8x4xf32> to vector<8x4xbf16>
    %1090 = arith.truncf %1088 : vector<8x4xf32> to vector<8x4xbf16>
    %cst_361 = arith.constant dense<0.000000e+00> : vector<8x8xf32>
    %1091 = tpu.matmul %1089, %1090, %cst_361 {dimension_numbers = #tpu.dot_dimension_numbers<[1], [1], [0], [0], [0, 0, 1, 0], [], []>} : vector<8x4xbf16>, vector<8x4xbf16>, vector<8x8xf32> -> vector<8x8xf32>
    %1092 = arith.addf %1091, %10 : vector<8x8xf32>
    %cst_362 = arith.constant dense<0xFF800000> : vector<8xf32>
    %1093 = vector.multi_reduction <maximumf>, %1092, %cst_362 [1] : vector<8x8xf32> to vector<8xf32>
    %1094 = vector.shape_cast %1093 : vector<8xf32> to vector<8x1xf32>
    %1095 = vector.broadcast %1094 : vector<8x1xf32> to vector<8x8xf32>
    %1096 = arith.subf %1092, %1095 : vector<8x8xf32>
    %1097 = math.exp %1096 : vector<8x8xf32>
    %cst_363 = arith.constant dense<0.000000e+00> : vector<8xf32>
    %1098 = vector.multi_reduction <add>, %1097, %cst_363 [1] : vector<8x8xf32> to vector<8xf32>
    %1099 = vector.shape_cast %1098 : vector<8xf32> to vector<8x1xf32>
    %1100 = tpu.reciprocal %1099 {approx = true} : vector<8x1xf32> -> vector<8x1xf32>
    %1101 = vector.broadcast %1100 : vector<8x1xf32> to vector<8x8xf32>
    %1102 = arith.mulf %1097, %1101 : vector<8x8xf32>
    %1103 = vector.extract_strided_slice %1059 {offsets = [0, 4], sizes = [8, 4], strides = [1, 1]} : vector<8x32xf32> to vector<8x4xf32>
    %1104 = arith.truncf %1102 : vector<8x8xf32> to vector<8x8xbf16>
    %1105 = arith.truncf %1103 : vector<8x4xf32> to vector<8x4xbf16>
    %cst_364 = arith.constant dense<0.000000e+00> : vector<8x4xf32>
    %1106 = tpu.matmul %1104, %1105, %cst_364 {dimension_numbers = #tpu.dot_dimension_numbers<[1], [0], [0], [1], [0, 0, 1, 1], [], []>} : vector<8x8xbf16>, vector<8x4xbf16>, vector<8x4xf32> -> vector<8x4xf32>
    %1107 = vector.extract_strided_slice %1061 {offsets = [4, 0], sizes = [4, 32], strides = [1, 1]} : vector<32x32xbf16> to vector<4x32xbf16>
    %1108 = arith.truncf %1106 : vector<8x4xf32> to vector<8x4xbf16>
    %cst_365 = arith.constant dense<0.000000e+00> : vector<8x32xf32>
    %1109 = tpu.matmul %1108, %1107, %cst_365 {dimension_numbers = #tpu.dot_dimension_numbers<[1], [0], [0], [1], [0, 0, 1, 1], [], []>} : vector<8x4xbf16>, vector<4x32xbf16>, vector<8x32xf32> -> vector<8x32xf32>
    %1110 = arith.addf %1086, %1109 : vector<8x32xf32>
    %1111 = vector.extract_strided_slice %1057 {offsets = [0, 8], sizes = [8, 4], strides = [1, 1]} : vector<8x32xf32> to vector<8x4xf32>
    %1112 = vector.extract_strided_slice %1058 {offsets = [0, 8], sizes = [8, 4], strides = [1, 1]} : vector<8x32xf32> to vector<8x4xf32>
    %1113 = arith.truncf %1111 : vector<8x4xf32> to vector<8x4xbf16>
    %1114 = arith.truncf %1112 : vector<8x4xf32> to vector<8x4xbf16>
    %cst_366 = arith.constant dense<0.000000e+00> : vector<8x8xf32>
    %1115 = tpu.matmul %1113, %1114, %cst_366 {dimension_numbers = #tpu.dot_dimension_numbers<[1], [1], [0], [0], [0, 0, 1, 0], [], []>} : vector<8x4xbf16>, vector<8x4xbf16>, vector<8x8xf32> -> vector<8x8xf32>
    %1116 = arith.addf %1115, %10 : vector<8x8xf32>
    %cst_367 = arith.constant dense<0xFF800000> : vector<8xf32>
    %1117 = vector.multi_reduction <maximumf>, %1116, %cst_367 [1] : vector<8x8xf32> to vector<8xf32>
    %1118 = vector.shape_cast %1117 : vector<8xf32> to vector<8x1xf32>
    %1119 = vector.broadcast %1118 : vector<8x1xf32> to vector<8x8xf32>
    %1120 = arith.subf %1116, %1119 : vector<8x8xf32>
    %1121 = math.exp %1120 : vector<8x8xf32>
    %cst_368 = arith.constant dense<0.000000e+00> : vector<8xf32>
    %1122 = vector.multi_reduction <add>, %1121, %cst_368 [1] : vector<8x8xf32> to vector<8xf32>
    %1123 = vector.shape_cast %1122 : vector<8xf32> to vector<8x1xf32>
    %1124 = tpu.reciprocal %1123 {approx = true} : vector<8x1xf32> -> vector<8x1xf32>
    %1125 = vector.broadcast %1124 : vector<8x1xf32> to vector<8x8xf32>
    %1126 = arith.mulf %1121, %1125 : vector<8x8xf32>
    %1127 = vector.extract_strided_slice %1059 {offsets = [0, 8], sizes = [8, 4], strides = [1, 1]} : vector<8x32xf32> to vector<8x4xf32>
    %1128 = arith.truncf %1126 : vector<8x8xf32> to vector<8x8xbf16>
    %1129 = arith.truncf %1127 : vector<8x4xf32> to vector<8x4xbf16>
    %cst_369 = arith.constant dense<0.000000e+00> : vector<8x4xf32>
    %1130 = tpu.matmul %1128, %1129, %cst_369 {dimension_numbers = #tpu.dot_dimension_numbers<[1], [0], [0], [1], [0, 0, 1, 1], [], []>} : vector<8x8xbf16>, vector<8x4xbf16>, vector<8x4xf32> -> vector<8x4xf32>
    %1131 = vector.extract_strided_slice %1061 {offsets = [8, 0], sizes = [4, 32], strides = [1, 1]} : vector<32x32xbf16> to vector<4x32xbf16>
    %1132 = arith.truncf %1130 : vector<8x4xf32> to vector<8x4xbf16>
    %cst_370 = arith.constant dense<0.000000e+00> : vector<8x32xf32>
    %1133 = tpu.matmul %1132, %1131, %cst_370 {dimension_numbers = #tpu.dot_dimension_numbers<[1], [0], [0], [1], [0, 0, 1, 1], [], []>} : vector<8x4xbf16>, vector<4x32xbf16>, vector<8x32xf32> -> vector<8x32xf32>
    %1134 = arith.addf %1110, %1133 : vector<8x32xf32>
    %1135 = vector.extract_strided_slice %1057 {offsets = [0, 12], sizes = [8, 4], strides = [1, 1]} : vector<8x32xf32> to vector<8x4xf32>
    %1136 = vector.extract_strided_slice %1058 {offsets = [0, 12], sizes = [8, 4], strides = [1, 1]} : vector<8x32xf32> to vector<8x4xf32>
    %1137 = arith.truncf %1135 : vector<8x4xf32> to vector<8x4xbf16>
    %1138 = arith.truncf %1136 : vector<8x4xf32> to vector<8x4xbf16>
    %cst_371 = arith.constant dense<0.000000e+00> : vector<8x8xf32>
    %1139 = tpu.matmul %1137, %1138, %cst_371 {dimension_numbers = #tpu.dot_dimension_numbers<[1], [1], [0], [0], [0, 0, 1, 0], [], []>} : vector<8x4xbf16>, vector<8x4xbf16>, vector<8x8xf32> -> vector<8x8xf32>
    %1140 = arith.addf %1139, %10 : vector<8x8xf32>
    %cst_372 = arith.constant dense<0xFF800000> : vector<8xf32>
    %1141 = vector.multi_reduction <maximumf>, %1140, %cst_372 [1] : vector<8x8xf32> to vector<8xf32>
    %1142 = vector.shape_cast %1141 : vector<8xf32> to vector<8x1xf32>
    %1143 = vector.broadcast %1142 : vector<8x1xf32> to vector<8x8xf32>
    %1144 = arith.subf %1140, %1143 : vector<8x8xf32>
    %1145 = math.exp %1144 : vector<8x8xf32>
    %cst_373 = arith.constant dense<0.000000e+00> : vector<8xf32>
    %1146 = vector.multi_reduction <add>, %1145, %cst_373 [1] : vector<8x8xf32> to vector<8xf32>
    %1147 = vector.shape_cast %1146 : vector<8xf32> to vector<8x1xf32>
    %1148 = tpu.reciprocal %1147 {approx = true} : vector<8x1xf32> -> vector<8x1xf32>
    %1149 = vector.broadcast %1148 : vector<8x1xf32> to vector<8x8xf32>
    %1150 = arith.mulf %1145, %1149 : vector<8x8xf32>
    %1151 = vector.extract_strided_slice %1059 {offsets = [0, 12], sizes = [8, 4], strides = [1, 1]} : vector<8x32xf32> to vector<8x4xf32>
    %1152 = arith.truncf %1150 : vector<8x8xf32> to vector<8x8xbf16>
    %1153 = arith.truncf %1151 : vector<8x4xf32> to vector<8x4xbf16>
    %cst_374 = arith.constant dense<0.000000e+00> : vector<8x4xf32>
    %1154 = tpu.matmul %1152, %1153, %cst_374 {dimension_numbers = #tpu.dot_dimension_numbers<[1], [0], [0], [1], [0, 0, 1, 1], [], []>} : vector<8x8xbf16>, vector<8x4xbf16>, vector<8x4xf32> -> vector<8x4xf32>
    %1155 = vector.extract_strided_slice %1061 {offsets = [12, 0], sizes = [4, 32], strides = [1, 1]} : vector<32x32xbf16> to vector<4x32xbf16>
    %1156 = arith.truncf %1154 : vector<8x4xf32> to vector<8x4xbf16>
    %cst_375 = arith.constant dense<0.000000e+00> : vector<8x32xf32>
    %1157 = tpu.matmul %1156, %1155, %cst_375 {dimension_numbers = #tpu.dot_dimension_numbers<[1], [0], [0], [1], [0, 0, 1, 1], [], []>} : vector<8x4xbf16>, vector<4x32xbf16>, vector<8x32xf32> -> vector<8x32xf32>
    %1158 = arith.addf %1134, %1157 : vector<8x32xf32>
    %1159 = vector.extract_strided_slice %1057 {offsets = [0, 16], sizes = [8, 4], strides = [1, 1]} : vector<8x32xf32> to vector<8x4xf32>
    %1160 = vector.extract_strided_slice %1058 {offsets = [0, 16], sizes = [8, 4], strides = [1, 1]} : vector<8x32xf32> to vector<8x4xf32>
    %1161 = arith.truncf %1159 : vector<8x4xf32> to vector<8x4xbf16>
    %1162 = arith.truncf %1160 : vector<8x4xf32> to vector<8x4xbf16>
    %cst_376 = arith.constant dense<0.000000e+00> : vector<8x8xf32>
    %1163 = tpu.matmul %1161, %1162, %cst_376 {dimension_numbers = #tpu.dot_dimension_numbers<[1], [1], [0], [0], [0, 0, 1, 0], [], []>} : vector<8x4xbf16>, vector<8x4xbf16>, vector<8x8xf32> -> vector<8x8xf32>
    %1164 = arith.addf %1163, %10 : vector<8x8xf32>
    %cst_377 = arith.constant dense<0xFF800000> : vector<8xf32>
    %1165 = vector.multi_reduction <maximumf>, %1164, %cst_377 [1] : vector<8x8xf32> to vector<8xf32>
    %1166 = vector.shape_cast %1165 : vector<8xf32> to vector<8x1xf32>
    %1167 = vector.broadcast %1166 : vector<8x1xf32> to vector<8x8xf32>
    %1168 = arith.subf %1164, %1167 : vector<8x8xf32>
    %1169 = math.exp %1168 : vector<8x8xf32>
    %cst_378 = arith.constant dense<0.000000e+00> : vector<8xf32>
    %1170 = vector.multi_reduction <add>, %1169, %cst_378 [1] : vector<8x8xf32> to vector<8xf32>
    %1171 = vector.shape_cast %1170 : vector<8xf32> to vector<8x1xf32>
    %1172 = tpu.reciprocal %1171 {approx = true} : vector<8x1xf32> -> vector<8x1xf32>
    %1173 = vector.broadcast %1172 : vector<8x1xf32> to vector<8x8xf32>
    %1174 = arith.mulf %1169, %1173 : vector<8x8xf32>
    %1175 = vector.extract_strided_slice %1059 {offsets = [0, 16], sizes = [8, 4], strides = [1, 1]} : vector<8x32xf32> to vector<8x4xf32>
    %1176 = arith.truncf %1174 : vector<8x8xf32> to vector<8x8xbf16>
    %1177 = arith.truncf %1175 : vector<8x4xf32> to vector<8x4xbf16>
    %cst_379 = arith.constant dense<0.000000e+00> : vector<8x4xf32>
    %1178 = tpu.matmul %1176, %1177, %cst_379 {dimension_numbers = #tpu.dot_dimension_numbers<[1], [0], [0], [1], [0, 0, 1, 1], [], []>} : vector<8x8xbf16>, vector<8x4xbf16>, vector<8x4xf32> -> vector<8x4xf32>
    %1179 = vector.extract_strided_slice %1061 {offsets = [16, 0], sizes = [4, 32], strides = [1, 1]} : vector<32x32xbf16> to vector<4x32xbf16>
    %1180 = arith.truncf %1178 : vector<8x4xf32> to vector<8x4xbf16>
    %cst_380 = arith.constant dense<0.000000e+00> : vector<8x32xf32>
    %1181 = tpu.matmul %1180, %1179, %cst_380 {dimension_numbers = #tpu.dot_dimension_numbers<[1], [0], [0], [1], [0, 0, 1, 1], [], []>} : vector<8x4xbf16>, vector<4x32xbf16>, vector<8x32xf32> -> vector<8x32xf32>
    %1182 = arith.addf %1158, %1181 : vector<8x32xf32>
    %1183 = vector.extract_strided_slice %1057 {offsets = [0, 20], sizes = [8, 4], strides = [1, 1]} : vector<8x32xf32> to vector<8x4xf32>
    %1184 = vector.extract_strided_slice %1058 {offsets = [0, 20], sizes = [8, 4], strides = [1, 1]} : vector<8x32xf32> to vector<8x4xf32>
    %1185 = arith.truncf %1183 : vector<8x4xf32> to vector<8x4xbf16>
    %1186 = arith.truncf %1184 : vector<8x4xf32> to vector<8x4xbf16>
    %cst_381 = arith.constant dense<0.000000e+00> : vector<8x8xf32>
    %1187 = tpu.matmul %1185, %1186, %cst_381 {dimension_numbers = #tpu.dot_dimension_numbers<[1], [1], [0], [0], [0, 0, 1, 0], [], []>} : vector<8x4xbf16>, vector<8x4xbf16>, vector<8x8xf32> -> vector<8x8xf32>
    %1188 = arith.addf %1187, %10 : vector<8x8xf32>
    %cst_382 = arith.constant dense<0xFF800000> : vector<8xf32>
    %1189 = vector.multi_reduction <maximumf>, %1188, %cst_382 [1] : vector<8x8xf32> to vector<8xf32>
    %1190 = vector.shape_cast %1189 : vector<8xf32> to vector<8x1xf32>
    %1191 = vector.broadcast %1190 : vector<8x1xf32> to vector<8x8xf32>
    %1192 = arith.subf %1188, %1191 : vector<8x8xf32>
    %1193 = math.exp %1192 : vector<8x8xf32>
    %cst_383 = arith.constant dense<0.000000e+00> : vector<8xf32>
    %1194 = vector.multi_reduction <add>, %1193, %cst_383 [1] : vector<8x8xf32> to vector<8xf32>
    %1195 = vector.shape_cast %1194 : vector<8xf32> to vector<8x1xf32>
    %1196 = tpu.reciprocal %1195 {approx = true} : vector<8x1xf32> -> vector<8x1xf32>
    %1197 = vector.broadcast %1196 : vector<8x1xf32> to vector<8x8xf32>
    %1198 = arith.mulf %1193, %1197 : vector<8x8xf32>
    %1199 = vector.extract_strided_slice %1059 {offsets = [0, 20], sizes = [8, 4], strides = [1, 1]} : vector<8x32xf32> to vector<8x4xf32>
    %1200 = arith.truncf %1198 : vector<8x8xf32> to vector<8x8xbf16>
    %1201 = arith.truncf %1199 : vector<8x4xf32> to vector<8x4xbf16>
    %cst_384 = arith.constant dense<0.000000e+00> : vector<8x4xf32>
    %1202 = tpu.matmul %1200, %1201, %cst_384 {dimension_numbers = #tpu.dot_dimension_numbers<[1], [0], [0], [1], [0, 0, 1, 1], [], []>} : vector<8x8xbf16>, vector<8x4xbf16>, vector<8x4xf32> -> vector<8x4xf32>
    %1203 = vector.extract_strided_slice %1061 {offsets = [20, 0], sizes = [4, 32], strides = [1, 1]} : vector<32x32xbf16> to vector<4x32xbf16>
    %1204 = arith.truncf %1202 : vector<8x4xf32> to vector<8x4xbf16>
    %cst_385 = arith.constant dense<0.000000e+00> : vector<8x32xf32>
    %1205 = tpu.matmul %1204, %1203, %cst_385 {dimension_numbers = #tpu.dot_dimension_numbers<[1], [0], [0], [1], [0, 0, 1, 1], [], []>} : vector<8x4xbf16>, vector<4x32xbf16>, vector<8x32xf32> -> vector<8x32xf32>
    %1206 = arith.addf %1182, %1205 : vector<8x32xf32>
    %1207 = vector.extract_strided_slice %1057 {offsets = [0, 24], sizes = [8, 4], strides = [1, 1]} : vector<8x32xf32> to vector<8x4xf32>
    %1208 = vector.extract_strided_slice %1058 {offsets = [0, 24], sizes = [8, 4], strides = [1, 1]} : vector<8x32xf32> to vector<8x4xf32>
    %1209 = arith.truncf %1207 : vector<8x4xf32> to vector<8x4xbf16>
    %1210 = arith.truncf %1208 : vector<8x4xf32> to vector<8x4xbf16>
    %cst_386 = arith.constant dense<0.000000e+00> : vector<8x8xf32>
    %1211 = tpu.matmul %1209, %1210, %cst_386 {dimension_numbers = #tpu.dot_dimension_numbers<[1], [1], [0], [0], [0, 0, 1, 0], [], []>} : vector<8x4xbf16>, vector<8x4xbf16>, vector<8x8xf32> -> vector<8x8xf32>
    %1212 = arith.addf %1211, %10 : vector<8x8xf32>
    %cst_387 = arith.constant dense<0xFF800000> : vector<8xf32>
    %1213 = vector.multi_reduction <maximumf>, %1212, %cst_387 [1] : vector<8x8xf32> to vector<8xf32>
    %1214 = vector.shape_cast %1213 : vector<8xf32> to vector<8x1xf32>
    %1215 = vector.broadcast %1214 : vector<8x1xf32> to vector<8x8xf32>
    %1216 = arith.subf %1212, %1215 : vector<8x8xf32>
    %1217 = math.exp %1216 : vector<8x8xf32>
    %cst_388 = arith.constant dense<0.000000e+00> : vector<8xf32>
    %1218 = vector.multi_reduction <add>, %1217, %cst_388 [1] : vector<8x8xf32> to vector<8xf32>
    %1219 = vector.shape_cast %1218 : vector<8xf32> to vector<8x1xf32>
    %1220 = tpu.reciprocal %1219 {approx = true} : vector<8x1xf32> -> vector<8x1xf32>
    %1221 = vector.broadcast %1220 : vector<8x1xf32> to vector<8x8xf32>
    %1222 = arith.mulf %1217, %1221 : vector<8x8xf32>
    %1223 = vector.extract_strided_slice %1059 {offsets = [0, 24], sizes = [8, 4], strides = [1, 1]} : vector<8x32xf32> to vector<8x4xf32>
    %1224 = arith.truncf %1222 : vector<8x8xf32> to vector<8x8xbf16>
    %1225 = arith.truncf %1223 : vector<8x4xf32> to vector<8x4xbf16>
    %cst_389 = arith.constant dense<0.000000e+00> : vector<8x4xf32>
    %1226 = tpu.matmul %1224, %1225, %cst_389 {dimension_numbers = #tpu.dot_dimension_numbers<[1], [0], [0], [1], [0, 0, 1, 1], [], []>} : vector<8x8xbf16>, vector<8x4xbf16>, vector<8x4xf32> -> vector<8x4xf32>
    %1227 = vector.extract_strided_slice %1061 {offsets = [24, 0], sizes = [4, 32], strides = [1, 1]} : vector<32x32xbf16> to vector<4x32xbf16>
    %1228 = arith.truncf %1226 : vector<8x4xf32> to vector<8x4xbf16>
    %cst_390 = arith.constant dense<0.000000e+00> : vector<8x32xf32>
    %1229 = tpu.matmul %1228, %1227, %cst_390 {dimension_numbers = #tpu.dot_dimension_numbers<[1], [0], [0], [1], [0, 0, 1, 1], [], []>} : vector<8x4xbf16>, vector<4x32xbf16>, vector<8x32xf32> -> vector<8x32xf32>
    %1230 = arith.addf %1206, %1229 : vector<8x32xf32>
    %1231 = vector.extract_strided_slice %1057 {offsets = [0, 28], sizes = [8, 4], strides = [1, 1]} : vector<8x32xf32> to vector<8x4xf32>
    %1232 = vector.extract_strided_slice %1058 {offsets = [0, 28], sizes = [8, 4], strides = [1, 1]} : vector<8x32xf32> to vector<8x4xf32>
    %1233 = arith.truncf %1231 : vector<8x4xf32> to vector<8x4xbf16>
    %1234 = arith.truncf %1232 : vector<8x4xf32> to vector<8x4xbf16>
    %cst_391 = arith.constant dense<0.000000e+00> : vector<8x8xf32>
    %1235 = tpu.matmul %1233, %1234, %cst_391 {dimension_numbers = #tpu.dot_dimension_numbers<[1], [1], [0], [0], [0, 0, 1, 0], [], []>} : vector<8x4xbf16>, vector<8x4xbf16>, vector<8x8xf32> -> vector<8x8xf32>
    %1236 = arith.addf %1235, %10 : vector<8x8xf32>
    %cst_392 = arith.constant dense<0xFF800000> : vector<8xf32>
    %1237 = vector.multi_reduction <maximumf>, %1236, %cst_392 [1] : vector<8x8xf32> to vector<8xf32>
    %1238 = vector.shape_cast %1237 : vector<8xf32> to vector<8x1xf32>
    %1239 = vector.broadcast %1238 : vector<8x1xf32> to vector<8x8xf32>
    %1240 = arith.subf %1236, %1239 : vector<8x8xf32>
    %1241 = math.exp %1240 : vector<8x8xf32>
    %cst_393 = arith.constant dense<0.000000e+00> : vector<8xf32>
    %1242 = vector.multi_reduction <add>, %1241, %cst_393 [1] : vector<8x8xf32> to vector<8xf32>
    %1243 = vector.shape_cast %1242 : vector<8xf32> to vector<8x1xf32>
    %1244 = tpu.reciprocal %1243 {approx = true} : vector<8x1xf32> -> vector<8x1xf32>
    %1245 = vector.broadcast %1244 : vector<8x1xf32> to vector<8x8xf32>
    %1246 = arith.mulf %1241, %1245 : vector<8x8xf32>
    %1247 = vector.extract_strided_slice %1059 {offsets = [0, 28], sizes = [8, 4], strides = [1, 1]} : vector<8x32xf32> to vector<8x4xf32>
    %1248 = arith.truncf %1246 : vector<8x8xf32> to vector<8x8xbf16>
    %1249 = arith.truncf %1247 : vector<8x4xf32> to vector<8x4xbf16>
    %cst_394 = arith.constant dense<0.000000e+00> : vector<8x4xf32>
    %1250 = tpu.matmul %1248, %1249, %cst_394 {dimension_numbers = #tpu.dot_dimension_numbers<[1], [0], [0], [1], [0, 0, 1, 1], [], []>} : vector<8x8xbf16>, vector<8x4xbf16>, vector<8x4xf32> -> vector<8x4xf32>
    %1251 = vector.extract_strided_slice %1061 {offsets = [28, 0], sizes = [4, 32], strides = [1, 1]} : vector<32x32xbf16> to vector<4x32xbf16>
    %1252 = arith.truncf %1250 : vector<8x4xf32> to vector<8x4xbf16>
    %cst_395 = arith.constant dense<0.000000e+00> : vector<8x32xf32>
    %1253 = tpu.matmul %1252, %1251, %cst_395 {dimension_numbers = #tpu.dot_dimension_numbers<[1], [0], [0], [1], [0, 0, 1, 1], [], []>} : vector<8x4xbf16>, vector<4x32xbf16>, vector<8x32xf32> -> vector<8x32xf32>
    %1254 = arith.addf %1230, %1253 : vector<8x32xf32>
    %1255 = vector.broadcast %1063 : vector<1x32xf32> to vector<8x32xf32>
    %1256 = arith.addf %1254, %1255 : vector<8x32xf32>
    %1257 = arith.addf %1048, %1256 : vector<8x32xf32>
    %c2_396 = arith.constant 2 : index
    %c0_397 = arith.constant 0 : index
    %c0_398 = arith.constant 0 : index
    %c0_399 = arith.constant 0 : index
    %1258 = vector.load %arg17[%c2_396, %c0_397, %c0_398, %c0_399] : memref<3x3x1x32xf32, #tpu.memory_space<vmem>>, vector<1x1x1x32xf32>
    %1259 = vector.shape_cast %1258 : vector<1x1x1x32xf32> to vector<1x32xf32>
    %c2_400 = arith.constant 2 : index
    %c0_401 = arith.constant 0 : index
    %c0_402 = arith.constant 0 : index
    %c0_403 = arith.constant 0 : index
    %1260 = vector.load %arg18[%c2_400, %c0_401, %c0_402, %c0_403] : memref<3x3x1x32xf32, #tpu.memory_space<vmem>>, vector<1x1x1x32xf32>
    %1261 = vector.shape_cast %1260 : vector<1x1x1x32xf32> to vector<1x32xf32>
    %cst_404 = arith.constant dense<0.000000e+00> : vector<8xf32>
    %1262 = vector.multi_reduction <add>, %1257, %cst_404 [1] : vector<8x32xf32> to vector<8xf32>
    %1263 = vector.shape_cast %1262 : vector<8xf32> to vector<8x1xf32>
    %cst_405 = arith.constant 3.200000e+01 : f32
    %1264 = vector.broadcast %cst_405 : f32 to vector<8x1xf32>
    %1265 = arith.divf %1263, %1264 : vector<8x1xf32>
    %1266 = vector.broadcast %1265 : vector<8x1xf32> to vector<8x32xf32>
    %1267 = arith.subf %1257, %1266 : vector<8x32xf32>
    %1268 = arith.mulf %1267, %1267 : vector<8x32xf32>
    %cst_406 = arith.constant dense<0.000000e+00> : vector<8xf32>
    %1269 = vector.multi_reduction <add>, %1268, %cst_406 [1] : vector<8x32xf32> to vector<8xf32>
    %1270 = vector.shape_cast %1269 : vector<8xf32> to vector<8x1xf32>
    %cst_407 = arith.constant 3.200000e+01 : f32
    %1271 = vector.broadcast %cst_407 : f32 to vector<8x1xf32>
    %1272 = arith.divf %1270, %1271 : vector<8x1xf32>
    %cst_408 = arith.constant 9.99999974E-6 : f32
    %1273 = vector.broadcast %cst_408 : f32 to vector<8x1xf32>
    %1274 = arith.addf %1272, %1273 : vector<8x1xf32>
    %1275 = math.rsqrt %1274 : vector<8x1xf32>
    %1276 = vector.broadcast %1275 : vector<8x1xf32> to vector<8x32xf32>
    %1277 = arith.mulf %1267, %1276 : vector<8x32xf32>
    %1278 = vector.broadcast %1259 : vector<1x32xf32> to vector<8x32xf32>
    %1279 = arith.mulf %1277, %1278 : vector<8x32xf32>
    %1280 = vector.broadcast %1261 : vector<1x32xf32> to vector<8x32xf32>
    %1281 = arith.addf %1279, %1280 : vector<8x32xf32>
    %c2_409 = arith.constant 2 : index
    %c0_410 = arith.constant 0 : index
    %c0_411 = arith.constant 0 : index
    %1282 = vector.load %arg7[%c2_409, %c0_410, %c0_411] : memref<3x32x32xbf16, #tpu.memory_space<vmem>>, vector<1x32x32xbf16>
    %1283 = vector.shape_cast %1282 : vector<1x32x32xbf16> to vector<32x32xbf16>
    %1284 = arith.truncf %1281 : vector<8x32xf32> to vector<8x32xbf16>
    %cst_412 = arith.constant dense<0.000000e+00> : vector<8x32xf32>
    %1285 = tpu.matmul %1284, %1283, %cst_412 {dimension_numbers = #tpu.dot_dimension_numbers<[1], [0], [0], [1], [0, 0, 1, 1], [], []>} : vector<8x32xbf16>, vector<32x32xbf16>, vector<8x32xf32> -> vector<8x32xf32>
    %c2_413 = arith.constant 2 : index
    %c0_414 = arith.constant 0 : index
    %c0_415 = arith.constant 0 : index
    %1286 = vector.load %arg8[%c2_413, %c0_414, %c0_415] : memref<3x1x32xf32, #tpu.memory_space<vmem>>, vector<1x1x32xf32>
    %1287 = vector.shape_cast %1286 : vector<1x1x32xf32> to vector<1x32xf32>
    %1288 = vector.broadcast %1287 : vector<1x32xf32> to vector<8x32xf32>
    %1289 = arith.addf %1285, %1288 : vector<8x32xf32>
    %c2_416 = arith.constant 2 : index
    %c0_417 = arith.constant 0 : index
    %c0_418 = arith.constant 0 : index
    %1290 = vector.load %arg9[%c2_416, %c0_417, %c0_418] : memref<3x32x64xbf16, #tpu.memory_space<vmem>>, vector<1x32x64xbf16>
    %1291 = vector.shape_cast %1290 : vector<1x32x64xbf16> to vector<32x64xbf16>
    %1292 = arith.truncf %3 : vector<12x32xf32> to vector<12x32xbf16>
    %cst_419 = arith.constant dense<0.000000e+00> : vector<12x64xf32>
    %1293 = tpu.matmul %1292, %1291, %cst_419 {dimension_numbers = #tpu.dot_dimension_numbers<[1], [0], [0], [1], [0, 0, 1, 1], [], []>} : vector<12x32xbf16>, vector<32x64xbf16>, vector<12x64xf32> -> vector<12x64xf32>
    %c2_420 = arith.constant 2 : index
    %c0_421 = arith.constant 0 : index
    %c0_422 = arith.constant 0 : index
    %1294 = vector.load %arg10[%c2_420, %c0_421, %c0_422] : memref<3x1x64xf32, #tpu.memory_space<vmem>>, vector<1x1x64xf32>
    %1295 = vector.shape_cast %1294 : vector<1x1x64xf32> to vector<1x64xf32>
    %1296 = vector.broadcast %1295 : vector<1x64xf32> to vector<12x64xf32>
    %1297 = arith.addf %1293, %1296 : vector<12x64xf32>
    %1298 = vector.extract_strided_slice %1297 {offsets = [0, 0], sizes = [12, 32], strides = [1, 1]} : vector<12x64xf32> to vector<12x32xf32>
    %1299 = vector.extract_strided_slice %1297 {offsets = [0, 32], sizes = [12, 32], strides = [1, 1]} : vector<12x64xf32> to vector<12x32xf32>
    %c2_423 = arith.constant 2 : index
    %c0_424 = arith.constant 0 : index
    %c0_425 = arith.constant 0 : index
    %1300 = vector.load %arg11[%c2_423, %c0_424, %c0_425] : memref<3x32x32xbf16, #tpu.memory_space<vmem>>, vector<1x32x32xbf16>
    %1301 = vector.shape_cast %1300 : vector<1x32x32xbf16> to vector<32x32xbf16>
    %c2_426 = arith.constant 2 : index
    %c0_427 = arith.constant 0 : index
    %c0_428 = arith.constant 0 : index
    %1302 = vector.load %arg12[%c2_426, %c0_427, %c0_428] : memref<3x1x32xf32, #tpu.memory_space<vmem>>, vector<1x1x32xf32>
    %1303 = vector.shape_cast %1302 : vector<1x1x32xf32> to vector<1x32xf32>
    %1304 = vector.extract_strided_slice %1289 {offsets = [0, 0], sizes = [8, 4], strides = [1, 1]} : vector<8x32xf32> to vector<8x4xf32>
    %1305 = vector.extract_strided_slice %1298 {offsets = [0, 0], sizes = [12, 4], strides = [1, 1]} : vector<12x32xf32> to vector<12x4xf32>
    %1306 = arith.truncf %1304 : vector<8x4xf32> to vector<8x4xbf16>
    %1307 = arith.truncf %1305 : vector<12x4xf32> to vector<12x4xbf16>
    %cst_429 = arith.constant dense<0.000000e+00> : vector<8x12xf32>
    %1308 = tpu.matmul %1306, %1307, %cst_429 {dimension_numbers = #tpu.dot_dimension_numbers<[1], [1], [0], [0], [0, 0, 1, 0], [], []>} : vector<8x4xbf16>, vector<12x4xbf16>, vector<8x12xf32> -> vector<8x12xf32>
    %cst_430 = arith.constant dense<0xFF800000> : vector<8xf32>
    %1309 = vector.multi_reduction <maximumf>, %1308, %cst_430 [1] : vector<8x12xf32> to vector<8xf32>
    %1310 = vector.shape_cast %1309 : vector<8xf32> to vector<8x1xf32>
    %1311 = vector.broadcast %1310 : vector<8x1xf32> to vector<8x12xf32>
    %1312 = arith.subf %1308, %1311 : vector<8x12xf32>
    %1313 = math.exp %1312 : vector<8x12xf32>
    %cst_431 = arith.constant dense<0.000000e+00> : vector<8xf32>
    %1314 = vector.multi_reduction <add>, %1313, %cst_431 [1] : vector<8x12xf32> to vector<8xf32>
    %1315 = vector.shape_cast %1314 : vector<8xf32> to vector<8x1xf32>
    %1316 = tpu.reciprocal %1315 {approx = true} : vector<8x1xf32> -> vector<8x1xf32>
    %1317 = vector.broadcast %1316 : vector<8x1xf32> to vector<8x12xf32>
    %1318 = arith.mulf %1313, %1317 : vector<8x12xf32>
    %1319 = vector.extract_strided_slice %1299 {offsets = [0, 0], sizes = [12, 4], strides = [1, 1]} : vector<12x32xf32> to vector<12x4xf32>
    %1320 = arith.truncf %1318 : vector<8x12xf32> to vector<8x12xbf16>
    %1321 = arith.truncf %1319 : vector<12x4xf32> to vector<12x4xbf16>
    %cst_432 = arith.constant dense<0.000000e+00> : vector<8x4xf32>
    %1322 = tpu.matmul %1320, %1321, %cst_432 {dimension_numbers = #tpu.dot_dimension_numbers<[1], [0], [0], [1], [0, 0, 1, 1], [], []>} : vector<8x12xbf16>, vector<12x4xbf16>, vector<8x4xf32> -> vector<8x4xf32>
    %1323 = vector.extract_strided_slice %1301 {offsets = [0, 0], sizes = [4, 32], strides = [1, 1]} : vector<32x32xbf16> to vector<4x32xbf16>
    %1324 = arith.truncf %1322 : vector<8x4xf32> to vector<8x4xbf16>
    %cst_433 = arith.constant dense<0.000000e+00> : vector<8x32xf32>
    %1325 = tpu.matmul %1324, %1323, %cst_433 {dimension_numbers = #tpu.dot_dimension_numbers<[1], [0], [0], [1], [0, 0, 1, 1], [], []>} : vector<8x4xbf16>, vector<4x32xbf16>, vector<8x32xf32> -> vector<8x32xf32>
    %1326 = vector.extract_strided_slice %1289 {offsets = [0, 4], sizes = [8, 4], strides = [1, 1]} : vector<8x32xf32> to vector<8x4xf32>
    %1327 = vector.extract_strided_slice %1298 {offsets = [0, 4], sizes = [12, 4], strides = [1, 1]} : vector<12x32xf32> to vector<12x4xf32>
    %1328 = arith.truncf %1326 : vector<8x4xf32> to vector<8x4xbf16>
    %1329 = arith.truncf %1327 : vector<12x4xf32> to vector<12x4xbf16>
    %cst_434 = arith.constant dense<0.000000e+00> : vector<8x12xf32>
    %1330 = tpu.matmul %1328, %1329, %cst_434 {dimension_numbers = #tpu.dot_dimension_numbers<[1], [1], [0], [0], [0, 0, 1, 0], [], []>} : vector<8x4xbf16>, vector<12x4xbf16>, vector<8x12xf32> -> vector<8x12xf32>
    %cst_435 = arith.constant dense<0xFF800000> : vector<8xf32>
    %1331 = vector.multi_reduction <maximumf>, %1330, %cst_435 [1] : vector<8x12xf32> to vector<8xf32>
    %1332 = vector.shape_cast %1331 : vector<8xf32> to vector<8x1xf32>
    %1333 = vector.broadcast %1332 : vector<8x1xf32> to vector<8x12xf32>
    %1334 = arith.subf %1330, %1333 : vector<8x12xf32>
    %1335 = math.exp %1334 : vector<8x12xf32>
    %cst_436 = arith.constant dense<0.000000e+00> : vector<8xf32>
    %1336 = vector.multi_reduction <add>, %1335, %cst_436 [1] : vector<8x12xf32> to vector<8xf32>
    %1337 = vector.shape_cast %1336 : vector<8xf32> to vector<8x1xf32>
    %1338 = tpu.reciprocal %1337 {approx = true} : vector<8x1xf32> -> vector<8x1xf32>
    %1339 = vector.broadcast %1338 : vector<8x1xf32> to vector<8x12xf32>
    %1340 = arith.mulf %1335, %1339 : vector<8x12xf32>
    %1341 = vector.extract_strided_slice %1299 {offsets = [0, 4], sizes = [12, 4], strides = [1, 1]} : vector<12x32xf32> to vector<12x4xf32>
    %1342 = arith.truncf %1340 : vector<8x12xf32> to vector<8x12xbf16>
    %1343 = arith.truncf %1341 : vector<12x4xf32> to vector<12x4xbf16>
    %cst_437 = arith.constant dense<0.000000e+00> : vector<8x4xf32>
    %1344 = tpu.matmul %1342, %1343, %cst_437 {dimension_numbers = #tpu.dot_dimension_numbers<[1], [0], [0], [1], [0, 0, 1, 1], [], []>} : vector<8x12xbf16>, vector<12x4xbf16>, vector<8x4xf32> -> vector<8x4xf32>
    %1345 = vector.extract_strided_slice %1301 {offsets = [4, 0], sizes = [4, 32], strides = [1, 1]} : vector<32x32xbf16> to vector<4x32xbf16>
    %1346 = arith.truncf %1344 : vector<8x4xf32> to vector<8x4xbf16>
    %cst_438 = arith.constant dense<0.000000e+00> : vector<8x32xf32>
    %1347 = tpu.matmul %1346, %1345, %cst_438 {dimension_numbers = #tpu.dot_dimension_numbers<[1], [0], [0], [1], [0, 0, 1, 1], [], []>} : vector<8x4xbf16>, vector<4x32xbf16>, vector<8x32xf32> -> vector<8x32xf32>
    %1348 = arith.addf %1325, %1347 : vector<8x32xf32>
    %1349 = vector.extract_strided_slice %1289 {offsets = [0, 8], sizes = [8, 4], strides = [1, 1]} : vector<8x32xf32> to vector<8x4xf32>
    %1350 = vector.extract_strided_slice %1298 {offsets = [0, 8], sizes = [12, 4], strides = [1, 1]} : vector<12x32xf32> to vector<12x4xf32>
    %1351 = arith.truncf %1349 : vector<8x4xf32> to vector<8x4xbf16>
    %1352 = arith.truncf %1350 : vector<12x4xf32> to vector<12x4xbf16>
    %cst_439 = arith.constant dense<0.000000e+00> : vector<8x12xf32>
    %1353 = tpu.matmul %1351, %1352, %cst_439 {dimension_numbers = #tpu.dot_dimension_numbers<[1], [1], [0], [0], [0, 0, 1, 0], [], []>} : vector<8x4xbf16>, vector<12x4xbf16>, vector<8x12xf32> -> vector<8x12xf32>
    %cst_440 = arith.constant dense<0xFF800000> : vector<8xf32>
    %1354 = vector.multi_reduction <maximumf>, %1353, %cst_440 [1] : vector<8x12xf32> to vector<8xf32>
    %1355 = vector.shape_cast %1354 : vector<8xf32> to vector<8x1xf32>
    %1356 = vector.broadcast %1355 : vector<8x1xf32> to vector<8x12xf32>
    %1357 = arith.subf %1353, %1356 : vector<8x12xf32>
    %1358 = math.exp %1357 : vector<8x12xf32>
    %cst_441 = arith.constant dense<0.000000e+00> : vector<8xf32>
    %1359 = vector.multi_reduction <add>, %1358, %cst_441 [1] : vector<8x12xf32> to vector<8xf32>
    %1360 = vector.shape_cast %1359 : vector<8xf32> to vector<8x1xf32>
    %1361 = tpu.reciprocal %1360 {approx = true} : vector<8x1xf32> -> vector<8x1xf32>
    %1362 = vector.broadcast %1361 : vector<8x1xf32> to vector<8x12xf32>
    %1363 = arith.mulf %1358, %1362 : vector<8x12xf32>
    %1364 = vector.extract_strided_slice %1299 {offsets = [0, 8], sizes = [12, 4], strides = [1, 1]} : vector<12x32xf32> to vector<12x4xf32>
    %1365 = arith.truncf %1363 : vector<8x12xf32> to vector<8x12xbf16>
    %1366 = arith.truncf %1364 : vector<12x4xf32> to vector<12x4xbf16>
    %cst_442 = arith.constant dense<0.000000e+00> : vector<8x4xf32>
    %1367 = tpu.matmul %1365, %1366, %cst_442 {dimension_numbers = #tpu.dot_dimension_numbers<[1], [0], [0], [1], [0, 0, 1, 1], [], []>} : vector<8x12xbf16>, vector<12x4xbf16>, vector<8x4xf32> -> vector<8x4xf32>
    %1368 = vector.extract_strided_slice %1301 {offsets = [8, 0], sizes = [4, 32], strides = [1, 1]} : vector<32x32xbf16> to vector<4x32xbf16>
    %1369 = arith.truncf %1367 : vector<8x4xf32> to vector<8x4xbf16>
    %cst_443 = arith.constant dense<0.000000e+00> : vector<8x32xf32>
    %1370 = tpu.matmul %1369, %1368, %cst_443 {dimension_numbers = #tpu.dot_dimension_numbers<[1], [0], [0], [1], [0, 0, 1, 1], [], []>} : vector<8x4xbf16>, vector<4x32xbf16>, vector<8x32xf32> -> vector<8x32xf32>
    %1371 = arith.addf %1348, %1370 : vector<8x32xf32>
    %1372 = vector.extract_strided_slice %1289 {offsets = [0, 12], sizes = [8, 4], strides = [1, 1]} : vector<8x32xf32> to vector<8x4xf32>
    %1373 = vector.extract_strided_slice %1298 {offsets = [0, 12], sizes = [12, 4], strides = [1, 1]} : vector<12x32xf32> to vector<12x4xf32>
    %1374 = arith.truncf %1372 : vector<8x4xf32> to vector<8x4xbf16>
    %1375 = arith.truncf %1373 : vector<12x4xf32> to vector<12x4xbf16>
    %cst_444 = arith.constant dense<0.000000e+00> : vector<8x12xf32>
    %1376 = tpu.matmul %1374, %1375, %cst_444 {dimension_numbers = #tpu.dot_dimension_numbers<[1], [1], [0], [0], [0, 0, 1, 0], [], []>} : vector<8x4xbf16>, vector<12x4xbf16>, vector<8x12xf32> -> vector<8x12xf32>
    %cst_445 = arith.constant dense<0xFF800000> : vector<8xf32>
    %1377 = vector.multi_reduction <maximumf>, %1376, %cst_445 [1] : vector<8x12xf32> to vector<8xf32>
    %1378 = vector.shape_cast %1377 : vector<8xf32> to vector<8x1xf32>
    %1379 = vector.broadcast %1378 : vector<8x1xf32> to vector<8x12xf32>
    %1380 = arith.subf %1376, %1379 : vector<8x12xf32>
    %1381 = math.exp %1380 : vector<8x12xf32>
    %cst_446 = arith.constant dense<0.000000e+00> : vector<8xf32>
    %1382 = vector.multi_reduction <add>, %1381, %cst_446 [1] : vector<8x12xf32> to vector<8xf32>
    %1383 = vector.shape_cast %1382 : vector<8xf32> to vector<8x1xf32>
    %1384 = tpu.reciprocal %1383 {approx = true} : vector<8x1xf32> -> vector<8x1xf32>
    %1385 = vector.broadcast %1384 : vector<8x1xf32> to vector<8x12xf32>
    %1386 = arith.mulf %1381, %1385 : vector<8x12xf32>
    %1387 = vector.extract_strided_slice %1299 {offsets = [0, 12], sizes = [12, 4], strides = [1, 1]} : vector<12x32xf32> to vector<12x4xf32>
    %1388 = arith.truncf %1386 : vector<8x12xf32> to vector<8x12xbf16>
    %1389 = arith.truncf %1387 : vector<12x4xf32> to vector<12x4xbf16>
    %cst_447 = arith.constant dense<0.000000e+00> : vector<8x4xf32>
    %1390 = tpu.matmul %1388, %1389, %cst_447 {dimension_numbers = #tpu.dot_dimension_numbers<[1], [0], [0], [1], [0, 0, 1, 1], [], []>} : vector<8x12xbf16>, vector<12x4xbf16>, vector<8x4xf32> -> vector<8x4xf32>
    %1391 = vector.extract_strided_slice %1301 {offsets = [12, 0], sizes = [4, 32], strides = [1, 1]} : vector<32x32xbf16> to vector<4x32xbf16>
    %1392 = arith.truncf %1390 : vector<8x4xf32> to vector<8x4xbf16>
    %cst_448 = arith.constant dense<0.000000e+00> : vector<8x32xf32>
    %1393 = tpu.matmul %1392, %1391, %cst_448 {dimension_numbers = #tpu.dot_dimension_numbers<[1], [0], [0], [1], [0, 0, 1, 1], [], []>} : vector<8x4xbf16>, vector<4x32xbf16>, vector<8x32xf32> -> vector<8x32xf32>
    %1394 = arith.addf %1371, %1393 : vector<8x32xf32>
    %1395 = vector.extract_strided_slice %1289 {offsets = [0, 16], sizes = [8, 4], strides = [1, 1]} : vector<8x32xf32> to vector<8x4xf32>
    %1396 = vector.extract_strided_slice %1298 {offsets = [0, 16], sizes = [12, 4], strides = [1, 1]} : vector<12x32xf32> to vector<12x4xf32>
    %1397 = arith.truncf %1395 : vector<8x4xf32> to vector<8x4xbf16>
    %1398 = arith.truncf %1396 : vector<12x4xf32> to vector<12x4xbf16>
    %cst_449 = arith.constant dense<0.000000e+00> : vector<8x12xf32>
    %1399 = tpu.matmul %1397, %1398, %cst_449 {dimension_numbers = #tpu.dot_dimension_numbers<[1], [1], [0], [0], [0, 0, 1, 0], [], []>} : vector<8x4xbf16>, vector<12x4xbf16>, vector<8x12xf32> -> vector<8x12xf32>
    %cst_450 = arith.constant dense<0xFF800000> : vector<8xf32>
    %1400 = vector.multi_reduction <maximumf>, %1399, %cst_450 [1] : vector<8x12xf32> to vector<8xf32>
    %1401 = vector.shape_cast %1400 : vector<8xf32> to vector<8x1xf32>
    %1402 = vector.broadcast %1401 : vector<8x1xf32> to vector<8x12xf32>
    %1403 = arith.subf %1399, %1402 : vector<8x12xf32>
    %1404 = math.exp %1403 : vector<8x12xf32>
    %cst_451 = arith.constant dense<0.000000e+00> : vector<8xf32>
    %1405 = vector.multi_reduction <add>, %1404, %cst_451 [1] : vector<8x12xf32> to vector<8xf32>
    %1406 = vector.shape_cast %1405 : vector<8xf32> to vector<8x1xf32>
    %1407 = tpu.reciprocal %1406 {approx = true} : vector<8x1xf32> -> vector<8x1xf32>
    %1408 = vector.broadcast %1407 : vector<8x1xf32> to vector<8x12xf32>
    %1409 = arith.mulf %1404, %1408 : vector<8x12xf32>
    %1410 = vector.extract_strided_slice %1299 {offsets = [0, 16], sizes = [12, 4], strides = [1, 1]} : vector<12x32xf32> to vector<12x4xf32>
    %1411 = arith.truncf %1409 : vector<8x12xf32> to vector<8x12xbf16>
    %1412 = arith.truncf %1410 : vector<12x4xf32> to vector<12x4xbf16>
    %cst_452 = arith.constant dense<0.000000e+00> : vector<8x4xf32>
    %1413 = tpu.matmul %1411, %1412, %cst_452 {dimension_numbers = #tpu.dot_dimension_numbers<[1], [0], [0], [1], [0, 0, 1, 1], [], []>} : vector<8x12xbf16>, vector<12x4xbf16>, vector<8x4xf32> -> vector<8x4xf32>
    %1414 = vector.extract_strided_slice %1301 {offsets = [16, 0], sizes = [4, 32], strides = [1, 1]} : vector<32x32xbf16> to vector<4x32xbf16>
    %1415 = arith.truncf %1413 : vector<8x4xf32> to vector<8x4xbf16>
    %cst_453 = arith.constant dense<0.000000e+00> : vector<8x32xf32>
    %1416 = tpu.matmul %1415, %1414, %cst_453 {dimension_numbers = #tpu.dot_dimension_numbers<[1], [0], [0], [1], [0, 0, 1, 1], [], []>} : vector<8x4xbf16>, vector<4x32xbf16>, vector<8x32xf32> -> vector<8x32xf32>
    %1417 = arith.addf %1394, %1416 : vector<8x32xf32>
    %1418 = vector.extract_strided_slice %1289 {offsets = [0, 20], sizes = [8, 4], strides = [1, 1]} : vector<8x32xf32> to vector<8x4xf32>
    %1419 = vector.extract_strided_slice %1298 {offsets = [0, 20], sizes = [12, 4], strides = [1, 1]} : vector<12x32xf32> to vector<12x4xf32>
    %1420 = arith.truncf %1418 : vector<8x4xf32> to vector<8x4xbf16>
    %1421 = arith.truncf %1419 : vector<12x4xf32> to vector<12x4xbf16>
    %cst_454 = arith.constant dense<0.000000e+00> : vector<8x12xf32>
    %1422 = tpu.matmul %1420, %1421, %cst_454 {dimension_numbers = #tpu.dot_dimension_numbers<[1], [1], [0], [0], [0, 0, 1, 0], [], []>} : vector<8x4xbf16>, vector<12x4xbf16>, vector<8x12xf32> -> vector<8x12xf32>
    %cst_455 = arith.constant dense<0xFF800000> : vector<8xf32>
    %1423 = vector.multi_reduction <maximumf>, %1422, %cst_455 [1] : vector<8x12xf32> to vector<8xf32>
    %1424 = vector.shape_cast %1423 : vector<8xf32> to vector<8x1xf32>
    %1425 = vector.broadcast %1424 : vector<8x1xf32> to vector<8x12xf32>
    %1426 = arith.subf %1422, %1425 : vector<8x12xf32>
    %1427 = math.exp %1426 : vector<8x12xf32>
    %cst_456 = arith.constant dense<0.000000e+00> : vector<8xf32>
    %1428 = vector.multi_reduction <add>, %1427, %cst_456 [1] : vector<8x12xf32> to vector<8xf32>
    %1429 = vector.shape_cast %1428 : vector<8xf32> to vector<8x1xf32>
    %1430 = tpu.reciprocal %1429 {approx = true} : vector<8x1xf32> -> vector<8x1xf32>
    %1431 = vector.broadcast %1430 : vector<8x1xf32> to vector<8x12xf32>
    %1432 = arith.mulf %1427, %1431 : vector<8x12xf32>
    %1433 = vector.extract_strided_slice %1299 {offsets = [0, 20], sizes = [12, 4], strides = [1, 1]} : vector<12x32xf32> to vector<12x4xf32>
    %1434 = arith.truncf %1432 : vector<8x12xf32> to vector<8x12xbf16>
    %1435 = arith.truncf %1433 : vector<12x4xf32> to vector<12x4xbf16>
    %cst_457 = arith.constant dense<0.000000e+00> : vector<8x4xf32>
    %1436 = tpu.matmul %1434, %1435, %cst_457 {dimension_numbers = #tpu.dot_dimension_numbers<[1], [0], [0], [1], [0, 0, 1, 1], [], []>} : vector<8x12xbf16>, vector<12x4xbf16>, vector<8x4xf32> -> vector<8x4xf32>
    %1437 = vector.extract_strided_slice %1301 {offsets = [20, 0], sizes = [4, 32], strides = [1, 1]} : vector<32x32xbf16> to vector<4x32xbf16>
    %1438 = arith.truncf %1436 : vector<8x4xf32> to vector<8x4xbf16>
    %cst_458 = arith.constant dense<0.000000e+00> : vector<8x32xf32>
    %1439 = tpu.matmul %1438, %1437, %cst_458 {dimension_numbers = #tpu.dot_dimension_numbers<[1], [0], [0], [1], [0, 0, 1, 1], [], []>} : vector<8x4xbf16>, vector<4x32xbf16>, vector<8x32xf32> -> vector<8x32xf32>
    %1440 = arith.addf %1417, %1439 : vector<8x32xf32>
    %1441 = vector.extract_strided_slice %1289 {offsets = [0, 24], sizes = [8, 4], strides = [1, 1]} : vector<8x32xf32> to vector<8x4xf32>
    %1442 = vector.extract_strided_slice %1298 {offsets = [0, 24], sizes = [12, 4], strides = [1, 1]} : vector<12x32xf32> to vector<12x4xf32>
    %1443 = arith.truncf %1441 : vector<8x4xf32> to vector<8x4xbf16>
    %1444 = arith.truncf %1442 : vector<12x4xf32> to vector<12x4xbf16>
    %cst_459 = arith.constant dense<0.000000e+00> : vector<8x12xf32>
    %1445 = tpu.matmul %1443, %1444, %cst_459 {dimension_numbers = #tpu.dot_dimension_numbers<[1], [1], [0], [0], [0, 0, 1, 0], [], []>} : vector<8x4xbf16>, vector<12x4xbf16>, vector<8x12xf32> -> vector<8x12xf32>
    %cst_460 = arith.constant dense<0xFF800000> : vector<8xf32>
    %1446 = vector.multi_reduction <maximumf>, %1445, %cst_460 [1] : vector<8x12xf32> to vector<8xf32>
    %1447 = vector.shape_cast %1446 : vector<8xf32> to vector<8x1xf32>
    %1448 = vector.broadcast %1447 : vector<8x1xf32> to vector<8x12xf32>
    %1449 = arith.subf %1445, %1448 : vector<8x12xf32>
    %1450 = math.exp %1449 : vector<8x12xf32>
    %cst_461 = arith.constant dense<0.000000e+00> : vector<8xf32>
    %1451 = vector.multi_reduction <add>, %1450, %cst_461 [1] : vector<8x12xf32> to vector<8xf32>
    %1452 = vector.shape_cast %1451 : vector<8xf32> to vector<8x1xf32>
    %1453 = tpu.reciprocal %1452 {approx = true} : vector<8x1xf32> -> vector<8x1xf32>
    %1454 = vector.broadcast %1453 : vector<8x1xf32> to vector<8x12xf32>
    %1455 = arith.mulf %1450, %1454 : vector<8x12xf32>
    %1456 = vector.extract_strided_slice %1299 {offsets = [0, 24], sizes = [12, 4], strides = [1, 1]} : vector<12x32xf32> to vector<12x4xf32>
    %1457 = arith.truncf %1455 : vector<8x12xf32> to vector<8x12xbf16>
    %1458 = arith.truncf %1456 : vector<12x4xf32> to vector<12x4xbf16>
    %cst_462 = arith.constant dense<0.000000e+00> : vector<8x4xf32>
    %1459 = tpu.matmul %1457, %1458, %cst_462 {dimension_numbers = #tpu.dot_dimension_numbers<[1], [0], [0], [1], [0, 0, 1, 1], [], []>} : vector<8x12xbf16>, vector<12x4xbf16>, vector<8x4xf32> -> vector<8x4xf32>
    %1460 = vector.extract_strided_slice %1301 {offsets = [24, 0], sizes = [4, 32], strides = [1, 1]} : vector<32x32xbf16> to vector<4x32xbf16>
    %1461 = arith.truncf %1459 : vector<8x4xf32> to vector<8x4xbf16>
    %cst_463 = arith.constant dense<0.000000e+00> : vector<8x32xf32>
    %1462 = tpu.matmul %1461, %1460, %cst_463 {dimension_numbers = #tpu.dot_dimension_numbers<[1], [0], [0], [1], [0, 0, 1, 1], [], []>} : vector<8x4xbf16>, vector<4x32xbf16>, vector<8x32xf32> -> vector<8x32xf32>
    %1463 = arith.addf %1440, %1462 : vector<8x32xf32>
    %1464 = vector.extract_strided_slice %1289 {offsets = [0, 28], sizes = [8, 4], strides = [1, 1]} : vector<8x32xf32> to vector<8x4xf32>
    %1465 = vector.extract_strided_slice %1298 {offsets = [0, 28], sizes = [12, 4], strides = [1, 1]} : vector<12x32xf32> to vector<12x4xf32>
    %1466 = arith.truncf %1464 : vector<8x4xf32> to vector<8x4xbf16>
    %1467 = arith.truncf %1465 : vector<12x4xf32> to vector<12x4xbf16>
    %cst_464 = arith.constant dense<0.000000e+00> : vector<8x12xf32>
    %1468 = tpu.matmul %1466, %1467, %cst_464 {dimension_numbers = #tpu.dot_dimension_numbers<[1], [1], [0], [0], [0, 0, 1, 0], [], []>} : vector<8x4xbf16>, vector<12x4xbf16>, vector<8x12xf32> -> vector<8x12xf32>
    %cst_465 = arith.constant dense<0xFF800000> : vector<8xf32>
    %1469 = vector.multi_reduction <maximumf>, %1468, %cst_465 [1] : vector<8x12xf32> to vector<8xf32>
    %1470 = vector.shape_cast %1469 : vector<8xf32> to vector<8x1xf32>
    %1471 = vector.broadcast %1470 : vector<8x1xf32> to vector<8x12xf32>
    %1472 = arith.subf %1468, %1471 : vector<8x12xf32>
    %1473 = math.exp %1472 : vector<8x12xf32>
    %cst_466 = arith.constant dense<0.000000e+00> : vector<8xf32>
    %1474 = vector.multi_reduction <add>, %1473, %cst_466 [1] : vector<8x12xf32> to vector<8xf32>
    %1475 = vector.shape_cast %1474 : vector<8xf32> to vector<8x1xf32>
    %1476 = tpu.reciprocal %1475 {approx = true} : vector<8x1xf32> -> vector<8x1xf32>
    %1477 = vector.broadcast %1476 : vector<8x1xf32> to vector<8x12xf32>
    %1478 = arith.mulf %1473, %1477 : vector<8x12xf32>
    %1479 = vector.extract_strided_slice %1299 {offsets = [0, 28], sizes = [12, 4], strides = [1, 1]} : vector<12x32xf32> to vector<12x4xf32>
    %1480 = arith.truncf %1478 : vector<8x12xf32> to vector<8x12xbf16>
    %1481 = arith.truncf %1479 : vector<12x4xf32> to vector<12x4xbf16>
    %cst_467 = arith.constant dense<0.000000e+00> : vector<8x4xf32>
    %1482 = tpu.matmul %1480, %1481, %cst_467 {dimension_numbers = #tpu.dot_dimension_numbers<[1], [0], [0], [1], [0, 0, 1, 1], [], []>} : vector<8x12xbf16>, vector<12x4xbf16>, vector<8x4xf32> -> vector<8x4xf32>
    %1483 = vector.extract_strided_slice %1301 {offsets = [28, 0], sizes = [4, 32], strides = [1, 1]} : vector<32x32xbf16> to vector<4x32xbf16>
    %1484 = arith.truncf %1482 : vector<8x4xf32> to vector<8x4xbf16>
    %cst_468 = arith.constant dense<0.000000e+00> : vector<8x32xf32>
    %1485 = tpu.matmul %1484, %1483, %cst_468 {dimension_numbers = #tpu.dot_dimension_numbers<[1], [0], [0], [1], [0, 0, 1, 1], [], []>} : vector<8x4xbf16>, vector<4x32xbf16>, vector<8x32xf32> -> vector<8x32xf32>
    %1486 = arith.addf %1463, %1485 : vector<8x32xf32>
    %1487 = vector.broadcast %1303 : vector<1x32xf32> to vector<8x32xf32>
    %1488 = arith.addf %1486, %1487 : vector<8x32xf32>
    %1489 = arith.addf %1281, %1488 : vector<8x32xf32>
    %c2_469 = arith.constant 2 : index
    %c1_470 = arith.constant 1 : index
    %c0_471 = arith.constant 0 : index
    %c0_472 = arith.constant 0 : index
    %1490 = vector.load %arg17[%c2_469, %c1_470, %c0_471, %c0_472] : memref<3x3x1x32xf32, #tpu.memory_space<vmem>>, vector<1x1x1x32xf32>
    %1491 = vector.shape_cast %1490 : vector<1x1x1x32xf32> to vector<1x32xf32>
    %c2_473 = arith.constant 2 : index
    %c1_474 = arith.constant 1 : index
    %c0_475 = arith.constant 0 : index
    %c0_476 = arith.constant 0 : index
    %1492 = vector.load %arg18[%c2_473, %c1_474, %c0_475, %c0_476] : memref<3x3x1x32xf32, #tpu.memory_space<vmem>>, vector<1x1x1x32xf32>
    %1493 = vector.shape_cast %1492 : vector<1x1x1x32xf32> to vector<1x32xf32>
    %cst_477 = arith.constant dense<0.000000e+00> : vector<8xf32>
    %1494 = vector.multi_reduction <add>, %1489, %cst_477 [1] : vector<8x32xf32> to vector<8xf32>
    %1495 = vector.shape_cast %1494 : vector<8xf32> to vector<8x1xf32>
    %cst_478 = arith.constant 3.200000e+01 : f32
    %1496 = vector.broadcast %cst_478 : f32 to vector<8x1xf32>
    %1497 = arith.divf %1495, %1496 : vector<8x1xf32>
    %1498 = vector.broadcast %1497 : vector<8x1xf32> to vector<8x32xf32>
    %1499 = arith.subf %1489, %1498 : vector<8x32xf32>
    %1500 = arith.mulf %1499, %1499 : vector<8x32xf32>
    %cst_479 = arith.constant dense<0.000000e+00> : vector<8xf32>
    %1501 = vector.multi_reduction <add>, %1500, %cst_479 [1] : vector<8x32xf32> to vector<8xf32>
    %1502 = vector.shape_cast %1501 : vector<8xf32> to vector<8x1xf32>
    %cst_480 = arith.constant 3.200000e+01 : f32
    %1503 = vector.broadcast %cst_480 : f32 to vector<8x1xf32>
    %1504 = arith.divf %1502, %1503 : vector<8x1xf32>
    %cst_481 = arith.constant 9.99999974E-6 : f32
    %1505 = vector.broadcast %cst_481 : f32 to vector<8x1xf32>
    %1506 = arith.addf %1504, %1505 : vector<8x1xf32>
    %1507 = math.rsqrt %1506 : vector<8x1xf32>
    %1508 = vector.broadcast %1507 : vector<8x1xf32> to vector<8x32xf32>
    %1509 = arith.mulf %1499, %1508 : vector<8x32xf32>
    %1510 = vector.broadcast %1491 : vector<1x32xf32> to vector<8x32xf32>
    %1511 = arith.mulf %1509, %1510 : vector<8x32xf32>
    %1512 = vector.broadcast %1493 : vector<1x32xf32> to vector<8x32xf32>
    %1513 = arith.addf %1511, %1512 : vector<8x32xf32>
    %c2_482 = arith.constant 2 : index
    %c0_483 = arith.constant 0 : index
    %c0_484 = arith.constant 0 : index
    %1514 = vector.load %arg13[%c2_482, %c0_483, %c0_484] : memref<3x32x64xbf16, #tpu.memory_space<vmem>>, vector<1x32x64xbf16>
    %1515 = vector.shape_cast %1514 : vector<1x32x64xbf16> to vector<32x64xbf16>
    %1516 = arith.truncf %1513 : vector<8x32xf32> to vector<8x32xbf16>
    %cst_485 = arith.constant dense<0.000000e+00> : vector<8x64xf32>
    %1517 = tpu.matmul %1516, %1515, %cst_485 {dimension_numbers = #tpu.dot_dimension_numbers<[1], [0], [0], [1], [0, 0, 1, 1], [], []>} : vector<8x32xbf16>, vector<32x64xbf16>, vector<8x64xf32> -> vector<8x64xf32>
    %c2_486 = arith.constant 2 : index
    %c0_487 = arith.constant 0 : index
    %c0_488 = arith.constant 0 : index
    %1518 = vector.load %arg14[%c2_486, %c0_487, %c0_488] : memref<3x1x64xf32, #tpu.memory_space<vmem>>, vector<1x1x64xf32>
    %1519 = vector.shape_cast %1518 : vector<1x1x64xf32> to vector<1x64xf32>
    %1520 = vector.broadcast %1519 : vector<1x64xf32> to vector<8x64xf32>
    %1521 = arith.addf %1517, %1520 : vector<8x64xf32>
    %cst_489 = arith.constant 5.000000e-01 : f32
    %1522 = vector.broadcast %cst_489 : f32 to vector<8x64xf32>
    %1523 = arith.mulf %1522, %1521 : vector<8x64xf32>
    %cst_490 = arith.constant 4.471500e-02 : f32
    %1524 = vector.broadcast %cst_490 : f32 to vector<8x64xf32>
    %1525 = arith.mulf %1524, %1521 : vector<8x64xf32>
    %1526 = arith.mulf %1525, %1521 : vector<8x64xf32>
    %1527 = arith.mulf %1526, %1521 : vector<8x64xf32>
    %1528 = arith.addf %1521, %1527 : vector<8x64xf32>
    %cst_491 = arith.constant 0.797884583 : f32
    %1529 = vector.broadcast %cst_491 : f32 to vector<8x64xf32>
    %1530 = arith.mulf %1529, %1528 : vector<8x64xf32>
    %1531 = math.tanh %1530 : vector<8x64xf32>
    %cst_492 = arith.constant 1.000000e+00 : f32
    %1532 = vector.broadcast %cst_492 : f32 to vector<8x64xf32>
    %1533 = arith.addf %1532, %1531 : vector<8x64xf32>
    %1534 = arith.mulf %1523, %1533 : vector<8x64xf32>
    %c2_493 = arith.constant 2 : index
    %c0_494 = arith.constant 0 : index
    %c0_495 = arith.constant 0 : index
    %1535 = vector.load %arg15[%c2_493, %c0_494, %c0_495] : memref<3x64x32xbf16, #tpu.memory_space<vmem>>, vector<1x64x32xbf16>
    %1536 = vector.shape_cast %1535 : vector<1x64x32xbf16> to vector<64x32xbf16>
    %1537 = arith.truncf %1534 : vector<8x64xf32> to vector<8x64xbf16>
    %cst_496 = arith.constant dense<0.000000e+00> : vector<8x32xf32>
    %1538 = tpu.matmul %1537, %1536, %cst_496 {dimension_numbers = #tpu.dot_dimension_numbers<[1], [0], [0], [1], [0, 0, 1, 1], [], []>} : vector<8x64xbf16>, vector<64x32xbf16>, vector<8x32xf32> -> vector<8x32xf32>
    %c2_497 = arith.constant 2 : index
    %c0_498 = arith.constant 0 : index
    %c0_499 = arith.constant 0 : index
    %1539 = vector.load %arg16[%c2_497, %c0_498, %c0_499] : memref<3x1x32xf32, #tpu.memory_space<vmem>>, vector<1x1x32xf32>
    %1540 = vector.shape_cast %1539 : vector<1x1x32xf32> to vector<1x32xf32>
    %1541 = vector.broadcast %1540 : vector<1x32xf32> to vector<8x32xf32>
    %1542 = arith.addf %1538, %1541 : vector<8x32xf32>
    %1543 = arith.addf %1513, %1542 : vector<8x32xf32>
    %c2_500 = arith.constant 2 : index
    %c2_501 = arith.constant 2 : index
    %c0_502 = arith.constant 0 : index
    %c0_503 = arith.constant 0 : index
    %1544 = vector.load %arg17[%c2_500, %c2_501, %c0_502, %c0_503] : memref<3x3x1x32xf32, #tpu.memory_space<vmem>>, vector<1x1x1x32xf32>
    %1545 = vector.shape_cast %1544 : vector<1x1x1x32xf32> to vector<1x32xf32>
    %c2_504 = arith.constant 2 : index
    %c2_505 = arith.constant 2 : index
    %c0_506 = arith.constant 0 : index
    %c0_507 = arith.constant 0 : index
    %1546 = vector.load %arg18[%c2_504, %c2_505, %c0_506, %c0_507] : memref<3x3x1x32xf32, #tpu.memory_space<vmem>>, vector<1x1x1x32xf32>
    %1547 = vector.shape_cast %1546 : vector<1x1x1x32xf32> to vector<1x32xf32>
    %cst_508 = arith.constant dense<0.000000e+00> : vector<8xf32>
    %1548 = vector.multi_reduction <add>, %1543, %cst_508 [1] : vector<8x32xf32> to vector<8xf32>
    %1549 = vector.shape_cast %1548 : vector<8xf32> to vector<8x1xf32>
    %cst_509 = arith.constant 3.200000e+01 : f32
    %1550 = vector.broadcast %cst_509 : f32 to vector<8x1xf32>
    %1551 = arith.divf %1549, %1550 : vector<8x1xf32>
    %1552 = vector.broadcast %1551 : vector<8x1xf32> to vector<8x32xf32>
    %1553 = arith.subf %1543, %1552 : vector<8x32xf32>
    %1554 = arith.mulf %1553, %1553 : vector<8x32xf32>
    %cst_510 = arith.constant dense<0.000000e+00> : vector<8xf32>
    %1555 = vector.multi_reduction <add>, %1554, %cst_510 [1] : vector<8x32xf32> to vector<8xf32>
    %1556 = vector.shape_cast %1555 : vector<8xf32> to vector<8x1xf32>
    %cst_511 = arith.constant 3.200000e+01 : f32
    %1557 = vector.broadcast %cst_511 : f32 to vector<8x1xf32>
    %1558 = arith.divf %1556, %1557 : vector<8x1xf32>
    %cst_512 = arith.constant 9.99999974E-6 : f32
    %1559 = vector.broadcast %cst_512 : f32 to vector<8x1xf32>
    %1560 = arith.addf %1558, %1559 : vector<8x1xf32>
    %1561 = math.rsqrt %1560 : vector<8x1xf32>
    %1562 = vector.broadcast %1561 : vector<8x1xf32> to vector<8x32xf32>
    %1563 = arith.mulf %1553, %1562 : vector<8x32xf32>
    %1564 = vector.broadcast %1545 : vector<1x32xf32> to vector<8x32xf32>
    %1565 = arith.mulf %1563, %1564 : vector<8x32xf32>
    %1566 = vector.broadcast %1547 : vector<1x32xf32> to vector<8x32xf32>
    %1567 = arith.addf %1565, %1566 : vector<8x32xf32>
    %c0_513 = arith.constant 0 : index
    %c0_514 = arith.constant 0 : index
    %1568 = vector.load %arg19[%c0_513, %c0_514] : memref<1x32xf32, #tpu.memory_space<vmem>>, vector<1x32xf32>
    %c0_515 = arith.constant 0 : index
    %c0_516 = arith.constant 0 : index
    %1569 = vector.load %arg20[%c0_515, %c0_516] : memref<1x32xf32, #tpu.memory_space<vmem>>, vector<1x32xf32>
    %cst_517 = arith.constant dense<0.000000e+00> : vector<8xf32>
    %1570 = vector.multi_reduction <add>, %1567, %cst_517 [1] : vector<8x32xf32> to vector<8xf32>
    %1571 = vector.shape_cast %1570 : vector<8xf32> to vector<8x1xf32>
    %cst_518 = arith.constant 3.200000e+01 : f32
    %1572 = vector.broadcast %cst_518 : f32 to vector<8x1xf32>
    %1573 = arith.divf %1571, %1572 : vector<8x1xf32>
    %1574 = vector.broadcast %1573 : vector<8x1xf32> to vector<8x32xf32>
    %1575 = arith.subf %1567, %1574 : vector<8x32xf32>
    %1576 = arith.mulf %1575, %1575 : vector<8x32xf32>
    %cst_519 = arith.constant dense<0.000000e+00> : vector<8xf32>
    %1577 = vector.multi_reduction <add>, %1576, %cst_519 [1] : vector<8x32xf32> to vector<8xf32>
    %1578 = vector.shape_cast %1577 : vector<8xf32> to vector<8x1xf32>
    %cst_520 = arith.constant 3.200000e+01 : f32
    %1579 = vector.broadcast %cst_520 : f32 to vector<8x1xf32>
    %1580 = arith.divf %1578, %1579 : vector<8x1xf32>
    %cst_521 = arith.constant 9.99999974E-6 : f32
    %1581 = vector.broadcast %cst_521 : f32 to vector<8x1xf32>
    %1582 = arith.addf %1580, %1581 : vector<8x1xf32>
    %1583 = math.rsqrt %1582 : vector<8x1xf32>
    %1584 = vector.broadcast %1583 : vector<8x1xf32> to vector<8x32xf32>
    %1585 = arith.mulf %1575, %1584 : vector<8x32xf32>
    %1586 = vector.broadcast %1568 : vector<1x32xf32> to vector<8x32xf32>
    %1587 = arith.mulf %1585, %1586 : vector<8x32xf32>
    %1588 = vector.broadcast %1569 : vector<1x32xf32> to vector<8x32xf32>
    %1589 = arith.addf %1587, %1588 : vector<8x32xf32>
    %c0_522 = arith.constant 0 : index
    %c0_523 = arith.constant 0 : index
    %c0_524 = arith.constant 0 : index
    %1590 = vector.load %arg21[%c0_522, %c0_523, %c0_524] : memref<1x8x32xf32, #tpu.memory_space<vmem>>, vector<1x8x32xf32>
    %1591 = vector.shape_cast %1590 : vector<1x8x32xf32> to vector<8x32xf32>
    %1592 = vector.shape_cast %1589 : vector<8x32xf32> to vector<1x8x32xf32>
    tpu.vector_store %arg21[%c0_522, %c0_523, %c0_524], %1592 {strides = array<i32>} : memref<1x8x32xf32, #tpu.memory_space<vmem>>, vector<1x8x32xf32>,
    return
  }
  func.func @transform_0(%arg0: i32) -> (i32, i32, i32) {
    %c0_i32 = arith.constant 0 : i32
    %c0_i32_0 = arith.constant 0 : i32
    %c0_i32_1 = arith.constant 0 : i32
    return %arg0, %c0_i32, %c0_i32_0 : i32, i32, i32
  }
  func.func @transform_1(%arg0: i32) -> (i32, i32, i32) {
    %c0_i32 = arith.constant 0 : i32
    %c0_i32_0 = arith.constant 0 : i32
    %c0_i32_1 = arith.constant 0 : i32
    return %arg0, %c0_i32, %c0_i32_0 : i32, i32, i32
  }
  func.func @transform_2(%arg0: i32) -> (i32, i32, i32) {
    %c0_i32 = arith.constant 0 : i32
    %c0_i32_0 = arith.constant 0 : i32
    %c0_i32_1 = arith.constant 0 : i32
    %c0_i32_2 = arith.constant 0 : i32
    return %c0_i32, %c0_i32_0, %c0_i32_1 : i32, i32, i32
  }
  func.func @transform_3(%arg0: i32) -> (i32, i32, i32) {
    %c0_i32 = arith.constant 0 : i32
    %c0_i32_0 = arith.constant 0 : i32
    %c0_i32_1 = arith.constant 0 : i32
    %c0_i32_2 = arith.constant 0 : i32
    return %c0_i32, %c0_i32_0, %c0_i32_1 : i32, i32, i32
  }
  func.func @transform_4(%arg0: i32) -> (i32, i32, i32) {
    %c0_i32 = arith.constant 0 : i32
    %c0_i32_0 = arith.constant 0 : i32
    %c0_i32_1 = arith.constant 0 : i32
    %c0_i32_2 = arith.constant 0 : i32
    return %c0_i32, %c0_i32_0, %c0_i32_1 : i32, i32, i32
  }
  func.func @transform_5(%arg0: i32) -> (i32, i32, i32) {
    %c0_i32 = arith.constant 0 : i32
    %c0_i32_0 = arith.constant 0 : i32
    %c0_i32_1 = arith.constant 0 : i32
    %c0_i32_2 = arith.constant 0 : i32
    return %c0_i32, %c0_i32_0, %c0_i32_1 : i32, i32, i32
  }
  func.func @transform_6(%arg0: i32) -> (i32, i32, i32) {
    %c0_i32 = arith.constant 0 : i32
    %c0_i32_0 = arith.constant 0 : i32
    %c0_i32_1 = arith.constant 0 : i32
    %c0_i32_2 = arith.constant 0 : i32
    return %c0_i32, %c0_i32_0, %c0_i32_1 : i32, i32, i32
  }
  func.func @transform_7(%arg0: i32) -> (i32, i32, i32) {
    %c0_i32 = arith.constant 0 : i32
    %c0_i32_0 = arith.constant 0 : i32
    %c0_i32_1 = arith.constant 0 : i32
    %c0_i32_2 = arith.constant 0 : i32
    return %c0_i32, %c0_i32_0, %c0_i32_1 : i32, i32, i32
  }
  func.func @transform_8(%arg0: i32) -> (i32, i32, i32) {
    %c0_i32 = arith.constant 0 : i32
    %c0_i32_0 = arith.constant 0 : i32
    %c0_i32_1 = arith.constant 0 : i32
    %c0_i32_2 = arith.constant 0 : i32
    return %c0_i32, %c0_i32_0, %c0_i32_1 : i32, i32, i32
  }
  func.func @transform_9(%arg0: i32) -> (i32, i32, i32) {
    %c0_i32 = arith.constant 0 : i32
    %c0_i32_0 = arith.constant 0 : i32
    %c0_i32_1 = arith.constant 0 : i32
    %c0_i32_2 = arith.constant 0 : i32
    return %c0_i32, %c0_i32_0, %c0_i32_1 : i32, i32, i32
  }
  func.func @transform_10(%arg0: i32) -> (i32, i32, i32) {
    %c0_i32 = arith.constant 0 : i32
    %c0_i32_0 = arith.constant 0 : i32
    %c0_i32_1 = arith.constant 0 : i32
    %c0_i32_2 = arith.constant 0 : i32
    return %c0_i32, %c0_i32_0, %c0_i32_1 : i32, i32, i32
  }
  func.func @transform_11(%arg0: i32) -> (i32, i32, i32) {
    %c0_i32 = arith.constant 0 : i32
    %c0_i32_0 = arith.constant 0 : i32
    %c0_i32_1 = arith.constant 0 : i32
    %c0_i32_2 = arith.constant 0 : i32
    return %c0_i32, %c0_i32_0, %c0_i32_1 : i32, i32, i32
  }
  func.func @transform_12(%arg0: i32) -> (i32, i32, i32) {
    %c0_i32 = arith.constant 0 : i32
    %c0_i32_0 = arith.constant 0 : i32
    %c0_i32_1 = arith.constant 0 : i32
    %c0_i32_2 = arith.constant 0 : i32
    return %c0_i32, %c0_i32_0, %c0_i32_1 : i32, i32, i32
  }
  func.func @transform_13(%arg0: i32) -> (i32, i32, i32) {
    %c0_i32 = arith.constant 0 : i32
    %c0_i32_0 = arith.constant 0 : i32
    %c0_i32_1 = arith.constant 0 : i32
    %c0_i32_2 = arith.constant 0 : i32
    return %c0_i32, %c0_i32_0, %c0_i32_1 : i32, i32, i32
  }
  func.func @transform_14(%arg0: i32) -> (i32, i32, i32) {
    %c0_i32 = arith.constant 0 : i32
    %c0_i32_0 = arith.constant 0 : i32
    %c0_i32_1 = arith.constant 0 : i32
    %c0_i32_2 = arith.constant 0 : i32
    return %c0_i32, %c0_i32_0, %c0_i32_1 : i32, i32, i32
  }
  func.func @transform_15(%arg0: i32) -> (i32, i32, i32) {
    %c0_i32 = arith.constant 0 : i32
    %c0_i32_0 = arith.constant 0 : i32
    %c0_i32_1 = arith.constant 0 : i32
    %c0_i32_2 = arith.constant 0 : i32
    return %c0_i32, %c0_i32_0, %c0_i32_1 : i32, i32, i32
  }
  func.func @transform_16(%arg0: i32) -> (i32, i32, i32, i32) {
    %c0_i32 = arith.constant 0 : i32
    %c0_i32_0 = arith.constant 0 : i32
    %c0_i32_1 = arith.constant 0 : i32
    %c0_i32_2 = arith.constant 0 : i32
    %c0_i32_3 = arith.constant 0 : i32
    return %c0_i32, %c0_i32_0, %c0_i32_1, %c0_i32_2 : i32, i32, i32, i32
  }
  func.func @transform_17(%arg0: i32) -> (i32, i32, i32, i32) {
    %c0_i32 = arith.constant 0 : i32
    %c0_i32_0 = arith.constant 0 : i32
    %c0_i32_1 = arith.constant 0 : i32
    %c0_i32_2 = arith.constant 0 : i32
    %c0_i32_3 = arith.constant 0 : i32
    return %c0_i32, %c0_i32_0, %c0_i32_1, %c0_i32_2 : i32, i32, i32, i32
  }
  func.func @transform_18(%arg0: i32) -> (i32, i32) {
    %c0_i32 = arith.constant 0 : i32
    %c0_i32_0 = arith.constant 0 : i32
    %c0_i32_1 = arith.constant 0 : i32
    return %c0_i32, %c0_i32_0 : i32, i32
  }
  func.func @transform_19(%arg0: i32) -> (i32, i32) {
    %c0_i32 = arith.constant 0 : i32
    %c0_i32_0 = arith.constant 0 : i32
    %c0_i32_1 = arith.constant 0 : i32
    return %c0_i32, %c0_i32_0 : i32, i32
  }
  func.func @transform_20(%arg0: i32) -> (i32, i32, i32) {
    %c0_i32 = arith.constant 0 : i32
    %c0_i32_0 = arith.constant 0 : i32
    %c0_i32_1 = arith.constant 0 : i32
    return %arg0, %c0_i32, %c0_i32_0 : i32, i32, i32
  }
}

</mosaic_0001>

<bundles_post_ra>
// kernel: tpu_custom_call.1
= control target key start
LH: loop header
LB: loop body
LE: loop exit
PB: predicated region body
PF: predicated region fallthrough
CT: control target
= control target key end

     0   :  { %s14699_s0 = inlined_call_operand.hbm [shape: f32[2,8,32], index: 0, kind: input, shape index: {}]   ;;  %s14700_s1 = inlined_call_operand.vmem [shape: f32[2,12,32], index: 1, kind: input, shape index: {}]   ;;  %s14701_s2 = inlined_call_operand.vmem [shape: bf16[3,32,96], index: 2, kind: input, shape index: {}]   ;;  %s14702_s3 = inlined_call_operand.hbm [shape: f32[3,1,96], index: 3, kind: input, shape index: {}]   ;;  %s14703_s4 = inlined_call_operand.vmem [shape: bf16[3,32,32], index: 4, kind: input, shape index: {}]   ;;  %s14704_s5 = inlined_call_operand.hbm [shape: f32[3,1,32], index: 5, kind: input, shape index: {}]   ;;  %s14705_s6 = inlined_call_operand.vmem [shape: bf16[3,32,32], index: 6, kind: input, shape index: {}]   ;;  %s14706_s7 = inlined_call_operand.hbm [shape: f32[3,1,32], index: 7, kind: input, shape index: {}]   ;;  %s14707_s8 = inlined_call_operand.vmem [shape: bf16[3,32,64], index: 8, kind: input, shape index: {}]   ;;  %s14708_s9 = inlined_call_operand.hbm [shape: f32[3,1,64], index: 9, kind: input, shape index: {}]   ;;  %s14709_s10 = inlined_call_operand.hbm [shape: bf16[3,32,32], index: 10, kind: input, shape index: {}]   ;;  %s14710_s11 = inlined_call_operand.hbm [shape: f32[3,1,32], index: 11, kind: input, shape index: {}]   ;;  %s14711_s12 = inlined_call_operand.hbm [shape: bf16[3,32,64], index: 12, kind: input, shape index: {}]   ;;  %s14712_s13 = inlined_call_operand.hbm [shape: f32[3,1,64], index: 13, kind: input, shape index: {}]   ;;  %s14713_s14 = inlined_call_operand.vmem [shape: bf16[3,64,32], index: 14, kind: input, shape index: {}]   ;;  %s14714_s15 = inlined_call_operand.hbm [shape: f32[3,1,32], index: 15, kind: input, shape index: {}]   ;;  %s14715_s16 = inlined_call_operand.vmem [shape: f32[3,3,1,32], index: 16, kind: input, shape index: {}]   ;;  %s14716_s17 = inlined_call_operand.vmem [shape: f32[3,3,1,32], index: 17, kind: input, shape index: {}]   ;;  %s14717_s18 = inlined_call_operand.vmem [shape: f32[1,32], index: 18, kind: input, shape index: {}]   ;;  %s14718_s19 = inlined_call_operand.vmem [shape: f32[1,32], index: 19, kind: input, shape index: {}]   ;;  %s14719_s20 = inlined_call_operand.hbm [shape: f32[2,8,32], index: 20, kind: output, shape index: {}]  }
   0x1   :  { %14800 = sst [smem:[#allocation37_spill]] %s14699_s0 }
   0x2   :  { %14801 = sst [smem:[#allocation38_spill]] %s14700_s1 }
   0x3   :  { %14802 = sst [smem:[#allocation39_spill]] %s14701_s2 }
   0x4   :  { %14803 = sst [smem:[#allocation40_spill]] %s14702_s3 }
   0x5   :  { %14804 = sst [smem:[#allocation41_spill]] %s14703_s4 }
   0x6   :  { %14805 = sst [smem:[#allocation42_spill]] %s14704_s5 }
   0x7   :  { %14806 = sst [smem:[#allocation43_spill]] %s14705_s6 }
   0x8   :  { %14807 = sst [smem:[#allocation44_spill]] %s14706_s7 }
   0x9   :  { %14808 = sst [smem:[#allocation45_spill]] %s14707_s8 }
   0xa   :  { %14809 = sst [smem:[#allocation46_spill]] %s14708_s9 }
   0xb   :  { %14810 = sst [smem:[#allocation47_spill]] %s14709_s10 }
   0xc   :  { %14811 = sst [smem:[#allocation48_spill]] %s14710_s11 }
   0xd   :  { %14812 = sst [smem:[#allocation49_spill]] %s14711_s12 }
   0xe   :  { %14813 = sst [smem:[#allocation50_spill]] %s14712_s13 }
   0xf   :  { %14814 = sst [smem:[#allocation51_spill]] %s14713_s14 }
  0x10   :  { %14815 = sst [smem:[#allocation52_spill]] %s14714_s15 }
  0x11   :  { %14816 = sst [smem:[#allocation53_spill]] %s14715_s16 }
  0x12   :  { %14817 = sst [smem:[#allocation54_spill]] %s14716_s17 }
  0x13   :  { %14818 = sst [smem:[#allocation55_spill]] %s14717_s18 }
  0x14   :  { %14819 = sst [smem:[#allocation56_spill]] %s14718_s19 }
  0x15   :  { %14820 = sst [smem:[#allocation57_spill]] %s14719_s20 }
  0x16   :  { %25 = vsyncpa [#allocation3], 0 }
  0x17   :  { %27 = vsyncpa [#allocation3 + $0x1], 0 }
  0x18   :  { %28 = vsyncpa [#allocation6], 0 }
  0x19   :  { %29 = vsyncpa [#allocation9], 0 }
  0x1a   :  { %30 = vsyncpa [#allocation12], 0 }
  0x1b   :  { %31 = vsyncpa [#allocation15], 0 }
  0x1c   :  { %32 = vsyncpa [#allocation18], 0 }
  0x1d   :  { %33 = vsyncpa [#allocation4], 0 }
  0x1e   :  { %35 = vsyncpa [#allocation4 + $0x1], 0  ;;  %s12811_s1 = smov 0   ;;  %s12813_s22 = smov 0  }
  0x1f   :  { %s12815_s23 = smov 0   ;;  %s12817_s24 = smov 0  }
  0x20 LB: > { %14821 = sst [smem:[#allocation27_spill]] %s12652_s1  ;;  %s12666_s2 = smov [#allocation5]   ;;  %s12664_s24 = sphi %s12817_s24, %s14914_s24   ;;  %s12660_s23 = sphi %s12815_s23, %s14917_s23   ;;  %s12656_s22 = sphi %s12813_s22, %s14916_s22   ;;  %s12652_s1 = sphi %s12811_s1, %s14915_s1  }
  0x21   : > { %14822 = sst [smem:[#allocation28_spill]] %s12656_s22  ;;  %s517_s25 = sshll.u32 %s12666_s2, 4  ;;  %s12837_s25 = int_to_ptr.vmem [resolvable:$true] %s517_s25 }
  0x22   : > { %14823 = sst [smem:[#allocation29_spill]] %s12660_s23  ;;  %s12832_s3 = sadd.s32 4294967295, %s12664_s24  }
  0x23   : > { %14824 = sst [smem:[#allocation30_spill]] %s12664_s24  ;;  %p10159_p0 = scmp.ge.s32.totalorder %s12664_s24, 1 }
  0x24   : > { %14825 = sst [smem:[#allocation31_spill]] %s12832_s3  ;;  %p14735_p1 = scmp.eq.s32.totalorder %s12832_s3, 0 }
  0x25   : > { %p502_p2 = scmp.lt.s32.totalorder %s12664_s24, 3  ;;  %s12667_s27 = smov [#allocation8]  }
  0x26   : > { %s549_s28 = sshll.u32 %s12667_s27, 4  ;;  %s12668_s29 = smov [#allocation11]   ;;  %s12852_s28 = int_to_ptr.vmem [resolvable:$true] %s549_s28 }
  0x27   : > { %p12839_p3 = pnand %p10159_p0, %p502_p2  ;;  %s578_s30 = sshll.u32 %s12668_s29, 4  ;;  %s12854_s30 = int_to_ptr.vmem [resolvable:$true] %s578_s30 }
  0x28   : > { %s14828_s2 = sld [smem:[#allocation40_spill]] }
  0x29   : > { %s14826_s26 = scalar_select %p12839_p3, 1, 0 }
  0x2a   : > { %p11891_p5 = pneg %p12839_p3 }
  0x2c   : > { %p12848_p6 = pnand %p11891_p5, %p14735_p1 }
  0x2e   : > { %s12296_s20 = scalar_lea.hbm %s14828_s2, 48  ;;  %p12864_p8 = pneg %p12848_p6 }
  0x2f   : > { %p12297_p7 = scmp.ne.s32.totalorder %s14828_s2, %s12296_s20  ;;  %p12303_p11 = scmp.lt.u32.totalorder %s12296_s20, %s14828_s2 }
  0x31   : > { %p12299_p9 = pnand %p12864_p8, %p12297_p7 }
  0x33   : > { %p12300_p10 = pneg %p12299_p9 }
  0x35   : > { %p12305_p12 = pnand %p12303_p11, %p12300_p10 }
  0x37   : > { %12308 = shalt.err (!%p12305_p12)
}
  0x38   : > { %s12309_s18 = scalar_lea.vmem %s12837_s25, 48  ;;  %s12316_s19 = scalar_lea.vmem %s12837_s25, 64 }
  0x39   : > { %p12310_p13 = scmp.ne.s32.totalorder %s12837_s25, %s12309_s18  ;;  %p12317_p5 = scmp.lt.s32.totalorder %s12837_s25, %s12837_s25 }
  0x3a   : > { %p12318_p7 = scmp.lt.s32.totalorder %s12316_s19, %s12309_s18 }
  0x3b   : > { %p12312_p0 = pnand %p12310_p13, %p12864_p8 }
  0x3c   : > { %p12319_p9 = por %p12318_p7, %p12317_p5 }
  0x3d   : > { %p12313_p2 = pneg %p12312_p0 }
  0x3f   : > { %p12320_p4 = pnand %p12319_p9, %p12313_p2 }
  0x41   : > { %12323 = shalt.err (!%p12320_p4)
}
  0x42   : > { %s14730_s14 = smov 16   ;;  %s14732_s20 = smov 1  }
  0x43   : > { %11894 = dma.hbm_to_vmem [thread:$0]  (!%p12848_p6), %s14828_s2, 48, %s12837_s25, [#allocation6], %s14730_s14, %s14730_s14, %s14732_s20  }
  0x44   : > { %s14830_s7 = sld [smem:[#allocation44_spill]] }
  0x4a   : > { %s12324_s18 = scalar_lea.hbm %s14830_s7, 48 }
  0x4b   : > { %p12325_p4 = scmp.ne.s32.totalorder %s14830_s7, %s12324_s18  ;;  %p12331_p12 = scmp.lt.u32.totalorder %s12324_s18, %s14830_s7 }
  0x4d   : > { %p12327_p10 = pnand %p12325_p4, %p12864_p8 }
  0x4f   : > { %p12328_p11 = pneg %p12327_p10 }
  0x51   : > { %p12333_p13 = pnand %p12331_p12, %p12328_p11 }
  0x53   : > { %12336 = shalt.err (!%p12333_p13)
}
  0x54   : > { %s12337_s17 = scalar_lea.vmem %s12852_s28, 48  ;;  %s12344_s16 = scalar_lea.vmem %s12852_s28, 64 }
  0x55   : > { %p12338_p0 = scmp.ne.s32.totalorder %s12852_s28, %s12337_s17  ;;  %p12345_p7 = scmp.lt.s32.totalorder %s12852_s28, %s12852_s28 }
  0x56   : > { %p12346_p9 = scmp.lt.s32.totalorder %s12344_s16, %s12337_s17 }
  0x57   : > { %p12340_p2 = pnand %p12338_p0, %p12864_p8 }
  0x58   : > { %p12347_p4 = por %p12346_p9, %p12345_p7 }
  0x59   : > { %p12341_p5 = pneg %p12340_p2 }
  0x5b   : > { %p12348_p10 = pnand %p12347_p4, %p12341_p5 }
  0x5d   : > { %12351 = shalt.err (!%p12348_p10)
}
  0x5e   : > { %11900 = dma.hbm_to_vmem [thread:$0]  (!%p12848_p6), %s14830_s7, 48, %s12852_s28, [#allocation9], %s14730_s14, %s14730_s14, %s14732_s20  }
  0x5f   : > { %s14831_s10 = sld [smem:[#allocation47_spill]] }
  0x65   : > { %s12352_s21 = scalar_lea.hbm %s14831_s10, 768 }
  0x66   : > { %p12353_p11 = scmp.ne.s32.totalorder %s14831_s10, %s12352_s21  ;;  %p12359_p0 = scmp.lt.u32.totalorder %s12352_s21, %s14831_s10 }
  0x68   : > { %p12355_p12 = pnand %p12353_p11, %p12864_p8 }
  0x6a   : > { %p12356_p13 = pneg %p12355_p12 }
  0x6c   : > { %p12361_p2 = pnand %p12359_p0, %p12356_p13 }
  0x6e   : > { %12364 = shalt.err (!%p12361_p2)
}
  0x6f   : > { %s12365_s28 = scalar_lea.vmem %s12854_s30, 768  ;;  %p12373_p4 = scmp.lt.s32.totalorder %s12854_s30, %s12854_s30 }
  0x70   : > { %p12366_p5 = scmp.ne.s32.totalorder %s12854_s30, %s12365_s28  ;;  %p12374_p10 = scmp.lt.s32.totalorder %s12365_s28, %s12365_s28 }
  0x72   : > { %p12368_p7 = pnand %p12366_p5, %p12864_p8  ;;  %p12375_p11 = por %p12374_p10, %p12373_p4 }
  0x74   : > { %p12369_p9 = pneg %p12368_p7 }
  0x76   : > { %p12376_p12 = pnand %p12375_p11, %p12369_p9 }
  0x78   : > { %12379 = shalt.err (!%p12376_p12)
}
  0x79   : > { %s12671_s16 = smov 64   ;;  %s12672_s6 = smov 4  }
  0x7a   : > { %11906 = dma.hbm_to_vmem [thread:$0]  (!%p12848_p6), %s14831_s10, 768, %s12854_s30, [#allocation12], %s12671_s16, %s12671_s16, %s12672_s6  }
  0x7b   : > { %s12673_s0 = smov [#allocation14]   ;;  %s12674_s29 = smov [#allocation7]  }
  0x7c   : > { %s604_s21 = sshll.u32 %s12673_s0, 4  ;;  %s533_s18 = sshll.u32 %s12674_s29, 4  ;;  %s605_s21 = int_to_ptr.vmem [resolvable:$true] %s604_s21  ;;  %s534_s18 = int_to_ptr.vmem [resolvable:$true] %s533_s18 }
  0x7d   : > { %s14832_s12 = sld [smem:[#allocation49_spill]] }
  0x83   : > { %s12380_s28 = scalar_lea.hbm %s14832_s12, 768 }
  0x84   : > { %p12381_p13 = scmp.ne.s32.totalorder %s14832_s12, %s12380_s28  ;;  %p12387_p5 = scmp.lt.u32.totalorder %s12380_s28, %s14832_s12 }
  0x86   : > { %p12383_p0 = pnand %p12381_p13, %p12864_p8 }
  0x88   : > { %p12384_p2 = pneg %p12383_p0 }
  0x8a   : > { %p12389_p7 = pnand %p12387_p5, %p12384_p2 }
  0x8c   : > { %12392 = shalt.err (!%p12389_p7)
}
  0x8d   : > { %s12393_s30 = scalar_lea.vmem %s605_s21, 768  ;;  %p12401_p11 = scmp.lt.s32.totalorder %s605_s21, %s605_s21 }
  0x8e   : > { %p12394_p9 = scmp.ne.s32.totalorder %s605_s21, %s12393_s30  ;;  %p12402_p12 = scmp.lt.s32.totalorder %s12393_s30, %s12393_s30 }
  0x90   : > { %p12396_p4 = pnand %p12394_p9, %p12864_p8  ;;  %p12403_p1 = por %p12402_p12, %p12401_p11 }
  0x92   : > { %p12397_p10 = pneg %p12396_p4 }
  0x94   : > { %p12404_p3 = pnand %p12403_p1, %p12397_p10 }
  0x96   : > { %12407 = shalt.err (!%p12404_p3)
}
  0x97   : > { %11912 = dma.hbm_to_vmem [thread:$0]  (!%p12848_p6), %s14832_s12, 768, %s605_s21, [#allocation15], %s12671_s16, %s12671_s16, %s12672_s6  }
  0x98   : > { %s14833_s5 = sld [smem:[#allocation42_spill]] }
  0x9e   : > { %s12408_s8 = scalar_lea.hbm %s14833_s5, 48 }
  0x9f   : > { %p12409_p13 = scmp.ne.s32.totalorder %s14833_s5, %s12408_s8  ;;  %p12415_p3 = scmp.lt.u32.totalorder %s12408_s8, %s14833_s5 }
  0xa1   : > { %p12411_p0 = pnand %p12409_p13, %p12864_p8 }
  0xa3   : > { %p12412_p1 = pneg %p12411_p0 }
  0xa5   : > { %p12417_p2 = pnand %p12415_p3, %p12412_p1 }
  0xa7   : > { %12420 = shalt.err (!%p12417_p2)
}
  0xa8   : > { %s12421_s17 = scalar_lea.vmem %s534_s18, 48  ;;  %s12428_s16 = scalar_lea.vmem %s534_s18, 64 }
  0xa9   : > { %p12422_p5 = scmp.ne.s32.totalorder %s534_s18, %s12421_s17  ;;  %p12429_p4 = scmp.lt.s32.totalorder %s534_s18, %s534_s18 }
  0xaa   : > { %p12430_p10 = scmp.lt.s32.totalorder %s12428_s16, %s12421_s17 }
  0xab   : > { %p12424_p7 = pnand %p12422_p5, %p12864_p8 }
  0xac   : > { %p12431_p11 = por %p12430_p10, %p12429_p4 }
  0xad   : > { %p12425_p9 = pneg %p12424_p7 }
  0xaf   : > { %p12432_p12 = pnand %p12431_p11, %p12425_p9 }
  0xb1   : > { %12435 = shalt.err (!%p12432_p12)
}
  0xb2   : > { %s14834_s6 = smov 1   ;;  %s14835_s21 = smov 16  }
  0xb3   : > { %11897 = dma.hbm_to_vmem [thread:$0]  (!%p12848_p6), %s14833_s5, 48, %s534_s18, [#allocation6], %s14835_s21, %s14835_s21, %s14834_s6  }
  0xb4   : > { %s12675_s14 = smov [#allocation10]   ;;  %s12676_s7 = smov [#allocation13]  }
  0xb5   : > { %s565_s20 = sshll.u32 %s12675_s14, 4  ;;  %s591_s2 = sshll.u32 %s12676_s7, 4  ;;  %s566_s20 = int_to_ptr.vmem [resolvable:$true] %s565_s20  ;;  %s592_s2 = int_to_ptr.vmem [resolvable:$true] %s591_s2 }
  0xb6   : > { %s14836_s9 = sld [smem:[#allocation46_spill]] }
  0xbc   : > { %s12436_s0 = scalar_lea.hbm %s14836_s9, 48 }
  0xbd   : > { %p12437_p13 = scmp.ne.s32.totalorder %s14836_s9, %s12436_s0  ;;  %p12443_p3 = scmp.lt.u32.totalorder %s12436_s0, %s14836_s9 }
  0xbf   : > { %p12439_p0 = pnand %p12437_p13, %p12864_p8 }
  0xc1   : > { %p12440_p1 = pneg %p12439_p0 }
  0xc3   : > { %p12445_p2 = pnand %p12443_p3, %p12440_p1 }
  0xc5   : > { %12448 = shalt.err (!%p12445_p2)
}
  0xc6   : > { %s12449_s18 = scalar_lea.vmem %s566_s20, 48  ;;  %s12456_s28 = scalar_lea.vmem %s566_s20, 64 }
  0xc7   : > { %p12450_p5 = scmp.ne.s32.totalorder %s566_s20, %s12449_s18  ;;  %p12457_p4 = scmp.lt.s32.totalorder %s566_s20, %s566_s20 }
  0xc8   : > { %p12458_p10 = scmp.lt.s32.totalorder %s12456_s28, %s12449_s18 }
  0xc9   : > { %p12452_p7 = pnand %p12450_p5, %p12864_p8 }
  0xca   : > { %p12459_p11 = por %p12458_p10, %p12457_p4 }
  0xcb   : > { %p12453_p9 = pneg %p12452_p7 }
  0xcd   : > { %p12460_p12 = pnand %p12459_p11, %p12453_p9 }
  0xcf   : > { %12463 = shalt.err (!%p12460_p12)
}
  0xd0   : > { %11903 = dma.hbm_to_vmem [thread:$0]  (!%p12848_p6), %s14836_s9, 48, %s566_s20, [#allocation9], %s14835_s21, %s14835_s21, %s14834_s6  }
  0xd1   : > { %s14837_s11 = sld [smem:[#allocation48_spill]] }
  0xd7   : > { %s12464_s25 = scalar_lea.hbm %s14837_s11, 48 }
  0xd8   : > { %p12465_p13 = scmp.ne.s32.totalorder %s14837_s11, %s12464_s25  ;;  %p12471_p3 = scmp.lt.u32.totalorder %s12464_s25, %s14837_s11 }
  0xda   : > { %p12467_p0 = pnand %p12465_p13, %p12864_p8 }
  0xdc   : > { %p12468_p1 = pneg %p12467_p0 }
  0xde   : > { %p12473_p2 = pnand %p12471_p3, %p12468_p1 }
  0xe0   : > { %12476 = shalt.err (!%p12473_p2)
}
  0xe1   : > { %s12477_s16 = scalar_lea.vmem %s592_s2, 48  ;;  %s12484_s20 = scalar_lea.vmem %s592_s2, 64 }
  0xe2   : > { %p12478_p5 = scmp.ne.s32.totalorder %s592_s2, %s12477_s16  ;;  %p12485_p4 = scmp.lt.s32.totalorder %s592_s2, %s592_s2 }
  0xe3   : > { %p12486_p10 = scmp.lt.s32.totalorder %s12484_s20, %s12477_s16 }
  0xe4   : > { %p12480_p7 = pnand %p12478_p5, %p12864_p8 }
  0xe5   : > { %p12487_p11 = por %p12486_p10, %p12485_p4 }
  0xe6   : > { %p12481_p9 = pneg %p12480_p7 }
  0xe8   : > { %p12488_p12 = pnand %p12487_p11, %p12481_p9 }
  0xea   : > { %12491 = shalt.err (!%p12488_p12)
}
  0xeb   : > { %11909 = dma.hbm_to_vmem [thread:$0]  (!%p12848_p6), %s14837_s11, 48, %s592_s2, [#allocation12], %s14835_s21, %s14835_s21, %s14834_s6  }
  0xec   : > { %s12677_s30 = smov [#allocation16]   ;;  %s12678_s7 = smov [#allocation17]  }
  0xed   : > { %s617_s14 = sshll.u32 %s12677_s30, 4  ;;  %s633_s8 = sshll.u32 %s12678_s7, 4  ;;  %s618_s14 = int_to_ptr.vmem [resolvable:$true] %s617_s14  ;;  %s634_s8 = int_to_ptr.vmem [resolvable:$true] %s633_s8 }
  0xee   : > { %s14838_s13 = sld [smem:[#allocation50_spill]] }
  0xf4   : > { %s12492_s29 = scalar_lea.hbm %s14838_s13, 48 }
  0xf5   : > { %p12493_p13 = scmp.ne.s32.totalorder %s14838_s13, %s12492_s29  ;;  %p12499_p3 = scmp.lt.u32.totalorder %s12492_s29, %s14838_s13 }
  0xf7   : > { %p12495_p0 = pnand %p12493_p13, %p12864_p8 }
  0xf9   : > { %p12496_p1 = pneg %p12495_p0 }
  0xfb   : > { %p12501_p2 = pnand %p12499_p3, %p12496_p1 }
  0xfd   : > { %12504 = shalt.err (!%p12501_p2)
}
  0xfe   : > { %s12505_s2 = scalar_lea.vmem %s618_s14, 48  ;;  %s12512_s18 = scalar_lea.vmem %s618_s14, 64 }
  0xff   : > { %p12506_p5 = scmp.ne.s32.totalorder %s618_s14, %s12505_s2  ;;  %p12513_p4 = scmp.lt.s32.totalorder %s618_s14, %s618_s14 }
 0x100   : > { %p12514_p10 = scmp.lt.s32.totalorder %s12512_s18, %s12505_s2 }
 0x101   : > { %p12508_p7 = pnand %p12506_p5, %p12864_p8 }
 0x102   : > { %p12515_p11 = por %p12514_p10, %p12513_p4 }
 0x103   : > { %p12509_p9 = pneg %p12508_p7 }
 0x105   : > { %p12516_p12 = pnand %p12515_p11, %p12509_p9 }
 0x107   : > { %12519 = shalt.err (!%p12516_p12)
}
 0x108   : > { %11915 = dma.hbm_to_vmem [thread:$0]  (!%p12848_p6), %s14838_s13, 48, %s618_s14, [#allocation15], %s14835_s21, %s14835_s21, %s14834_s6  }
 0x109   : > { %s14839_s15 = sld [smem:[#allocation52_spill]] }
 0x10f   : > { %s12520_s0 = scalar_lea.hbm %s14839_s15, 48 }
 0x110   : > { %p12521_p13 = scmp.ne.s32.totalorder %s14839_s15, %s12520_s0  ;;  %p12527_p3 = scmp.lt.u32.totalorder %s12520_s0, %s14839_s15 }
 0x112   : > { %p12523_p0 = pnand %p12521_p13, %p12864_p8 }
 0x114   : > { %p12524_p1 = pneg %p12523_p0 }
 0x116   : > { %p12529_p2 = pnand %p12527_p3, %p12524_p1 }
 0x118   : > { %12532 = shalt.err (!%p12529_p2)
}
 0x119   : > { %s12533_s20 = scalar_lea.vmem %s634_s8, 48  ;;  %s12540_s14 = scalar_lea.vmem %s634_s8, 64 }
 0x11a   : > { %p12534_p5 = scmp.ne.s32.totalorder %s634_s8, %s12533_s20  ;;  %p12541_p4 = scmp.lt.s32.totalorder %s634_s8, %s634_s8 }
 0x11b   : > { %p12542_p10 = scmp.lt.s32.totalorder %s12540_s14, %s12533_s20 }
 0x11c   : > { %p12536_p7 = pnand %p12534_p5, %p12864_p8 }
 0x11d   : > { %p12543_p11 = por %p12542_p10, %p12541_p4 }
 0x11e   : > { %p12537_p9 = pneg %p12536_p7 }
 0x120   : > { %p12544_p12 = pnand %p12543_p11, %p12537_p9 }
 0x122   : > { %12547 = shalt.err (!%p12544_p12)
}
 0x123   : > { %11918 = dma.hbm_to_vmem [thread:$0]  (!%p12848_p6), %s14839_s15, 48, %s634_s8, [#allocation18], %s14835_s21, %s14835_s21, %s14834_s6  }
 0x124   : > { %s10158_s4 = sadd.s32 4294967294, %s12664_s24   ;;  %s13064_s27 = sadd.s32 1, %s12664_s24  }
 0x125   : > { %14840 = sst [smem:[#allocation32_spill]] %s13064_s27  ;;  %s48_s28 = sadd.s32 1, %s12660_s23 }
 0x126   : > { %s45_s30 = ssub.s32 %s12664_s24, %s13064_s27  ;;  %p55_p8 = scmp.ne.s32.totalorder %s12660_s23, %s12656_s22 }
 0x127   : > { %p46_p13 = scmp.eq.s32.totalorder %s45_s30, 0  ;;  %p56_p0 = scmp.eq.s32.totalorder %s12664_s24, 0 }
 0x128   : > { %p61_p1 = scmp.ne.s32.totalorder %s12656_s22, %s12652_s1  ;;  %p489_p3 = scmp.eq.s32.totalorder %s12832_s3, 1 }
 0x129   : > { %s13076_s7 = scalar_select %p46_p13, %s12660_s23, %s48_s28  }
 0x12a   : > { %p57_p2 = por %p56_p0, %p55_p8  ;;  %p14842_p5 = scmp.eq.s32.totalorder %s12832_s3, 0 }
 0x12b   : > { %14841 = sst [smem:[#allocation33_spill]] %s13076_s7  ;;  %p13084_p6 = por %p489_p3, %p55_p8 }
 0x12c   : > { %p13080_p7 = por %p14842_p5, %p61_p1  ;;  %p495_p9 = scmp.eq.s32.totalorder %s10158_s4, 1 }
 0x12d   : > { %s14844_s6 = scalar_select %p13084_p6, 1, 0 }
 0x12e   : > { %p11936_p4 = scmp.lt.s32.totalorder %s12664_s24, 2  ;;  %s659_s21 = sand.u32 1, %s12660_s23  }
 0x12f   : > { %14845 = sst [smem:[#allocation34_spill]] %s14844_s6  ;;  %p13090_p10 = por %p495_p9, %p61_p1 }
 0x130   : > { %s10170_s0 = sshll.u32 %s659_s21, 3  ;;  %s10171_s29 = sshll.u32 %s12664_s24, 7 }
 0x131   : > { %s14846_s8 = scalar_select %p13090_p10, 1, 0 }
 0x132   : > { %s14848_s16 = sld [smem:[#allocation37_spill]]  ;;  %s663_s14 = scalar_lea.vmem [#allocation2], %s10170_s0 }
 0x133   : > { %14847 = sst [smem:[#allocation35_spill]] %s14846_s8  ;;  %s670_s2 = sshll.u32 %s663_s14, 4  ;;  %s13104_s2 = int_to_ptr.vmem [resolvable:$true] %s670_s2 }
 0x134   : > { %p13100_p11 = pnand %p11936_p4, %p57_p2  ;;  %s660_s4 = scalar_lea.sflag [#allocation3], %s659_s21 }
 0x136   : > { %p12550_p8 = pneg %p13100_p11 }
 0x138   : > { %s13098_s20 = scalar_lea.hbm %s14848_s16, %s10171_s29  ;;  %s12553_s29 = scalar_lea.hbm %s14848_s16, 256 }
 0x139   : > { %s12548_s28 = scalar_lea.hbm %s13098_s20, 128  ;;  %p12554_p1 = scmp.lt.u32.totalorder %s13098_s20, %s14848_s16 }
 0x13a   : > { %p12549_p12 = scmp.ne.s32.totalorder %s13098_s20, %s12548_s28  ;;  %p12555_p3 = scmp.lt.u32.totalorder %s12553_s29, %s12548_s28 }
 0x13b   : > { %p12557_p5 = scmp.lt.u32.totalorder %s12548_s28, %s13098_s20 }
 0x13c   : > { %p12551_p13 = pnand %p12550_p8, %p12549_p12  ;;  %p12556_p2 = por %p12555_p3, %p12554_p1 }
 0x13e   : > { %p12552_p0 = pneg %p12551_p13  ;;  %p12558_p9 = por %p12557_p5, %p12556_p2 }
 0x140   : > { %p12559_p4 = pnand %p12558_p9, %p12552_p0 }
 0x142   : > { %12562 = shalt.err (!%p12559_p4)
}
 0x143   : > { %s12563_s21 = scalar_lea.vmem %s13104_s2, 128  ;;  %s12679_s14 = smov [#allocation2]  }
 0x144   : > { %p12564_p12 = scmp.ne.s32.totalorder %s13104_s2, %s12563_s21  ;;  %s12568_s30 = sshll.u32 %s12679_s14, 4  ;;  %s12569_s30 = int_to_ptr.vmem [resolvable:$false] %s12568_s30 }
 0x145   : > { %s12570_s0 = scalar_lea.vmem %s12569_s30, 256  ;;  %p12571_p6 = scmp.lt.s32.totalorder %s13104_s2, %s12569_s30 }
 0x146   : > { %p12566_p13 = pnand %p12564_p12, %p12550_p8  ;;  %p12572_p1 = scmp.lt.s32.totalorder %s12570_s0, %s12563_s21 }
 0x148   : > { %p12567_p10 = pneg %p12566_p13  ;;  %p12573_p3 = por %p12572_p1, %p12571_p6 }
 0x14a   : > { %p12574_p2 = pnand %p12573_p3, %p12567_p10 }
 0x14c   : > { %12577 = shalt.err (!%p12574_p2)
}
 0x14d   : > { %11922 = dma.hbm_to_vmem [thread:$0]  (!%p13100_p11), %s13098_s20, 128, %s13104_s2, %s660_s4  }
 0x14e   : > { %p14850_p0 = scmp.ne.s32.totalorder %s14826_s26, 0 }
 0x150   : > { %687 = sbr.rel (%p14850_p0) target bundleno = 33328 (0x8230), region = 100 }
 0x157   : > { %s13134_s28 = sand.u32 1, %s12656_s22  }
 0x158   : > { %14851 = sst [smem:[#allocation36_spill]] %s13134_s28  ;;  %s14738_s29 = sshll.u32 %s13134_s28, 3 }
 0x159   : > { %s690_s19 = scalar_lea.sflag [#allocation3], %s13134_s28  ;;  %s13140_s17 = scalar_lea.vmem [#allocation2], %s14738_s29 }
 0x15a   : > { %12623 = dma.done.wait (%p13080_p7), %s690_s19, 128  }
 0x15b   : > { %12625 = vsyncadd (%p13080_p7), %s690_s19, 4294967168  ;;  %p14852_p6 = scmp.eq.s32.totalorder %s12832_s3, 0 }
 0x15d   : > { %12627 = dma.done.wait (%p14852_p6), [#allocation6], 96   ;;  %p14853_p10 = pmov %p14852_p6 }
 0x15e   : > { %p14854_p11 = pmov %p14852_p6 }
 0x15f   : > { %12629 = vsyncadd (%p14853_p10), [#allocation6], 4294967200 }
 0x160   : > { %12631 = dma.done.wait (%p14854_p11), [#allocation9], 96   ;;  %p14855_p8 = pmov %p14852_p6 }
 0x161   : > { %p14856_p5 = pmov %p14852_p6 }
 0x162   : > { %12633 = vsyncadd (%p14855_p8), [#allocation9], 4294967200 }
 0x163   : > { %12635 = dma.done.wait (%p14856_p5), [#allocation12], 816   ;;  %p14857_p9 = pmov %p14856_p5 }
 0x164   : > { %p14858_p7 = pmov %p14856_p5 }
 0x165   : > { %12637 = vsyncadd (%p14857_p9), [#allocation12], 4294966480 }
 0x166   : > { %12639 = dma.done.wait (%p14858_p7), [#allocation15], 816   ;;  %p14859_p4 = pmov %p14856_p5 }
 0x168   : > { %12641 = vsyncadd (%p14859_p4), [#allocation15], 4294966480  ;;  %p14860_p12 = pmov %p14859_p4 }
 0x169   : > { %p14861_p13 = pmov %p14859_p4 }
 0x16a   : > { %12643 = dma.done.wait (%p14860_p12), [#allocation18], 48  }
 0x16b   : > { %12645 = vsyncadd (%p14861_p13), [#allocation18], 4294967248  ;;  %v12680_v0 = vmov 0.0   ;;  %vm12681_vm0 = vmmov 0   ;;  %s14862_s20 = sld [smem:[#allocation39_spill]]  ;;  %v797_v3 = vld [vmem:[%s13140_s17] sm:$0xff]  ;;  %v800_v17 = vlaneseq }
 0x16c   : > { %10855 = vmatprep.subr.bf16.mxu1 %v12680_v0  ;;  %10859 = vmatprep.mubr.msk.bf16.mxu1 %vm12681_vm0, %v12680_v0  ;;  %vm832_vm1 = vcmask 261120   ;;  %v812_v4 = vpack.c.bf16 %v797_v3, %v797_v3  ;;  %v10187_v5 = vld [vmem:[#allocation5] ss:$0 sm:$0xff]  ;;  %s14783_s4 = smov 124   ;;  %s14777_s21 = smov 96   ;;  %vm885_vm2 = vcmask 31744  }
 0x16d   : > { %10869 = vmatprep.subr.bf16.mxu0 %v12680_v0  ;;  %10871 = vmatprep.mubr.msk.bf16.mxu0 %vm12681_vm0, %v12680_v0  ;;  %s14781_s14 = smov 92   ;;  %v801_v18 = vshrl.u32 %v800_v17, 7  ;;  %v803_v19 = vand.u32 127, %v800_v17  ;;  %vm932_vm4 = vcmask 64512   ;;  %s14741_s30 = smov 64   ;;  %vm950_vm5 = vcmask 1043456  }
 0x16e   : > { %s14743_s0 = smov 60   ;;  %s14779_s19 = smov 120   ;;  %vm1113_vm6 = vcmask 1041408   ;;  %vm2389_vm7 = vcmask 97280   ;;  %vm2408_vm8 = vcmask 1045504   ;;  %vm3776_vm9 = vcmask 523264  }
 0x16f   : > { %vm804_vm3 = vcmp.gt.s32.totalorder %v803_v19, %v801_v18  ;;  %s14773_s26 = smov 88   ;;  %s14863_s18 = sld [smem:[#allocation41_spill]] }
 0x170   : > { %v10186_v20 = vsel %vm804_vm3, 1.0, %v12680_v0  ;;  %s14771_s25 = smov 84   ;;  %s14775_s2 = smov 116  }
 0x171   : > { %v12017_v1 = vld [vmem:[%s14862_s20] sm:$0xff]   ;;  %v12018_v2 = vld [vmem:[%s14862_s20 + $0x8] sm:$0xff]   ;;  %v13204_v21 = vmul.f32 -1e+30, %v10186_v20  ;;  %s14739_s29 = smov 56   ;;  %p791_p1 = scmp.lt.s32.totalorder %s12832_s3, 1 }
 0x172   : > { %10856 = vmatpush3.bf16.msra.mxu1 %v12017_v1  ;;  %s14876_s5 = smov 112   ;;  %s14877_s9 = smov 108  }
 0x173   : > { %10857 = vmatprep.subr.bf16.mxu1 %v12680_v0  ;;  %s14878_s10 = smov 80   ;;  %s14879_s11 = smov 76  }
 0x174   : > { %s14880_s12 = smov 104   ;;  %s14881_s13 = smov 100  }
 0x175   : > { %v876_v56 = vld [vmem:[%s14863_s18] sm:$0xf]  ;;  %s14882_s15 = smov 72   ;;  %s14883_s16 = smov 68  }
 0x176   : > { %10858 = vmatpush3.bf16.msra.mxu1 %v12018_v2  ;;  %v10195_v57 = vcombine.low %v876_v56, %v876_v56  ;;  %v1161_v58 = vsel %vm1113_vm6, %v876_v56, 0  ;;  %s14884_s1 = sld [smem:[#allocation51_spill]]  ;;  %s14886_s27 = smov 60  }
 0x177   : > { %10863 = vmatprep.subr.bf16.mxu1 %v12680_v0  ;;  %s14888_s8 = smov 56   ;;  %s14889_s7 = smov 52  }
 0x178   : > { %v1109_v59 = vrot.slane %v10195_v57, 2  ;;  %s14890_s22 = smov 48   ;;  %s14891_s28 = smov 44  }
 0x179   : > { %10860 = vmatmul.mubr.msk.bf16.vlgmr.msra.gmra.mrb[0].mxu1 %vm832_vm1, %v812_v4  ;;  %s14892_s23 = smov 40   ;;  %s14893_s24 = smov 36  }
 0x17a   : > { %10865 = vmatprep.mubr.msk.bf16.mxu1 %vm12681_vm0, %v12680_v0  ;;  %v1115_v60 = vsel %vm1113_vm6, %v1109_v59, 0 }
 0x17c   : > { %s14885_s6 = smov %s14884_s1 }
 0x24c   : > { %v870_v6 = vpop.f32.mrb[0].mxu1 }
 0x24d   : > { %v871_v7 = vadd.f32 %v10187_v5, %v870_v6  ;;  %v10861_v8 = vpop.f32.mrb[1].mxu1 }
 0x24e   : > { %v873_v9 = vpop.f32.mrb[2].mxu1 }
 0x24f   : > { %v13184_v10 = vpack.c.bf16 %v871_v7, %v871_v7  ;;  %v10862_v11 = vpop.f32.mrb[3].mxu1 }
 0x251   : > { %995 = vrot.lane.b32.xlu1 %v13184_v10, %s14783_s4  ;;  %883 = vrot.lane.b32.xlu0 %v13184_v10, %s14777_s21  ;;  %s14870_s21 = smov 92  }
 0x255   : > { %997 = vrot.lane.b32.xlu0 %v13184_v10, %s14781_s14  ;;  %s14865_s14 = sld [smem:[#allocation38_spill]] }
 0x2c3   : > { %v884_v12 = vpop.permute.xlu0 %883  ;;  %v996_v16 = vpop.permute.xlu1 %995 }
 0x2c4   : > { %v890_v13 = vsel %vm885_vm2, %v884_v12, 0 }
 0x2c5   : > { %10864 = vmatpush3.bf16.xpose.msra.mxu1 %v890_v13 }
 0x2c6   : > { %10875 = vmatprep.subr.bf16.mxu1 %v12680_v0 }
 0x2c7   : > { %v998_v14 = vpop.permute.xlu0 %997 }
 0x2c8   : > { %v1003_v15 = vsel %vm885_vm2, %v998_v14, 0 }
 0x2cc   : > { %10866 = vmatmul.mubr.msk.bf16.vlgmr.msra.gmra.mrb[4].mxu1 %vm885_vm2, %v13184_v10 }
 0x2cd   : > { %10876 = vmatpush3.bf16.xpose.msra.mxu1 %v1003_v15  ;;  %10877 = vmatprep.mubr.msk.bf16.mxu1 %vm12681_vm0, %v12680_v0 }
 0x2ce   : > { %10887 = vmatprep.subr.bf16.mxu1 %v12680_v0 }
 0x2d4   : > { %10878 = vmatmul.mubr.msk.bf16.vlgmr.msra.gmra.mrb[8].mxu1 %vm885_vm2, %v996_v16 }
 0x2d5   : > { %10889 = vmatprep.mubr.msk.bf16.mxu1 %vm12681_vm0, %v12680_v0  ;;  %10888 = vmatpush3.bf16.msra.mxu1 %v1115_v60 }
 0x2d6   : > { %10899 = vmatprep.subr.bf16.mxu1 %v12680_v0 }
 0x39f   : > { %v926_v22 = vpop.f32.mrb[4].mxu1 }
 0x3a0   : > { %v10867_v23 = vpop.f32.mrb[5].mxu1  ;;  %v927_v24 = vadd.f32 %v926_v22, %v13204_v21 }
 0x3a1   : > { %v929_v25 = vpop.f32.mrb[6].mxu1 }
 0x3a2   : > { %v10868_v26 = vpop.f32.mrb[7].mxu1  ;;  %v933_v27 = vsel %vm932_vm4, %v927_v24, -inf }
 0x3a3   : > { %934 = vmax.xlane.f32.xlu1 %v933_v27 }
 0x3a7   : > { %v1039_v28 = vpop.f32.mrb[8].mxu1 }
 0x3a8   : > { %v10879_v29 = vpop.f32.mrb[9].mxu1  ;;  %v1040_v30 = vadd.f32 %v1039_v28, %v13204_v21 }
 0x3a9   : > { %v1042_v31 = vpop.f32.mrb[10].mxu1 }
 0x3aa   : > { %v10880_v32 = vpop.f32.mrb[11].mxu1  ;;  %v1045_v33 = vsel %vm932_vm4, %v1040_v30, -inf }
 0x3ab   : > { %1046 = vmax.xlane.f32.xlu0 %v1045_v33 }
 0x430   : > { %v935_v34 = vpop.xlane.xlu1 %934 }
 0x431   : > { %v936_v35 = vsub.f32 %v927_v24, %v935_v34 }
 0x433   : > { %v937_v36 = vmul.f32 1.442695, %v936_v35 }
 0x435   : > { %12077 = vpow2.f32 %v937_v36 }
 0x438   : > { %v1047_v37 = vpop.xlane.xlu0 %1046 }
 0x439   : > { %v1048_v38 = vsub.f32 %v1040_v30, %v1047_v37 }
 0x43b   : > { %v1049_v39 = vmul.f32 1.442695, %v1048_v38 }
 0x43d   : > { %12079 = vpow2.f32 %v1049_v39 }
 0x43f   : > { %v12078_v40 = vpop.eup %12077 }
 0x440   : > { %v939_v41 = vsel %vm932_vm4, %v12078_v40, 0.0 }
 0x441   : > { %940 = vadd.xlane.f32.xlu0 %v939_v41 }
 0x447   : > { %v12080_v42 = vpop.eup %12079 }
 0x448   : > { %v1051_v43 = vsel %vm932_vm4, %v12080_v42, 0.0 }
 0x449   : > { %1052 = vadd.xlane.f32.xlu1 %v1051_v43 }
 0x457   : > { %945 = vrot.lane.b32.xlu0 %v13184_v10, %s14741_s30  ;;  %s14749_s30 = smov 112  }
 0x45a   : > { %1057 = vrot.lane.b32.xlu1 %v13184_v10, %s14743_s0  ;;  %s14747_s0 = smov 80  }
 0x45b   : > { %1203 = vrot.lane.b32.xlu0 %v13184_v10, %s14779_s19  ;;  %s14873_s19 = smov 116  }
 0x45e   : > { %1205 = vrot.lane.b32.xlu1 %v13184_v10, %s14773_s26  ;;  %s14868_s26 = sld [smem:[#allocation54_spill]] }
 0x4ce   : > { %v941_v44 = vpop.xlane.xlu0 %940 }
 0x4cf   : > { %12081 = vrcp.f32 %v941_v44 }
 0x4d2   : > { %v946_v45 = vpop.permute.xlu0 %945 }
 0x4d3   : > { %v952_v46 = vsel %vm950_vm5, %v946_v45, 0 }
 0x4d4   : > { %10870 = vmatpush3.bf16.msra.mxu0 %v952_v46 }
 0x4d5   : > { %10881 = vmatprep.subr.bf16.mxu0 %v12680_v0 }
 0x4d6   : > { %v1053_v47 = vpop.xlane.xlu1 %1052  ;;  %v1204_v11 = vpop.permute.xlu0 %1203 }
 0x4d7   : > { %12083 = vrcp.f32 %v1053_v47 }
 0x4d9   : > { %v12082_v48 = vpop.eup %12081 }
 0x4da   : > { %v943_v49 = vmul.f32 %v12082_v48, %v12078_v40  ;;  %v1058_v50 = vpop.permute.xlu1 %1057 }
 0x4db   : > { %v1063_v52 = vsel %vm950_vm5, %v1058_v50, 0 }
 0x4dc   : > { %v944_v51 = vpack.c.bf16 %v943_v49, %v943_v49 }
 0x4de   : > { %10872 = vmatmul.mubr.msk.bf16.vlgmr.msra.gmra.mrb[0].mxu0 %vm932_vm4, %v944_v51  ;;  %v1206_v3 = vpop.permute.xlu1 %1205 }
 0x4df   : > { %10882 = vmatpush3.bf16.msra.mxu0 %v1063_v52  ;;  %10883 = vmatprep.mubr.msk.bf16.mxu0 %vm12681_vm0, %v12680_v0  ;;  %v1211_v8 = vsel %vm885_vm2, %v1206_v3, 0 }
 0x4e0   : > { %10893 = vmatprep.subr.bf16.mxu0 %v12680_v0 }
 0x4e1   : > { %v12084_v53 = vpop.eup %12083 }
 0x4e2   : > { %v1055_v54 = vmul.f32 %v12084_v53, %v12080_v42  ;;  %v877_v42 = vld [vmem:[%s14863_s18 + $0x4] sm:$0xf] }
 0x4e3   : > { %v1318_v43 = vsel %vm1113_vm6, %v877_v42, 0 }
 0x4e4   : > { %v1056_v55 = vpack.c.bf16 %v1055_v54, %v1055_v54 }
 0x4e6   : > { %10884 = vmatmul.mubr.msk.bf16.vlgmr.msra.gmra.mrb[4].mxu0 %vm932_vm4, %v1056_v55 }
 0x4e7   : > { %10895 = vmatprep.mubr.msk.bf16.mxu0 %vm12681_vm0, %v12680_v0  ;;  %10894 = vmatpush3.bf16.msra.mxu0 %v1161_v58 }
 0x4e8   : > { %10905 = vmatprep.subr.bf16.mxu0 %v12680_v0 }
 0x5b1   : > { %v988_v61 = vpop.f32.mrb[0].mxu0 }
 0x5b2   : > { %v994_v62 = vpack.c.bf16 %v988_v61, %v988_v61  ;;  %v10873_v63 = vpop.f32.mrb[1].mxu0 }
 0x5b3   : > { %v991_v1 = vpop.f32.mrb[2].mxu0 }
 0x5b4   : > { %v10874_v2 = vpop.f32.mrb[3].mxu0  ;;  %10896 = vmatmul.mubr.msk.bf16.vlgmr.msra.gmra.mrb[8].mxu0 %vm885_vm2, %v994_v62 }
 0x5b5   : > { %10907 = vmatprep.mubr.msk.bf16.mxu0 %vm12681_vm0, %v12680_v0 }
 0x5b9   : > { %v1099_v4 = vpop.f32.mrb[4].mxu0 }
 0x5ba   : > { %v1105_v5 = vpack.c.bf16 %v1099_v4, %v1099_v4  ;;  %v10885_v6 = vpop.f32.mrb[5].mxu0 }
 0x5bb   : > { %v1102_v7 = vpop.f32.mrb[6].mxu0 }
 0x5bc   : > { %v10886_v9 = vpop.f32.mrb[7].mxu0  ;;  %10890 = vmatmul.mubr.msk.bf16.vlgmr.msra.gmra.mrb[12].mxu1 %vm885_vm2, %v1105_v5 }
 0x5bd   : > { %10900 = vmatpush3.bf16.xpose.msra.mxu1 %v1211_v8  ;;  %10901 = vmatprep.mubr.msk.bf16.mxu1 %vm12681_vm0, %v12680_v0 }
 0x5be   : > { %10911 = vmatprep.subr.bf16.mxu1 %v12680_v0 }
 0x5c4   : > { %10902 = vmatmul.mubr.msk.bf16.vlgmr.msra.gmra.mrb[16].mxu1 %vm885_vm2, %v1204_v11 }
 0x5c5   : > { %10913 = vmatprep.mubr.msk.bf16.mxu1 %vm12681_vm0, %v12680_v0  ;;  %10912 = vmatpush3.bf16.msra.mxu1 %v1318_v43 }
 0x5c6   : > { %10923 = vmatprep.subr.bf16.mxu1 %v12680_v0 }
 0x687   : > { %v1197_v12 = vpop.f32.mrb[8].mxu0 }
 0x688   : > { %v10897_v13 = vpop.f32.mrb[9].mxu0 }
 0x689   : > { %v1200_v14 = vpop.f32.mrb[10].mxu0 }
 0x68a   : > { %v10898_v15 = vpop.f32.mrb[11].mxu0 }
 0x68f   : > { %v1151_v16 = vpop.f32.mrb[12].mxu1 }
 0x690   : > { %v13248_v17 = vadd.f32 %v1197_v12, %v1151_v16  ;;  %v10891_v18 = vpop.f32.mrb[13].mxu1  ;;  %v10203_v12 = vcombine.low %v877_v42, %v877_v42 }
 0x691   : > { %v1154_v19 = vpop.f32.mrb[14].mxu1 }
 0x692   : > { %v10892_v20 = vpop.f32.mrb[15].mxu1  ;;  %v1475_v13 = vrot.slane %v10203_v12, 2 }
 0x694   : > { %v1480_v14 = vsel %vm1113_vm6, %v1475_v13, 0 }
 0x697   : > { %v1247_v22 = vpop.f32.mrb[16].mxu1 }
 0x698   : > { %v10903_v23 = vpop.f32.mrb[17].mxu1  ;;  %v1248_v24 = vadd.f32 %v1247_v22, %v13204_v21 }
 0x699   : > { %v1250_v25 = vpop.f32.mrb[18].mxu1 }
 0x69a   : > { %v10904_v26 = vpop.f32.mrb[19].mxu1  ;;  %v1253_v27 = vsel %vm932_vm4, %v1248_v24, -inf }
 0x69b   : > { %1254 = vmax.xlane.f32.xlu1 %v1253_v27 }
 0x6ac   : > { %1363 = vrot.lane.b32.xlu1 %v13184_v10, %s14771_s25  ;;  %s792_s25 = scalar_select %p791_p1, %s12832_s3, 1 }
 0x6ad   : > { %s14896_s3 = smov 44  }
 0x6b0   : > { %1361 = vrot.lane.b32.xlu1 %v13184_v10, %s14775_s2  ;;  %s10515_s2 = sshll.u32 %s792_s25, 4  ;;  %s14866_s25 = sld [smem:[#allocation43_spill]] }
 0x6b1   : > { %s795_s4 = scalar_lea.vmem %s14865_s14, %s10515_s2  ;;  %s14867_s2 = sld [smem:[#allocation53_spill]] }
 0x6b2   : > { %s14871_s14 = smov 120  }
 0x728   : > { %v1255_v28 = vpop.xlane.xlu1 %1254 }
 0x729   : > { %v1256_v29 = vsub.f32 %v1248_v24, %v1255_v28 }
 0x72b   : > { %v1257_v30 = vmul.f32 1.442695, %v1256_v29 }
 0x72c   : > { %v1364_v38 = vpop.permute.xlu1 %1363 }
 0x72d   : > { %12085 = vpow2.f32 %v1257_v30  ;;  %v1369_v40 = vsel %vm885_vm2, %v1364_v38, 0 }
 0x730   : > { %v1362_v41 = vpop.permute.xlu1 %1361 }
 0x737   : > { %v12086_v31 = vpop.eup %12085 }
 0x738   : > { %v1259_v32 = vsel %vm932_vm4, %v12086_v31, 0.0 }
 0x739   : > { %1260 = vadd.xlane.f32.xlu0 %v1259_v32 }
 0x74f   : > { %1265 = vrot.lane.b32.xlu0 %v13184_v10, %s14739_s29  ;;  %s14745_s29 = smov 52  }
 0x7c6   : > { %v1261_v33 = vpop.xlane.xlu0 %1260 }
 0x7c7   : > { %12087 = vrcp.f32 %v1261_v33 }
 0x7ca   : > { %v1266_v34 = vpop.permute.xlu0 %1265 }
 0x7cb   : > { %v1271_v35 = vsel %vm950_vm5, %v1266_v34, 0 }
 0x7cc   : > { %10906 = vmatpush3.bf16.msra.mxu0 %v1271_v35 }
 0x7cd   : > { %10917 = vmatprep.subr.bf16.mxu0 %v12680_v0 }
 0x7d1   : > { %v12088_v36 = vpop.eup %12087 }
 0x7d2   : > { %v1263_v37 = vmul.f32 %v12088_v36, %v12086_v31 }
 0x7d4   : > { %v1264_v39 = vpack.c.bf16 %v1263_v37, %v1263_v37 }
 0x7d6   : > { %10908 = vmatmul.mubr.msk.bf16.vlgmr.msra.gmra.mrb[12].mxu0 %vm932_vm4, %v1264_v39 }
 0x7d7   : > { %10918 = vmatpush3.bf16.xpose.msra.mxu0 %v1369_v40  ;;  %10919 = vmatprep.mubr.msk.bf16.mxu0 %vm12681_vm0, %v12680_v0 }
 0x7d8   : > { %10929 = vmatprep.subr.bf16.mxu0 %v12680_v0 }
 0x7de   : > { %10920 = vmatmul.mubr.msk.bf16.vlgmr.msra.gmra.mrb[16].mxu0 %vm885_vm2, %v1362_v41 }
 0x7df   : > { %10931 = vmatprep.mubr.msk.bf16.mxu0 %vm12681_vm0, %v12680_v0  ;;  %10930 = vmatpush3.bf16.msra.mxu0 %v1480_v14 }
 0x7e0   : > { %10941 = vmatprep.subr.bf16.mxu0 %v12680_v0 }
 0x8a9   : > { %v1307_v44 = vpop.f32.mrb[12].mxu0 }
 0x8aa   : > { %v1313_v45 = vpack.c.bf16 %v1307_v44, %v1307_v44  ;;  %v10909_v46 = vpop.f32.mrb[13].mxu0 }
 0x8ab   : > { %v1310_v47 = vpop.f32.mrb[14].mxu0  ;;  %v878_v46 = vld [vmem:[%s14863_s18 + $0x8] sm:$0xf] }
 0x8ac   : > { %v10910_v48 = vpop.f32.mrb[15].mxu0  ;;  %10914 = vmatmul.mubr.msk.bf16.vlgmr.msra.gmra.mrb[20].mxu1 %vm885_vm2, %v1313_v45  ;;  %v1638_v47 = vsel %vm1113_vm6, %v878_v46, 0 }
 0x8ad   : > { %10925 = vmatprep.mubr.msk.bf16.mxu1 %vm12681_vm0, %v12680_v0 }
 0x8b1   : > { %v1405_v49 = vpop.f32.mrb[16].mxu0 }
 0x8b2   : > { %v10921_v50 = vpop.f32.mrb[17].mxu0  ;;  %v1406_v51 = vadd.f32 %v1405_v49, %v13204_v21 }
 0x8b3   : > { %v1408_v52 = vpop.f32.mrb[18].mxu0 }
 0x8b4   : > { %v10922_v53 = vpop.f32.mrb[19].mxu0  ;;  %v1411_v54 = vsel %vm932_vm4, %v1406_v51, -inf }
 0x8b5   : > { %1412 = vmax.xlane.f32.xlu0 %v1411_v54 }
 0x8cb   : > { %1423 = vrot.lane.b32.xlu0 %v13184_v10, %s14745_s29  ;;  %s14753_s29 = smov 76  }
 0x8cf   : > { %1523 = vrot.lane.b32.xlu0 %v13184_v10, %s14749_s30  ;;  %s14751_s30 = smov 48  }
 0x942   : > { %v1413_v55 = vpop.xlane.xlu0 %1412 }
 0x943   : > { %v1414_v56 = vsub.f32 %v1406_v51, %v1413_v55 }
 0x945   : > { %v1415_v57 = vmul.f32 1.442695, %v1414_v56 }
 0x946   : > { %v1424_v58 = vpop.permute.xlu0 %1423 }
 0x947   : > { %12089 = vpow2.f32 %v1415_v57  ;;  %v1429_v59 = vsel %vm950_vm5, %v1424_v58, 0 }
 0x948   : > { %10924 = vmatpush3.bf16.msra.mxu1 %v1429_v59 }
 0x949   : > { %10935 = vmatprep.subr.bf16.mxu1 %v12680_v0 }
 0x94a   : > { %v1524_v11 = vpop.permute.xlu0 %1523 }
 0x951   : > { %v12090_v60 = vpop.eup %12089 }
 0x952   : > { %v1417_v61 = vsel %vm932_vm4, %v12090_v60, 0.0 }
 0x953   : > { %1418 = vadd.xlane.f32.xlu1 %v1417_v61 }
 0x964   : > { %1525 = vrot.lane.b32.xlu1 %v13184_v10, %s14747_s0  ;;  %s14755_s0 = smov 108  }
 0x97f   : > { %v1354_v62 = vpop.f32.mrb[20].mxu1 }
 0x980   : > { %v1360_v63 = vadd.f32 %v1354_v62, %v13248_v17  ;;  %v10915_v1 = vpop.f32.mrb[21].mxu1 }
 0x981   : > { %v1357_v2 = vpop.f32.mrb[22].mxu1 }
 0x982   : > { %v10916_v3 = vpop.f32.mrb[23].mxu1 }
 0x9e0   : > { %v1419_v4 = vpop.xlane.xlu1 %1418 }
 0x9e1   : > { %12091 = vrcp.f32 %v1419_v4 }
 0x9e4   : > { %v1526_v7 = vpop.permute.xlu1 %1525 }
 0x9e5   : > { %v1531_v9 = vsel %vm885_vm2, %v1526_v7, 0 }
 0x9eb   : > { %v12092_v5 = vpop.eup %12091 }
 0x9ec   : > { %v1421_v6 = vmul.f32 %v12092_v5, %v12090_v60 }
 0x9ee   : > { %v1422_v8 = vpack.c.bf16 %v1421_v6, %v1421_v6 }
 0x9f0   : > { %10926 = vmatmul.mubr.msk.bf16.vlgmr.msra.gmra.mrb[24].mxu1 %vm932_vm4, %v1422_v8 }
 0x9f1   : > { %10936 = vmatpush3.bf16.xpose.msra.mxu1 %v1531_v9  ;;  %10937 = vmatprep.mubr.msk.bf16.mxu1 %vm12681_vm0, %v12680_v0 }
 0x9f2   : > { %10947 = vmatprep.subr.bf16.mxu1 %v12680_v0 }
 0x9f8   : > { %10938 = vmatmul.mubr.msk.bf16.vlgmr.msra.gmra.mrb[28].mxu1 %vm885_vm2, %v1524_v11 }
 0x9f9   : > { %10949 = vmatprep.mubr.msk.bf16.mxu1 %vm12681_vm0, %v12680_v0  ;;  %10948 = vmatpush3.bf16.msra.mxu1 %v1638_v47 }
 0x9fa   : > { %10959 = vmatprep.subr.bf16.mxu1 %v12680_v0 }
 0xac3   : > { %v1465_v15 = vpop.f32.mrb[24].mxu1 }
 0xac4   : > { %v1471_v16 = vpack.c.bf16 %v1465_v15, %v1465_v15  ;;  %v10927_v17 = vpop.f32.mrb[25].mxu1 }
 0xac5   : > { %v1468_v18 = vpop.f32.mrb[26].mxu1 }
 0xac6   : > { %v10928_v19 = vpop.f32.mrb[27].mxu1  ;;  %10932 = vmatmul.mubr.msk.bf16.vlgmr.msra.gmra.mrb[20].mxu0 %vm885_vm2, %v1471_v16  ;;  %v10210_v16 = vcombine.low %v878_v46, %v878_v46 }
 0xac7   : > { %10943 = vmatprep.mubr.msk.bf16.mxu0 %vm12681_vm0, %v12680_v0 }
 0xac8   : > { %v1795_v17 = vrot.slane %v10210_v16, 2 }
 0xaca   : > { %v1800_v18 = vsel %vm1113_vm6, %v1795_v17, 0 }
 0xacb   : > { %v1567_v20 = vpop.f32.mrb[28].mxu1 }
 0xacc   : > { %v10939_v22 = vpop.f32.mrb[29].mxu1  ;;  %v1568_v23 = vadd.f32 %v1567_v20, %v13204_v21 }
 0xacd   : > { %v1570_v24 = vpop.f32.mrb[30].mxu1 }
 0xace   : > { %v10940_v25 = vpop.f32.mrb[31].mxu1  ;;  %v1573_v26 = vsel %vm932_vm4, %v1568_v23, -inf }
 0xacf   : > { %1574 = vmax.xlane.f32.xlu1 %v1573_v26 }
 0xae0   : > { %1683 = vrot.lane.b32.xlu1 %v13184_v10, %s14753_s29  ;;  %s14757_s29 = smov 44  }
 0xae4   : > { %1681 = vrot.lane.b32.xlu1 %v13184_v10, %s14755_s0  ;;  %s14759_s0 = smov 72  }
 0xb5c   : > { %v1575_v27 = vpop.xlane.xlu1 %1574 }
 0xb5d   : > { %v1576_v28 = vsub.f32 %v1568_v23, %v1575_v27 }
 0xb5f   : > { %v1577_v29 = vmul.f32 1.442695, %v1576_v28 }
 0xb60   : > { %v1684_v42 = vpop.permute.xlu1 %1683 }
 0xb61   : > { %12093 = vpow2.f32 %v1577_v29  ;;  %v1689_v44 = vsel %vm885_vm2, %v1684_v42, 0 }
 0xb64   : > { %v1682_v45 = vpop.permute.xlu1 %1681 }
 0xb6b   : > { %v12094_v30 = vpop.eup %12093 }
 0xb6c   : > { %v1579_v31 = vsel %vm932_vm4, %v12094_v30, 0.0 }
 0xb6d   : > { %1580 = vadd.xlane.f32.xlu0 %v1579_v31 }
 0xb83   : > { %1585 = vrot.lane.b32.xlu0 %v13184_v10, %s14751_s30  ;;  %s14761_s30 = smov 104  }
 0xb99   : > { %v1516_v32 = vpop.f32.mrb[20].mxu0 }
 0xb9a   : > { %v1522_v33 = vadd.f32 %v1516_v32, %v1360_v63  ;;  %v10933_v34 = vpop.f32.mrb[21].mxu0 }
 0xb9b   : > { %v1519_v35 = vpop.f32.mrb[22].mxu0 }
 0xb9c   : > { %v10934_v36 = vpop.f32.mrb[23].mxu0 }
 0xbfa   : > { %v1581_v37 = vpop.xlane.xlu0 %1580 }
 0xbfb   : > { %12095 = vrcp.f32 %v1581_v37 }
 0xbfe   : > { %v1586_v38 = vpop.permute.xlu0 %1585 }
 0xbff   : > { %v1591_v39 = vsel %vm950_vm5, %v1586_v38, 0 }
 0xc00   : > { %10942 = vmatpush3.bf16.msra.mxu0 %v1591_v39 }
 0xc01   : > { %10953 = vmatprep.subr.bf16.mxu0 %v12680_v0 }
 0xc05   : > { %v12096_v40 = vpop.eup %12095 }
 0xc06   : > { %v1583_v41 = vmul.f32 %v12096_v40, %v12094_v30 }
 0xc08   : > { %v1584_v43 = vpack.c.bf16 %v1583_v41, %v1583_v41 }
 0xc0a   : > { %10944 = vmatmul.mubr.msk.bf16.vlgmr.msra.gmra.mrb[24].mxu0 %vm932_vm4, %v1584_v43 }
 0xc0b   : > { %10954 = vmatpush3.bf16.xpose.msra.mxu0 %v1689_v44  ;;  %10955 = vmatprep.mubr.msk.bf16.mxu0 %vm12681_vm0, %v12680_v0 }
 0xc0c   : > { %10965 = vmatprep.subr.bf16.mxu0 %v12680_v0 }
 0xc12   : > { %10956 = vmatmul.mubr.msk.bf16.vlgmr.msra.gmra.mrb[28].mxu0 %vm885_vm2, %v1682_v45 }
 0xc13   : > { %10967 = vmatprep.mubr.msk.bf16.mxu0 %vm12681_vm0, %v12680_v0  ;;  %10966 = vmatpush3.bf16.msra.mxu0 %v1800_v18 }
 0xc14   : > { %10977 = vmatprep.subr.bf16.mxu0 %v12680_v0 }
 0xcdd   : > { %v1627_v48 = vpop.f32.mrb[24].mxu0 }
 0xcde   : > { %v1633_v49 = vpack.c.bf16 %v1627_v48, %v1627_v48  ;;  %v10945_v50 = vpop.f32.mrb[25].mxu0 }
 0xcdf   : > { %v1630_v51 = vpop.f32.mrb[26].mxu0  ;;  %v879_v50 = vld [vmem:[%s14863_s18 + $0xc] sm:$0xf] }
 0xce0   : > { %v10946_v52 = vpop.f32.mrb[27].mxu0  ;;  %10950 = vmatmul.mubr.msk.bf16.vlgmr.msra.gmra.mrb[32].mxu1 %vm885_vm2, %v1633_v49  ;;  %v1958_v51 = vsel %vm1113_vm6, %v879_v50, 0  ;;  %v10217_v16 = vcombine.low %v879_v50, %v879_v50 }
 0xce1   : > { %10961 = vmatprep.mubr.msk.bf16.mxu1 %vm12681_vm0, %v12680_v0 }
 0xce2   : > { %v2115_v17 = vrot.slane %v10217_v16, 2 }
 0xce4   : > { %v2120_v18 = vsel %vm1113_vm6, %v2115_v17, 0 }
 0xce5   : > { %v1725_v53 = vpop.f32.mrb[28].mxu0 }
 0xce6   : > { %v10957_v54 = vpop.f32.mrb[29].mxu0  ;;  %v1726_v55 = vadd.f32 %v1725_v53, %v13204_v21 }
 0xce7   : > { %v1728_v56 = vpop.f32.mrb[30].mxu0 }
 0xce8   : > { %v10958_v57 = vpop.f32.mrb[31].mxu0  ;;  %v1731_v58 = vsel %vm932_vm4, %v1726_v55, -inf }
 0xce9   : > { %1732 = vmax.xlane.f32.xlu0 %v1731_v58 }
 0xcff   : > { %1743 = vrot.lane.b32.xlu0 %v13184_v10, %s14757_s29  ;;  %s14765_s29 = smov 68  }
 0xd03   : > { %1843 = vrot.lane.b32.xlu0 %v13184_v10, %s14761_s30  ;;  %s14763_s30 = smov 40  }
 0xd76   : > { %v1733_v59 = vpop.xlane.xlu0 %1732 }
 0xd77   : > { %v1734_v60 = vsub.f32 %v1726_v55, %v1733_v59 }
 0xd79   : > { %v1735_v61 = vmul.f32 1.442695, %v1734_v60 }
 0xd7a   : > { %v1744_v62 = vpop.permute.xlu0 %1743 }
 0xd7b   : > { %12097 = vpow2.f32 %v1735_v61  ;;  %v1749_v63 = vsel %vm950_vm5, %v1744_v62, 0 }
 0xd7c   : > { %10960 = vmatpush3.bf16.msra.mxu1 %v1749_v63 }
 0xd7d   : > { %10971 = vmatprep.subr.bf16.mxu1 %v12680_v0 }
 0xd7e   : > { %v1844_v15 = vpop.permute.xlu0 %1843 }
 0xd85   : > { %v12098_v1 = vpop.eup %12097 }
 0xd86   : > { %v1737_v2 = vsel %vm932_vm4, %v12098_v1, 0.0 }
 0xd87   : > { %1738 = vadd.xlane.f32.xlu1 %v1737_v2 }
 0xd98   : > { %1845 = vrot.lane.b32.xlu1 %v13184_v10, %s14759_s0  ;;  %s14769_s0 = smov 100  }
 0xdb3   : > { %v1674_v3 = vpop.f32.mrb[32].mxu1 }
 0xdb4   : > { %v1680_v4 = vadd.f32 %v1674_v3, %v1522_v33  ;;  %v10951_v5 = vpop.f32.mrb[33].mxu1 }
 0xdb5   : > { %v1677_v6 = vpop.f32.mrb[34].mxu1 }
 0xdb6   : > { %v10952_v7 = vpop.f32.mrb[35].mxu1 }
 0xe14   : > { %v1739_v8 = vpop.xlane.xlu1 %1738 }
 0xe15   : > { %12099 = vrcp.f32 %v1739_v8 }
 0xe18   : > { %v1846_v12 = vpop.permute.xlu1 %1845 }
 0xe19   : > { %v1851_v14 = vsel %vm885_vm2, %v1846_v12, 0 }
 0xe1f   : > { %v12100_v9 = vpop.eup %12099 }
 0xe20   : > { %v1741_v11 = vmul.f32 %v12100_v9, %v12098_v1 }
 0xe22   : > { %v1742_v13 = vpack.c.bf16 %v1741_v11, %v1741_v11 }
 0xe24   : > { %10962 = vmatmul.mubr.msk.bf16.vlgmr.msra.gmra.mrb[36].mxu1 %vm932_vm4, %v1742_v13 }
 0xe25   : > { %10972 = vmatpush3.bf16.xpose.msra.mxu1 %v1851_v14  ;;  %10973 = vmatprep.mubr.msk.bf16.mxu1 %vm12681_vm0, %v12680_v0 }
 0xe26   : > { %10983 = vmatprep.subr.bf16.mxu1 %v12680_v0 }
 0xe2c   : > { %10974 = vmatmul.mubr.msk.bf16.vlgmr.msra.gmra.mrb[40].mxu1 %vm885_vm2, %v1844_v15 }
 0xe2d   : > { %10985 = vmatprep.mubr.msk.bf16.mxu1 %vm12681_vm0, %v12680_v0  ;;  %10984 = vmatpush3.bf16.msra.mxu1 %v1958_v51  ;;  %v10220_v51 = vld [vmem:[%s14867_s2] ss:$0 sm:$0xff] }
 0xe2e   : > { %10995 = vmatprep.subr.bf16.mxu1 %v12680_v0 }
 0xef7   : > { %v1785_v19 = vpop.f32.mrb[36].mxu1 }
 0xef8   : > { %v1791_v20 = vpack.c.bf16 %v1785_v19, %v1785_v19  ;;  %v10963_v22 = vpop.f32.mrb[37].mxu1 }
 0xef9   : > { %v1788_v23 = vpop.f32.mrb[38].mxu1 }
 0xefa   : > { %v10964_v24 = vpop.f32.mrb[39].mxu1  ;;  %10968 = vmatmul.mubr.msk.bf16.vlgmr.msra.gmra.mrb[32].mxu0 %vm885_vm2, %v1791_v20 }
 0xefb   : > { %10979 = vmatprep.mubr.msk.bf16.mxu0 %vm12681_vm0, %v12680_v0 }
 0xeff   : > { %v1887_v25 = vpop.f32.mrb[40].mxu1 }
 0xf00   : > { %v10975_v26 = vpop.f32.mrb[41].mxu1  ;;  %v1888_v27 = vadd.f32 %v1887_v25, %v13204_v21 }
 0xf01   : > { %v1890_v28 = vpop.f32.mrb[42].mxu1  ;;  %v10219_v26 = vld [vmem:[#allocation7] ss:$0 sm:$0xff] }
 0xf02   : > { %v10976_v29 = vpop.f32.mrb[43].mxu1  ;;  %v1893_v30 = vsel %vm932_vm4, %v1888_v27, -inf }
 0xf03   : > { %1894 = vmax.xlane.f32.xlu1 %v1893_v30 }
 0xf14   : > { %2003 = vrot.lane.b32.xlu1 %v13184_v10, %s14765_s29  ;;  %s14767_s29 = smov 36  }
 0xf18   : > { %2001 = vrot.lane.b32.xlu1 %v13184_v10, %s14769_s0  ;;  %s14864_s0 = sld [smem:[#allocation45_spill]] }
 0xf90   : > { %v1895_v31 = vpop.xlane.xlu1 %1894 }
 0xf91   : > { %v1896_v32 = vsub.f32 %v1888_v27, %v1895_v31 }
 0xf93   : > { %v1897_v33 = vmul.f32 1.442695, %v1896_v32  ;;  %v12295_v32 = vld [vmem:[%s13140_s17] sm:$0xff]  ;;  %s14875_s17 = smov 84  }
 0xf94   : > { %v2004_v46 = vpop.permute.xlu1 %2003 }
 0xf95   : > { %12101 = vpow2.f32 %v1897_v33  ;;  %v2009_v48 = vsel %vm885_vm2, %v2004_v46, 0  ;;  %v12026_v46 = vld [vmem:[%s14866_s25 + $0x8] sm:$0xff]  }
 0xf98   : > { %v2002_v49 = vpop.permute.xlu1 %2001 }
 0xf9f   : > { %v12102_v34 = vpop.eup %12101 }
 0xfa0   : > { %v1899_v35 = vsel %vm932_vm4, %v12102_v34, 0.0 }
 0xfa1   : > { %1900 = vadd.xlane.f32.xlu0 %v1899_v35 }
 0xfb7   : > { %1905 = vrot.lane.b32.xlu0 %v13184_v10, %s14763_s30  ;;  %s14874_s30 = smov 88  }
 0xfcd   : > { %v1836_v36 = vpop.f32.mrb[32].mxu0 }
 0xfce   : > { %v1842_v37 = vadd.f32 %v1836_v36, %v1680_v4  ;;  %v10969_v38 = vpop.f32.mrb[33].mxu0 }
 0xfcf   : > { %v1839_v39 = vpop.f32.mrb[34].mxu0 }
 0xfd0   : > { %v10970_v40 = vpop.f32.mrb[35].mxu0 }
 0xfd1   : > { %v12023_v40 = vld [vmem:[%s14864_s0] sm:$0xff]  }
0x102e   : > { %v1901_v41 = vpop.xlane.xlu0 %1900 }
0x102f   : > { %12103 = vrcp.f32 %v1901_v41  ;;  %v12024_v41 = vld [vmem:[%s14864_s0 + $0x8] sm:$0xff]  }
0x1032   : > { %v1906_v42 = vpop.permute.xlu0 %1905 }
0x1033   : > { %v1911_v43 = vsel %vm950_vm5, %v1906_v42, 0  ;;  %v798_v42 = vld [vmem:[%s795_s4] sm:$0xff] }
0x1034   : > { %10978 = vmatpush3.bf16.msra.mxu0 %v1911_v43  ;;  %v799_v43 = vld [vmem:[%s795_s4 + $0x8] sm:$0xf]  ;;  %s14872_s4 = smov 96  }
0x1035   : > { %10989 = vmatprep.subr.bf16.mxu0 %v12680_v0 }
0x1039   : > { %v12104_v44 = vpop.eup %12103 }
0x103a   : > { %v1903_v45 = vmul.f32 %v12104_v44, %v12102_v34  ;;  %v13410_v44 = vpack.c.bf16 %v799_v43, %v798_v42 }
0x103c   : > { %v1904_v47 = vpack.c.bf16 %v1903_v45, %v1903_v45  ;;  %v12025_v45 = vld [vmem:[%s14866_s25] sm:$0xff]  }
0x103e   : > { %10980 = vmatmul.mubr.msk.bf16.vlgmr.msra.gmra.mrb[36].mxu0 %vm932_vm4, %v1904_v47 }
0x103f   : > { %10990 = vmatpush3.bf16.xpose.msra.mxu0 %v2009_v48  ;;  %10991 = vmatprep.mubr.msk.bf16.mxu0 %vm12681_vm0, %v12680_v0 }
0x1040   : > { %11001 = vmatprep.subr.bf16.mxu0 %v12680_v0 }
0x1046   : > { %10992 = vmatmul.mubr.msk.bf16.vlgmr.msra.gmra.mrb[40].mxu0 %vm885_vm2, %v2002_v49 }
0x1047   : > { %11003 = vmatprep.mubr.msk.bf16.mxu0 %vm12681_vm0, %v12680_v0  ;;  %11002 = vmatpush3.bf16.msra.mxu0 %v2120_v18 }
0x1048   : > { %11015 = vmatprep.subr.bf16.mxu0 %v12680_v0 }
0x1111   : > { %v1947_v52 = vpop.f32.mrb[36].mxu0 }
0x1112   : > { %v1953_v53 = vpack.c.bf16 %v1947_v52, %v1947_v52  ;;  %v10981_v54 = vpop.f32.mrb[37].mxu0 }
0x1113   : > { %v1950_v55 = vpop.f32.mrb[38].mxu0 }
0x1114   : > { %v10982_v56 = vpop.f32.mrb[39].mxu0  ;;  %10986 = vmatmul.mubr.msk.bf16.vlgmr.msra.gmra.mrb[44].mxu1 %vm885_vm2, %v1953_v53  ;;  %v10221_v53 = vld [vmem:[%s14868_s26] ss:$0 sm:$0xff] }
0x1115   : > { %10997 = vmatprep.mubr.msk.bf16.mxu1 %vm12681_vm0, %v12680_v0 }
0x1119   : > { %v2045_v57 = vpop.f32.mrb[40].mxu0 }
0x111a   : > { %v10993_v58 = vpop.f32.mrb[41].mxu0  ;;  %v2046_v59 = vadd.f32 %v2045_v57, %v13204_v21  ;;  %v10226_v57 = vld [vmem:[#allocation10] ss:$0 sm:$0xff] }
0x111b   : > { %v2048_v60 = vpop.f32.mrb[42].mxu0 }
0x111c   : > { %v10994_v61 = vpop.f32.mrb[43].mxu0  ;;  %v2051_v62 = vsel %vm932_vm4, %v2046_v59, -inf }
0x111d   : > { %2052 = vmax.xlane.f32.xlu0 %v2051_v62 }
0x1133   : > { %2063 = vrot.lane.b32.xlu0 %v13184_v10, %s14767_s29  ;;  %s14869_s29 = smov 124  }
0x11aa   : > { %v2053_v63 = vpop.xlane.xlu0 %2052 }
0x11ab   : > { %v2054_v1 = vsub.f32 %v2046_v59, %v2053_v63 }
0x11ad   : > { %v2055_v2 = vmul.f32 1.442695, %v2054_v1 }
0x11ae   : > { %v2064_v3 = vpop.permute.xlu0 %2063 }
0x11af   : > { %12105 = vpow2.f32 %v2055_v2  ;;  %v2069_v4 = vsel %vm950_vm5, %v2064_v3, 0  ;;  %v10222_v3 = vld [vmem:[#allocation8] ss:$0 sm:$0xff] }
0x11b0   : > { %10996 = vmatpush3.bf16.msra.mxu1 %v2069_v4 }
0x11b1   : > { %11007 = vmatprep.subr.bf16.mxu1 %v12680_v0 }
0x11b9   : > { %v12106_v5 = vpop.eup %12105 }
0x11ba   : > { %v2057_v6 = vsel %vm932_vm4, %v12106_v5, 0.0 }
0x11bb   : > { %2058 = vadd.xlane.f32.xlu1 %v2057_v6 }
0x11e7   : > { %v1994_v7 = vpop.f32.mrb[44].mxu1 }
0x11e8   : > { %v2000_v8 = vadd.f32 %v1994_v7, %v1842_v37  ;;  %v10987_v9 = vpop.f32.mrb[45].mxu1 }
0x11e9   : > { %v1997_v11 = vpop.f32.mrb[46].mxu1 }
0x11ea   : > { %v10988_v12 = vpop.f32.mrb[47].mxu1 }
0x1248   : > { %v2059_v10 = vpop.xlane.xlu1 %2058 }
0x1249   : > { %12107 = vrcp.f32 %v2059_v10 }
0x1253   : > { %v12108_v13 = vpop.eup %12107 }
0x1254   : > { %v2061_v14 = vmul.f32 %v12108_v13, %v12106_v5 }
0x1256   : > { %v2062_v15 = vpack.c.bf16 %v2061_v14, %v2061_v14 }
0x1258   : > { %10998 = vmatmul.mubr.msk.bf16.vlgmr.msra.gmra.mrb[48].mxu1 %vm932_vm4, %v2062_v15 }
0x1259   : > { %11011 = vmatprep.mubr.msk.bf16.mxu1 %vm12681_vm0, %v12680_v0  ;;  %11008 = vmatpush3.bf16.msra.mxu1 %v12025_v45 }
0x125a   : > { %11009 = vmatprep.subr.bf16.mxu1 %v12680_v0 }
0x125d   : > { %11010 = vmatpush3.bf16.msra.mxu1 %v12026_v46 }
0x125e   : > { %11023 = vmatprep.subr.bf16.mxu1 %v12680_v0 }
0x132b   : > { %v2105_v19 = vpop.f32.mrb[48].mxu1 }
0x132c   : > { %v2111_v20 = vpack.c.bf16 %v2105_v19, %v2105_v19  ;;  %v10999_v22 = vpop.f32.mrb[49].mxu1 }
0x132d   : > { %v2108_v23 = vpop.f32.mrb[50].mxu1 }
0x132e   : > { %v11000_v24 = vpop.f32.mrb[51].mxu1  ;;  %11004 = vmatmul.mubr.msk.bf16.vlgmr.msra.gmra.mrb[44].mxu0 %vm885_vm2, %v2111_v20 }
0x132f   : > { %11019 = vmatprep.mubr.msk.bf16.mxu0 %vm12681_vm0, %v12680_v0  ;;  %11016 = vmatpush3.bf16.msra.mxu0 %v12023_v40 }
0x1330   : > { %11017 = vmatprep.subr.bf16.mxu0 %v12680_v0 }
0x1333   : > { %11018 = vmatpush3.bf16.msra.mxu0 %v12024_v41 }
0x1334   : > { %11029 = vmatprep.subr.bf16.mxu0 %v12680_v0 }
0x1336   : > { %11020 = vmatmul.mubr.msk.bf16.vlgmr.msra.gmra.mrb[48].mxu0 %vm832_vm1, %v13410_v44 }
0x1337   : > { %11031 = vmatprep.mubr.msk.bf16.mxu0 %vm12681_vm0, %v12680_v0 }
0x1401   : > { %v2156_v25 = vpop.f32.mrb[44].mxu0 }
0x1402   : > { %v2162_v27 = vadd.f32 %v2156_v25, %v2000_v8  ;;  %v11005_v28 = vpop.f32.mrb[45].mxu0 }
0x1403   : > { %v2159_v29 = vpop.f32.mrb[46].mxu0 }
0x1404   : > { %v11006_v30 = vpop.f32.mrb[47].mxu0  ;;  %v2169_v31 = vadd.f32 %v10219_v26, %v2162_v27 }
0x1406   : > { %v2170_v33 = vadd.f32 %v12295_v32, %v2169_v31 }
0x1408   : > { %v2173_v34 = vsel %vm832_vm1, %v2170_v33, 0.0 }
0x1409   : > { %2174 = vadd.xlane.f32.xlu1 %v2173_v34  ;;  %v2329_v58 = vpop.f32.mrb[48].mxu0 }
0x140a   : > { %v2330_v59 = vadd.f32 %v10226_v57, %v2329_v58  ;;  %v11021_v60 = vpop.f32.mrb[49].mxu0 }
0x140b   : > { %v2332_v61 = vpop.f32.mrb[50].mxu0 }
0x140c   : > { %v2333_v62 = vadd.f32 %v10226_v57, %v2332_v61  ;;  %v11022_v63 = vpop.f32.mrb[51].mxu0 }
0x140e   : > { %v13438_v1 = vpack.c.bf16 %v2333_v62, %v2330_v59 }
0x1410   : > { %v2347_v2 = vsel %vm885_vm2, %v13438_v1, 0 }
0x1496   : > { %v2175_v35 = vpop.xlane.xlu1 %2174 }
0x1497   : > { %v2177_v36 = vmul.f32 0.03125, %v2175_v35 }
0x1499   : > { %v2178_v37 = vsub.f32 %v2170_v33, %v2177_v36 }
0x149b   : > { %v2179_v38 = vmul.f32 %v2178_v37, %v2178_v37 }
0x149d   : > { %v2180_v39 = vsel %vm832_vm1, %v2179_v38, 0.0 }
0x149e   : > { %2181 = vadd.xlane.f32.xlu1 %v2180_v39 }
0x14af   : > { %2456 = vrot.lane.b32.xlu1 %v13438_v1, %s14869_s29 }
0x152b   : > { %v2182_v47 = vpop.xlane.xlu1 %2181 }
0x152c   : > { %v2183_v48 = vmul.f32 0.03125, %v2182_v47  ;;  %v2336_v47 = vld [vmem:[#allocation11] sm:$0xf] }
0x152e   : > { %v2184_v49 = vadd.f32 1e-05, %v2183_v48  ;;  %v10234_v48 = vcombine.low %v2336_v47, %v2336_v47 }
0x152f   : > { %v2457_v5 = vpop.permute.xlu1 %2456 }
0x1530   : > { %12109 = vrsqrt.f32 %v2184_v49  ;;  %v2462_v12 = vsel %vm885_vm2, %v2457_v5, 0  ;;  %v2619_v49 = vsel %vm1113_vm6, %v2336_v47, 0 }
0x153a   : > { %v12110_v50 = vpop.eup %12109 }
0x153b   : > { %v2186_v52 = vmul.f32 %v12110_v50, %v2178_v37  ;;  %v2568_v50 = vrot.slane %v10234_v48, 2 }
0x153d   : > { %v2193_v54 = vmul.f32 %v10220_v51, %v2186_v52  ;;  %v2573_v51 = vsel %vm1113_vm6, %v2568_v50, 0 }
0x153f   : > { %v13431_v55 = vadd.f32 %v10221_v53, %v2193_v54 }
0x1541   : > { %v2205_v56 = vpack.c.bf16 %v13431_v55, %v13431_v55 }
0x1543   : > { %11012 = vmatmul.mubr.msk.bf16.vlgmr.msra.gmra.mrb[52].mxu1 %vm832_vm1, %v2205_v56 }
0x1544   : > { %11025 = vmatprep.mubr.msk.bf16.mxu1 %vm12681_vm0, %v12680_v0  ;;  %11024 = vmatpush3.bf16.xpose.msra.mxu1 %v2347_v2 }
0x1545   : > { %11035 = vmatprep.subr.bf16.mxu1 %v12680_v0 }
0x1616   : > { %v2262_v4 = vpop.f32.mrb[52].mxu1 }
0x1617   : > { %v2263_v6 = vadd.f32 %v10222_v3, %v2262_v4  ;;  %v11013_v7 = vpop.f32.mrb[53].mxu1 }
0x1618   : > { %v2265_v8 = vpop.f32.mrb[54].mxu1 }
0x1619   : > { %v13445_v9 = vpack.c.bf16 %v2263_v6, %v2263_v6  ;;  %v11014_v11 = vpop.f32.mrb[55].mxu1 }
0x161b   : > { %2454 = vrot.lane.b32.xlu0 %v13445_v9, %s14869_s29  ;;  %11026 = vmatmul.mubr.msk.bf16.vlgmr.msra.gmra.mrb[56].mxu1 %vm885_vm2, %v13445_v9 }
0x161c   : > { %11036 = vmatpush3.bf16.xpose.msra.mxu1 %v2462_v12  ;;  %11037 = vmatprep.mubr.msk.bf16.mxu1 %vm12681_vm0, %v12680_v0 }
0x161d   : > { %11047 = vmatprep.subr.bf16.mxu1 %v12680_v0 }
0x168d   : > { %v2455_v10 = vpop.permute.xlu0 %2454 }
0x168e   : > { %11038 = vmatmul.mubr.msk.bf16.vlgmr.msra.gmra.mrb[60].mxu1 %vm885_vm2, %v2455_v10 }
0x168f   : > { %11049 = vmatprep.mubr.msk.bf16.mxu1 %vm12681_vm0, %v12680_v0  ;;  %11048 = vmatpush3.bf16.msra.mxu1 %v2573_v51 }
0x1690   : > { %11059 = vmatprep.subr.bf16.mxu1 %v12680_v0 }
0x16ee   : > { %v2383_v13 = vpop.f32.mrb[56].mxu1 }
0x16ef   : > { %v11027_v14 = vpop.f32.mrb[57].mxu1  ;;  %v2390_v15 = vsel %vm2389_vm7, %v2383_v13, -inf }
0x16f0   : > { %2391 = vmax.xlane.f32.xlu0 %v2390_v15  ;;  %v2386_v16 = vpop.f32.mrb[58].mxu1 }
0x16f1   : > { %v11028_v17 = vpop.f32.mrb[59].mxu1 }
0x1761   : > { %v2498_v18 = vpop.f32.mrb[60].mxu1 }
0x1762   : > { %v11039_v19 = vpop.f32.mrb[61].mxu1  ;;  %v2504_v20 = vsel %vm2389_vm7, %v2498_v18, -inf }
0x1763   : > { %2505 = vmax.xlane.f32.xlu1 %v2504_v20  ;;  %v2501_v22 = vpop.f32.mrb[62].mxu1 }
0x1764   : > { %v11040_v23 = vpop.f32.mrb[63].mxu1 }
0x1774   : > { %2516 = vrot.lane.b32.xlu1 %v13438_v1, %s14870_s21 }
0x1778   : > { %2663 = vrot.lane.b32.xlu1 %v13438_v1, %s14871_s14 }
0x177d   : > { %v2392_v24 = vpop.xlane.xlu0 %2391 }
0x177e   : > { %v2393_v25 = vsub.f32 %v2383_v13, %v2392_v24 }
0x1780   : > { %v2394_v26 = vmul.f32 1.442695, %v2393_v25 }
0x1782   : > { %12111 = vpow2.f32 %v2394_v26 }
0x178c   : > { %v12112_v27 = vpop.eup %12111 }
0x178d   : > { %v2396_v28 = vsel %vm2389_vm7, %v12112_v27, 0.0 }
0x178e   : > { %2397 = vadd.xlane.f32.xlu0 %v2396_v28 }
0x17f0   : > { %v2506_v29 = vpop.xlane.xlu1 %2505 }
0x17f1   : > { %v2507_v30 = vsub.f32 %v2498_v18, %v2506_v29 }
0x17f3   : > { %v2508_v31 = vmul.f32 1.442695, %v2507_v30 }
0x17f4   : > { %v2517_v40 = vpop.permute.xlu1 %2516 }
0x17f5   : > { %12113 = vpow2.f32 %v2508_v31  ;;  %v2522_v42 = vsel %vm2408_vm8, %v2517_v40, 0 }
0x17f8   : > { %v2664_v58 = vpop.permute.xlu1 %2663 }
0x17f9   : > { %v2669_v63 = vsel %vm885_vm2, %v2664_v58, 0 }
0x17ff   : > { %v12114_v32 = vpop.eup %12113 }
0x1800   : > { %v2510_v33 = vsel %vm2389_vm7, %v12114_v32, 0.0 }
0x1801   : > { %2511 = vadd.xlane.f32.xlu0 %v2510_v33 }
0x1817   : > { %2403 = vrot.lane.b32.xlu0 %v13438_v1, %s14872_s4 }
0x181b   : > { %2661 = vrot.lane.b32.xlu0 %v13445_v9, %s14871_s14  ;;  %v2398_v34 = vpop.xlane.xlu0 %2397 }
0x181c   : > { %12115 = vrcp.f32 %v2398_v34  ;;  %v2337_v34 = vld [vmem:[#allocation11 + $0x4] sm:$0xf] }
0x1826   : > { %v12116_v35 = vpop.eup %12115 }
0x1827   : > { %v2400_v37 = vmul.f32 %v12116_v35, %v12112_v27  ;;  %v2776_v35 = vsel %vm1113_vm6, %v2337_v34, 0 }
0x1829   : > { %v2401_v41 = vpack.c.bf16 %v2400_v37, %v2400_v37 }
0x188e   : > { %v2512_v36 = vpop.xlane.xlu0 %2511 }
0x188f   : > { %12117 = vrcp.f32 %v2512_v36 }
0x1892   : > { %v2404_v38 = vpop.permute.xlu0 %2403 }
0x1893   : > { %v2410_v39 = vsel %vm2408_vm8, %v2404_v38, 0 }
0x1894   : > { %11030 = vmatpush3.bf16.msra.mxu0 %v2410_v39 }
0x1895   : > { %11041 = vmatprep.subr.bf16.mxu0 %v12680_v0 }
0x1896   : > { %v2662_v3 = vpop.permute.xlu0 %2661 }
0x1897   : > { %11032 = vmatmul.mubr.msk.bf16.vlgmr.msra.gmra.mrb[52].mxu0 %vm2389_vm7, %v2401_v41 }
0x1898   : > { %11042 = vmatpush3.bf16.msra.mxu0 %v2522_v42  ;;  %11043 = vmatprep.mubr.msk.bf16.mxu0 %vm12681_vm0, %v12680_v0 }
0x1899   : > { %v12118_v43 = vpop.eup %12117  ;;  %11053 = vmatprep.subr.bf16.mxu0 %v12680_v0 }
0x189a   : > { %v2514_v45 = vmul.f32 %v12118_v43, %v12114_v32 }
0x189c   : > { %v2515_v46 = vpack.c.bf16 %v2514_v45, %v2514_v45 }
0x189f   : > { %11044 = vmatmul.mubr.msk.bf16.vlgmr.msra.gmra.mrb[56].mxu0 %vm2389_vm7, %v2515_v46 }
0x18a0   : > { %11055 = vmatprep.mubr.msk.bf16.mxu0 %vm12681_vm0, %v12680_v0  ;;  %11054 = vmatpush3.bf16.msra.mxu0 %v2619_v49 }
0x18a1   : > { %11065 = vmatprep.subr.bf16.mxu0 %v12680_v0 }
0x196a   : > { %v2446_v52 = vpop.f32.mrb[52].mxu0 }
0x196b   : > { %v2452_v53 = vpack.c.bf16 %v2446_v52, %v2446_v52  ;;  %v11033_v54 = vpop.f32.mrb[53].mxu0 }
0x196c   : > { %v2449_v56 = vpop.f32.mrb[54].mxu0 }
0x196d   : > { %v11034_v57 = vpop.f32.mrb[55].mxu0  ;;  %11056 = vmatmul.mubr.msk.bf16.vlgmr.msra.gmra.mrb[60].mxu0 %vm885_vm2, %v2452_v53 }
0x196e   : > { %11067 = vmatprep.mubr.msk.bf16.mxu0 %vm12681_vm0, %v12680_v0 }
0x1972   : > { %v2558_v59 = vpop.f32.mrb[56].mxu0 }
0x1973   : > { %v2564_v60 = vpack.c.bf16 %v2558_v59, %v2558_v59  ;;  %v11045_v61 = vpop.f32.mrb[57].mxu0 }
0x1974   : > { %v2561_v62 = vpop.f32.mrb[58].mxu0 }
0x1975   : > { %v11046_v2 = vpop.f32.mrb[59].mxu0  ;;  %11050 = vmatmul.mubr.msk.bf16.vlgmr.msra.gmra.mrb[64].mxu1 %vm885_vm2, %v2564_v60 }
0x1976   : > { %11060 = vmatpush3.bf16.xpose.msra.mxu1 %v2669_v63  ;;  %11061 = vmatprep.mubr.msk.bf16.mxu1 %vm12681_vm0, %v12680_v0 }
0x1977   : > { %11071 = vmatprep.subr.bf16.mxu1 %v12680_v0 }
0x197d   : > { %11062 = vmatmul.mubr.msk.bf16.vlgmr.msra.gmra.mrb[68].mxu1 %vm885_vm2, %v2662_v3 }
0x197e   : > { %11073 = vmatprep.mubr.msk.bf16.mxu1 %vm12681_vm0, %v12680_v0  ;;  %11072 = vmatpush3.bf16.msra.mxu1 %v2776_v35 }
0x197f   : > { %11083 = vmatprep.subr.bf16.mxu1 %v12680_v0 }
0x1a40   : > { %v2655_v4 = vpop.f32.mrb[60].mxu0 }
0x1a41   : > { %v11057_v5 = vpop.f32.mrb[61].mxu0 }
0x1a42   : > { %v2658_v6 = vpop.f32.mrb[62].mxu0  ;;  %v10242_v5 = vcombine.low %v2337_v34, %v2337_v34 }
0x1a43   : > { %v11058_v7 = vpop.f32.mrb[63].mxu0 }
0x1a44   : > { %v2933_v6 = vrot.slane %v10242_v5, 2 }
0x1a46   : > { %v2938_v7 = vsel %vm1113_vm6, %v2933_v6, 0 }
0x1a48   : > { %v2609_v8 = vpop.f32.mrb[64].mxu1 }
0x1a49   : > { %v11051_v11 = vpop.f32.mrb[65].mxu1  ;;  %v13495_v12 = vadd.f32 %v2655_v4, %v2609_v8 }
0x1a4a   : > { %v2612_v10 = vpop.f32.mrb[66].mxu1 }
0x1a4b   : > { %v11052_v13 = vpop.f32.mrb[67].mxu1 }
0x1a50   : > { %v2705_v14 = vpop.f32.mrb[68].mxu1 }
0x1a51   : > { %v11063_v15 = vpop.f32.mrb[69].mxu1  ;;  %v2711_v16 = vsel %vm2389_vm7, %v2705_v14, -inf }
0x1a52   : > { %2712 = vmax.xlane.f32.xlu1 %v2711_v16  ;;  %v2708_v17 = vpop.f32.mrb[70].mxu1 }
0x1a53   : > { %v11064_v18 = vpop.f32.mrb[71].mxu1 }
0x1a63   : > { %2821 = vrot.lane.b32.xlu1 %v13438_v1, %s14873_s19 }
0x1a67   : > { %2819 = vrot.lane.b32.xlu1 %v13445_v9, %s14873_s19 }
0x1adf   : > { %v2713_v19 = vpop.xlane.xlu1 %2712 }
0x1ae0   : > { %v2714_v20 = vsub.f32 %v2705_v14, %v2713_v19 }
0x1ae2   : > { %v2715_v22 = vmul.f32 1.442695, %v2714_v20 }
0x1ae3   : > { %v2822_v30 = vpop.permute.xlu1 %2821 }
0x1ae4   : > { %12119 = vpow2.f32 %v2715_v22  ;;  %v2827_v32 = vsel %vm885_vm2, %v2822_v30, 0 }
0x1ae7   : > { %v2820_v33 = vpop.permute.xlu1 %2819 }
0x1aee   : > { %v12120_v23 = vpop.eup %12119 }
0x1aef   : > { %v2717_v24 = vsel %vm2389_vm7, %v12120_v23, 0.0 }
0x1af0   : > { %2718 = vadd.xlane.f32.xlu0 %v2717_v24 }
0x1b06   : > { %2723 = vrot.lane.b32.xlu0 %v13438_v1, %s14874_s30 }
0x1b7d   : > { %v2719_v25 = vpop.xlane.xlu0 %2718 }
0x1b7e   : > { %12121 = vrcp.f32 %v2719_v25 }
0x1b81   : > { %v2724_v26 = vpop.permute.xlu0 %2723 }
0x1b82   : > { %v2729_v27 = vsel %vm2408_vm8, %v2724_v26, 0 }
0x1b83   : > { %11066 = vmatpush3.bf16.msra.mxu0 %v2729_v27 }
0x1b84   : > { %11077 = vmatprep.subr.bf16.mxu0 %v12680_v0 }
0x1b88   : > { %v12122_v28 = vpop.eup %12121 }
0x1b89   : > { %v2721_v29 = vmul.f32 %v12122_v28, %v12120_v23 }
0x1b8b   : > { %v2722_v31 = vpack.c.bf16 %v2721_v29, %v2721_v29 }
0x1b8d   : > { %11068 = vmatmul.mubr.msk.bf16.vlgmr.msra.gmra.mrb[64].mxu0 %vm2389_vm7, %v2722_v31 }
0x1b8e   : > { %11078 = vmatpush3.bf16.xpose.msra.mxu0 %v2827_v32  ;;  %11079 = vmatprep.mubr.msk.bf16.mxu0 %vm12681_vm0, %v12680_v0 }
0x1b8f   : > { %11089 = vmatprep.subr.bf16.mxu0 %v12680_v0 }
0x1b95   : > { %11080 = vmatmul.mubr.msk.bf16.vlgmr.msra.gmra.mrb[68].mxu0 %vm885_vm2, %v2820_v33 }
0x1b96   : > { %11091 = vmatprep.mubr.msk.bf16.mxu0 %vm12681_vm0, %v12680_v0  ;;  %11090 = vmatpush3.bf16.msra.mxu0 %v2938_v7 }
0x1b97   : > { %11101 = vmatprep.subr.bf16.mxu0 %v12680_v0 }
0x1c60   : > { %v2765_v36 = vpop.f32.mrb[64].mxu0 }
0x1c61   : > { %v2771_v37 = vpack.c.bf16 %v2765_v36, %v2765_v36  ;;  %v11069_v38 = vpop.f32.mrb[65].mxu0 }
0x1c62   : > { %v2768_v39 = vpop.f32.mrb[66].mxu0 }
0x1c63   : > { %v11070_v40 = vpop.f32.mrb[67].mxu0  ;;  %11074 = vmatmul.mubr.msk.bf16.vlgmr.msra.gmra.mrb[72].mxu1 %vm885_vm2, %v2771_v37  ;;  %v2338_v39 = vld [vmem:[#allocation11 + $0x8] sm:$0xf] }
0x1c64   : > { %11085 = vmatprep.mubr.msk.bf16.mxu1 %vm12681_vm0, %v12680_v0  ;;  %v3096_v40 = vsel %vm1113_vm6, %v2338_v39, 0 }
0x1c68   : > { %v2863_v41 = vpop.f32.mrb[68].mxu0 }
0x1c69   : > { %v11081_v42 = vpop.f32.mrb[69].mxu0  ;;  %v2869_v43 = vsel %vm2389_vm7, %v2863_v41, -inf }
0x1c6a   : > { %2870 = vmax.xlane.f32.xlu0 %v2869_v43  ;;  %v2866_v45 = vpop.f32.mrb[70].mxu0 }
0x1c6b   : > { %v11082_v46 = vpop.f32.mrb[71].mxu0 }
0x1c80   : > { %2881 = vrot.lane.b32.xlu0 %v13438_v1, %s14875_s17 }
0x1c84   : > { %2981 = vrot.lane.b32.xlu0 %v13445_v9, %s14876_s5 }
0x1cf7   : > { %v2871_v47 = vpop.xlane.xlu0 %2870 }
0x1cf8   : > { %v2872_v48 = vsub.f32 %v2863_v41, %v2871_v47 }
0x1cfa   : > { %v2873_v49 = vmul.f32 1.442695, %v2872_v48 }
0x1cfb   : > { %v2882_v50 = vpop.permute.xlu0 %2881 }
0x1cfc   : > { %12123 = vpow2.f32 %v2873_v49  ;;  %v2887_v51 = vsel %vm2408_vm8, %v2882_v50, 0 }
0x1cfd   : > { %11084 = vmatpush3.bf16.msra.mxu1 %v2887_v51 }
0x1cfe   : > { %11095 = vmatprep.subr.bf16.mxu1 %v12680_v0 }
0x1cff   : > { %v2982_v4 = vpop.permute.xlu0 %2981 }
0x1d06   : > { %v12124_v52 = vpop.eup %12123 }
0x1d07   : > { %v2875_v53 = vsel %vm2389_vm7, %v12124_v52, 0.0 }
0x1d08   : > { %2876 = vadd.xlane.f32.xlu1 %v2875_v53 }
0x1d19   : > { %2983 = vrot.lane.b32.xlu1 %v13438_v1, %s14876_s5 }
0x1d36   : > { %v2812_v54 = vpop.f32.mrb[72].mxu1 }
0x1d37   : > { %v2818_v56 = vadd.f32 %v2812_v54, %v13495_v12  ;;  %v11075_v57 = vpop.f32.mrb[73].mxu1 }
0x1d38   : > { %v2815_v58 = vpop.f32.mrb[74].mxu1 }
0x1d39   : > { %v11076_v59 = vpop.f32.mrb[75].mxu1 }
0x1d95   : > { %v2877_v60 = vpop.xlane.xlu1 %2876 }
0x1d96   : > { %12125 = vrcp.f32 %v2877_v60 }
0x1d99   : > { %v2984_v63 = vpop.permute.xlu1 %2983 }
0x1d9a   : > { %v2989_v3 = vsel %vm885_vm2, %v2984_v63, 0 }
0x1da0   : > { %v12126_v61 = vpop.eup %12125 }
0x1da1   : > { %v2879_v62 = vmul.f32 %v12126_v61, %v12124_v52 }
0x1da3   : > { %v2880_v2 = vpack.c.bf16 %v2879_v62, %v2879_v62 }
0x1da5   : > { %11086 = vmatmul.mubr.msk.bf16.vlgmr.msra.gmra.mrb[76].mxu1 %vm2389_vm7, %v2880_v2 }
0x1da6   : > { %11096 = vmatpush3.bf16.xpose.msra.mxu1 %v2989_v3  ;;  %11097 = vmatprep.mubr.msk.bf16.mxu1 %vm12681_vm0, %v12680_v0 }
0x1da7   : > { %11107 = vmatprep.subr.bf16.mxu1 %v12680_v0 }
0x1dad   : > { %11098 = vmatmul.mubr.msk.bf16.vlgmr.msra.gmra.mrb[80].mxu1 %vm885_vm2, %v2982_v4 }
0x1dae   : > { %11109 = vmatprep.mubr.msk.bf16.mxu1 %vm12681_vm0, %v12680_v0  ;;  %11108 = vmatpush3.bf16.msra.mxu1 %v3096_v40 }
0x1daf   : > { %11119 = vmatprep.subr.bf16.mxu1 %v12680_v0 }
0x1e78   : > { %v2923_v8 = vpop.f32.mrb[76].mxu1 }
0x1e79   : > { %v2929_v11 = vpack.c.bf16 %v2923_v8, %v2923_v8  ;;  %v11087_v12 = vpop.f32.mrb[77].mxu1 }
0x1e7a   : > { %v2926_v10 = vpop.f32.mrb[78].mxu1  ;;  %v10249_v12 = vcombine.low %v2338_v39, %v2338_v39 }
0x1e7b   : > { %v11088_v13 = vpop.f32.mrb[79].mxu1  ;;  %11092 = vmatmul.mubr.msk.bf16.vlgmr.msra.gmra.mrb[72].mxu0 %vm885_vm2, %v2929_v11 }
0x1e7c   : > { %11103 = vmatprep.mubr.msk.bf16.mxu0 %vm12681_vm0, %v12680_v0  ;;  %v3253_v10 = vrot.slane %v10249_v12, 2 }
0x1e7e   : > { %v3258_v13 = vsel %vm1113_vm6, %v3253_v10, 0 }
0x1e80   : > { %v3025_v14 = vpop.f32.mrb[80].mxu1 }
0x1e81   : > { %v11099_v15 = vpop.f32.mrb[81].mxu1  ;;  %v3031_v16 = vsel %vm2389_vm7, %v3025_v14, -inf }
0x1e82   : > { %3032 = vmax.xlane.f32.xlu1 %v3031_v16  ;;  %v3028_v17 = vpop.f32.mrb[82].mxu1 }
0x1e83   : > { %v11100_v18 = vpop.f32.mrb[83].mxu1 }
0x1e93   : > { %3141 = vrot.lane.b32.xlu1 %v13438_v1, %s14877_s9 }
0x1e97   : > { %3139 = vrot.lane.b32.xlu1 %v13445_v9, %s14877_s9 }
0x1f0f   : > { %v3033_v19 = vpop.xlane.xlu1 %3032 }
0x1f10   : > { %v3034_v20 = vsub.f32 %v3025_v14, %v3033_v19 }
0x1f12   : > { %v3035_v22 = vmul.f32 1.442695, %v3034_v20 }
0x1f13   : > { %v3142_v35 = vpop.permute.xlu1 %3141 }
0x1f14   : > { %12127 = vpow2.f32 %v3035_v22  ;;  %v3147_v37 = vsel %vm885_vm2, %v3142_v35, 0 }
0x1f17   : > { %v3140_v38 = vpop.permute.xlu1 %3139 }
0x1f1e   : > { %v12128_v23 = vpop.eup %12127 }
0x1f1f   : > { %v3037_v24 = vsel %vm2389_vm7, %v12128_v23, 0.0 }
0x1f20   : > { %3038 = vadd.xlane.f32.xlu0 %v3037_v24 }
0x1f36   : > { %3043 = vrot.lane.b32.xlu0 %v13438_v1, %s14878_s10 }
0x1f4e   : > { %v2974_v25 = vpop.f32.mrb[72].mxu0 }
0x1f4f   : > { %v2980_v26 = vadd.f32 %v2974_v25, %v2818_v56  ;;  %v11093_v27 = vpop.f32.mrb[73].mxu0 }
0x1f50   : > { %v2977_v28 = vpop.f32.mrb[74].mxu0 }
0x1f51   : > { %v11094_v29 = vpop.f32.mrb[75].mxu0 }
0x1fad   : > { %v3039_v30 = vpop.xlane.xlu0 %3038 }
0x1fae   : > { %12129 = vrcp.f32 %v3039_v30 }
0x1fb1   : > { %v3044_v31 = vpop.permute.xlu0 %3043 }
0x1fb2   : > { %v3049_v32 = vsel %vm2408_vm8, %v3044_v31, 0 }
0x1fb3   : > { %11102 = vmatpush3.bf16.msra.mxu0 %v3049_v32 }
0x1fb4   : > { %11113 = vmatprep.subr.bf16.mxu0 %v12680_v0 }
0x1fb8   : > { %v12130_v33 = vpop.eup %12129 }
0x1fb9   : > { %v3041_v34 = vmul.f32 %v12130_v33, %v12128_v23 }
0x1fbb   : > { %v3042_v36 = vpack.c.bf16 %v3041_v34, %v3041_v34 }
0x1fbd   : > { %11104 = vmatmul.mubr.msk.bf16.vlgmr.msra.gmra.mrb[76].mxu0 %vm2389_vm7, %v3042_v36 }
0x1fbe   : > { %11114 = vmatpush3.bf16.xpose.msra.mxu0 %v3147_v37  ;;  %11115 = vmatprep.mubr.msk.bf16.mxu0 %vm12681_vm0, %v12680_v0 }
0x1fbf   : > { %11125 = vmatprep.subr.bf16.mxu0 %v12680_v0 }
0x1fc5   : > { %11116 = vmatmul.mubr.msk.bf16.vlgmr.msra.gmra.mrb[80].mxu0 %vm885_vm2, %v3140_v38 }
0x1fc6   : > { %11127 = vmatprep.mubr.msk.bf16.mxu0 %vm12681_vm0, %v12680_v0  ;;  %11126 = vmatpush3.bf16.msra.mxu0 %v3258_v13 }
0x1fc7   : > { %11137 = vmatprep.subr.bf16.mxu0 %v12680_v0 }
0x2090   : > { %v3085_v41 = vpop.f32.mrb[76].mxu0 }
0x2091   : > { %v3091_v42 = vpack.c.bf16 %v3085_v41, %v3085_v41  ;;  %v11105_v43 = vpop.f32.mrb[77].mxu0 }
0x2092   : > { %v3088_v45 = vpop.f32.mrb[78].mxu0  ;;  %v2339_v43 = vld [vmem:[#allocation11 + $0xc] sm:$0xf] }
0x2093   : > { %v11106_v46 = vpop.f32.mrb[79].mxu0  ;;  %11110 = vmatmul.mubr.msk.bf16.vlgmr.msra.gmra.mrb[84].mxu1 %vm885_vm2, %v3091_v42  ;;  %v3416_v45 = vsel %vm1113_vm6, %v2339_v43, 0  ;;  %v10256_v12 = vcombine.low %v2339_v43, %v2339_v43 }
0x2094   : > { %11121 = vmatprep.mubr.msk.bf16.mxu1 %vm12681_vm0, %v12680_v0 }
0x2095   : > { %v3573_v10 = vrot.slane %v10256_v12, 2 }
0x2097   : > { %v3578_v13 = vsel %vm1113_vm6, %v3573_v10, 0 }
0x2098   : > { %v3183_v47 = vpop.f32.mrb[80].mxu0 }
0x2099   : > { %v11117_v48 = vpop.f32.mrb[81].mxu0  ;;  %v3189_v49 = vsel %vm2389_vm7, %v3183_v47, -inf }
0x209a   : > { %3190 = vmax.xlane.f32.xlu0 %v3189_v49  ;;  %v3186_v50 = vpop.f32.mrb[82].mxu0 }
0x209b   : > { %v11118_v51 = vpop.f32.mrb[83].mxu0 }
0x20b0   : > { %3201 = vrot.lane.b32.xlu0 %v13438_v1, %s14879_s11 }
0x20b4   : > { %3301 = vrot.lane.b32.xlu0 %v13445_v9, %s14880_s12 }
0x2127   : > { %v3191_v52 = vpop.xlane.xlu0 %3190 }
0x2128   : > { %v3192_v53 = vsub.f32 %v3183_v47, %v3191_v52 }
0x212a   : > { %v3193_v54 = vmul.f32 1.442695, %v3192_v53 }
0x212b   : > { %v3202_v56 = vpop.permute.xlu0 %3201 }
0x212c   : > { %12131 = vpow2.f32 %v3193_v54  ;;  %v3207_v57 = vsel %vm2408_vm8, %v3202_v56, 0 }
0x212d   : > { %11120 = vmatpush3.bf16.msra.mxu1 %v3207_v57 }
0x212e   : > { %11131 = vmatprep.subr.bf16.mxu1 %v12680_v0 }
0x212f   : > { %v3302_v11 = vpop.permute.xlu0 %3301 }
0x2136   : > { %v12132_v58 = vpop.eup %12131 }
0x2137   : > { %v3195_v59 = vsel %vm2389_vm7, %v12132_v58, 0.0 }
0x2138   : > { %3196 = vadd.xlane.f32.xlu1 %v3195_v59 }
0x2149   : > { %3303 = vrot.lane.b32.xlu1 %v13438_v1, %s14880_s12 }
0x2166   : > { %v3132_v60 = vpop.f32.mrb[84].mxu1 }
0x2167   : > { %v3138_v61 = vadd.f32 %v3132_v60, %v2980_v26  ;;  %v11111_v62 = vpop.f32.mrb[85].mxu1 }
0x2168   : > { %v3135_v63 = vpop.f32.mrb[86].mxu1 }
0x2169   : > { %v11112_v2 = vpop.f32.mrb[87].mxu1 }
0x21c5   : > { %v3197_v3 = vpop.xlane.xlu1 %3196 }
0x21c6   : > { %12133 = vrcp.f32 %v3197_v3 }
0x21c9   : > { %v3304_v6 = vpop.permute.xlu1 %3303 }
0x21ca   : > { %v3309_v8 = vsel %vm885_vm2, %v3304_v6, 0 }
0x21d0   : > { %v12134_v4 = vpop.eup %12133 }
0x21d1   : > { %v3199_v5 = vmul.f32 %v12134_v4, %v12132_v58 }
0x21d3   : > { %v3200_v7 = vpack.c.bf16 %v3199_v5, %v3199_v5 }
0x21d5   : > { %11122 = vmatmul.mubr.msk.bf16.vlgmr.msra.gmra.mrb[88].mxu1 %vm2389_vm7, %v3200_v7 }
0x21d6   : > { %11132 = vmatpush3.bf16.xpose.msra.mxu1 %v3309_v8  ;;  %11133 = vmatprep.mubr.msk.bf16.mxu1 %vm12681_vm0, %v12680_v0 }
0x21d7   : > { %11143 = vmatprep.subr.bf16.mxu1 %v12680_v0 }
0x21dd   : > { %11134 = vmatmul.mubr.msk.bf16.vlgmr.msra.gmra.mrb[92].mxu1 %vm885_vm2, %v3302_v11 }
0x21de   : > { %11145 = vmatprep.mubr.msk.bf16.mxu1 %vm12681_vm0, %v12680_v0  ;;  %11144 = vmatpush3.bf16.msra.mxu1 %v3416_v45  ;;  %v12033_v45 = vld [vmem:[%s14884_s1] sm:$0xff]   ;;  %s14887_s1 = smov 64  }
0x21df   : > { %11155 = vmatprep.subr.bf16.mxu1 %v12680_v0 }
0x22a8   : > { %v3243_v14 = vpop.f32.mrb[88].mxu1 }
0x22a9   : > { %v3249_v15 = vpack.c.bf16 %v3243_v14, %v3243_v14  ;;  %v11123_v16 = vpop.f32.mrb[89].mxu1 }
0x22aa   : > { %v3246_v17 = vpop.f32.mrb[90].mxu1 }
0x22ab   : > { %v11124_v18 = vpop.f32.mrb[91].mxu1  ;;  %11128 = vmatmul.mubr.msk.bf16.vlgmr.msra.gmra.mrb[84].mxu0 %vm885_vm2, %v3249_v15 }
0x22ac   : > { %11139 = vmatprep.mubr.msk.bf16.mxu0 %vm12681_vm0, %v12680_v0 }
0x22b0   : > { %v3345_v19 = vpop.f32.mrb[92].mxu1 }
0x22b1   : > { %v11135_v20 = vpop.f32.mrb[93].mxu1  ;;  %v3351_v22 = vsel %vm2389_vm7, %v3345_v19, -inf }
0x22b2   : > { %3352 = vmax.xlane.f32.xlu1 %v3351_v22  ;;  %v3348_v23 = vpop.f32.mrb[94].mxu1 }
0x22b3   : > { %v11136_v24 = vpop.f32.mrb[95].mxu1 }
0x22c3   : > { %3461 = vrot.lane.b32.xlu1 %v13438_v1, %s14881_s13 }
0x22c7   : > { %3459 = vrot.lane.b32.xlu1 %v13445_v9, %s14881_s13 }
0x233f   : > { %v3353_v25 = vpop.xlane.xlu1 %3352 }
0x2340   : > { %v3354_v26 = vsub.f32 %v3345_v19, %v3353_v25  ;;  %v10258_v19 = vld [vmem:[#allocation13] ss:$0 sm:$0xff] }
0x2342   : > { %v3355_v27 = vmul.f32 1.442695, %v3354_v26 }
0x2343   : > { %v3462_v39 = vpop.permute.xlu1 %3461 }
0x2344   : > { %12135 = vpow2.f32 %v3355_v27  ;;  %v3467_v41 = vsel %vm885_vm2, %v3462_v39, 0 }
0x2347   : > { %v3460_v42 = vpop.permute.xlu1 %3459 }
0x234e   : > { %v12136_v28 = vpop.eup %12135 }
0x234f   : > { %v3357_v29 = vsel %vm2389_vm7, %v12136_v28, 0.0 }
0x2350   : > { %3358 = vadd.xlane.f32.xlu0 %v3357_v29 }
0x2366   : > { %3363 = vrot.lane.b32.xlu0 %v13438_v1, %s14882_s15 }
0x237e   : > { %v3294_v30 = vpop.f32.mrb[84].mxu0 }
0x237f   : > { %v3300_v31 = vadd.f32 %v3294_v30, %v3138_v61  ;;  %v11129_v32 = vpop.f32.mrb[85].mxu0 }
0x2380   : > { %v3297_v33 = vpop.f32.mrb[86].mxu0 }
0x2381   : > { %v11130_v34 = vpop.f32.mrb[87].mxu0 }
0x2382   : > { %v12031_v34 = vld [vmem:[#allocation14] sm:$0xff]  }
0x23dd   : > { %v3359_v35 = vpop.xlane.xlu0 %3358 }
0x23de   : > { %12137 = vrcp.f32 %v3359_v35  ;;  %v12032_v35 = vld [vmem:[#allocation14 + $0x8] sm:$0xff]  }
0x23e1   : > { %v3364_v36 = vpop.permute.xlu0 %3363 }
0x23e2   : > { %v3369_v9 = vsel %vm2408_vm8, %v3364_v36, 0 }
0x23e3   : > { %11138 = vmatpush3.bf16.msra.mxu0 %v3369_v9 }
0x23e4   : > { %11149 = vmatprep.subr.bf16.mxu0 %v12680_v0 }
0x23e8   : > { %v12138_v37 = vpop.eup %12137 }
0x23e9   : > { %v3361_v38 = vmul.f32 %v12138_v37, %v12136_v28 }
0x23eb   : > { %v3362_v40 = vpack.c.bf16 %v3361_v38, %v3361_v38  ;;  %v10261_v38 = vld [vmem:[%s14867_s2 + $0x1] ss:$0 sm:$0xff] }
0x23ed   : > { %11140 = vmatmul.mubr.msk.bf16.vlgmr.msra.gmra.mrb[88].mxu0 %vm2389_vm7, %v3362_v40  ;;  %v10262_v40 = vld [vmem:[%s14868_s26 + $0x1] ss:$0 sm:$0xff] }
0x23ee   : > { %11150 = vmatpush3.bf16.xpose.msra.mxu0 %v3467_v41  ;;  %11151 = vmatprep.mubr.msk.bf16.mxu0 %vm12681_vm0, %v12680_v0 }
0x23ef   : > { %11161 = vmatprep.subr.bf16.mxu0 %v12680_v0 }
0x23f5   : > { %11152 = vmatmul.mubr.msk.bf16.vlgmr.msra.gmra.mrb[92].mxu0 %vm885_vm2, %v3460_v42 }
0x23f6   : > { %11163 = vmatprep.mubr.msk.bf16.mxu0 %vm12681_vm0, %v12680_v0  ;;  %11162 = vmatpush3.bf16.msra.mxu0 %v3578_v13 }
0x23f7   : > { %11175 = vmatprep.subr.bf16.mxu0 %v12680_v0 }
0x24c0   : > { %v3405_v46 = vpop.f32.mrb[88].mxu0 }
0x24c1   : > { %v3411_v47 = vpack.c.bf16 %v3405_v46, %v3405_v46  ;;  %v11141_v48 = vpop.f32.mrb[89].mxu0  ;;  %v12034_v46 = vld [vmem:[%s14885_s6 + $0x8] sm:$0xff]  }
0x24c2   : > { %v3408_v49 = vpop.f32.mrb[90].mxu0  ;;  %v12036_v48 = vld [vmem:[%s14885_s6 + $0x18] sm:$0xff]  }
0x24c3   : > { %v11142_v50 = vpop.f32.mrb[91].mxu0  ;;  %11146 = vmatmul.mubr.msk.bf16.vlgmr.msra.gmra.mrb[96].mxu1 %vm885_vm2, %v3411_v47  ;;  %v12035_v47 = vld [vmem:[%s14885_s6 + $0x10] sm:$0xff]   ;;  %v10263_v49 = vld [vmem:[#allocation16] ss:$0 sm:$0xff] }
0x24c4   : > { %11157 = vmatprep.mubr.msk.bf16.mxu1 %vm12681_vm0, %v12680_v0 }
0x24c8   : > { %v3503_v51 = vpop.f32.mrb[92].mxu0 }
0x24c9   : > { %v11153_v52 = vpop.f32.mrb[93].mxu0  ;;  %v3509_v53 = vsel %vm2389_vm7, %v3503_v51, -inf }
0x24ca   : > { %3510 = vmax.xlane.f32.xlu0 %v3509_v53  ;;  %v3506_v54 = vpop.f32.mrb[94].mxu0 }
0x24cb   : > { %v11154_v56 = vpop.f32.mrb[95].mxu0 }
0x24e0   : > { %3521 = vrot.lane.b32.xlu0 %v13438_v1, %s14883_s16 }
0x2557   : > { %v3511_v57 = vpop.xlane.xlu0 %3510 }
0x2558   : > { %v3512_v58 = vsub.f32 %v3503_v51, %v3511_v57 }
0x255a   : > { %v3513_v59 = vmul.f32 1.442695, %v3512_v58 }
0x255b   : > { %v3522_v60 = vpop.permute.xlu0 %3521 }
0x255c   : > { %12139 = vpow2.f32 %v3513_v59  ;;  %v3527_v61 = vsel %vm2408_vm8, %v3522_v60, 0 }
0x255d   : > { %11156 = vmatpush3.bf16.msra.mxu1 %v3527_v61 }
0x255e   : > { %11167 = vmatprep.subr.bf16.mxu1 %v12680_v0 }
0x2566   : > { %v12140_v62 = vpop.eup %12139 }
0x2567   : > { %v3515_v63 = vsel %vm2389_vm7, %v12140_v62, 0.0 }
0x2568   : > { %3516 = vadd.xlane.f32.xlu1 %v3515_v63 }
0x2596   : > { %v3452_v2 = vpop.f32.mrb[96].mxu1 }
0x2597   : > { %v3458_v3 = vadd.f32 %v3452_v2, %v3300_v31  ;;  %v11147_v4 = vpop.f32.mrb[97].mxu1 }
0x2598   : > { %v3455_v5 = vpop.f32.mrb[98].mxu1  ;;  %v10267_v4 = vld [vmem:[#allocation17] ss:$0 sm:$0xff] }
0x2599   : > { %v11148_v6 = vpop.f32.mrb[99].mxu1 }
0x25f5   : > { %v3517_v1 = vpop.xlane.xlu1 %3516 }
0x25f6   : > { %12141 = vrcp.f32 %v3517_v1 }
0x2600   : > { %v12142_v7 = vpop.eup %12141 }
0x2601   : > { %v3519_v8 = vmul.f32 %v12142_v7, %v12140_v62 }
0x2603   : > { %v3520_v11 = vpack.c.bf16 %v3519_v8, %v3519_v8 }
0x2605   : > { %11158 = vmatmul.mubr.msk.bf16.vlgmr.msra.gmra.mrb[100].mxu1 %vm2389_vm7, %v3520_v11 }
0x2606   : > { %11171 = vmatprep.mubr.msk.bf16.mxu1 %vm12681_vm0, %v12680_v0  ;;  %11168 = vmatpush3.bf16.msra.mxu1 %v12031_v34 }
0x2607   : > { %11169 = vmatprep.subr.bf16.mxu1 %v12680_v0 }
0x260a   : > { %11170 = vmatpush3.bf16.msra.mxu1 %v12032_v35 }
0x260b   : > { %11187 = vmatprep.subr.bf16.mxu1 %v12680_v0 }
0x26d8   : > { %v3563_v14 = vpop.f32.mrb[100].mxu1 }
0x26d9   : > { %v3569_v15 = vpack.c.bf16 %v3563_v14, %v3563_v14  ;;  %v11159_v16 = vpop.f32.mrb[101].mxu1 }
0x26da   : > { %v3566_v17 = vpop.f32.mrb[102].mxu1 }
0x26db   : > { %v11160_v18 = vpop.f32.mrb[103].mxu1  ;;  %11164 = vmatmul.mubr.msk.bf16.vlgmr.msra.gmra.mrb[96].mxu0 %vm885_vm2, %v3569_v15  ;;  %v12037_v17 = vld [vmem:[%s14862_s20 + $0x10] sm:$0xff]  }
0x26dc   : > { %11183 = vmatprep.mubr.msk.bf16.mxu0 %vm12681_vm0, %v12680_v0  ;;  %11176 = vmatpush3.bf16.msra.mxu0 %v12033_v45  ;;  %v12038_v18 = vld [vmem:[%s14862_s20 + $0x18] sm:$0xff]  }
0x26dd   : > { %11177 = vmatprep.subr.bf16.mxu0 %v12680_v0 }
0x26e0   : > { %11178 = vmatpush3.bf16.msra.mxu0 %v12034_v46 }
0x26e1   : > { %11179 = vmatprep.subr.bf16.mxu0 %v12680_v0 }
0x26e4   : > { %11180 = vmatpush3.bf16.msra.mxu0 %v12035_v47 }
0x26e5   : > { %11181 = vmatprep.subr.bf16.mxu0 %v12680_v0 }
0x26e8   : > { %11182 = vmatpush3.bf16.msra.mxu0 %v12036_v48 }
0x26e9   : > { %11201 = vmatprep.subr.bf16.mxu0 %v12680_v0 }
0x27ae   : > { %v3614_v20 = vpop.f32.mrb[96].mxu0 }
0x27af   : > { %v3620_v22 = vadd.f32 %v3614_v20, %v3458_v3  ;;  %v11165_v23 = vpop.f32.mrb[97].mxu0 }
0x27b0   : > { %v3617_v24 = vpop.f32.mrb[98].mxu0 }
0x27b1   : > { %v3627_v25 = vadd.f32 %v10258_v19, %v3620_v22  ;;  %v11166_v26 = vpop.f32.mrb[99].mxu0  ;;  %v10275_v24 = vld [vmem:[%s14867_s2 + $0x2] ss:$0 sm:$0xff] }
0x27b2   : > { %v10276_v26 = vld [vmem:[%s14868_s26 + $0x2] ss:$0 sm:$0xff] }
0x27b3   : > { %v3628_v27 = vadd.f32 %v3627_v25, %v13431_v55 }
0x27b5   : > { %v3633_v28 = vsel %vm832_vm1, %v3628_v27, 0.0 }
0x27b6   : > { %3634 = vadd.xlane.f32.xlu1 %v3633_v28 }
0x2843   : > { %v3635_v29 = vpop.xlane.xlu1 %3634 }
0x2844   : > { %v3636_v30 = vmul.f32 0.03125, %v3635_v29 }
0x2846   : > { %v3637_v31 = vsub.f32 %v3628_v27, %v3636_v30  ;;  %v10281_v30 = vld [vmem:[#allocation5 + $0x1] ss:$0 sm:$0xff] }
0x2848   : > { %v3638_v32 = vmul.f32 %v3637_v31, %v3637_v31 }
0x284a   : > { %v3639_v33 = vsel %vm832_vm1, %v3638_v32, 0.0 }
0x284b   : > { %3640 = vadd.xlane.f32.xlu1 %v3639_v33 }
0x28d8   : > { %v3641_v36 = vpop.xlane.xlu1 %3640 }
0x28d9   : > { %v3642_v55 = vmul.f32 0.03125, %v3641_v36 }
0x28db   : > { %v3643_v9 = vadd.f32 1e-05, %v3642_v55 }
0x28dd   : > { %12143 = vrsqrt.f32 %v3643_v9 }
0x28e7   : > { %v12144_v37 = vpop.eup %12143 }
0x28e8   : > { %v3645_v39 = vmul.f32 %v12144_v37, %v3637_v31 }
0x28ea   : > { %v3652_v41 = vmul.f32 %v10261_v38, %v3645_v39 }
0x28ec   : > { %v3659_v42 = vadd.f32 %v10262_v40, %v3652_v41 }
0x28ee   : > { %v3664_v43 = vpack.c.bf16 %v3659_v42, %v3659_v42 }
0x28f0   : > { %11172 = vmatmul.mubr.msk.bf16.vlgmr.msra.gmra.mrb[104].mxu1 %vm832_vm1, %v3664_v43 }
0x28f1   : > { %11191 = vmatprep.mubr.msk.bf16.mxu1 %vm12681_vm0, %v12680_v0  ;;  %11188 = vmatpush3.bf16.msra.mxu1 %v12037_v17 }
0x28f2   : > { %11189 = vmatprep.subr.bf16.mxu1 %v12680_v0 }
0x28f5   : > { %11190 = vmatpush3.bf16.msra.mxu1 %v12038_v18 }
0x28f6   : > { %11195 = vmatprep.subr.bf16.mxu1 %v12680_v0 }
0x29c3   : > { %v3721_v50 = vpop.f32.mrb[104].mxu1 }
0x29c4   : > { %v3722_v51 = vadd.f32 %v10263_v49, %v3721_v50  ;;  %v11173_v52 = vpop.f32.mrb[105].mxu1 }
0x29c5   : > { %v3724_v53 = vpop.f32.mrb[106].mxu1 }
0x29c6   : > { %v3728_v54 = vmul.f32 0.044715, %v3722_v51  ;;  %v11174_v56 = vpop.f32.mrb[107].mxu1  ;;  %v3727_v62 = vmul.f32 0.5, %v3722_v51 }
0x29c8   : > { %v3729_v57 = vmul.f32 %v3728_v54, %v3722_v51 }
0x29ca   : > { %v3730_v58 = vmul.f32 %v3729_v57, %v3722_v51 }
0x29cc   : > { %v3731_v59 = vadd.f32 %v3730_v58, %v3722_v51 }
0x29ce   : > { %v3732_v60 = vmul.f32 0.7978846, %v3731_v59 }
0x29d0   : > { %12145 = vtanh.f32 %v3732_v60 }
0x29da   : > { %v12146_v61 = vpop.eup %12145 }
0x29db   : > { %v3734_v63 = vadd.f32 1.0, %v12146_v61 }
0x29dd   : > { %v3735_v2 = vmul.f32 %v3734_v63, %v3727_v62 }
0x29df   : > { %v3744_v3 = vpack.c.bf16 %v3735_v2, %v3735_v2 }
0x29e1   : > { %11184 = vmatmul.mubr.msk.bf16.vlgmr.msra.gmra.mrb[100].mxu0 %vm3776_vm9, %v3744_v3 }
0x29e2   : > { %11203 = vmatprep.mubr.msk.bf16.mxu0 %vm12681_vm0, %v12680_v0 }
0x2ab4   : > { %v3814_v5 = vpop.f32.mrb[100].mxu0 }
0x2ab5   : > { %v3815_v6 = vadd.f32 %v10267_v4, %v3814_v5  ;;  %v11185_v1 = vpop.f32.mrb[101].mxu0 }
0x2ab6   : > { %v3817_v7 = vpop.f32.mrb[102].mxu0 }
0x2ab7   : > { %v11186_v8 = vpop.f32.mrb[103].mxu0  ;;  %v3820_v11 = vadd.f32 %v3815_v6, %v3659_v42 }
0x2ab9   : > { %v3825_v12 = vsel %vm832_vm1, %v3820_v11, 0.0 }
0x2aba   : > { %3826 = vadd.xlane.f32.xlu1 %v3825_v12 }
0x2b47   : > { %v3827_v10 = vpop.xlane.xlu1 %3826 }
0x2b48   : > { %v3828_v13 = vmul.f32 0.03125, %v3827_v10 }
0x2b4a   : > { %v3829_v14 = vsub.f32 %v3820_v11, %v3828_v13 }
0x2b4c   : > { %v3830_v15 = vmul.f32 %v3829_v14, %v3829_v14 }
0x2b4e   : > { %v3831_v16 = vsel %vm832_vm1, %v3830_v15, 0.0 }
0x2b4f   : > { %3832 = vadd.xlane.f32.xlu1 %v3831_v16 }
0x2bdc   : > { %v3833_v19 = vpop.xlane.xlu1 %3832 }
0x2bdd   : > { %v3834_v20 = vmul.f32 0.03125, %v3833_v19 }
0x2bdf   : > { %v3835_v22 = vadd.f32 1e-05, %v3834_v20 }
0x2be1   : > { %12147 = vrsqrt.f32 %v3835_v22 }
0x2beb   : > { %v12148_v23 = vpop.eup %12147 }
0x2bec   : > { %v3837_v25 = vmul.f32 %v12148_v23, %v3829_v14  ;;  %v10285_v14 = vld [vmem:[%s14863_s18 + $0x10] sm:$0xf] }
0x2bed   : > { %v10293_v15 = vcombine.low %v10285_v14, %v10285_v14  ;;  %v4204_v16 = vsel %vm1113_vm6, %v10285_v14, 0 }
0x2bee   : > { %v3844_v27 = vmul.f32 %v10275_v24, %v3837_v25 }
0x2bef   : > { %v4153_v17 = vrot.slane %v10293_v15, 2 }
0x2bf0   : > { %v13676_v28 = vadd.f32 %v10276_v26, %v3844_v27 }
0x2bf1   : > { %v4158_v18 = vsel %vm1113_vm6, %v4153_v17, 0 }
0x2bf2   : > { %v3857_v29 = vpack.c.bf16 %v13676_v28, %v13676_v28 }
0x2bf4   : > { %11192 = vmatmul.mubr.msk.bf16.vlgmr.msra.gmra.mrb[108].mxu1 %vm832_vm1, %v3857_v29 }
0x2bf5   : > { %11197 = vmatprep.mubr.msk.bf16.mxu1 %vm12681_vm0, %v12680_v0 }
0x2cc7   : > { %v3915_v31 = vpop.f32.mrb[108].mxu1 }
0x2cc8   : > { %v3916_v32 = vadd.f32 %v10281_v30, %v3915_v31  ;;  %v11193_v33 = vpop.f32.mrb[109].mxu1 }
0x2cc9   : > { %v3918_v34 = vpop.f32.mrb[110].mxu1 }
0x2cca   : > { %v13683_v35 = vpack.c.bf16 %v3916_v32, %v3916_v32  ;;  %v11194_v36 = vpop.f32.mrb[111].mxu1 }
0x2ccc   : > { %4041 = vrot.lane.b32.xlu0 %v13683_v35, %s14870_s21  ;;  %3930 = vrot.lane.b32.xlu1 %v13683_v35, %s14872_s4 }
0x2cd0   : > { %4039 = vrot.lane.b32.xlu0 %v13683_v35, %s14869_s29 }
0x2d3e   : > { %v3931_v55 = vpop.permute.xlu1 %3930  ;;  %v4042_v37 = vpop.permute.xlu0 %4041 }
0x2d3f   : > { %v3936_v9 = vsel %vm885_vm2, %v3931_v55, 0  ;;  %v4047_v38 = vsel %vm885_vm2, %v4042_v37, 0 }
0x2d40   : > { %11196 = vmatpush3.bf16.xpose.msra.mxu1 %v3936_v9 }
0x2d41   : > { %11207 = vmatprep.subr.bf16.mxu1 %v12680_v0 }
0x2d42   : > { %v4040_v39 = vpop.permute.xlu0 %4039 }
0x2d47   : > { %11198 = vmatmul.mubr.msk.bf16.vlgmr.msra.gmra.mrb[112].mxu1 %vm885_vm2, %v13683_v35 }
0x2d48   : > { %11208 = vmatpush3.bf16.xpose.msra.mxu1 %v4047_v38  ;;  %11209 = vmatprep.mubr.msk.bf16.mxu1 %vm12681_vm0, %v12680_v0 }
0x2d49   : > { %11219 = vmatprep.subr.bf16.mxu1 %v12680_v0 }
0x2d4f   : > { %11210 = vmatmul.mubr.msk.bf16.vlgmr.msra.gmra.mrb[116].mxu1 %vm885_vm2, %v4040_v39 }
0x2d50   : > { %11221 = vmatprep.mubr.msk.bf16.mxu1 %vm12681_vm0, %v12680_v0  ;;  %11220 = vmatpush3.bf16.msra.mxu1 %v4158_v18 }
0x2d51   : > { %11231 = vmatprep.subr.bf16.mxu1 %v12680_v0 }
0x2e1a   : > { %v3972_v40 = vpop.f32.mrb[112].mxu1 }
0x2e1b   : > { %v3973_v41 = vadd.f32 %v3972_v40, %v13204_v21  ;;  %v11199_v42 = vpop.f32.mrb[113].mxu1 }
0x2e1c   : > { %v3975_v43 = vpop.f32.mrb[114].mxu1 }
0x2e1d   : > { %v11200_v45 = vpop.f32.mrb[115].mxu1  ;;  %v3978_v46 = vsel %vm932_vm4, %v3973_v41, -inf }
0x2e1e   : > { %3979 = vmax.xlane.f32.xlu0 %v3978_v46 }
0x2e22   : > { %v4083_v47 = vpop.f32.mrb[116].mxu1 }
0x2e23   : > { %v4084_v48 = vadd.f32 %v4083_v47, %v13204_v21  ;;  %v11211_v49 = vpop.f32.mrb[117].mxu1 }
0x2e24   : > { %v4086_v50 = vpop.f32.mrb[118].mxu1 }
0x2e25   : > { %v11212_v51 = vpop.f32.mrb[119].mxu1  ;;  %v4089_v52 = vsel %vm932_vm4, %v4084_v48, -inf }
0x2e26   : > { %4090 = vmax.xlane.f32.xlu1 %v4089_v52 }
0x2e37   : > { %4101 = vrot.lane.b32.xlu1 %v13683_v35, %s14886_s27 }
0x2e3b   : > { %4246 = vrot.lane.b32.xlu1 %v13683_v35, %s14871_s14 }
0x2eab   : > { %v3980_v53 = vpop.xlane.xlu0 %3979 }
0x2eac   : > { %v3981_v54 = vsub.f32 %v3973_v41, %v3980_v53 }
0x2eae   : > { %v3982_v56 = vmul.f32 1.442695, %v3981_v54 }
0x2eb0   : > { %12149 = vpow2.f32 %v3982_v56 }
0x2eb3   : > { %v4091_v57 = vpop.xlane.xlu1 %4090 }
0x2eb4   : > { %v4092_v58 = vsub.f32 %v4084_v48, %v4091_v57 }
0x2eb6   : > { %v4093_v59 = vmul.f32 1.442695, %v4092_v58 }
0x2eb7   : > { %v4102_v7 = vpop.permute.xlu1 %4101 }
0x2eb8   : > { %12151 = vpow2.f32 %v4093_v59  ;;  %v4107_v11 = vsel %vm950_vm5, %v4102_v7, 0 }
0x2eba   : > { %v12150_v60 = vpop.eup %12149 }
0x2ebb   : > { %v3984_v61 = vsel %vm932_vm4, %v12150_v60, 0.0  ;;  %v4247_v33 = vpop.permute.xlu1 %4246 }
0x2ebc   : > { %3985 = vadd.xlane.f32.xlu0 %v3984_v61 }
0x2ec2   : > { %v12152_v62 = vpop.eup %12151 }
0x2ec3   : > { %v4095_v63 = vsel %vm932_vm4, %v12152_v62, 0.0 }
0x2ec4   : > { %4096 = vadd.xlane.f32.xlu0 %v4095_v63 }
0x2eda   : > { %3990 = vrot.lane.b32.xlu0 %v13683_v35, %s14887_s1 }
0x2ede   : > { %4248 = vrot.lane.b32.xlu0 %v13683_v35, %s14874_s30 }
0x2f49   : > { %v3986_v2 = vpop.xlane.xlu0 %3985 }
0x2f4a   : > { %12153 = vrcp.f32 %v3986_v2  ;;  %v10286_v2 = vld [vmem:[%s14863_s18 + $0x14] sm:$0xf] }
0x2f51   : > { %v4097_v3 = vpop.xlane.xlu0 %4096 }
0x2f52   : > { %12155 = vrcp.f32 %v4097_v3  ;;  %v4361_v3 = vsel %vm1113_vm6, %v10286_v2, 0 }
0x2f54   : > { %v12154_v4 = vpop.eup %12153 }
0x2f55   : > { %v3991_v5 = vpop.permute.xlu0 %3990  ;;  %v3988_v6 = vmul.f32 %v12154_v4, %v12150_v60 }
0x2f56   : > { %v3996_v1 = vsel %vm950_vm5, %v3991_v5, 0 }
0x2f57   : > { %11202 = vmatpush3.bf16.msra.mxu0 %v3996_v1  ;;  %v3989_v8 = vpack.c.bf16 %v3988_v6, %v3988_v6 }
0x2f58   : > { %11213 = vmatprep.subr.bf16.mxu0 %v12680_v0 }
0x2f59   : > { %v4249_v25 = vpop.permute.xlu0 %4248 }
0x2f5a   : > { %11204 = vmatmul.mubr.msk.bf16.vlgmr.msra.gmra.mrb[104].mxu0 %vm932_vm4, %v3989_v8  ;;  %v4254_v31 = vsel %vm885_vm2, %v4249_v25, 0 }
0x2f5b   : > { %11214 = vmatpush3.bf16.msra.mxu0 %v4107_v11  ;;  %11215 = vmatprep.mubr.msk.bf16.mxu0 %vm12681_vm0, %v12680_v0 }
0x2f5c   : > { %v12156_v12 = vpop.eup %12155  ;;  %11225 = vmatprep.subr.bf16.mxu0 %v12680_v0 }
0x2f5d   : > { %v4099_v10 = vmul.f32 %v12156_v12, %v12152_v62 }
0x2f5f   : > { %v4100_v13 = vpack.c.bf16 %v4099_v10, %v4099_v10 }
0x2f62   : > { %11216 = vmatmul.mubr.msk.bf16.vlgmr.msra.gmra.mrb[108].mxu0 %vm932_vm4, %v4100_v13 }
0x2f63   : > { %11227 = vmatprep.mubr.msk.bf16.mxu0 %vm12681_vm0, %v12680_v0  ;;  %11226 = vmatpush3.bf16.msra.mxu0 %v4204_v16 }
0x2f64   : > { %11237 = vmatprep.subr.bf16.mxu0 %v12680_v0 }
0x302d   : > { %v4032_v19 = vpop.f32.mrb[104].mxu0 }
0x302e   : > { %v4038_v20 = vpack.c.bf16 %v4032_v19, %v4032_v19  ;;  %v11205_v22 = vpop.f32.mrb[105].mxu0 }
0x302f   : > { %v4035_v23 = vpop.f32.mrb[106].mxu0 }
0x3030   : > { %v11206_v24 = vpop.f32.mrb[107].mxu0  ;;  %11228 = vmatmul.mubr.msk.bf16.vlgmr.msra.gmra.mrb[112].mxu0 %vm885_vm2, %v4038_v20 }
0x3031   : > { %11239 = vmatprep.mubr.msk.bf16.mxu0 %vm12681_vm0, %v12680_v0 }
0x3035   : > { %v4143_v26 = vpop.f32.mrb[108].mxu0 }
0x3036   : > { %v4149_v27 = vpack.c.bf16 %v4143_v26, %v4143_v26  ;;  %v11217_v29 = vpop.f32.mrb[109].mxu0 }
0x3037   : > { %v4146_v30 = vpop.f32.mrb[110].mxu0 }
0x3038   : > { %v11218_v32 = vpop.f32.mrb[111].mxu0  ;;  %11222 = vmatmul.mubr.msk.bf16.vlgmr.msra.gmra.mrb[120].mxu1 %vm885_vm2, %v4149_v27 }
0x3039   : > { %11232 = vmatpush3.bf16.xpose.msra.mxu1 %v4254_v31  ;;  %11233 = vmatprep.mubr.msk.bf16.mxu1 %vm12681_vm0, %v12680_v0 }
0x303a   : > { %11243 = vmatprep.subr.bf16.mxu1 %v12680_v0 }
0x3040   : > { %11234 = vmatmul.mubr.msk.bf16.vlgmr.msra.gmra.mrb[124].mxu1 %vm885_vm2, %v4247_v33 }
0x3041   : > { %11245 = vmatprep.mubr.msk.bf16.mxu1 %vm12681_vm0, %v12680_v0  ;;  %11244 = vmatpush3.bf16.msra.mxu1 %v4361_v3 }
0x3042   : > { %11255 = vmatprep.subr.bf16.mxu1 %v12680_v0 }
0x3103   : > { %v4240_v34 = vpop.f32.mrb[112].mxu0 }
0x3104   : > { %v11229_v36 = vpop.f32.mrb[113].mxu0 }
0x3105   : > { %v4243_v55 = vpop.f32.mrb[114].mxu0 }
0x3106   : > { %v11230_v9 = vpop.f32.mrb[115].mxu0  ;;  %v10301_v55 = vcombine.low %v10286_v2, %v10286_v2 }
0x3108   : > { %v4518_v9 = vrot.slane %v10301_v55, 2 }
0x310b   : > { %v4194_v37 = vpop.f32.mrb[120].mxu1 }
0x310c   : > { %v13744_v38 = vadd.f32 %v4240_v34, %v4194_v37  ;;  %v11223_v39 = vpop.f32.mrb[121].mxu1  ;;  %v4523_v37 = vsel %vm1113_vm6, %v4518_v9, 0 }
0x310d   : > { %v4197_v40 = vpop.f32.mrb[122].mxu1 }
0x310e   : > { %v11224_v41 = vpop.f32.mrb[123].mxu1 }
0x3113   : > { %v4290_v42 = vpop.f32.mrb[124].mxu1 }
0x3114   : > { %v4291_v43 = vadd.f32 %v4290_v42, %v13204_v21  ;;  %v11235_v45 = vpop.f32.mrb[125].mxu1 }
0x3115   : > { %v4293_v46 = vpop.f32.mrb[126].mxu1 }
0x3116   : > { %v11236_v47 = vpop.f32.mrb[127].mxu1  ;;  %v4296_v48 = vsel %vm932_vm4, %v4291_v43, -inf }
0x3117   : > { %4297 = vmax.xlane.f32.xlu0 %v4296_v48 }
0x312d   : > { %4308 = vrot.lane.b32.xlu0 %v13683_v35, %s14888_s8 }
0x3131   : > { %4404 = vrot.lane.b32.xlu0 %v13683_v35, %s14873_s19 }
0x31a4   : > { %v4298_v49 = vpop.xlane.xlu0 %4297 }
0x31a5   : > { %v4299_v50 = vsub.f32 %v4291_v43, %v4298_v49 }
0x31a7   : > { %v4300_v51 = vmul.f32 1.442695, %v4299_v50 }
0x31a8   : > { %v4309_v52 = vpop.permute.xlu0 %4308 }
0x31a9   : > { %12157 = vpow2.f32 %v4300_v51  ;;  %v4314_v53 = vsel %vm950_vm5, %v4309_v52, 0 }
0x31aa   : > { %11238 = vmatpush3.bf16.msra.mxu0 %v4314_v53 }
0x31ab   : > { %11249 = vmatprep.subr.bf16.mxu0 %v12680_v0 }
0x31ac   : > { %v4405_v63 = vpop.permute.xlu0 %4404 }
0x31b3   : > { %v12158_v54 = vpop.eup %12157 }
0x31b4   : > { %v4302_v56 = vsel %vm932_vm4, %v12158_v54, 0.0 }
0x31b5   : > { %4303 = vadd.xlane.f32.xlu1 %v4302_v56 }
0x31c6   : > { %4406 = vrot.lane.b32.xlu1 %v13683_v35, %s14875_s17 }
0x3242   : > { %v4304_v57 = vpop.xlane.xlu1 %4303 }
0x3243   : > { %12159 = vrcp.f32 %v4304_v57 }
0x3246   : > { %v4407_v60 = vpop.permute.xlu1 %4406 }
0x3247   : > { %v4412_v62 = vsel %vm885_vm2, %v4407_v60, 0 }
0x324d   : > { %v12160_v58 = vpop.eup %12159 }
0x324e   : > { %v4306_v59 = vmul.f32 %v12160_v58, %v12158_v54 }
0x3250   : > { %v4307_v61 = vpack.c.bf16 %v4306_v59, %v4306_v59 }
0x3252   : > { %11240 = vmatmul.mubr.msk.bf16.vlgmr.msra.gmra.mrb[116].mxu0 %vm932_vm4, %v4307_v61 }
0x3253   : > { %11250 = vmatpush3.bf16.xpose.msra.mxu0 %v4412_v62  ;;  %11251 = vmatprep.mubr.msk.bf16.mxu0 %vm12681_vm0, %v12680_v0 }
0x3254   : > { %11261 = vmatprep.subr.bf16.mxu0 %v12680_v0 }
0x325a   : > { %11252 = vmatmul.mubr.msk.bf16.vlgmr.msra.gmra.mrb[120].mxu0 %vm885_vm2, %v4405_v63 }
0x325b   : > { %11263 = vmatprep.mubr.msk.bf16.mxu0 %vm12681_vm0, %v12680_v0  ;;  %11262 = vmatpush3.bf16.msra.mxu0 %v4523_v37 }
0x325c   : > { %11273 = vmatprep.subr.bf16.mxu0 %v12680_v0 }
0x3325   : > { %v4350_v4 = vpop.f32.mrb[116].mxu0 }
0x3326   : > { %v4356_v5 = vpack.c.bf16 %v4350_v4, %v4350_v4  ;;  %v11241_v6 = vpop.f32.mrb[117].mxu0 }
0x3327   : > { %v4353_v1 = vpop.f32.mrb[118].mxu0 }
0x3328   : > { %v11242_v7 = vpop.f32.mrb[119].mxu0  ;;  %11246 = vmatmul.mubr.msk.bf16.vlgmr.msra.gmra.mrb[128].mxu1 %vm885_vm2, %v4356_v5 }
0x3329   : > { %11257 = vmatprep.mubr.msk.bf16.mxu1 %vm12681_vm0, %v12680_v0  ;;  %v10287_v7 = vld [vmem:[%s14863_s18 + $0x18] sm:$0xf] }
0x332d   : > { %v4448_v8 = vpop.f32.mrb[120].mxu0 }
0x332e   : > { %v4449_v11 = vadd.f32 %v4448_v8, %v13204_v21  ;;  %v11253_v12 = vpop.f32.mrb[121].mxu0  ;;  %v4681_v8 = vsel %vm1113_vm6, %v10287_v7, 0 }
0x332f   : > { %v4451_v10 = vpop.f32.mrb[122].mxu0 }
0x3330   : > { %v11254_v13 = vpop.f32.mrb[123].mxu0  ;;  %v4454_v14 = vsel %vm932_vm4, %v4449_v11, -inf }
0x3331   : > { %4455 = vmax.xlane.f32.xlu1 %v4454_v14 }
0x3342   : > { %4568 = vrot.lane.b32.xlu1 %v13683_v35, %s14878_s10 }
0x3346   : > { %4566 = vrot.lane.b32.xlu1 %v13683_v35, %s14876_s5 }
0x33be   : > { %v4456_v15 = vpop.xlane.xlu1 %4455 }
0x33bf   : > { %v4457_v16 = vsub.f32 %v4449_v11, %v4456_v15 }
0x33c1   : > { %v4458_v17 = vmul.f32 1.442695, %v4457_v16 }
0x33c2   : > { %v4569_v32 = vpop.permute.xlu1 %4568 }
0x33c3   : > { %12161 = vpow2.f32 %v4458_v17  ;;  %v4574_v34 = vsel %vm885_vm2, %v4569_v32, 0 }
0x33c6   : > { %v4567_v36 = vpop.permute.xlu1 %4566 }
0x33cd   : > { %v12162_v18 = vpop.eup %12161 }
0x33ce   : > { %v4460_v19 = vsel %vm932_vm4, %v12162_v18, 0.0 }
0x33cf   : > { %4461 = vadd.xlane.f32.xlu0 %v4460_v19 }
0x33e5   : > { %4466 = vrot.lane.b32.xlu0 %v13683_v35, %s14889_s7  ;;  %s14895_s7 = smov 48  }
0x33fb   : > { %v4397_v20 = vpop.f32.mrb[128].mxu1 }
0x33fc   : > { %v4403_v22 = vadd.f32 %v4397_v20, %v13744_v38  ;;  %v11247_v23 = vpop.f32.mrb[129].mxu1 }
0x33fd   : > { %v4400_v24 = vpop.f32.mrb[130].mxu1 }
0x33fe   : > { %v11248_v25 = vpop.f32.mrb[131].mxu1 }
0x345c   : > { %v4462_v26 = vpop.xlane.xlu0 %4461 }
0x345d   : > { %12163 = vrcp.f32 %v4462_v26 }
0x3460   : > { %v4467_v27 = vpop.permute.xlu0 %4466 }
0x3461   : > { %v4472_v29 = vsel %vm950_vm5, %v4467_v27, 0 }
0x3462   : > { %11256 = vmatpush3.bf16.msra.mxu1 %v4472_v29 }
0x3463   : > { %11267 = vmatprep.subr.bf16.mxu1 %v12680_v0 }
0x3467   : > { %v12164_v30 = vpop.eup %12163 }
0x3468   : > { %v4464_v31 = vmul.f32 %v12164_v30, %v12162_v18 }
0x346a   : > { %v4465_v33 = vpack.c.bf16 %v4464_v31, %v4464_v31 }
0x346c   : > { %11258 = vmatmul.mubr.msk.bf16.vlgmr.msra.gmra.mrb[132].mxu1 %vm932_vm4, %v4465_v33 }
0x346d   : > { %11268 = vmatpush3.bf16.xpose.msra.mxu1 %v4574_v34  ;;  %11269 = vmatprep.mubr.msk.bf16.mxu1 %vm12681_vm0, %v12680_v0 }
0x346e   : > { %11279 = vmatprep.subr.bf16.mxu1 %v12680_v0 }
0x3474   : > { %11270 = vmatmul.mubr.msk.bf16.vlgmr.msra.gmra.mrb[136].mxu1 %vm885_vm2, %v4567_v36 }
0x3475   : > { %11281 = vmatprep.mubr.msk.bf16.mxu1 %vm12681_vm0, %v12680_v0  ;;  %11280 = vmatpush3.bf16.msra.mxu1 %v4681_v8 }
0x3476   : > { %11291 = vmatprep.subr.bf16.mxu1 %v12680_v0 }
0x353f   : > { %v4508_v38 = vpop.f32.mrb[132].mxu1 }
0x3540   : > { %v4514_v39 = vpack.c.bf16 %v4508_v38, %v4508_v38  ;;  %v11259_v40 = vpop.f32.mrb[133].mxu1 }
0x3541   : > { %v4511_v41 = vpop.f32.mrb[134].mxu1 }
0x3542   : > { %v11260_v42 = vpop.f32.mrb[135].mxu1  ;;  %11264 = vmatmul.mubr.msk.bf16.vlgmr.msra.gmra.mrb[124].mxu0 %vm885_vm2, %v4514_v39  ;;  %v10308_v41 = vcombine.low %v10287_v7, %v10287_v7 }
0x3543   : > { %11275 = vmatprep.mubr.msk.bf16.mxu0 %vm12681_vm0, %v12680_v0 }
0x3544   : > { %v4838_v42 = vrot.slane %v10308_v41, 2 }
0x3547   : > { %v4610_v43 = vpop.f32.mrb[136].mxu1 }
0x3548   : > { %v4611_v45 = vadd.f32 %v4610_v43, %v13204_v21  ;;  %v11271_v46 = vpop.f32.mrb[137].mxu1  ;;  %v4843_v43 = vsel %vm1113_vm6, %v4838_v42, 0 }
0x3549   : > { %v4613_v47 = vpop.f32.mrb[138].mxu1 }
0x354a   : > { %v11272_v48 = vpop.f32.mrb[139].mxu1  ;;  %v4616_v49 = vsel %vm932_vm4, %v4611_v45, -inf }
0x354b   : > { %4617 = vmax.xlane.f32.xlu0 %v4616_v49 }
0x3561   : > { %4628 = vrot.lane.b32.xlu0 %v13683_v35, %s14890_s22 }
0x3565   : > { %4724 = vrot.lane.b32.xlu0 %v13683_v35, %s14877_s9 }
0x35d8   : > { %v4618_v50 = vpop.xlane.xlu0 %4617 }
0x35d9   : > { %v4619_v51 = vsub.f32 %v4611_v45, %v4618_v50 }
0x35db   : > { %v4620_v52 = vmul.f32 1.442695, %v4619_v51 }
0x35dc   : > { %v4629_v53 = vpop.permute.xlu0 %4628 }
0x35dd   : > { %12165 = vpow2.f32 %v4620_v52  ;;  %v4634_v54 = vsel %vm950_vm5, %v4629_v53, 0 }
0x35de   : > { %11274 = vmatpush3.bf16.msra.mxu0 %v4634_v54 }
0x35df   : > { %11285 = vmatprep.subr.bf16.mxu0 %v12680_v0 }
0x35e0   : > { %v4725_v1 = vpop.permute.xlu0 %4724 }
0x35e7   : > { %v12166_v56 = vpop.eup %12165 }
0x35e8   : > { %v4622_v57 = vsel %vm932_vm4, %v12166_v56, 0.0 }
0x35e9   : > { %4623 = vadd.xlane.f32.xlu1 %v4622_v57 }
0x35fa   : > { %4726 = vrot.lane.b32.xlu1 %v13683_v35, %s14879_s11 }
0x3615   : > { %v4559_v58 = vpop.f32.mrb[124].mxu0 }
0x3616   : > { %v4565_v59 = vadd.f32 %v4559_v58, %v4403_v22  ;;  %v11265_v60 = vpop.f32.mrb[125].mxu0 }
0x3617   : > { %v4562_v61 = vpop.f32.mrb[126].mxu0 }
0x3618   : > { %v11266_v62 = vpop.f32.mrb[127].mxu0 }
0x3676   : > { %v4624_v63 = vpop.xlane.xlu1 %4623 }
0x3677   : > { %12167 = vrcp.f32 %v4624_v63 }
0x367a   : > { %v4727_v4 = vpop.permute.xlu1 %4726 }
0x367b   : > { %v4732_v6 = vsel %vm885_vm2, %v4727_v4, 0 }
0x3681   : > { %v12168_v2 = vpop.eup %12167 }
0x3682   : > { %v4626_v3 = vmul.f32 %v12168_v2, %v12166_v56 }
0x3684   : > { %v4627_v5 = vpack.c.bf16 %v4626_v3, %v4626_v3 }
0x3686   : > { %11276 = vmatmul.mubr.msk.bf16.vlgmr.msra.gmra.mrb[128].mxu0 %vm932_vm4, %v4627_v5 }
0x3687   : > { %11286 = vmatpush3.bf16.xpose.msra.mxu0 %v4732_v6  ;;  %11287 = vmatprep.mubr.msk.bf16.mxu0 %vm12681_vm0, %v12680_v0 }
0x3688   : > { %11297 = vmatprep.subr.bf16.mxu0 %v12680_v0 }
0x368e   : > { %11288 = vmatmul.mubr.msk.bf16.vlgmr.msra.gmra.mrb[132].mxu0 %vm885_vm2, %v4725_v1 }
0x368f   : > { %11299 = vmatprep.mubr.msk.bf16.mxu0 %vm12681_vm0, %v12680_v0  ;;  %11298 = vmatpush3.bf16.msra.mxu0 %v4843_v43 }
0x3690   : > { %11309 = vmatprep.subr.bf16.mxu0 %v12680_v0 }
0x3759   : > { %v4670_v11 = vpop.f32.mrb[128].mxu0 }
0x375a   : > { %v4676_v12 = vpack.c.bf16 %v4670_v11, %v4670_v11  ;;  %v11277_v10 = vpop.f32.mrb[129].mxu0 }
0x375b   : > { %v4673_v13 = vpop.f32.mrb[130].mxu0 }
0x375c   : > { %v11278_v14 = vpop.f32.mrb[131].mxu0  ;;  %11282 = vmatmul.mubr.msk.bf16.vlgmr.msra.gmra.mrb[140].mxu1 %vm885_vm2, %v4676_v12 }
0x375d   : > { %11293 = vmatprep.mubr.msk.bf16.mxu1 %vm12681_vm0, %v12680_v0  ;;  %v10288_v14 = vld [vmem:[%s14863_s18 + $0x1c] sm:$0xf] }
0x3761   : > { %v4768_v15 = vpop.f32.mrb[132].mxu0 }
0x3762   : > { %v4769_v16 = vadd.f32 %v4768_v15, %v13204_v21  ;;  %v11289_v17 = vpop.f32.mrb[133].mxu0  ;;  %v5001_v15 = vsel %vm1113_vm6, %v10288_v14, 0 }
0x3763   : > { %v4771_v18 = vpop.f32.mrb[134].mxu0 }
0x3764   : > { %v11290_v19 = vpop.f32.mrb[135].mxu0  ;;  %v4774_v20 = vsel %vm932_vm4, %v4769_v16, -inf }
0x3765   : > { %4775 = vmax.xlane.f32.xlu1 %v4774_v20 }
0x3776   : > { %4888 = vrot.lane.b32.xlu1 %v13683_v35, %s14882_s15 }
0x377a   : > { %4886 = vrot.lane.b32.xlu1 %v13683_v35, %s14880_s12 }
0x37f2   : > { %v4776_v22 = vpop.xlane.xlu1 %4775 }
0x37f3   : > { %v4777_v23 = vsub.f32 %v4769_v16, %v4776_v22 }
0x37f5   : > { %v4778_v24 = vmul.f32 1.442695, %v4777_v23 }
0x37f6   : > { %v4889_v37 = vpop.permute.xlu1 %4888 }
0x37f7   : > { %12169 = vpow2.f32 %v4778_v24  ;;  %v4894_v39 = vsel %vm885_vm2, %v4889_v37, 0 }
0x37fa   : > { %v4887_v40 = vpop.permute.xlu1 %4886 }
0x3801   : > { %v12170_v25 = vpop.eup %12169 }
0x3802   : > { %v4780_v26 = vsel %vm932_vm4, %v12170_v25, 0.0 }
0x3803   : > { %4781 = vadd.xlane.f32.xlu0 %v4780_v26 }
0x3819   : > { %4786 = vrot.lane.b32.xlu0 %v13683_v35, %s14891_s28  ;;  %s14897_s28 = smov 40  }
0x382f   : > { %v4717_v27 = vpop.f32.mrb[140].mxu1 }
0x3830   : > { %v4723_v29 = vadd.f32 %v4717_v27, %v4565_v59  ;;  %v11283_v30 = vpop.f32.mrb[141].mxu1 }
0x3831   : > { %v4720_v31 = vpop.f32.mrb[142].mxu1 }
0x3832   : > { %v11284_v32 = vpop.f32.mrb[143].mxu1 }
0x3890   : > { %v4782_v33 = vpop.xlane.xlu0 %4781 }
0x3891   : > { %12171 = vrcp.f32 %v4782_v33 }
0x3894   : > { %v4787_v34 = vpop.permute.xlu0 %4786 }
0x3895   : > { %v4792_v36 = vsel %vm950_vm5, %v4787_v34, 0 }
0x3896   : > { %11292 = vmatpush3.bf16.msra.mxu1 %v4792_v36 }
0x3897   : > { %11303 = vmatprep.subr.bf16.mxu1 %v12680_v0 }
0x389b   : > { %v12172_v55 = vpop.eup %12171 }
0x389c   : > { %v4784_v9 = vmul.f32 %v12172_v55, %v12170_v25 }
0x389e   : > { %v4785_v38 = vpack.c.bf16 %v4784_v9, %v4784_v9 }
0x38a0   : > { %11294 = vmatmul.mubr.msk.bf16.vlgmr.msra.gmra.mrb[144].mxu1 %vm932_vm4, %v4785_v38 }
0x38a1   : > { %11304 = vmatpush3.bf16.xpose.msra.mxu1 %v4894_v39  ;;  %11305 = vmatprep.mubr.msk.bf16.mxu1 %vm12681_vm0, %v12680_v0 }
0x38a2   : > { %11315 = vmatprep.subr.bf16.mxu1 %v12680_v0 }
0x38a8   : > { %11306 = vmatmul.mubr.msk.bf16.vlgmr.msra.gmra.mrb[148].mxu1 %vm885_vm2, %v4887_v40 }
0x38a9   : > { %11317 = vmatprep.mubr.msk.bf16.mxu1 %vm12681_vm0, %v12680_v0  ;;  %11316 = vmatpush3.bf16.msra.mxu1 %v5001_v15 }
0x38aa   : > { %11327 = vmatprep.subr.bf16.mxu1 %v12680_v0 }
0x3973   : > { %v4828_v45 = vpop.f32.mrb[144].mxu1 }
0x3974   : > { %v4834_v46 = vpack.c.bf16 %v4828_v45, %v4828_v45  ;;  %v11295_v47 = vpop.f32.mrb[145].mxu1 }
0x3975   : > { %v4831_v48 = vpop.f32.mrb[146].mxu1 }
0x3976   : > { %v11296_v49 = vpop.f32.mrb[147].mxu1  ;;  %11300 = vmatmul.mubr.msk.bf16.vlgmr.msra.gmra.mrb[136].mxu0 %vm885_vm2, %v4834_v46 }
0x3977   : > { %11311 = vmatprep.mubr.msk.bf16.mxu0 %vm12681_vm0, %v12680_v0 }
0x397b   : > { %v4930_v50 = vpop.f32.mrb[148].mxu1 }
0x397c   : > { %v4931_v51 = vadd.f32 %v4930_v50, %v13204_v21  ;;  %v11307_v52 = vpop.f32.mrb[149].mxu1 }
0x397d   : > { %v4933_v53 = vpop.f32.mrb[150].mxu1  ;;  %v10317_v52 = vld [vmem:[#allocation7 + $0x1] ss:$0 sm:$0xff] }
0x397e   : > { %v11308_v54 = vpop.f32.mrb[151].mxu1  ;;  %v4936_v56 = vsel %vm932_vm4, %v4931_v51, -inf }
0x397f   : > { %4937 = vmax.xlane.f32.xlu0 %v4936_v56 }
0x3995   : > { %4948 = vrot.lane.b32.xlu0 %v13683_v35, %s14892_s23  ;;  %s14903_s23 = sld [smem:[#allocation34_spill]] }
0x3999   : > { %5044 = vrot.lane.b32.xlu0 %v13683_v35, %s14881_s13 }
0x399b   : > { %p14908_p2 = scmp.ne.s32.totalorder %s14903_s23, 0 }
0x3a0c   : > { %v4938_v57 = vpop.xlane.xlu0 %4937 }
0x3a0d   : > { %v4939_v58 = vsub.f32 %v4931_v51, %v4938_v57 }
0x3a0f   : > { %v4940_v59 = vmul.f32 1.442695, %v4939_v58 }
0x3a10   : > { %v4949_v60 = vpop.permute.xlu0 %4948 }
0x3a11   : > { %12173 = vpow2.f32 %v4940_v59  ;;  %v4954_v61 = vsel %vm950_vm5, %v4949_v60, 0 }
0x3a12   : > { %11310 = vmatpush3.bf16.msra.mxu0 %v4954_v61 }
0x3a13   : > { %11321 = vmatprep.subr.bf16.mxu0 %v12680_v0 }
0x3a14   : > { %v5045_v13 = vpop.permute.xlu0 %5044 }
0x3a1b   : > { %v12174_v62 = vpop.eup %12173 }
0x3a1c   : > { %v4942_v63 = vsel %vm932_vm4, %v12174_v62, 0.0 }
0x3a1d   : > { %4943 = vadd.xlane.f32.xlu1 %v4942_v63 }
0x3a2e   : > { %5046 = vrot.lane.b32.xlu1 %v13683_v35, %s14883_s16 }
0x3a49   : > { %v4879_v2 = vpop.f32.mrb[136].mxu0 }
0x3a4a   : > { %v4885_v3 = vadd.f32 %v4879_v2, %v4723_v29  ;;  %v11301_v4 = vpop.f32.mrb[137].mxu0 }
0x3a4b   : > { %v4882_v5 = vpop.f32.mrb[138].mxu0 }
0x3a4c   : > { %v11302_v6 = vpop.f32.mrb[139].mxu0  ;;  %v12043_v5 = vld [vmem:[%s14864_s0 + $0x10] sm:$0xff]  }
0x3a4d   : > { %v12045_v6 = vld [vmem:[%s14866_s25 + $0x10] sm:$0xff]  }
0x3aaa   : > { %v4944_v1 = vpop.xlane.xlu1 %4943 }
0x3aab   : > { %12175 = vrcp.f32 %v4944_v1  ;;  %v12046_v1 = vld [vmem:[%s14866_s25 + $0x18] sm:$0xff]   ;;  %s14894_s25 = smov 52  }
0x3aae   : > { %v5047_v11 = vpop.permute.xlu1 %5046 }
0x3aaf   : > { %v5052_v10 = vsel %vm885_vm2, %v5047_v11, 0 }
0x3ab5   : > { %v12176_v7 = vpop.eup %12175 }
0x3ab6   : > { %v4946_v8 = vmul.f32 %v12176_v7, %v12174_v62 }
0x3ab8   : > { %v4947_v12 = vpack.c.bf16 %v4946_v8, %v4946_v8 }
0x3aba   : > { %11312 = vmatmul.mubr.msk.bf16.vlgmr.msra.gmra.mrb[140].mxu0 %vm932_vm4, %v4947_v12 }
0x3abb   : > { %11322 = vmatpush3.bf16.xpose.msra.mxu0 %v5052_v10  ;;  %11323 = vmatprep.mubr.msk.bf16.mxu0 %vm12681_vm0, %v12680_v0  ;;  %v10320_v10 = vld [vmem:[%s14867_s2 + $0x3] ss:$0 sm:$0xff] }
0x3abc   : > { %11333 = vmatprep.subr.bf16.mxu0 %v12680_v0 }
0x3ac2   : > { %11324 = vmatmul.mubr.msk.bf16.vlgmr.msra.gmra.mrb[144].mxu0 %vm885_vm2, %v5045_v13 }
0x3ac3   : > { %11335 = vmatprep.mubr.msk.bf16.mxu0 %vm12681_vm0, %v12680_v0 }
0x3b8d   : > { %v4990_v16 = vpop.f32.mrb[140].mxu0 }
0x3b8e   : > { %v4996_v17 = vpack.c.bf16 %v4990_v16, %v4990_v16  ;;  %v11313_v18 = vpop.f32.mrb[141].mxu0 }
0x3b8f   : > { %v4993_v19 = vpop.f32.mrb[142].mxu0  ;;  %v10334_v18 = vld [vmem:[#allocation10 + $0x1] ss:$0 sm:$0xff] }
0x3b90   : > { %v11314_v20 = vpop.f32.mrb[143].mxu0  ;;  %11318 = vmatmul.mubr.msk.bf16.vlgmr.msra.gmra.mrb[152].mxu1 %vm885_vm2, %v4996_v17 }
0x3b91   : > { %11329 = vmatprep.mubr.msk.bf16.mxu1 %vm12681_vm0, %v12680_v0 }
0x3b95   : > { %v5088_v22 = vpop.f32.mrb[144].mxu0 }
0x3b96   : > { %v5089_v23 = vadd.f32 %v5088_v22, %v13204_v21  ;;  %v11325_v24 = vpop.f32.mrb[145].mxu0 }
0x3b97   : > { %v5091_v25 = vpop.f32.mrb[146].mxu0 }
0x3b98   : > { %v11326_v26 = vpop.f32.mrb[147].mxu0  ;;  %v5094_v27 = vsel %vm932_vm4, %v5089_v23, -inf }
0x3b99   : > { %5095 = vmax.xlane.f32.xlu1 %v5094_v27 }
0x3c26   : > { %v5096_v29 = vpop.xlane.xlu1 %5095 }
0x3c27   : > { %v5097_v30 = vsub.f32 %v5089_v23, %v5096_v29  ;;  %v10326_v29 = vld [vmem:[#allocation8 + $0x1] ss:$0 sm:$0xff] }
0x3c29   : > { %v5098_v31 = vmul.f32 1.442695, %v5097_v30 }
0x3c2b   : > { %12177 = vpow2.f32 %v5098_v31 }
0x3c35   : > { %v12178_v32 = vpop.eup %12177 }
0x3c36   : > { %v5100_v33 = vsel %vm932_vm4, %v12178_v32, 0.0 }
0x3c37   : > { %5101 = vadd.xlane.f32.xlu0 %v5100_v33 }
0x3c4d   : > { %5106 = vrot.lane.b32.xlu0 %v13683_v35, %s14893_s24  ;;  %v10315_v35 = vcombine.low %v10288_v14, %v10288_v14  ;;  %v10321_v14 = vld [vmem:[%s14868_s26 + $0x3] ss:$0 sm:$0xff]  ;;  %s14901_s24 = sld [smem:[#allocation31_spill]] }
0x3c4f   : > { %v5158_v45 = vrot.slane %v10315_v35, 2 }
0x3c51   : > { %v5163_v46 = vsel %vm1113_vm6, %v5158_v45, 0 }
0x3c52   : > { %11334 = vmatpush3.bf16.msra.mxu0 %v5163_v46 }
0x3c53   : > { %11347 = vmatprep.subr.bf16.mxu0 %v12680_v0 }
0x3c63   : > { %v5037_v34 = vpop.f32.mrb[152].mxu1 }
0x3c64   : > { %v5043_v36 = vadd.f32 %v5037_v34, %v4885_v3  ;;  %v11319_v55 = vpop.f32.mrb[153].mxu1 }
0x3c65   : > { %v5040_v9 = vpop.f32.mrb[154].mxu1 }
0x3c66   : > { %v11320_v37 = vpop.f32.mrb[155].mxu1 }
0x3cc4   : > { %v5102_v38 = vpop.xlane.xlu0 %5101 }
0x3cc5   : > { %12179 = vrcp.f32 %v5102_v38 }
0x3cc8   : > { %v5107_v39 = vpop.permute.xlu0 %5106 }
0x3cc9   : > { %v5112_v40 = vsel %vm950_vm5, %v5107_v39, 0 }
0x3cca   : > { %11328 = vmatpush3.bf16.msra.mxu1 %v5112_v40 }
0x3ccb   : > { %11339 = vmatprep.subr.bf16.mxu1 %v12680_v0 }
0x3ccf   : > { %v12180_v41 = vpop.eup %12179 }
0x3cd0   : > { %v5104_v42 = vmul.f32 %v12180_v41, %v12178_v32 }
0x3cd2   : > { %v5105_v43 = vpack.c.bf16 %v5104_v42, %v5104_v42 }
0x3cd4   : > { %11330 = vmatmul.mubr.msk.bf16.vlgmr.msra.gmra.mrb[156].mxu1 %vm932_vm4, %v5105_v43 }
0x3cd5   : > { %11343 = vmatprep.mubr.msk.bf16.mxu1 %vm12681_vm0, %v12680_v0  ;;  %11340 = vmatpush3.bf16.msra.mxu1 %v12045_v6 }
0x3cd6   : > { %11341 = vmatprep.subr.bf16.mxu1 %v12680_v0 }
0x3cd9   : > { %11342 = vmatpush3.bf16.msra.mxu1 %v12046_v1 }
0x3cda   : > { %11355 = vmatprep.subr.bf16.mxu1 %v12680_v0 }
0x3da7   : > { %v5148_v47 = vpop.f32.mrb[156].mxu1 }
0x3da8   : > { %v5154_v48 = vpack.c.bf16 %v5148_v47, %v5148_v47  ;;  %v11331_v49 = vpop.f32.mrb[157].mxu1 }
0x3da9   : > { %v5151_v50 = vpop.f32.mrb[158].mxu1 }
0x3daa   : > { %v11332_v51 = vpop.f32.mrb[159].mxu1  ;;  %11336 = vmatmul.mubr.msk.bf16.vlgmr.msra.gmra.mrb[148].mxu0 %vm885_vm2, %v5154_v48 }
0x3dab   : > { %11351 = vmatprep.mubr.msk.bf16.mxu0 %vm12681_vm0, %v12680_v0  ;;  %11348 = vmatpush3.bf16.msra.mxu0 %v12043_v5 }
0x3dac   : > { %11349 = vmatprep.subr.bf16.mxu0 %v12680_v0 }
0x3e7d   : > { %v5199_v53 = vpop.f32.mrb[148].mxu0 }
0x3e7e   : > { %v5205_v54 = vadd.f32 %v5199_v53, %v5043_v36  ;;  %v11337_v56 = vpop.f32.mrb[149].mxu0 }
0x3e7f   : > { %v5202_v57 = vpop.f32.mrb[150].mxu0 }
0x3e80   : > { %v5212_v58 = vadd.f32 %v10317_v52, %v5205_v54  ;;  %v11338_v59 = vpop.f32.mrb[151].mxu0 }
0x3e82   : > { %v5213_v60 = vadd.f32 %v5212_v58, %v13676_v28  ;;  %v12044_v28 = vld [vmem:[%s14864_s0 + $0x18] sm:$0xff]  }
0x3e83   : > { %11350 = vmatpush3.bf16.msra.mxu0 %v12044_v28 }
0x3e84   : > { %v5218_v61 = vsel %vm832_vm1, %v5213_v60, 0.0  ;;  %11361 = vmatprep.subr.bf16.mxu0 %v12680_v0 }
0x3e85   : > { %5219 = vadd.xlane.f32.xlu1 %v5218_v61 }
0x3e86   : > { %11352 = vmatmul.mubr.msk.bf16.vlgmr.msra.gmra.mrb[152].mxu0 %vm832_vm1, %v13410_v44 }
0x3e87   : > { %11363 = vmatprep.mubr.msk.bf16.mxu0 %vm12681_vm0, %v12680_v0 }
0x3f12   : > { %v5220_v62 = vpop.xlane.xlu1 %5219 }
0x3f13   : > { %v5221_v63 = vmul.f32 0.03125, %v5220_v62 }
0x3f15   : > { %v5222_v2 = vsub.f32 %v5213_v60, %v5221_v63 }
0x3f17   : > { %v5223_v3 = vmul.f32 %v5222_v2, %v5222_v2 }
0x3f19   : > { %v5224_v4 = vsel %vm832_vm1, %v5223_v3, 0.0  ;;  %v5381_v3 = vld [vmem:[#allocation11 + $0x10] sm:$0xf] }
0x3f1a   : > { %5225 = vadd.xlane.f32.xlu1 %v5224_v4  ;;  %v10342_v4 = vcombine.low %v5381_v3, %v5381_v3 }
0x3f1c   : > { %v5612_v5 = vrot.slane %v10342_v4, 2 }
0x3f1e   : > { %v5617_v28 = vsel %vm1113_vm6, %v5612_v5, 0 }
0x3f59   : > { %v5373_v19 = vpop.f32.mrb[152].mxu0 }
0x3f5a   : > { %v5374_v20 = vadd.f32 %v10334_v18, %v5373_v19  ;;  %v11353_v22 = vpop.f32.mrb[153].mxu0 }
0x3f5b   : > { %v5376_v23 = vpop.f32.mrb[154].mxu0 }
0x3f5c   : > { %v5377_v24 = vadd.f32 %v10334_v18, %v5376_v23  ;;  %v11354_v25 = vpop.f32.mrb[155].mxu0 }
0x3f5e   : > { %v13927_v26 = vpack.c.bf16 %v5377_v24, %v5374_v20 }
0x3f60   : > { %5500 = vrot.lane.b32.xlu1 %v13927_v26, %s14869_s29  ;;  %v5393_v27 = vsel %vm885_vm2, %v13927_v26, 0 }
0x3fa7   : > { %v5226_v7 = vpop.xlane.xlu1 %5225 }
0x3fa8   : > { %v5227_v8 = vmul.f32 0.03125, %v5226_v7 }
0x3faa   : > { %v5228_v11 = vadd.f32 1e-05, %v5227_v8 }
0x3fac   : > { %12181 = vrsqrt.f32 %v5228_v11 }
0x3fb6   : > { %v12182_v12 = vpop.eup %12181 }
0x3fb7   : > { %v5230_v13 = vmul.f32 %v12182_v12, %v5222_v2 }
0x3fb9   : > { %v5237_v15 = vmul.f32 %v10320_v10, %v5230_v13  ;;  %v5663_v10 = vsel %vm1113_vm6, %v5381_v3, 0 }
0x3fbb   : > { %v13920_v16 = vadd.f32 %v10321_v14, %v5237_v15 }
0x3fbd   : > { %v5250_v17 = vpack.c.bf16 %v13920_v16, %v13920_v16 }
0x3fbf   : > { %11344 = vmatmul.mubr.msk.bf16.vlgmr.msra.gmra.mrb[160].mxu1 %vm832_vm1, %v5250_v17 }
0x3fc0   : > { %11357 = vmatprep.mubr.msk.bf16.mxu1 %vm12681_vm0, %v12680_v0  ;;  %11356 = vmatpush3.bf16.xpose.msra.mxu1 %v5393_v27 }
0x3fc1   : > { %11367 = vmatprep.subr.bf16.mxu1 %v12680_v0 }
0x3fd2   : > { %v5501_v31 = vpop.permute.xlu1 %5500 }
0x3fd3   : > { %v5506_v9 = vsel %vm885_vm2, %v5501_v31, 0 }
0x4092   : > { %v5308_v30 = vpop.f32.mrb[160].mxu1 }
0x4093   : > { %v5309_v32 = vadd.f32 %v10326_v29, %v5308_v30  ;;  %v11345_v33 = vpop.f32.mrb[161].mxu1 }
0x4094   : > { %v5311_v34 = vpop.f32.mrb[162].mxu1 }
0x4095   : > { %v13934_v36 = vpack.c.bf16 %v5309_v32, %v5309_v32  ;;  %v11346_v55 = vpop.f32.mrb[163].mxu1 }
0x4097   : > { %5498 = vrot.lane.b32.xlu0 %v13934_v36, %s14869_s29  ;;  %11358 = vmatmul.mubr.msk.bf16.vlgmr.msra.gmra.mrb[164].mxu1 %vm885_vm2, %v13934_v36 }
0x4098   : > { %11368 = vmatpush3.bf16.xpose.msra.mxu1 %v5506_v9  ;;  %11369 = vmatprep.mubr.msk.bf16.mxu1 %vm12681_vm0, %v12680_v0 }
0x4099   : > { %11379 = vmatprep.subr.bf16.mxu1 %v12680_v0 }
0x4109   : > { %v5499_v37 = vpop.permute.xlu0 %5498 }
0x410a   : > { %11370 = vmatmul.mubr.msk.bf16.vlgmr.msra.gmra.mrb[168].mxu1 %vm885_vm2, %v5499_v37 }
0x410b   : > { %11381 = vmatprep.mubr.msk.bf16.mxu1 %vm12681_vm0, %v12680_v0  ;;  %11380 = vmatpush3.bf16.msra.mxu1 %v5617_v28 }
0x410c   : > { %11391 = vmatprep.subr.bf16.mxu1 %v12680_v0 }
0x416a   : > { %v5429_v38 = vpop.f32.mrb[164].mxu1 }
0x416b   : > { %v11359_v39 = vpop.f32.mrb[165].mxu1  ;;  %v5435_v40 = vsel %vm2389_vm7, %v5429_v38, -inf }
0x416c   : > { %5436 = vmax.xlane.f32.xlu0 %v5435_v40  ;;  %v5432_v41 = vpop.f32.mrb[166].mxu1 }
0x416d   : > { %v11360_v42 = vpop.f32.mrb[167].mxu1 }
0x41dd   : > { %v5542_v43 = vpop.f32.mrb[168].mxu1 }
0x41de   : > { %v11371_v35 = vpop.f32.mrb[169].mxu1  ;;  %v5548_v45 = vsel %vm2389_vm7, %v5542_v43, -inf }
0x41df   : > { %5549 = vmax.xlane.f32.xlu1 %v5548_v45  ;;  %v5545_v46 = vpop.f32.mrb[170].mxu1 }
0x41e0   : > { %v11372_v47 = vpop.f32.mrb[171].mxu1 }
0x41f0   : > { %5448 = vrot.lane.b32.xlu1 %v13927_v26, %s14872_s4 }
0x41f4   : > { %5707 = vrot.lane.b32.xlu1 %v13927_v26, %s14871_s14 }
0x41f8   : > { %5705 = vrot.lane.b32.xlu1 %v13934_v36, %s14871_s14 }
0x41f9   : > { %v5437_v48 = vpop.xlane.xlu0 %5436 }
0x41fa   : > { %v5438_v49 = vsub.f32 %v5429_v38, %v5437_v48 }
0x41fc   : > { %v5439_v50 = vmul.f32 1.442695, %v5438_v49 }
0x41fe   : > { %12183 = vpow2.f32 %v5439_v50 }
0x4208   : > { %v12184_v51 = vpop.eup %12183 }
0x4209   : > { %v5441_v52 = vsel %vm2389_vm7, %v12184_v51, 0.0 }
0x420a   : > { %5442 = vadd.xlane.f32.xlu0 %v5441_v52 }
0x426c   : > { %v5550_v53 = vpop.xlane.xlu1 %5549 }
0x426d   : > { %v5551_v54 = vsub.f32 %v5542_v43, %v5550_v53 }
0x426f   : > { %v5552_v56 = vmul.f32 1.442695, %v5551_v54 }
0x4270   : > { %v5449_v57 = vpop.permute.xlu1 %5448 }
0x4271   : > { %12185 = vpow2.f32 %v5552_v56  ;;  %v5454_v58 = vsel %vm2408_vm8, %v5449_v57, 0 }
0x4272   : > { %11362 = vmatpush3.bf16.msra.mxu0 %v5454_v58 }
0x4273   : > { %11373 = vmatprep.subr.bf16.mxu0 %v12680_v0 }
0x4274   : > { %v5708_v19 = vpop.permute.xlu1 %5707 }
0x4275   : > { %v5713_v25 = vsel %vm885_vm2, %v5708_v19, 0 }
0x4278   : > { %v5706_v29 = vpop.permute.xlu1 %5705 }
0x427b   : > { %v12186_v59 = vpop.eup %12185 }
0x427c   : > { %v5554_v60 = vsel %vm2389_vm7, %v12186_v59, 0.0 }
0x427d   : > { %5555 = vadd.xlane.f32.xlu0 %v5554_v60 }
0x4293   : > { %5560 = vrot.lane.b32.xlu0 %v13927_v26, %s14870_s21 }
0x4297   : > { %v5443_v61 = vpop.xlane.xlu0 %5442 }
0x4298   : > { %12187 = vrcp.f32 %v5443_v61 }
0x42a2   : > { %v12188_v62 = vpop.eup %12187 }
0x42a3   : > { %v5445_v63 = vmul.f32 %v12188_v62, %v12184_v51 }
0x42a5   : > { %v5446_v2 = vpack.c.bf16 %v5445_v63, %v5445_v63 }
0x42a7   : > { %11364 = vmatmul.mubr.msk.bf16.vlgmr.msra.gmra.mrb[156].mxu0 %vm2389_vm7, %v5446_v2 }
0x42a8   : > { %11375 = vmatprep.mubr.msk.bf16.mxu0 %vm12681_vm0, %v12680_v0 }
0x430a   : > { %v5556_v6 = vpop.xlane.xlu0 %5555 }
0x430b   : > { %12189 = vrcp.f32 %v5556_v6 }
0x430e   : > { %v5561_v1 = vpop.permute.xlu0 %5560 }
0x430f   : > { %v5566_v7 = vsel %vm2408_vm8, %v5561_v1, 0 }
0x4310   : > { %11374 = vmatpush3.bf16.msra.mxu0 %v5566_v7 }
0x4311   : > { %11385 = vmatprep.subr.bf16.mxu0 %v12680_v0 }
0x4315   : > { %v12190_v8 = vpop.eup %12189 }
0x4316   : > { %v5558_v11 = vmul.f32 %v12190_v8, %v12186_v59  ;;  %v5382_v59 = vld [vmem:[#allocation11 + $0x14] sm:$0xf] }
0x4317   : > { %v5820_v60 = vsel %vm1113_vm6, %v5382_v59, 0 }
0x4318   : > { %v5559_v12 = vpack.c.bf16 %v5558_v11, %v5558_v11 }
0x431a   : > { %11376 = vmatmul.mubr.msk.bf16.vlgmr.msra.gmra.mrb[160].mxu0 %vm2389_vm7, %v5559_v12 }
0x431b   : > { %11386 = vmatpush3.bf16.msra.mxu0 %v5663_v10  ;;  %11387 = vmatprep.mubr.msk.bf16.mxu0 %vm12681_vm0, %v12680_v0 }
0x431c   : > { %11397 = vmatprep.subr.bf16.mxu0 %v12680_v0 }
0x437a   : > { %v5490_v13 = vpop.f32.mrb[156].mxu0 }
0x437b   : > { %v5496_v14 = vpack.c.bf16 %v5490_v13, %v5490_v13  ;;  %v11365_v15 = vpop.f32.mrb[157].mxu0 }
0x437c   : > { %v5493_v17 = vpop.f32.mrb[158].mxu0 }
0x437d   : > { %v11366_v18 = vpop.f32.mrb[159].mxu0  ;;  %11388 = vmatmul.mubr.msk.bf16.vlgmr.msra.gmra.mrb[164].mxu0 %vm885_vm2, %v5496_v14 }
0x437e   : > { %11399 = vmatprep.mubr.msk.bf16.mxu0 %vm12681_vm0, %v12680_v0 }
0x43ed   : > { %v5602_v20 = vpop.f32.mrb[160].mxu0 }
0x43ee   : > { %v5608_v22 = vpack.c.bf16 %v5602_v20, %v5602_v20  ;;  %v11377_v23 = vpop.f32.mrb[161].mxu0 }
0x43ef   : > { %v5605_v24 = vpop.f32.mrb[162].mxu0 }
0x43f0   : > { %v11378_v27 = vpop.f32.mrb[163].mxu0  ;;  %11382 = vmatmul.mubr.msk.bf16.vlgmr.msra.gmra.mrb[172].mxu1 %vm885_vm2, %v5608_v22 }
0x43f1   : > { %11392 = vmatpush3.bf16.xpose.msra.mxu1 %v5713_v25  ;;  %11393 = vmatprep.mubr.msk.bf16.mxu1 %vm12681_vm0, %v12680_v0 }
0x43f2   : > { %11403 = vmatprep.subr.bf16.mxu1 %v12680_v0 }
0x43f8   : > { %11394 = vmatmul.mubr.msk.bf16.vlgmr.msra.gmra.mrb[176].mxu1 %vm885_vm2, %v5706_v29 }
0x43f9   : > { %11405 = vmatprep.mubr.msk.bf16.mxu1 %vm12681_vm0, %v12680_v0  ;;  %11404 = vmatpush3.bf16.msra.mxu1 %v5820_v60 }
0x43fa   : > { %11415 = vmatprep.subr.bf16.mxu1 %v12680_v0 }
0x4450   : > { %v5699_v30 = vpop.f32.mrb[164].mxu0 }
0x4451   : > { %v11389_v31 = vpop.f32.mrb[165].mxu0 }
0x4452   : > { %v5702_v32 = vpop.f32.mrb[166].mxu0  ;;  %v10350_v31 = vcombine.low %v5382_v59, %v5382_v59 }
0x4453   : > { %v11390_v33 = vpop.f32.mrb[167].mxu0 }
0x4454   : > { %v5977_v32 = vrot.slane %v10350_v31, 2 }
0x4456   : > { %v5982_v33 = vsel %vm1113_vm6, %v5977_v32, 0 }
0x44c3   : > { %v5653_v34 = vpop.f32.mrb[172].mxu1 }
0x44c4   : > { %v13984_v55 = vadd.f32 %v5699_v30, %v5653_v34  ;;  %v11383_v9 = vpop.f32.mrb[173].mxu1 }
0x44c5   : > { %v5656_v37 = vpop.f32.mrb[174].mxu1 }
0x44c6   : > { %v11384_v38 = vpop.f32.mrb[175].mxu1 }
0x44cb   : > { %v5749_v39 = vpop.f32.mrb[176].mxu1 }
0x44cc   : > { %v11395_v40 = vpop.f32.mrb[177].mxu1  ;;  %v5755_v41 = vsel %vm2389_vm7, %v5749_v39, -inf }
0x44cd   : > { %5756 = vmax.xlane.f32.xlu0 %v5755_v41  ;;  %v5752_v42 = vpop.f32.mrb[178].mxu1 }
0x44ce   : > { %v11396_v43 = vpop.f32.mrb[179].mxu1 }
0x44e3   : > { %5767 = vrot.lane.b32.xlu0 %v13927_v26, %s14874_s30 }
0x44e7   : > { %5863 = vrot.lane.b32.xlu0 %v13934_v36, %s14873_s19 }
0x455a   : > { %v5757_v35 = vpop.xlane.xlu0 %5756 }
0x455b   : > { %v5758_v45 = vsub.f32 %v5749_v39, %v5757_v35 }
0x455d   : > { %v5759_v46 = vmul.f32 1.442695, %v5758_v45 }
0x455e   : > { %v5768_v47 = vpop.permute.xlu0 %5767 }
0x455f   : > { %12191 = vpow2.f32 %v5759_v46  ;;  %v5773_v48 = vsel %vm2408_vm8, %v5768_v47, 0 }
0x4560   : > { %11398 = vmatpush3.bf16.msra.mxu0 %v5773_v48 }
0x4561   : > { %11409 = vmatprep.subr.bf16.mxu0 %v12680_v0 }
0x4562   : > { %v5864_v58 = vpop.permute.xlu0 %5863 }
0x4569   : > { %v12192_v49 = vpop.eup %12191 }
0x456a   : > { %v5761_v50 = vsel %vm2389_vm7, %v12192_v49, 0.0 }
0x456b   : > { %5762 = vadd.xlane.f32.xlu1 %v5761_v50 }
0x457c   : > { %5865 = vrot.lane.b32.xlu1 %v13927_v26, %s14873_s19 }
0x45f8   : > { %v5763_v51 = vpop.xlane.xlu1 %5762 }
0x45f9   : > { %12193 = vrcp.f32 %v5763_v51 }
0x45fc   : > { %v5866_v54 = vpop.permute.xlu1 %5865 }
0x45fd   : > { %v5871_v57 = vsel %vm885_vm2, %v5866_v54, 0 }
0x4603   : > { %v12194_v52 = vpop.eup %12193 }
0x4604   : > { %v5765_v53 = vmul.f32 %v12194_v52, %v12192_v49 }
0x4606   : > { %v5766_v56 = vpack.c.bf16 %v5765_v53, %v5765_v53 }
0x4608   : > { %11400 = vmatmul.mubr.msk.bf16.vlgmr.msra.gmra.mrb[168].mxu0 %vm2389_vm7, %v5766_v56 }
0x4609   : > { %11410 = vmatpush3.bf16.xpose.msra.mxu0 %v5871_v57  ;;  %11411 = vmatprep.mubr.msk.bf16.mxu0 %vm12681_vm0, %v12680_v0 }
0x460a   : > { %11421 = vmatprep.subr.bf16.mxu0 %v12680_v0 }
0x4610   : > { %11412 = vmatmul.mubr.msk.bf16.vlgmr.msra.gmra.mrb[172].mxu0 %vm885_vm2, %v5864_v58 }
0x4611   : > { %11423 = vmatprep.mubr.msk.bf16.mxu0 %vm12681_vm0, %v12680_v0  ;;  %11422 = vmatpush3.bf16.msra.mxu0 %v5982_v33 }
0x4612   : > { %11433 = vmatprep.subr.bf16.mxu0 %v12680_v0 }
0x46db   : > { %v5809_v61 = vpop.f32.mrb[168].mxu0 }
0x46dc   : > { %v5815_v62 = vpack.c.bf16 %v5809_v61, %v5809_v61  ;;  %v11401_v63 = vpop.f32.mrb[169].mxu0 }
0x46dd   : > { %v5812_v2 = vpop.f32.mrb[170].mxu0 }
0x46de   : > { %v11402_v3 = vpop.f32.mrb[171].mxu0  ;;  %11406 = vmatmul.mubr.msk.bf16.vlgmr.msra.gmra.mrb[180].mxu1 %vm885_vm2, %v5815_v62  ;;  %v5383_v2 = vld [vmem:[#allocation11 + $0x18] sm:$0xf] }
0x46df   : > { %11417 = vmatprep.mubr.msk.bf16.mxu1 %vm12681_vm0, %v12680_v0  ;;  %v6140_v3 = vsel %vm1113_vm6, %v5383_v2, 0 }
0x46e3   : > { %v5907_v4 = vpop.f32.mrb[172].mxu0 }
0x46e4   : > { %v11413_v5 = vpop.f32.mrb[173].mxu0  ;;  %v5913_v28 = vsel %vm2389_vm7, %v5907_v4, -inf }
0x46e5   : > { %5914 = vmax.xlane.f32.xlu1 %v5913_v28  ;;  %v5910_v6 = vpop.f32.mrb[174].mxu0 }
0x46e6   : > { %v11414_v1 = vpop.f32.mrb[175].mxu0 }
0x46f6   : > { %6027 = vrot.lane.b32.xlu1 %v13927_v26, %s14876_s5 }
0x46fa   : > { %6025 = vrot.lane.b32.xlu1 %v13934_v36, %s14876_s5 }
0x4772   : > { %v5915_v7 = vpop.xlane.xlu1 %5914 }
0x4773   : > { %v5916_v8 = vsub.f32 %v5907_v4, %v5915_v7 }
0x4775   : > { %v5917_v11 = vmul.f32 1.442695, %v5916_v8 }
0x4776   : > { %v6028_v25 = vpop.permute.xlu1 %6027 }
0x4777   : > { %12195 = vpow2.f32 %v5917_v11  ;;  %v6033_v29 = vsel %vm885_vm2, %v6028_v25, 0 }
0x477a   : > { %v6026_v30 = vpop.permute.xlu1 %6025 }
0x4781   : > { %v12196_v12 = vpop.eup %12195 }
0x4782   : > { %v5919_v10 = vsel %vm2389_vm7, %v12196_v12, 0.0 }
0x4783   : > { %5920 = vadd.xlane.f32.xlu0 %v5919_v10 }
0x4799   : > { %5925 = vrot.lane.b32.xlu0 %v13927_v26, %s14875_s17 }
0x47b1   : > { %v5856_v13 = vpop.f32.mrb[180].mxu1 }
0x47b2   : > { %v5862_v14 = vadd.f32 %v5856_v13, %v13984_v55  ;;  %v11407_v15 = vpop.f32.mrb[181].mxu1 }
0x47b3   : > { %v5859_v17 = vpop.f32.mrb[182].mxu1 }
0x47b4   : > { %v11408_v18 = vpop.f32.mrb[183].mxu1 }
0x4810   : > { %v5921_v19 = vpop.xlane.xlu0 %5920 }
0x4811   : > { %12197 = vrcp.f32 %v5921_v19 }
0x4814   : > { %v5926_v20 = vpop.permute.xlu0 %5925 }
0x4815   : > { %v5931_v22 = vsel %vm2408_vm8, %v5926_v20, 0 }
0x4816   : > { %11416 = vmatpush3.bf16.msra.mxu1 %v5931_v22 }
0x4817   : > { %11427 = vmatprep.subr.bf16.mxu1 %v12680_v0 }
0x481b   : > { %v12198_v23 = vpop.eup %12197 }
0x481c   : > { %v5923_v24 = vmul.f32 %v12198_v23, %v12196_v12 }
0x481e   : > { %v5924_v27 = vpack.c.bf16 %v5923_v24, %v5923_v24 }
0x4820   : > { %11418 = vmatmul.mubr.msk.bf16.vlgmr.msra.gmra.mrb[184].mxu1 %vm2389_vm7, %v5924_v27 }
0x4821   : > { %11428 = vmatpush3.bf16.xpose.msra.mxu1 %v6033_v29  ;;  %11429 = vmatprep.mubr.msk.bf16.mxu1 %vm12681_vm0, %v12680_v0 }
0x4822   : > { %11439 = vmatprep.subr.bf16.mxu1 %v12680_v0 }
0x4828   : > { %11430 = vmatmul.mubr.msk.bf16.vlgmr.msra.gmra.mrb[188].mxu1 %vm885_vm2, %v6026_v30 }
0x4829   : > { %11441 = vmatprep.mubr.msk.bf16.mxu1 %vm12681_vm0, %v12680_v0  ;;  %11440 = vmatpush3.bf16.msra.mxu1 %v6140_v3 }
0x482a   : > { %11451 = vmatprep.subr.bf16.mxu1 %v12680_v0 }
0x48f3   : > { %v5967_v34 = vpop.f32.mrb[184].mxu1 }
0x48f4   : > { %v5973_v55 = vpack.c.bf16 %v5967_v34, %v5967_v34  ;;  %v11419_v9 = vpop.f32.mrb[185].mxu1 }
0x48f5   : > { %v5970_v37 = vpop.f32.mrb[186].mxu1  ;;  %v10357_v9 = vcombine.low %v5383_v2, %v5383_v2 }
0x48f6   : > { %v11420_v38 = vpop.f32.mrb[187].mxu1  ;;  %11424 = vmatmul.mubr.msk.bf16.vlgmr.msra.gmra.mrb[176].mxu0 %vm885_vm2, %v5973_v55 }
0x48f7   : > { %11435 = vmatprep.mubr.msk.bf16.mxu0 %vm12681_vm0, %v12680_v0  ;;  %v6297_v37 = vrot.slane %v10357_v9, 2 }
0x48f9   : > { %v6302_v38 = vsel %vm1113_vm6, %v6297_v37, 0 }
0x48fb   : > { %v6069_v39 = vpop.f32.mrb[188].mxu1 }
0x48fc   : > { %v11431_v40 = vpop.f32.mrb[189].mxu1  ;;  %v6075_v41 = vsel %vm2389_vm7, %v6069_v39, -inf }
0x48fd   : > { %6076 = vmax.xlane.f32.xlu0 %v6075_v41  ;;  %v6072_v42 = vpop.f32.mrb[190].mxu1 }
0x48fe   : > { %v11432_v43 = vpop.f32.mrb[191].mxu1 }
0x4913   : > { %6087 = vrot.lane.b32.xlu0 %v13927_v26, %s14878_s10 }
0x4917   : > { %6183 = vrot.lane.b32.xlu0 %v13934_v36, %s14877_s9 }
0x498a   : > { %v6077_v35 = vpop.xlane.xlu0 %6076 }
0x498b   : > { %v6078_v45 = vsub.f32 %v6069_v39, %v6077_v35 }
0x498d   : > { %v6079_v46 = vmul.f32 1.442695, %v6078_v45 }
0x498e   : > { %v6088_v47 = vpop.permute.xlu0 %6087 }
0x498f   : > { %12199 = vpow2.f32 %v6079_v46  ;;  %v6093_v48 = vsel %vm2408_vm8, %v6088_v47, 0 }
0x4990   : > { %11434 = vmatpush3.bf16.msra.mxu0 %v6093_v48 }
0x4991   : > { %11445 = vmatprep.subr.bf16.mxu0 %v12680_v0 }
0x4992   : > { %v6184_v63 = vpop.permute.xlu0 %6183 }
0x4999   : > { %v12200_v49 = vpop.eup %12199 }
0x499a   : > { %v6081_v50 = vsel %vm2389_vm7, %v12200_v49, 0.0 }
0x499b   : > { %6082 = vadd.xlane.f32.xlu1 %v6081_v50 }
0x49ac   : > { %6185 = vrot.lane.b32.xlu1 %v13927_v26, %s14877_s9 }
0x49c9   : > { %v6018_v51 = vpop.f32.mrb[176].mxu0 }
0x49ca   : > { %v6024_v52 = vadd.f32 %v6018_v51, %v5862_v14  ;;  %v11425_v53 = vpop.f32.mrb[177].mxu0 }
0x49cb   : > { %v6021_v54 = vpop.f32.mrb[178].mxu0 }
0x49cc   : > { %v11426_v56 = vpop.f32.mrb[179].mxu0 }
0x4a28   : > { %v6083_v57 = vpop.xlane.xlu1 %6082 }
0x4a29   : > { %12201 = vrcp.f32 %v6083_v57 }
0x4a2c   : > { %v6186_v60 = vpop.permute.xlu1 %6185 }
0x4a2d   : > { %v6191_v62 = vsel %vm885_vm2, %v6186_v60, 0 }
0x4a33   : > { %v12202_v58 = vpop.eup %12201 }
0x4a34   : > { %v6085_v59 = vmul.f32 %v12202_v58, %v12200_v49 }
0x4a36   : > { %v6086_v61 = vpack.c.bf16 %v6085_v59, %v6085_v59 }
0x4a38   : > { %11436 = vmatmul.mubr.msk.bf16.vlgmr.msra.gmra.mrb[180].mxu0 %vm2389_vm7, %v6086_v61 }
0x4a39   : > { %11446 = vmatpush3.bf16.xpose.msra.mxu0 %v6191_v62  ;;  %11447 = vmatprep.mubr.msk.bf16.mxu0 %vm12681_vm0, %v12680_v0 }
0x4a3a   : > { %11457 = vmatprep.subr.bf16.mxu0 %v12680_v0 }
0x4a40   : > { %11448 = vmatmul.mubr.msk.bf16.vlgmr.msra.gmra.mrb[184].mxu0 %vm885_vm2, %v6184_v63 }
0x4a41   : > { %11459 = vmatprep.mubr.msk.bf16.mxu0 %vm12681_vm0, %v12680_v0  ;;  %11458 = vmatpush3.bf16.msra.mxu0 %v6302_v38 }
0x4a42   : > { %11469 = vmatprep.subr.bf16.mxu0 %v12680_v0 }
0x4b0b   : > { %v6129_v4 = vpop.f32.mrb[180].mxu0 }
0x4b0c   : > { %v6135_v5 = vpack.c.bf16 %v6129_v4, %v6129_v4  ;;  %v11437_v28 = vpop.f32.mrb[181].mxu0 }
0x4b0d   : > { %v6132_v6 = vpop.f32.mrb[182].mxu0  ;;  %v5384_v28 = vld [vmem:[#allocation11 + $0x1c] sm:$0xf] }
0x4b0e   : > { %v11438_v1 = vpop.f32.mrb[183].mxu0  ;;  %11442 = vmatmul.mubr.msk.bf16.vlgmr.msra.gmra.mrb[192].mxu1 %vm885_vm2, %v6135_v5  ;;  %v6460_v6 = vsel %vm1113_vm6, %v5384_v28, 0 }
0x4b0f   : > { %11453 = vmatprep.mubr.msk.bf16.mxu1 %vm12681_vm0, %v12680_v0 }
0x4b13   : > { %v6227_v7 = vpop.f32.mrb[184].mxu0 }
0x4b14   : > { %v11449_v8 = vpop.f32.mrb[185].mxu0  ;;  %v6233_v11 = vsel %vm2389_vm7, %v6227_v7, -inf }
0x4b15   : > { %6234 = vmax.xlane.f32.xlu1 %v6233_v11  ;;  %v6230_v12 = vpop.f32.mrb[186].mxu0 }
0x4b16   : > { %v11450_v10 = vpop.f32.mrb[187].mxu0 }
0x4b26   : > { %6347 = vrot.lane.b32.xlu1 %v13927_v26, %s14880_s12 }
0x4b2a   : > { %6345 = vrot.lane.b32.xlu1 %v13934_v36, %s14880_s12 }
0x4ba2   : > { %v6235_v13 = vpop.xlane.xlu1 %6234 }
0x4ba3   : > { %v6236_v14 = vsub.f32 %v6227_v7, %v6235_v13 }
0x4ba5   : > { %v6237_v15 = vmul.f32 1.442695, %v6236_v14 }
0x4ba6   : > { %v6348_v32 = vpop.permute.xlu1 %6347 }
0x4ba7   : > { %12203 = vpow2.f32 %v6237_v15  ;;  %v6353_v34 = vsel %vm885_vm2, %v6348_v32, 0 }
0x4baa   : > { %v6346_v55 = vpop.permute.xlu1 %6345 }
0x4bb1   : > { %v12204_v17 = vpop.eup %12203 }
0x4bb2   : > { %v6239_v18 = vsel %vm2389_vm7, %v12204_v17, 0.0 }
0x4bb3   : > { %6240 = vadd.xlane.f32.xlu0 %v6239_v18 }
0x4bc9   : > { %6245 = vrot.lane.b32.xlu0 %v13927_v26, %s14879_s11 }
0x4be1   : > { %v6176_v19 = vpop.f32.mrb[192].mxu1 }
0x4be2   : > { %v6182_v20 = vadd.f32 %v6176_v19, %v6024_v52  ;;  %v11443_v22 = vpop.f32.mrb[193].mxu1 }
0x4be3   : > { %v6179_v23 = vpop.f32.mrb[194].mxu1 }
0x4be4   : > { %v11444_v24 = vpop.f32.mrb[195].mxu1 }
0x4c40   : > { %v6241_v25 = vpop.xlane.xlu0 %6240 }
0x4c41   : > { %12205 = vrcp.f32 %v6241_v25 }
0x4c44   : > { %v6246_v27 = vpop.permute.xlu0 %6245 }
0x4c45   : > { %v6251_v29 = vsel %vm2408_vm8, %v6246_v27, 0 }
0x4c46   : > { %11452 = vmatpush3.bf16.msra.mxu1 %v6251_v29 }
0x4c47   : > { %11463 = vmatprep.subr.bf16.mxu1 %v12680_v0 }
0x4c4b   : > { %v12206_v30 = vpop.eup %12205 }
0x4c4c   : > { %v6243_v31 = vmul.f32 %v12206_v30, %v12204_v17 }
0x4c4e   : > { %v6244_v33 = vpack.c.bf16 %v6243_v31, %v6243_v31 }
0x4c50   : > { %11454 = vmatmul.mubr.msk.bf16.vlgmr.msra.gmra.mrb[196].mxu1 %vm2389_vm7, %v6244_v33 }
0x4c51   : > { %11464 = vmatpush3.bf16.xpose.msra.mxu1 %v6353_v34  ;;  %11465 = vmatprep.mubr.msk.bf16.mxu1 %vm12681_vm0, %v12680_v0 }
0x4c52   : > { %11475 = vmatprep.subr.bf16.mxu1 %v12680_v0 }
0x4c58   : > { %11466 = vmatmul.mubr.msk.bf16.vlgmr.msra.gmra.mrb[200].mxu1 %vm885_vm2, %v6346_v55 }
0x4c59   : > { %11477 = vmatprep.mubr.msk.bf16.mxu1 %vm12681_vm0, %v12680_v0  ;;  %11476 = vmatpush3.bf16.msra.mxu1 %v6460_v6  ;;  %v12053_v6 = vld [vmem:[%s14885_s6 + $0x20] sm:$0xff]  }
0x4c5a   : > { %11487 = vmatprep.subr.bf16.mxu1 %v12680_v0 }
0x4d23   : > { %v6287_v39 = vpop.f32.mrb[196].mxu1 }
0x4d24   : > { %v6293_v40 = vpack.c.bf16 %v6287_v39, %v6287_v39  ;;  %v11455_v41 = vpop.f32.mrb[197].mxu1 }
0x4d25   : > { %v6290_v42 = vpop.f32.mrb[198].mxu1 }
0x4d26   : > { %v11456_v43 = vpop.f32.mrb[199].mxu1  ;;  %11460 = vmatmul.mubr.msk.bf16.vlgmr.msra.gmra.mrb[188].mxu0 %vm885_vm2, %v6293_v40 }
0x4d27   : > { %11471 = vmatprep.mubr.msk.bf16.mxu0 %vm12681_vm0, %v12680_v0 }
0x4d2b   : > { %v6389_v35 = vpop.f32.mrb[200].mxu1 }
0x4d2c   : > { %v11467_v45 = vpop.f32.mrb[201].mxu1  ;;  %v6395_v46 = vsel %vm2389_vm7, %v6389_v35, -inf }
0x4d2d   : > { %6396 = vmax.xlane.f32.xlu0 %v6395_v46  ;;  %v6392_v47 = vpop.f32.mrb[202].mxu1 }
0x4d2e   : > { %v11468_v48 = vpop.f32.mrb[203].mxu1 }
0x4d43   : > { %6407 = vrot.lane.b32.xlu0 %v13927_v26, %s14882_s15 }
0x4d47   : > { %6503 = vrot.lane.b32.xlu0 %v13934_v36, %s14881_s13 }
0x4dba   : > { %v6397_v49 = vpop.xlane.xlu0 %6396 }
0x4dbb   : > { %v6398_v50 = vsub.f32 %v6389_v35, %v6397_v49  ;;  %v10366_v35 = vld [vmem:[#allocation13 + $0x1] ss:$0 sm:$0xff] }
0x4dbd   : > { %v6399_v51 = vmul.f32 1.442695, %v6398_v50 }
0x4dbe   : > { %v6408_v52 = vpop.permute.xlu0 %6407 }
0x4dbf   : > { %12207 = vpow2.f32 %v6399_v51  ;;  %v6413_v53 = vsel %vm2408_vm8, %v6408_v52, 0 }
0x4dc0   : > { %11470 = vmatpush3.bf16.msra.mxu0 %v6413_v53 }
0x4dc1   : > { %11481 = vmatprep.subr.bf16.mxu0 %v12680_v0 }
0x4dc2   : > { %v6504_v5 = vpop.permute.xlu0 %6503 }
0x4dc9   : > { %v12208_v54 = vpop.eup %12207 }
0x4dca   : > { %v6401_v56 = vsel %vm2389_vm7, %v12208_v54, 0.0 }
0x4dcb   : > { %6402 = vadd.xlane.f32.xlu1 %v6401_v56 }
0x4ddc   : > { %6505 = vrot.lane.b32.xlu1 %v13927_v26, %s14881_s13 }
0x4df9   : > { %v6338_v57 = vpop.f32.mrb[188].mxu0 }
0x4dfa   : > { %v6344_v58 = vadd.f32 %v6338_v57, %v6182_v20  ;;  %v11461_v36 = vpop.f32.mrb[189].mxu0 }
0x4dfb   : > { %v6341_v59 = vpop.f32.mrb[190].mxu0  ;;  %v12051_v36 = vld [vmem:[#allocation14 + $0x10] sm:$0xff]  }
0x4dfc   : > { %v11462_v60 = vpop.f32.mrb[191].mxu0  ;;  %v12052_v59 = vld [vmem:[#allocation14 + $0x18] sm:$0xff]  }
0x4e58   : > { %v6403_v61 = vpop.xlane.xlu1 %6402 }
0x4e59   : > { %12209 = vrcp.f32 %v6403_v61 }
0x4e5c   : > { %v6506_v2 = vpop.permute.xlu1 %6505 }
0x4e5d   : > { %v6511_v4 = vsel %vm885_vm2, %v6506_v2, 0 }
0x4e63   : > { %v12210_v62 = vpop.eup %12209 }
0x4e64   : > { %v6405_v63 = vmul.f32 %v12210_v62, %v12208_v54 }
0x4e66   : > { %v6406_v3 = vpack.c.bf16 %v6405_v63, %v6405_v63  ;;  %v10369_v63 = vld [vmem:[%s14867_s2 + $0x4] ss:$0 sm:$0xff] }
0x4e68   : > { %11472 = vmatmul.mubr.msk.bf16.vlgmr.msra.gmra.mrb[192].mxu0 %vm2389_vm7, %v6406_v3  ;;  %v10370_v3 = vld [vmem:[%s14868_s26 + $0x4] ss:$0 sm:$0xff] }
0x4e69   : > { %11482 = vmatpush3.bf16.xpose.msra.mxu0 %v6511_v4  ;;  %11483 = vmatprep.mubr.msk.bf16.mxu0 %vm12681_vm0, %v12680_v0 }
0x4e6a   : > { %11493 = vmatprep.subr.bf16.mxu0 %v12680_v0 }
0x4e70   : > { %11484 = vmatmul.mubr.msk.bf16.vlgmr.msra.gmra.mrb[196].mxu0 %vm885_vm2, %v6504_v5 }
0x4e71   : > { %11495 = vmatprep.mubr.msk.bf16.mxu0 %vm12681_vm0, %v12680_v0 }
0x4f3b   : > { %v6449_v1 = vpop.f32.mrb[192].mxu0 }
0x4f3c   : > { %v6455_v7 = vpack.c.bf16 %v6449_v1, %v6449_v1  ;;  %v11473_v8 = vpop.f32.mrb[193].mxu0  ;;  %v12054_v1 = vld [vmem:[%s14885_s6 + $0x28] sm:$0xff]  }
0x4f3d   : > { %v6452_v11 = vpop.f32.mrb[194].mxu0  ;;  %v12056_v8 = vld [vmem:[%s14885_s6 + $0x38] sm:$0xff]  }
0x4f3e   : > { %v11474_v12 = vpop.f32.mrb[195].mxu0  ;;  %11478 = vmatmul.mubr.msk.bf16.vlgmr.msra.gmra.mrb[204].mxu1 %vm885_vm2, %v6455_v7  ;;  %v12055_v7 = vld [vmem:[%s14885_s6 + $0x30] sm:$0xff]   ;;  %v10371_v11 = vld [vmem:[#allocation16 + $0x1] ss:$0 sm:$0xff] }
0x4f3f   : > { %11489 = vmatprep.mubr.msk.bf16.mxu1 %vm12681_vm0, %v12680_v0 }
0x4f43   : > { %v6547_v10 = vpop.f32.mrb[196].mxu0 }
0x4f44   : > { %v11485_v13 = vpop.f32.mrb[197].mxu0  ;;  %v6553_v14 = vsel %vm2389_vm7, %v6547_v10, -inf }
0x4f45   : > { %6554 = vmax.xlane.f32.xlu1 %v6553_v14  ;;  %v6550_v15 = vpop.f32.mrb[198].mxu0 }
0x4f46   : > { %v11486_v17 = vpop.f32.mrb[199].mxu0 }
0x4fd2   : > { %v6555_v18 = vpop.xlane.xlu1 %6554 }
0x4fd3   : > { %v6556_v19 = vsub.f32 %v6547_v10, %v6555_v18 }
0x4fd5   : > { %v6557_v20 = vmul.f32 1.442695, %v6556_v19 }
0x4fd7   : > { %12211 = vpow2.f32 %v6557_v20 }
0x4fe1   : > { %v12212_v22 = vpop.eup %12211 }
0x4fe2   : > { %v6559_v23 = vsel %vm2389_vm7, %v12212_v22, 0.0 }
0x4fe3   : > { %6560 = vadd.xlane.f32.xlu0 %v6559_v23 }
0x4ff9   : > { %6565 = vrot.lane.b32.xlu0 %v13927_v26, %s14883_s16  ;;  %v10364_v26 = vcombine.low %v5384_v28, %v5384_v28 }
0x4ffb   : > { %v6617_v37 = vrot.slane %v10364_v26, 2 }
0x4ffd   : > { %v6622_v38 = vsel %vm1113_vm6, %v6617_v37, 0 }
0x4ffe   : > { %11494 = vmatpush3.bf16.msra.mxu0 %v6622_v38 }
0x4fff   : > { %11507 = vmatprep.subr.bf16.mxu0 %v12680_v0 }
0x5011   : > { %v6496_v24 = vpop.f32.mrb[204].mxu1 }
0x5012   : > { %v6502_v25 = vadd.f32 %v6496_v24, %v6344_v58  ;;  %v11479_v27 = vpop.f32.mrb[205].mxu1 }
0x5013   : > { %v6499_v29 = vpop.f32.mrb[206].mxu1 }
0x5014   : > { %v11480_v30 = vpop.f32.mrb[207].mxu1 }
0x5015   : > { %v10383_v30 = vld [vmem:[#allocation17 + $0x1] ss:$0 sm:$0xff] }
0x5070   : > { %v6561_v31 = vpop.xlane.xlu0 %6560 }
0x5071   : > { %12213 = vrcp.f32 %v6561_v31 }
0x5074   : > { %v6566_v32 = vpop.permute.xlu0 %6565 }
0x5075   : > { %v6571_v33 = vsel %vm2408_vm8, %v6566_v32, 0 }
0x5076   : > { %11488 = vmatpush3.bf16.msra.mxu1 %v6571_v33 }
0x5077   : > { %11499 = vmatprep.subr.bf16.mxu1 %v12680_v0 }
0x507b   : > { %v12214_v34 = vpop.eup %12213 }
0x507c   : > { %v6563_v55 = vmul.f32 %v12214_v34, %v12212_v22 }
0x507e   : > { %v6564_v9 = vpack.c.bf16 %v6563_v55, %v6563_v55 }
0x5080   : > { %11490 = vmatmul.mubr.msk.bf16.vlgmr.msra.gmra.mrb[208].mxu1 %vm2389_vm7, %v6564_v9 }
0x5081   : > { %11503 = vmatprep.mubr.msk.bf16.mxu1 %vm12681_vm0, %v12680_v0  ;;  %11500 = vmatpush3.bf16.msra.mxu1 %v12051_v36 }
0x5082   : > { %11501 = vmatprep.subr.bf16.mxu1 %v12680_v0 }
0x5085   : > { %11502 = vmatpush3.bf16.msra.mxu1 %v12052_v59 }
0x5086   : > { %11519 = vmatprep.subr.bf16.mxu1 %v12680_v0 }
0x5153   : > { %v6607_v39 = vpop.f32.mrb[208].mxu1 }
0x5154   : > { %v6613_v40 = vpack.c.bf16 %v6607_v39, %v6607_v39  ;;  %v11491_v41 = vpop.f32.mrb[209].mxu1 }
0x5155   : > { %v6610_v42 = vpop.f32.mrb[210].mxu1 }
0x5156   : > { %v11492_v43 = vpop.f32.mrb[211].mxu1  ;;  %11496 = vmatmul.mubr.msk.bf16.vlgmr.msra.gmra.mrb[200].mxu0 %vm885_vm2, %v6613_v40  ;;  %v12057_v42 = vld [vmem:[%s14862_s20 + $0x20] sm:$0xff]  }
0x5157   : > { %11515 = vmatprep.mubr.msk.bf16.mxu0 %vm12681_vm0, %v12680_v0  ;;  %11508 = vmatpush3.bf16.msra.mxu0 %v12053_v6  ;;  %v12058_v43 = vld [vmem:[%s14862_s20 + $0x28] sm:$0xff]  }
0x5158   : > { %11509 = vmatprep.subr.bf16.mxu0 %v12680_v0 }
0x515b   : > { %11510 = vmatpush3.bf16.msra.mxu0 %v12054_v1 }
0x515c   : > { %11511 = vmatprep.subr.bf16.mxu0 %v12680_v0 }
0x515f   : > { %11512 = vmatpush3.bf16.msra.mxu0 %v12055_v7 }
0x5160   : > { %11513 = vmatprep.subr.bf16.mxu0 %v12680_v0 }
0x5163   : > { %11514 = vmatpush3.bf16.msra.mxu0 %v12056_v8 }
0x5164   : > { %11533 = vmatprep.subr.bf16.mxu0 %v12680_v0 }
0x5229   : > { %v6658_v45 = vpop.f32.mrb[200].mxu0 }
0x522a   : > { %v6664_v46 = vadd.f32 %v6658_v45, %v6502_v25  ;;  %v11497_v47 = vpop.f32.mrb[201].mxu0 }
0x522b   : > { %v6661_v48 = vpop.f32.mrb[202].mxu0 }
0x522c   : > { %v6671_v49 = vadd.f32 %v10366_v35, %v6664_v46  ;;  %v11498_v50 = vpop.f32.mrb[203].mxu0  ;;  %v10391_v48 = vld [vmem:[%s14867_s2 + $0x5] ss:$0 sm:$0xff] }
0x522d   : > { %v10392_v50 = vld [vmem:[%s14868_s26 + $0x5] ss:$0 sm:$0xff] }
0x522e   : > { %v6672_v51 = vadd.f32 %v6671_v49, %v13920_v16 }
0x5230   : > { %v6677_v52 = vsel %vm832_vm1, %v6672_v51, 0.0 }
0x5231   : > { %6678 = vadd.xlane.f32.xlu1 %v6677_v52 }
0x52be   : > { %v6679_v53 = vpop.xlane.xlu1 %6678 }
0x52bf   : > { %v6680_v54 = vmul.f32 0.03125, %v6679_v53 }
0x52c1   : > { %v6681_v56 = vsub.f32 %v6672_v51, %v6680_v54  ;;  %v10397_v54 = vld [vmem:[#allocation5 + $0x2] ss:$0 sm:$0xff] }
0x52c3   : > { %v6682_v57 = vmul.f32 %v6681_v56, %v6681_v56 }
0x52c5   : > { %v6683_v58 = vsel %vm832_vm1, %v6682_v57, 0.0 }
0x52c6   : > { %6684 = vadd.xlane.f32.xlu1 %v6683_v58 }
0x5353   : > { %v6685_v60 = vpop.xlane.xlu1 %6684 }
0x5354   : > { %v6686_v16 = vmul.f32 0.03125, %v6685_v60 }
0x5356   : > { %v6687_v61 = vadd.f32 1e-05, %v6686_v16 }
0x5358   : > { %12215 = vrsqrt.f32 %v6687_v61 }
0x5362   : > { %v12216_v62 = vpop.eup %12215 }
0x5363   : > { %v6689_v2 = vmul.f32 %v12216_v62, %v6681_v56 }
0x5365   : > { %v6696_v4 = vmul.f32 %v10369_v63, %v6689_v2 }
0x5367   : > { %v6703_v5 = vadd.f32 %v10370_v3, %v6696_v4 }
0x5369   : > { %v6709_v28 = vpack.c.bf16 %v6703_v5, %v6703_v5 }
0x536b   : > { %11504 = vmatmul.mubr.msk.bf16.vlgmr.msra.gmra.mrb[212].mxu1 %vm832_vm1, %v6709_v28 }
0x536c   : > { %11523 = vmatprep.mubr.msk.bf16.mxu1 %vm12681_vm0, %v12680_v0  ;;  %11520 = vmatpush3.bf16.msra.mxu1 %v12057_v42 }
0x536d   : > { %11521 = vmatprep.subr.bf16.mxu1 %v12680_v0 }
0x5370   : > { %11522 = vmatpush3.bf16.msra.mxu1 %v12058_v43 }
0x5371   : > { %11527 = vmatprep.subr.bf16.mxu1 %v12680_v0 }
0x543e   : > { %v6767_v12 = vpop.f32.mrb[212].mxu1 }
0x543f   : > { %v6768_v10 = vadd.f32 %v10371_v11, %v6767_v12  ;;  %v11505_v13 = vpop.f32.mrb[213].mxu1 }
0x5440   : > { %v6770_v14 = vpop.f32.mrb[214].mxu1 }
0x5441   : > { %v6774_v15 = vmul.f32 0.044715, %v6768_v10  ;;  %v11506_v17 = vpop.f32.mrb[215].mxu1  ;;  %v6773_v24 = vmul.f32 0.5, %v6768_v10 }
0x5443   : > { %v6775_v18 = vmul.f32 %v6774_v15, %v6768_v10 }
0x5445   : > { %v6776_v19 = vmul.f32 %v6775_v18, %v6768_v10 }
0x5447   : > { %v6777_v20 = vadd.f32 %v6776_v19, %v6768_v10 }
0x5449   : > { %v6778_v22 = vmul.f32 0.7978846, %v6777_v20 }
0x544b   : > { %12217 = vtanh.f32 %v6778_v22 }
0x5455   : > { %v12218_v23 = vpop.eup %12217 }
0x5456   : > { %v6780_v25 = vadd.f32 1.0, %v12218_v23 }
0x5458   : > { %v6781_v27 = vmul.f32 %v6780_v25, %v6773_v24 }
0x545a   : > { %v6791_v29 = vpack.c.bf16 %v6781_v27, %v6781_v27 }
0x545c   : > { %11516 = vmatmul.mubr.msk.bf16.vlgmr.msra.gmra.mrb[204].mxu0 %vm3776_vm9, %v6791_v29 }
0x545d   : > { %11535 = vmatprep.mubr.msk.bf16.mxu0 %vm12681_vm0, %v12680_v0 }
0x552f   : > { %v6861_v31 = vpop.f32.mrb[204].mxu0 }
0x5530   : > { %v6862_v32 = vadd.f32 %v10383_v30, %v6861_v31  ;;  %v11517_v33 = vpop.f32.mrb[205].mxu0 }
0x5531   : > { %v6864_v34 = vpop.f32.mrb[206].mxu0 }
0x5532   : > { %v6867_v55 = vadd.f32 %v6862_v32, %v6703_v5  ;;  %v11518_v9 = vpop.f32.mrb[207].mxu0 }
0x5534   : > { %v6872_v26 = vsel %vm832_vm1, %v6867_v55, 0.0 }
0x5535   : > { %6873 = vadd.xlane.f32.xlu1 %v6872_v26 }
0x55c2   : > { %v6874_v37 = vpop.xlane.xlu1 %6873 }
0x55c3   : > { %v6875_v38 = vmul.f32 0.03125, %v6874_v37 }
0x55c5   : > { %v6876_v39 = vsub.f32 %v6867_v55, %v6875_v38 }
0x55c7   : > { %v6877_v40 = vmul.f32 %v6876_v39, %v6876_v39 }
0x55c9   : > { %v6878_v41 = vsel %vm832_vm1, %v6877_v40, 0.0 }
0x55ca   : > { %6879 = vadd.xlane.f32.xlu1 %v6878_v41 }
0x5657   : > { %v6880_v35 = vpop.xlane.xlu1 %6879 }
0x5658   : > { %v6881_v45 = vmul.f32 0.03125, %v6880_v35 }
0x565a   : > { %v6882_v46 = vadd.f32 1e-05, %v6881_v45 }
0x565c   : > { %12219 = vrsqrt.f32 %v6882_v46 }
0x5666   : > { %v12220_v47 = vpop.eup %12219 }
0x5667   : > { %v6884_v49 = vmul.f32 %v12220_v47, %v6876_v39  ;;  %v10401_v39 = vld [vmem:[%s14863_s18 + $0x20] sm:$0xf] }
0x5668   : > { %v10409_v40 = vcombine.low %v10401_v39, %v10401_v39  ;;  %v7251_v41 = vsel %vm1113_vm6, %v10401_v39, 0 }
0x5669   : > { %v6891_v51 = vmul.f32 %v10391_v48, %v6884_v49 }
0x566a   : > { %v7200_v42 = vrot.slane %v10409_v40, 2 }
0x566b   : > { %v14165_v52 = vadd.f32 %v10392_v50, %v6891_v51 }
0x566c   : > { %v7205_v43 = vsel %vm1113_vm6, %v7200_v42, 0 }
0x566d   : > { %v6904_v53 = vpack.c.bf16 %v14165_v52, %v14165_v52 }
0x566f   : > { %11524 = vmatmul.mubr.msk.bf16.vlgmr.msra.gmra.mrb[216].mxu1 %vm832_vm1, %v6904_v53 }
0x5670   : > { %11529 = vmatprep.mubr.msk.bf16.mxu1 %vm12681_vm0, %v12680_v0 }
0x5742   : > { %v6962_v56 = vpop.f32.mrb[216].mxu1 }
0x5743   : > { %v6963_v57 = vadd.f32 %v10397_v54, %v6962_v56  ;;  %v11525_v58 = vpop.f32.mrb[217].mxu1 }
0x5744   : > { %v6965_v36 = vpop.f32.mrb[218].mxu1 }
0x5745   : > { %v14172_v59 = vpack.c.bf16 %v6963_v57, %v6963_v57  ;;  %v11526_v60 = vpop.f32.mrb[219].mxu1 }
0x5747   : > { %7088 = vrot.lane.b32.xlu0 %v14172_v59, %s14870_s21  ;;  %6977 = vrot.lane.b32.xlu1 %v14172_v59, %s14872_s4 }
0x574b   : > { %7086 = vrot.lane.b32.xlu0 %v14172_v59, %s14869_s29 }
0x57b9   : > { %v6978_v16 = vpop.permute.xlu1 %6977  ;;  %v7089_v62 = vpop.permute.xlu0 %7088 }
0x57ba   : > { %v6983_v61 = vsel %vm885_vm2, %v6978_v16, 0  ;;  %v7094_v63 = vsel %vm885_vm2, %v7089_v62, 0 }
0x57bb   : > { %11528 = vmatpush3.bf16.xpose.msra.mxu1 %v6983_v61 }
0x57bc   : > { %11539 = vmatprep.subr.bf16.mxu1 %v12680_v0 }
0x57bd   : > { %v7087_v2 = vpop.permute.xlu0 %7086 }
0x57c2   : > { %11530 = vmatmul.mubr.msk.bf16.vlgmr.msra.gmra.mrb[220].mxu1 %vm885_vm2, %v14172_v59 }
0x57c3   : > { %11540 = vmatpush3.bf16.xpose.msra.mxu1 %v7094_v63  ;;  %11541 = vmatprep.mubr.msk.bf16.mxu1 %vm12681_vm0, %v12680_v0 }
0x57c4   : > { %11551 = vmatprep.subr.bf16.mxu1 %v12680_v0 }
0x57ca   : > { %11542 = vmatmul.mubr.msk.bf16.vlgmr.msra.gmra.mrb[224].mxu1 %vm885_vm2, %v7087_v2 }
0x57cb   : > { %11553 = vmatprep.mubr.msk.bf16.mxu1 %vm12681_vm0, %v12680_v0  ;;  %11552 = vmatpush3.bf16.msra.mxu1 %v7205_v43 }
0x57cc   : > { %11563 = vmatprep.subr.bf16.mxu1 %v12680_v0 }
0x5895   : > { %v7019_v3 = vpop.f32.mrb[220].mxu1 }
0x5896   : > { %v7020_v4 = vadd.f32 %v7019_v3, %v13204_v21  ;;  %v11531_v5 = vpop.f32.mrb[221].mxu1 }
0x5897   : > { %v7022_v28 = vpop.f32.mrb[222].mxu1 }
0x5898   : > { %v11532_v6 = vpop.f32.mrb[223].mxu1  ;;  %v7025_v1 = vsel %vm932_vm4, %v7020_v4, -inf }
0x5899   : > { %7026 = vmax.xlane.f32.xlu0 %v7025_v1 }
0x589d   : > { %v7130_v7 = vpop.f32.mrb[224].mxu1 }
0x589e   : > { %v7131_v8 = vadd.f32 %v7130_v7, %v13204_v21  ;;  %v11543_v11 = vpop.f32.mrb[225].mxu1 }
0x589f   : > { %v7133_v12 = vpop.f32.mrb[226].mxu1 }
0x58a0   : > { %v11544_v10 = vpop.f32.mrb[227].mxu1  ;;  %v7136_v13 = vsel %vm932_vm4, %v7131_v8, -inf }
0x58a1   : > { %7137 = vmax.xlane.f32.xlu1 %v7136_v13 }
0x58b2   : > { %7148 = vrot.lane.b32.xlu1 %v14172_v59, %s14886_s27 }
0x58b6   : > { %7295 = vrot.lane.b32.xlu1 %v14172_v59, %s14874_s30 }
0x5926   : > { %v7027_v14 = vpop.xlane.xlu0 %7026 }
0x5927   : > { %v7028_v15 = vsub.f32 %v7020_v4, %v7027_v14 }
0x5929   : > { %v7029_v17 = vmul.f32 1.442695, %v7028_v15 }
0x592b   : > { %12221 = vpow2.f32 %v7029_v17 }
0x592e   : > { %v7138_v18 = vpop.xlane.xlu1 %7137 }
0x592f   : > { %v7139_v19 = vsub.f32 %v7131_v8, %v7138_v18 }
0x5931   : > { %v7140_v20 = vmul.f32 1.442695, %v7139_v19 }
0x5932   : > { %v7149_v34 = vpop.permute.xlu1 %7148 }
0x5933   : > { %12223 = vpow2.f32 %v7140_v20  ;;  %v7154_v9 = vsel %vm950_vm5, %v7149_v34, 0 }
0x5935   : > { %v12222_v22 = vpop.eup %12221 }
0x5936   : > { %v7031_v23 = vsel %vm932_vm4, %v12222_v22, 0.0  ;;  %v7296_v49 = vpop.permute.xlu1 %7295 }
0x5937   : > { %7032 = vadd.xlane.f32.xlu0 %v7031_v23  ;;  %v7301_v56 = vsel %vm885_vm2, %v7296_v49, 0 }
0x593d   : > { %v12224_v24 = vpop.eup %12223 }
0x593e   : > { %v7142_v25 = vsel %vm932_vm4, %v12224_v24, 0.0 }
0x593f   : > { %7143 = vadd.xlane.f32.xlu0 %v7142_v25 }
0x5955   : > { %7037 = vrot.lane.b32.xlu0 %v14172_v59, %s14887_s1  ;;  %s14898_s1 = smov 36  }
0x5959   : > { %7293 = vrot.lane.b32.xlu0 %v14172_v59, %s14871_s14 }
0x59c4   : > { %v7033_v27 = vpop.xlane.xlu0 %7032 }
0x59c5   : > { %12225 = vrcp.f32 %v7033_v27  ;;  %v10402_v27 = vld [vmem:[%s14863_s18 + $0x24] sm:$0xf] }
0x59cc   : > { %v7144_v29 = vpop.xlane.xlu0 %7143 }
0x59cd   : > { %12227 = vrcp.f32 %v7144_v29  ;;  %v7408_v29 = vsel %vm1113_vm6, %v10402_v27, 0 }
0x59cf   : > { %v12226_v30 = vpop.eup %12225 }
0x59d0   : > { %v7035_v31 = vmul.f32 %v12226_v30, %v12222_v22  ;;  %v7038_v32 = vpop.permute.xlu0 %7037 }
0x59d1   : > { %v7043_v33 = vsel %vm950_vm5, %v7038_v32, 0 }
0x59d2   : > { %11534 = vmatpush3.bf16.msra.mxu0 %v7043_v33  ;;  %v7036_v55 = vpack.c.bf16 %v7035_v31, %v7035_v31 }
0x59d3   : > { %11545 = vmatprep.subr.bf16.mxu0 %v12680_v0 }
0x59d4   : > { %v7294_v58 = vpop.permute.xlu0 %7293 }
0x59d5   : > { %11536 = vmatmul.mubr.msk.bf16.vlgmr.msra.gmra.mrb[208].mxu0 %vm932_vm4, %v7036_v55 }
0x59d6   : > { %11546 = vmatpush3.bf16.msra.mxu0 %v7154_v9  ;;  %11547 = vmatprep.mubr.msk.bf16.mxu0 %vm12681_vm0, %v12680_v0 }
0x59d7   : > { %v12228_v26 = vpop.eup %12227  ;;  %11557 = vmatprep.subr.bf16.mxu0 %v12680_v0 }
0x59d8   : > { %v7146_v37 = vmul.f32 %v12228_v26, %v12224_v24 }
0x59da   : > { %v7147_v38 = vpack.c.bf16 %v7146_v37, %v7146_v37 }
0x59dd   : > { %11548 = vmatmul.mubr.msk.bf16.vlgmr.msra.gmra.mrb[212].mxu0 %vm932_vm4, %v7147_v38 }
0x59de   : > { %11559 = vmatprep.mubr.msk.bf16.mxu0 %vm12681_vm0, %v12680_v0  ;;  %11558 = vmatpush3.bf16.msra.mxu0 %v7251_v41 }
0x59df   : > { %11569 = vmatprep.subr.bf16.mxu0 %v12680_v0 }
0x5aa8   : > { %v7079_v35 = vpop.f32.mrb[208].mxu0 }
0x5aa9   : > { %v7085_v45 = vpack.c.bf16 %v7079_v35, %v7079_v35  ;;  %v11537_v46 = vpop.f32.mrb[209].mxu0 }
0x5aaa   : > { %v7082_v47 = vpop.f32.mrb[210].mxu0 }
0x5aab   : > { %v11538_v48 = vpop.f32.mrb[211].mxu0  ;;  %11560 = vmatmul.mubr.msk.bf16.vlgmr.msra.gmra.mrb[216].mxu0 %vm885_vm2, %v7085_v45 }
0x5aac   : > { %11571 = vmatprep.mubr.msk.bf16.mxu0 %vm12681_vm0, %v12680_v0 }
0x5ab0   : > { %v7190_v50 = vpop.f32.mrb[212].mxu0 }
0x5ab1   : > { %v7196_v51 = vpack.c.bf16 %v7190_v50, %v7190_v50  ;;  %v11549_v53 = vpop.f32.mrb[213].mxu0 }
0x5ab2   : > { %v7193_v54 = vpop.f32.mrb[214].mxu0 }
0x5ab3   : > { %v11550_v57 = vpop.f32.mrb[215].mxu0  ;;  %11554 = vmatmul.mubr.msk.bf16.vlgmr.msra.gmra.mrb[228].mxu1 %vm885_vm2, %v7196_v51 }
0x5ab4   : > { %11564 = vmatpush3.bf16.xpose.msra.mxu1 %v7301_v56  ;;  %11565 = vmatprep.mubr.msk.bf16.mxu1 %vm12681_vm0, %v12680_v0 }
0x5ab5   : > { %11575 = vmatprep.subr.bf16.mxu1 %v12680_v0 }
0x5abb   : > { %11566 = vmatmul.mubr.msk.bf16.vlgmr.msra.gmra.mrb[232].mxu1 %vm885_vm2, %v7294_v58 }
0x5abc   : > { %11577 = vmatprep.mubr.msk.bf16.mxu1 %vm12681_vm0, %v12680_v0  ;;  %11576 = vmatpush3.bf16.msra.mxu1 %v7408_v29 }
0x5abd   : > { %11587 = vmatprep.subr.bf16.mxu1 %v12680_v0 }
0x5b7e   : > { %v7287_v36 = vpop.f32.mrb[216].mxu0 }
0x5b7f   : > { %v11561_v60 = vpop.f32.mrb[217].mxu0 }
0x5b80   : > { %v7290_v16 = vpop.f32.mrb[218].mxu0 }
0x5b81   : > { %v11562_v61 = vpop.f32.mrb[219].mxu0  ;;  %v10417_v16 = vcombine.low %v10402_v27, %v10402_v27 }
0x5b83   : > { %v7565_v61 = vrot.slane %v10417_v16, 2 }
0x5b86   : > { %v7241_v62 = vpop.f32.mrb[228].mxu1 }
0x5b87   : > { %v14233_v63 = vadd.f32 %v7287_v36, %v7241_v62  ;;  %v11555_v2 = vpop.f32.mrb[229].mxu1  ;;  %v7570_v62 = vsel %vm1113_vm6, %v7565_v61, 0 }
0x5b88   : > { %v7244_v3 = vpop.f32.mrb[230].mxu1 }
0x5b89   : > { %v11556_v4 = vpop.f32.mrb[231].mxu1 }
0x5b8e   : > { %v7337_v5 = vpop.f32.mrb[232].mxu1 }
0x5b8f   : > { %v7338_v28 = vadd.f32 %v7337_v5, %v13204_v21  ;;  %v11567_v6 = vpop.f32.mrb[233].mxu1 }
0x5b90   : > { %v7340_v1 = vpop.f32.mrb[234].mxu1 }
0x5b91   : > { %v11568_v7 = vpop.f32.mrb[235].mxu1  ;;  %v7343_v8 = vsel %vm932_vm4, %v7338_v28, -inf }
0x5b92   : > { %7344 = vmax.xlane.f32.xlu1 %v7343_v8 }
0x5ba3   : > { %7453 = vrot.lane.b32.xlu1 %v14172_v59, %s14875_s17 }
0x5ba7   : > { %7451 = vrot.lane.b32.xlu1 %v14172_v59, %s14873_s19 }
0x5c1f   : > { %v7345_v11 = vpop.xlane.xlu1 %7344 }
0x5c20   : > { %v7346_v12 = vsub.f32 %v7338_v28, %v7345_v11 }
0x5c22   : > { %v7347_v10 = vmul.f32 1.442695, %v7346_v12 }
0x5c23   : > { %v7454_v22 = vpop.permute.xlu1 %7453 }
0x5c24   : > { %12229 = vpow2.f32 %v7347_v10  ;;  %v7459_v24 = vsel %vm885_vm2, %v7454_v22, 0 }
0x5c27   : > { %v7452_v25 = vpop.permute.xlu1 %7451 }
0x5c2e   : > { %v12230_v13 = vpop.eup %12229 }
0x5c2f   : > { %v7349_v14 = vsel %vm932_vm4, %v12230_v13, 0.0 }
0x5c30   : > { %7350 = vadd.xlane.f32.xlu0 %v7349_v14 }
0x5c46   : > { %7355 = vrot.lane.b32.xlu0 %v14172_v59, %s14888_s8  ;;  %s14904_s8 = sld [smem:[#allocation55_spill]] }
0x5cbd   : > { %v7351_v15 = vpop.xlane.xlu0 %7350 }
0x5cbe   : > { %12231 = vrcp.f32 %v7351_v15 }
0x5cc1   : > { %v7356_v17 = vpop.permute.xlu0 %7355 }
0x5cc2   : > { %v7361_v18 = vsel %vm950_vm5, %v7356_v17, 0 }
0x5cc3   : > { %11570 = vmatpush3.bf16.msra.mxu0 %v7361_v18 }
0x5cc4   : > { %11581 = vmatprep.subr.bf16.mxu0 %v12680_v0 }
0x5cc8   : > { %v12232_v19 = vpop.eup %12231 }
0x5cc9   : > { %v7353_v20 = vmul.f32 %v12232_v19, %v12230_v13 }
0x5ccb   : > { %v7354_v23 = vpack.c.bf16 %v7353_v20, %v7353_v20 }
0x5ccd   : > { %11572 = vmatmul.mubr.msk.bf16.vlgmr.msra.gmra.mrb[220].mxu0 %vm932_vm4, %v7354_v23 }
0x5cce   : > { %11582 = vmatpush3.bf16.xpose.msra.mxu0 %v7459_v24  ;;  %11583 = vmatprep.mubr.msk.bf16.mxu0 %vm12681_vm0, %v12680_v0 }
0x5ccf   : > { %11593 = vmatprep.subr.bf16.mxu0 %v12680_v0 }
0x5cd5   : > { %11584 = vmatmul.mubr.msk.bf16.vlgmr.msra.gmra.mrb[224].mxu0 %vm885_vm2, %v7452_v25 }
0x5cd6   : > { %11595 = vmatprep.mubr.msk.bf16.mxu0 %vm12681_vm0, %v12680_v0  ;;  %11594 = vmatpush3.bf16.msra.mxu0 %v7570_v62 }
0x5cd7   : > { %11605 = vmatprep.subr.bf16.mxu0 %v12680_v0 }
0x5da0   : > { %v7397_v30 = vpop.f32.mrb[220].mxu0 }
0x5da1   : > { %v7403_v31 = vpack.c.bf16 %v7397_v30, %v7397_v30  ;;  %v11573_v32 = vpop.f32.mrb[221].mxu0 }
0x5da2   : > { %v7400_v33 = vpop.f32.mrb[222].mxu0 }
0x5da3   : > { %v11574_v34 = vpop.f32.mrb[223].mxu0  ;;  %11578 = vmatmul.mubr.msk.bf16.vlgmr.msra.gmra.mrb[236].mxu1 %vm885_vm2, %v7403_v31 }
0x5da4   : > { %11589 = vmatprep.mubr.msk.bf16.mxu1 %vm12681_vm0, %v12680_v0  ;;  %v10403_v34 = vld [vmem:[%s14863_s18 + $0x28] sm:$0xf] }
0x5da8   : > { %v7495_v55 = vpop.f32.mrb[224].mxu0 }
0x5da9   : > { %v7496_v9 = vadd.f32 %v7495_v55, %v13204_v21  ;;  %v11585_v26 = vpop.f32.mrb[225].mxu0  ;;  %v7728_v55 = vsel %vm1113_vm6, %v10403_v34, 0 }
0x5daa   : > { %v7498_v37 = vpop.f32.mrb[226].mxu0 }
0x5dab   : > { %v11586_v38 = vpop.f32.mrb[227].mxu0  ;;  %v7501_v39 = vsel %vm932_vm4, %v7496_v9, -inf }
0x5dac   : > { %7502 = vmax.xlane.f32.xlu0 %v7501_v39 }
0x5dc2   : > { %7513 = vrot.lane.b32.xlu0 %v14172_v59, %s14894_s25  ;;  %s14899_s25 = sld [smem:[#allocation45_spill]] }
0x5dc6   : > { %7613 = vrot.lane.b32.xlu0 %v14172_v59, %s14876_s5 }
0x5e39   : > { %v7503_v40 = vpop.xlane.xlu0 %7502 }
0x5e3a   : > { %v7504_v41 = vsub.f32 %v7496_v9, %v7503_v40 }
0x5e3c   : > { %v7505_v42 = vmul.f32 1.442695, %v7504_v41 }
0x5e3d   : > { %v7514_v43 = vpop.permute.xlu0 %7513 }
0x5e3e   : > { %12233 = vpow2.f32 %v7505_v42  ;;  %v7519_v35 = vsel %vm950_vm5, %v7514_v43, 0 }
0x5e3f   : > { %11588 = vmatpush3.bf16.msra.mxu1 %v7519_v35 }
0x5e40   : > { %11599 = vmatprep.subr.bf16.mxu1 %v12680_v0 }
0x5e41   : > { %v7614_v60 = vpop.permute.xlu0 %7613 }
0x5e48   : > { %v12234_v45 = vpop.eup %12233 }
0x5e49   : > { %v7507_v46 = vsel %vm932_vm4, %v12234_v45, 0.0 }
0x5e4a   : > { %7508 = vadd.xlane.f32.xlu1 %v7507_v46 }
0x5e5b   : > { %7615 = vrot.lane.b32.xlu1 %v14172_v59, %s14878_s10 }
0x5e76   : > { %v7444_v47 = vpop.f32.mrb[236].mxu1 }
0x5e77   : > { %v7450_v48 = vadd.f32 %v7444_v47, %v14233_v63  ;;  %v11579_v49 = vpop.f32.mrb[237].mxu1 }
0x5e78   : > { %v7447_v50 = vpop.f32.mrb[238].mxu1 }
0x5e79   : > { %v11580_v51 = vpop.f32.mrb[239].mxu1 }
0x5ed7   : > { %v7509_v53 = vpop.xlane.xlu1 %7508 }
0x5ed8   : > { %12235 = vrcp.f32 %v7509_v53 }
0x5edb   : > { %v7616_v57 = vpop.permute.xlu1 %7615 }
0x5edc   : > { %v7621_v36 = vsel %vm885_vm2, %v7616_v57, 0 }
0x5ee2   : > { %v12236_v54 = vpop.eup %12235 }
0x5ee3   : > { %v7511_v56 = vmul.f32 %v12236_v54, %v12234_v45 }
0x5ee5   : > { %v7512_v58 = vpack.c.bf16 %v7511_v56, %v7511_v56 }
0x5ee7   : > { %11590 = vmatmul.mubr.msk.bf16.vlgmr.msra.gmra.mrb[240].mxu1 %vm932_vm4, %v7512_v58 }
0x5ee8   : > { %11600 = vmatpush3.bf16.xpose.msra.mxu1 %v7621_v36  ;;  %11601 = vmatprep.mubr.msk.bf16.mxu1 %vm12681_vm0, %v12680_v0 }
0x5ee9   : > { %11611 = vmatprep.subr.bf16.mxu1 %v12680_v0 }
0x5eef   : > { %11602 = vmatmul.mubr.msk.bf16.vlgmr.msra.gmra.mrb[244].mxu1 %vm885_vm2, %v7614_v60 }
0x5ef0   : > { %11613 = vmatprep.mubr.msk.bf16.mxu1 %vm12681_vm0, %v12680_v0  ;;  %11612 = vmatpush3.bf16.msra.mxu1 %v7728_v55 }
0x5ef1   : > { %11623 = vmatprep.subr.bf16.mxu1 %v12680_v0 }
0x5fba   : > { %v7555_v63 = vpop.f32.mrb[240].mxu1 }
0x5fbb   : > { %v7561_v2 = vpack.c.bf16 %v7555_v63, %v7555_v63  ;;  %v11591_v3 = vpop.f32.mrb[241].mxu1 }
0x5fbc   : > { %v7558_v4 = vpop.f32.mrb[242].mxu1 }
0x5fbd   : > { %v11592_v5 = vpop.f32.mrb[243].mxu1  ;;  %11596 = vmatmul.mubr.msk.bf16.vlgmr.msra.gmra.mrb[228].mxu0 %vm885_vm2, %v7561_v2  ;;  %v10424_v4 = vcombine.low %v10403_v34, %v10403_v34 }
0x5fbe   : > { %11607 = vmatprep.mubr.msk.bf16.mxu0 %vm12681_vm0, %v12680_v0 }
0x5fbf   : > { %v7885_v5 = vrot.slane %v10424_v4, 2 }
0x5fc2   : > { %v7657_v28 = vpop.f32.mrb[244].mxu1 }
0x5fc3   : > { %v7658_v6 = vadd.f32 %v7657_v28, %v13204_v21  ;;  %v11603_v1 = vpop.f32.mrb[245].mxu1  ;;  %v7890_v28 = vsel %vm1113_vm6, %v7885_v5, 0 }
0x5fc4   : > { %v7660_v7 = vpop.f32.mrb[246].mxu1 }
0x5fc5   : > { %v11604_v8 = vpop.f32.mrb[247].mxu1  ;;  %v7663_v11 = vsel %vm932_vm4, %v7658_v6, -inf }
0x5fc6   : > { %7664 = vmax.xlane.f32.xlu1 %v7663_v11 }
0x5fd7   : > { %7773 = vrot.lane.b32.xlu1 %v14172_v59, %s14879_s11 }
0x5fdb   : > { %7771 = vrot.lane.b32.xlu1 %v14172_v59, %s14877_s9 }
0x6053   : > { %v7665_v12 = vpop.xlane.xlu1 %7664 }
0x6054   : > { %v7666_v10 = vsub.f32 %v7658_v6, %v7665_v12 }
0x6056   : > { %v7667_v13 = vmul.f32 1.442695, %v7666_v10 }
0x6057   : > { %v7774_v30 = vpop.permute.xlu1 %7773 }
0x6058   : > { %12237 = vpow2.f32 %v7667_v13  ;;  %v7779_v32 = vsel %vm885_vm2, %v7774_v30, 0 }
0x605b   : > { %v7772_v33 = vpop.permute.xlu1 %7771 }
0x6062   : > { %v12238_v14 = vpop.eup %12237 }
0x6063   : > { %v7669_v15 = vsel %vm932_vm4, %v12238_v14, 0.0 }
0x6064   : > { %7670 = vadd.xlane.f32.xlu0 %v7669_v15 }
0x607a   : > { %7675 = vrot.lane.b32.xlu0 %v14172_v59, %s14895_s7 }
0x6090   : > { %v7606_v17 = vpop.f32.mrb[228].mxu0 }
0x6091   : > { %v7612_v18 = vadd.f32 %v7606_v17, %v7450_v48  ;;  %v11597_v19 = vpop.f32.mrb[229].mxu0 }
0x6092   : > { %v7609_v20 = vpop.f32.mrb[230].mxu0 }
0x6093   : > { %v11598_v22 = vpop.f32.mrb[231].mxu0 }
0x60f1   : > { %v7671_v23 = vpop.xlane.xlu0 %7670 }
0x60f2   : > { %12239 = vrcp.f32 %v7671_v23 }
0x60f5   : > { %v7676_v24 = vpop.permute.xlu0 %7675 }
0x60f6   : > { %v7681_v25 = vsel %vm950_vm5, %v7676_v24, 0 }
0x60f7   : > { %11606 = vmatpush3.bf16.msra.mxu0 %v7681_v25 }
0x60f8   : > { %11617 = vmatprep.subr.bf16.mxu0 %v12680_v0 }
0x60fc   : > { %v12240_v27 = vpop.eup %12239 }
0x60fd   : > { %v7673_v29 = vmul.f32 %v12240_v27, %v12238_v14 }
0x60ff   : > { %v7674_v31 = vpack.c.bf16 %v7673_v29, %v7673_v29 }
0x6101   : > { %11608 = vmatmul.mubr.msk.bf16.vlgmr.msra.gmra.mrb[232].mxu0 %vm932_vm4, %v7674_v31 }
0x6102   : > { %11618 = vmatpush3.bf16.xpose.msra.mxu0 %v7779_v32  ;;  %11619 = vmatprep.mubr.msk.bf16.mxu0 %vm12681_vm0, %v12680_v0 }
0x6103   : > { %11629 = vmatprep.subr.bf16.mxu0 %v12680_v0 }
0x6109   : > { %11620 = vmatmul.mubr.msk.bf16.vlgmr.msra.gmra.mrb[236].mxu0 %vm885_vm2, %v7772_v33 }
0x610a   : > { %11631 = vmatprep.mubr.msk.bf16.mxu0 %vm12681_vm0, %v12680_v0  ;;  %11630 = vmatpush3.bf16.msra.mxu0 %v7890_v28 }
0x610b   : > { %11641 = vmatprep.subr.bf16.mxu0 %v12680_v0 }
0x61d4   : > { %v7717_v9 = vpop.f32.mrb[232].mxu0 }
0x61d5   : > { %v7723_v26 = vpack.c.bf16 %v7717_v9, %v7717_v9  ;;  %v11609_v37 = vpop.f32.mrb[233].mxu0 }
0x61d6   : > { %v7720_v38 = vpop.f32.mrb[234].mxu0 }
0x61d7   : > { %v11610_v39 = vpop.f32.mrb[235].mxu0  ;;  %11614 = vmatmul.mubr.msk.bf16.vlgmr.msra.gmra.mrb[248].mxu1 %vm885_vm2, %v7723_v26 }
0x61d8   : > { %11625 = vmatprep.mubr.msk.bf16.mxu1 %vm12681_vm0, %v12680_v0  ;;  %v10404_v39 = vld [vmem:[%s14863_s18 + $0x2c] sm:$0xf] }
0x61d9   : > { %v10431_v5 = vcombine.low %v10404_v39, %v10404_v39 }
0x61db   : > { %v8205_v28 = vrot.slane %v10431_v5, 2 }
0x61dc   : > { %v7815_v40 = vpop.f32.mrb[236].mxu0 }
0x61dd   : > { %v7816_v41 = vadd.f32 %v7815_v40, %v13204_v21  ;;  %v11621_v42 = vpop.f32.mrb[237].mxu0  ;;  %v8048_v40 = vsel %vm1113_vm6, %v10404_v39, 0 }
0x61de   : > { %v7818_v43 = vpop.f32.mrb[238].mxu0 }
0x61df   : > { %v11622_v35 = vpop.f32.mrb[239].mxu0  ;;  %v7821_v45 = vsel %vm932_vm4, %v7816_v41, -inf }
0x61e0   : > { %7822 = vmax.xlane.f32.xlu0 %v7821_v45 }
0x61f6   : > { %7833 = vrot.lane.b32.xlu0 %v14172_v59, %s14896_s3  ;;  %s14902_s3 = sld [smem:[#allocation36_spill]] }
0x61fa   : > { %7933 = vrot.lane.b32.xlu0 %v14172_v59, %s14880_s12 }
0x626d   : > { %v7823_v46 = vpop.xlane.xlu0 %7822 }
0x626e   : > { %v7824_v47 = vsub.f32 %v7816_v41, %v7823_v46 }
0x6270   : > { %v7825_v48 = vmul.f32 1.442695, %v7824_v47 }
0x6271   : > { %v7834_v49 = vpop.permute.xlu0 %7833 }
0x6272   : > { %12241 = vpow2.f32 %v7825_v48  ;;  %v7839_v50 = vsel %vm950_vm5, %v7834_v49, 0 }
0x6273   : > { %11624 = vmatpush3.bf16.msra.mxu1 %v7839_v50 }
0x6274   : > { %11635 = vmatprep.subr.bf16.mxu1 %v12680_v0 }
0x6275   : > { %v7934_v3 = vpop.permute.xlu0 %7933 }
0x627c   : > { %v12242_v51 = vpop.eup %12241 }
0x627d   : > { %v7827_v53 = vsel %vm932_vm4, %v12242_v51, 0.0 }
0x627e   : > { %7828 = vadd.xlane.f32.xlu1 %v7827_v53 }
0x628f   : > { %7935 = vrot.lane.b32.xlu1 %v14172_v59, %s14882_s15 }
0x62aa   : > { %v7764_v54 = vpop.f32.mrb[248].mxu1 }
0x62ab   : > { %v7770_v56 = vadd.f32 %v7764_v54, %v7612_v18  ;;  %v11615_v57 = vpop.f32.mrb[249].mxu1 }
0x62ac   : > { %v7767_v58 = vpop.f32.mrb[250].mxu1 }
0x62ad   : > { %v11616_v36 = vpop.f32.mrb[251].mxu1 }
0x630b   : > { %v7829_v60 = vpop.xlane.xlu1 %7828 }
0x630c   : > { %12243 = vrcp.f32 %v7829_v60 }
0x630f   : > { %v7936_v62 = vpop.permute.xlu1 %7935 }
0x6310   : > { %v7941_v2 = vsel %vm885_vm2, %v7936_v62, 0 }
0x6316   : > { %v12244_v16 = vpop.eup %12243 }
0x6317   : > { %v7831_v61 = vmul.f32 %v12244_v16, %v12242_v51 }
0x6319   : > { %v7832_v63 = vpack.c.bf16 %v7831_v61, %v7831_v61 }
0x631b   : > { %11626 = vmatmul.mubr.msk.bf16.vlgmr.msra.gmra.mrb[252].mxu1 %vm932_vm4, %v7832_v63 }
0x631c   : > { %11636 = vmatpush3.bf16.xpose.msra.mxu1 %v7941_v2  ;;  %11637 = vmatprep.mubr.msk.bf16.mxu1 %vm12681_vm0, %v12680_v0 }
0x631d   : > { %11647 = vmatprep.subr.bf16.mxu1 %v12680_v0 }
0x6323   : > { %11638 = vmatmul.mubr.msk.bf16.vlgmr.msra.gmra.mrb[0].mxu1 %vm885_vm2, %v7934_v3 }
0x6324   : > { %11649 = vmatprep.mubr.msk.bf16.mxu1 %vm12681_vm0, %v12680_v0  ;;  %11648 = vmatpush3.bf16.msra.mxu1 %v8048_v40 }
0x6325   : > { %11659 = vmatprep.subr.bf16.mxu1 %v12680_v0 }
0x63ee   : > { %v7875_v6 = vpop.f32.mrb[252].mxu1 }
0x63ef   : > { %v7881_v1 = vpack.c.bf16 %v7875_v6, %v7875_v6  ;;  %v11627_v7 = vpop.f32.mrb[253].mxu1  ;;  %v8210_v6 = vsel %vm1113_vm6, %v8205_v28, 0 }
0x63f0   : > { %v7878_v8 = vpop.f32.mrb[254].mxu1 }
0x63f1   : > { %v11628_v11 = vpop.f32.mrb[255].mxu1  ;;  %11632 = vmatmul.mubr.msk.bf16.vlgmr.msra.gmra.mrb[240].mxu0 %vm885_vm2, %v7881_v1 }
0x63f2   : > { %11643 = vmatprep.mubr.msk.bf16.mxu0 %vm12681_vm0, %v12680_v0 }
0x63f6   : > { %v7977_v12 = vpop.f32.mrb[0].mxu1 }
0x63f7   : > { %v7978_v10 = vadd.f32 %v7977_v12, %v13204_v21  ;;  %v11639_v13 = vpop.f32.mrb[1].mxu1 }
0x63f8   : > { %v7980_v14 = vpop.f32.mrb[2].mxu1 }
0x63f9   : > { %v11640_v15 = vpop.f32.mrb[3].mxu1  ;;  %v7983_v17 = vsel %vm932_vm4, %v7978_v10, -inf }
0x63fa   : > { %7984 = vmax.xlane.f32.xlu1 %v7983_v17 }
0x640b   : > { %8093 = vrot.lane.b32.xlu1 %v14172_v59, %s14883_s16 }
0x640f   : > { %8091 = vrot.lane.b32.xlu1 %v14172_v59, %s14881_s13 }
0x6487   : > { %v7985_v18 = vpop.xlane.xlu1 %7984 }
0x6488   : > { %v7986_v19 = vsub.f32 %v7978_v10, %v7985_v18  ;;  %v10433_v10 = vld [vmem:[#allocation7 + $0x2] ss:$0 sm:$0xff] }
0x648a   : > { %v7987_v20 = vmul.f32 1.442695, %v7986_v19 }
0x648b   : > { %v8094_v9 = vpop.permute.xlu1 %8093 }
0x648c   : > { %12245 = vpow2.f32 %v7987_v20  ;;  %v8099_v37 = vsel %vm885_vm2, %v8094_v9, 0  ;;  %v10436_v9 = vld [vmem:[%s14867_s2 + $0x6] ss:$0 sm:$0xff] }
0x648f   : > { %v8092_v38 = vpop.permute.xlu1 %8091 }
0x6496   : > { %v12246_v22 = vpop.eup %12245 }
0x6497   : > { %v7989_v23 = vsel %vm932_vm4, %v12246_v22, 0.0 }
0x6498   : > { %7990 = vadd.xlane.f32.xlu0 %v7989_v23 }
0x64ae   : > { %7995 = vrot.lane.b32.xlu0 %v14172_v59, %s14897_s28  ;;  %s14900_s28 = sld [smem:[#allocation43_spill]] }
0x64c4   : > { %v7926_v24 = vpop.f32.mrb[240].mxu0 }
0x64c5   : > { %v7932_v25 = vadd.f32 %v7926_v24, %v7770_v56  ;;  %v11633_v27 = vpop.f32.mrb[241].mxu0 }
0x64c6   : > { %v7929_v29 = vpop.f32.mrb[242].mxu0 }
0x64c7   : > { %v11634_v30 = vpop.f32.mrb[243].mxu0 }
0x64c8   : > { %v12063_v30 = vld [vmem:[%s14899_s25 + $0x20] sm:$0xff]  }
0x6525   : > { %v7991_v31 = vpop.xlane.xlu0 %7990 }
0x6526   : > { %12247 = vrcp.f32 %v7991_v31  ;;  %v12065_v31 = vld [vmem:[%s14900_s28 + $0x20] sm:$0xff]  }
0x6529   : > { %v7996_v32 = vpop.permute.xlu0 %7995 }
0x652a   : > { %v8001_v33 = vsel %vm950_vm5, %v7996_v32, 0  ;;  %v12066_v32 = vld [vmem:[%s14900_s28 + $0x28] sm:$0xff]  }
0x652b   : > { %11642 = vmatpush3.bf16.msra.mxu0 %v8001_v33 }
0x652c   : > { %11653 = vmatprep.subr.bf16.mxu0 %v12680_v0 }
0x6530   : > { %v12248_v34 = vpop.eup %12247 }
0x6531   : > { %v7993_v55 = vmul.f32 %v12248_v34, %v12246_v22 }
0x6533   : > { %v7994_v26 = vpack.c.bf16 %v7993_v55, %v7993_v55 }
0x6535   : > { %11644 = vmatmul.mubr.msk.bf16.vlgmr.msra.gmra.mrb[244].mxu0 %vm932_vm4, %v7994_v26 }
0x6536   : > { %11654 = vmatpush3.bf16.xpose.msra.mxu0 %v8099_v37  ;;  %11655 = vmatprep.mubr.msk.bf16.mxu0 %vm12681_vm0, %v12680_v0  ;;  %v10437_v37 = vld [vmem:[%s14868_s26 + $0x6] ss:$0 sm:$0xff] }
0x6537   : > { %11665 = vmatprep.subr.bf16.mxu0 %v12680_v0 }
0x653d   : > { %11656 = vmatmul.mubr.msk.bf16.vlgmr.msra.gmra.mrb[248].mxu0 %vm885_vm2, %v8092_v38 }
0x653e   : > { %11667 = vmatprep.mubr.msk.bf16.mxu0 %vm12681_vm0, %v12680_v0  ;;  %11666 = vmatpush3.bf16.msra.mxu0 %v8210_v6 }
0x653f   : > { %11679 = vmatprep.subr.bf16.mxu0 %v12680_v0 }
0x6608   : > { %v8037_v41 = vpop.f32.mrb[244].mxu0 }
0x6609   : > { %v8043_v42 = vpack.c.bf16 %v8037_v41, %v8037_v41  ;;  %v11645_v43 = vpop.f32.mrb[245].mxu0  ;;  %v10450_v41 = vld [vmem:[#allocation10 + $0x2] ss:$0 sm:$0xff] }
0x660a   : > { %v8040_v35 = vpop.f32.mrb[246].mxu0 }
0x660b   : > { %v11646_v45 = vpop.f32.mrb[247].mxu0  ;;  %11650 = vmatmul.mubr.msk.bf16.vlgmr.msra.gmra.mrb[4].mxu1 %vm885_vm2, %v8043_v42 }
0x660c   : > { %11661 = vmatprep.mubr.msk.bf16.mxu1 %vm12681_vm0, %v12680_v0 }
0x6610   : > { %v8135_v46 = vpop.f32.mrb[248].mxu0 }
0x6611   : > { %v8136_v47 = vadd.f32 %v8135_v46, %v13204_v21  ;;  %v11657_v48 = vpop.f32.mrb[249].mxu0 }
0x6612   : > { %v8138_v49 = vpop.f32.mrb[250].mxu0 }
0x6613   : > { %v11658_v50 = vpop.f32.mrb[251].mxu0  ;;  %v8141_v51 = vsel %vm932_vm4, %v8136_v47, -inf }
0x6614   : > { %8142 = vmax.xlane.f32.xlu0 %v8141_v51  ;;  %v10442_v50 = vld [vmem:[#allocation8 + $0x2] ss:$0 sm:$0xff] }
0x662a   : > { %8153 = vrot.lane.b32.xlu0 %v14172_v59, %s14898_s1 }
0x66a1   : > { %v8143_v53 = vpop.xlane.xlu0 %8142 }
0x66a2   : > { %v8144_v54 = vsub.f32 %v8136_v47, %v8143_v53 }
0x66a4   : > { %v8145_v56 = vmul.f32 1.442695, %v8144_v54 }
0x66a5   : > { %v8154_v57 = vpop.permute.xlu0 %8153 }
0x66a6   : > { %12249 = vpow2.f32 %v8145_v56  ;;  %v8159_v58 = vsel %vm950_vm5, %v8154_v57, 0 }
0x66a7   : > { %11660 = vmatpush3.bf16.msra.mxu1 %v8159_v58 }
0x66a8   : > { %11671 = vmatprep.subr.bf16.mxu1 %v12680_v0 }
0x66b0   : > { %v12250_v21 = vpop.eup %12249 }
0x66b1   : > { %v8147_v36 = vsel %vm932_vm4, %v12250_v21, 0.0 }
0x66b2   : > { %8148 = vadd.xlane.f32.xlu1 %v8147_v36 }
0x66de   : > { %v8084_v60 = vpop.f32.mrb[4].mxu1 }
0x66df   : > { %v8090_v16 = vadd.f32 %v8084_v60, %v7932_v25  ;;  %v11651_v61 = vpop.f32.mrb[5].mxu1 }
0x66e0   : > { %v8087_v62 = vpop.f32.mrb[6].mxu1 }
0x66e1   : > { %v11652_v63 = vpop.f32.mrb[7].mxu1 }
0x673f   : > { %v8149_v59 = vpop.xlane.xlu1 %8148 }
0x6740   : > { %12251 = vrcp.f32 %v8149_v59 }
0x674a   : > { %v12252_v2 = vpop.eup %12251 }
0x674b   : > { %v8151_v3 = vmul.f32 %v12252_v2, %v12250_v21 }
0x674d   : > { %v8152_v4 = vpack.c.bf16 %v8151_v3, %v8151_v3 }
0x674f   : > { %11662 = vmatmul.mubr.msk.bf16.vlgmr.msra.gmra.mrb[8].mxu1 %vm932_vm4, %v8152_v4 }
0x6750   : > { %11675 = vmatprep.mubr.msk.bf16.mxu1 %vm12681_vm0, %v12680_v0  ;;  %11672 = vmatpush3.bf16.msra.mxu1 %v12065_v31  ;;  %v8428_v31 = vld [vmem:[#allocation11 + $0x20] sm:$0xf] }
0x6751   : > { %11673 = vmatprep.subr.bf16.mxu1 %v12680_v0 }
0x6754   : > { %11674 = vmatpush3.bf16.msra.mxu1 %v12066_v32  ;;  %v10458_v32 = vcombine.low %v8428_v31, %v8428_v31 }
0x6755   : > { %11687 = vmatprep.subr.bf16.mxu1 %v12680_v0 }
0x6822   : > { %v8195_v1 = vpop.f32.mrb[8].mxu1 }
0x6823   : > { %v8201_v7 = vpack.c.bf16 %v8195_v1, %v8195_v1  ;;  %v11663_v8 = vpop.f32.mrb[9].mxu1 }
0x6824   : > { %v8198_v11 = vpop.f32.mrb[10].mxu1 }
0x6825   : > { %v11664_v12 = vpop.f32.mrb[11].mxu1  ;;  %11668 = vmatmul.mubr.msk.bf16.vlgmr.msra.gmra.mrb[252].mxu0 %vm885_vm2, %v8201_v7 }
0x6826   : > { %11683 = vmatprep.mubr.msk.bf16.mxu0 %vm12681_vm0, %v12680_v0  ;;  %11680 = vmatpush3.bf16.msra.mxu0 %v12063_v30 }
0x6827   : > { %11681 = vmatprep.subr.bf16.mxu0 %v12680_v0 }
0x68f8   : > { %v8246_v13 = vpop.f32.mrb[252].mxu0 }
0x68f9   : > { %v8252_v14 = vadd.f32 %v8246_v13, %v8090_v16  ;;  %v11669_v15 = vpop.f32.mrb[253].mxu0 }
0x68fa   : > { %v8249_v17 = vpop.f32.mrb[254].mxu0 }
0x68fb   : > { %v8259_v18 = vadd.f32 %v10433_v10, %v8252_v14  ;;  %v11670_v19 = vpop.f32.mrb[255].mxu0 }
0x68fd   : > { %v8260_v20 = vadd.f32 %v8259_v18, %v14165_v52  ;;  %v12064_v52 = vld [vmem:[%s14899_s25 + $0x28] sm:$0xff]  }
0x68fe   : > { %11682 = vmatpush3.bf16.msra.mxu0 %v12064_v52 }
0x68ff   : > { %v8265_v22 = vsel %vm832_vm1, %v8260_v20, 0.0  ;;  %11693 = vmatprep.subr.bf16.mxu0 %v12680_v0 }
0x6900   : > { %8266 = vadd.xlane.f32.xlu1 %v8265_v22 }
0x6901   : > { %11684 = vmatmul.mubr.msk.bf16.vlgmr.msra.gmra.mrb[0].mxu0 %vm832_vm1, %v13410_v44 }
0x6902   : > { %11695 = vmatprep.mubr.msk.bf16.mxu0 %vm12681_vm0, %v12680_v0 }
0x698d   : > { %v8267_v23 = vpop.xlane.xlu1 %8266 }
0x698e   : > { %v8268_v24 = vmul.f32 0.03125, %v8267_v23 }
0x6990   : > { %v8269_v25 = vsub.f32 %v8260_v20, %v8268_v24 }
0x6992   : > { %v8270_v27 = vmul.f32 %v8269_v25, %v8269_v25 }
0x6994   : > { %v8271_v29 = vsel %vm832_vm1, %v8270_v27, 0.0 }
0x6995   : > { %8272 = vadd.xlane.f32.xlu1 %v8271_v29 }
0x69d4   : > { %v8420_v42 = vpop.f32.mrb[0].mxu0 }
0x69d5   : > { %v8421_v43 = vadd.f32 %v10450_v41, %v8420_v42  ;;  %v11685_v35 = vpop.f32.mrb[1].mxu0 }
0x69d6   : > { %v8423_v45 = vpop.f32.mrb[2].mxu0 }
0x69d7   : > { %v8424_v46 = vadd.f32 %v10450_v41, %v8423_v45  ;;  %v11686_v47 = vpop.f32.mrb[3].mxu0 }
0x69d9   : > { %v14416_v48 = vpack.c.bf16 %v8424_v46, %v8421_v43 }
0x69db   : > { %8547 = vrot.lane.b32.xlu1 %v14416_v48, %s14869_s29  ;;  %v8440_v49 = vsel %vm885_vm2, %v14416_v48, 0 }
0x6a22   : > { %v8273_v33 = vpop.xlane.xlu1 %8272 }
0x6a23   : > { %v8274_v34 = vmul.f32 0.03125, %v8273_v33  ;;  %v8710_v33 = vsel %vm1113_vm6, %v8428_v31, 0 }
0x6a25   : > { %v8275_v44 = vadd.f32 1e-05, %v8274_v34  ;;  %v8659_v34 = vrot.slane %v10458_v32, 2 }
0x6a27   : > { %12253 = vrsqrt.f32 %v8275_v44  ;;  %v8664_v44 = vsel %vm1113_vm6, %v8659_v34, 0 }
0x6a31   : > { %v12254_v55 = vpop.eup %12253 }
0x6a32   : > { %v8277_v26 = vmul.f32 %v12254_v55, %v8269_v25 }
0x6a34   : > { %v8284_v38 = vmul.f32 %v10436_v9, %v8277_v26 }
0x6a36   : > { %v14409_v39 = vadd.f32 %v10437_v37, %v8284_v38 }
0x6a38   : > { %v8297_v40 = vpack.c.bf16 %v14409_v39, %v14409_v39 }
0x6a3a   : > { %11676 = vmatmul.mubr.msk.bf16.vlgmr.msra.gmra.mrb[12].mxu1 %vm832_vm1, %v8297_v40 }
0x6a3b   : > { %11689 = vmatprep.mubr.msk.bf16.mxu1 %vm12681_vm0, %v12680_v0  ;;  %11688 = vmatpush3.bf16.xpose.msra.mxu1 %v8440_v49 }
0x6a3c   : > { %11699 = vmatprep.subr.bf16.mxu1 %v12680_v0 }
0x6a4d   : > { %v8548_v53 = vpop.permute.xlu1 %8547 }
0x6a4e   : > { %v8553_v36 = vsel %vm885_vm2, %v8548_v53, 0 }
0x6b0d   : > { %v8355_v51 = vpop.f32.mrb[12].mxu1 }
0x6b0e   : > { %v8356_v54 = vadd.f32 %v10442_v50, %v8355_v51  ;;  %v11677_v56 = vpop.f32.mrb[13].mxu1 }
0x6b0f   : > { %v8358_v57 = vpop.f32.mrb[14].mxu1 }
0x6b10   : > { %v14423_v58 = vpack.c.bf16 %v8356_v54, %v8356_v54  ;;  %v11678_v21 = vpop.f32.mrb[15].mxu1 }
0x6b12   : > { %8545 = vrot.lane.b32.xlu0 %v14423_v58, %s14869_s29  ;;  %11690 = vmatmul.mubr.msk.bf16.vlgmr.msra.gmra.mrb[16].mxu1 %vm885_vm2, %v14423_v58 }
0x6b13   : > { %11700 = vmatpush3.bf16.xpose.msra.mxu1 %v8553_v36  ;;  %11701 = vmatprep.mubr.msk.bf16.mxu1 %vm12681_vm0, %v12680_v0 }
0x6b14   : > { %11711 = vmatprep.subr.bf16.mxu1 %v12680_v0 }
0x6b84   : > { %v8546_v60 = vpop.permute.xlu0 %8545 }
0x6b85   : > { %11702 = vmatmul.mubr.msk.bf16.vlgmr.msra.gmra.mrb[20].mxu1 %vm885_vm2, %v8546_v60 }
0x6b86   : > { %11713 = vmatprep.mubr.msk.bf16.mxu1 %vm12681_vm0, %v12680_v0  ;;  %11712 = vmatpush3.bf16.msra.mxu1 %v8664_v44 }
0x6b87   : > { %11723 = vmatprep.subr.bf16.mxu1 %v12680_v0 }
0x6be5   : > { %v8476_v16 = vpop.f32.mrb[16].mxu1 }
0x6be6   : > { %v11691_v61 = vpop.f32.mrb[17].mxu1  ;;  %v8482_v62 = vsel %vm2389_vm7, %v8476_v16, -inf }
0x6be7   : > { %8483 = vmax.xlane.f32.xlu0 %v8482_v62  ;;  %v8479_v63 = vpop.f32.mrb[18].mxu1 }
0x6be8   : > { %v11692_v59 = vpop.f32.mrb[19].mxu1 }
0x6c58   : > { %v8589_v2 = vpop.f32.mrb[20].mxu1 }
0x6c59   : > { %v11703_v3 = vpop.f32.mrb[21].mxu1  ;;  %v8595_v4 = vsel %vm2389_vm7, %v8589_v2, -inf }
0x6c5a   : > { %8596 = vmax.xlane.f32.xlu1 %v8595_v4  ;;  %v8592_v5 = vpop.f32.mrb[22].mxu1 }
0x6c5b   : > { %v11704_v28 = vpop.f32.mrb[23].mxu1 }
0x6c6b   : > { %8607 = vrot.lane.b32.xlu1 %v14416_v48, %s14870_s21  ;;  %s9977_s21 = scalar_lea.sflag [#allocation4], %s14902_s3 }
0x6c6f   : > { %8754 = vrot.lane.b32.xlu1 %v14416_v48, %s14871_s14 }
0x6c74   : > { %v8484_v6 = vpop.xlane.xlu0 %8483 }
0x6c75   : > { %v8485_v1 = vsub.f32 %v8476_v16, %v8484_v6 }
0x6c77   : > { %v8486_v7 = vmul.f32 1.442695, %v8485_v1 }
0x6c79   : > { %12255 = vpow2.f32 %v8486_v7 }
0x6c83   : > { %v12256_v8 = vpop.eup %12255 }
0x6c84   : > { %v8488_v11 = vsel %vm2389_vm7, %v12256_v8, 0.0 }
0x6c85   : > { %8489 = vadd.xlane.f32.xlu0 %v8488_v11 }
0x6ce7   : > { %v8597_v12 = vpop.xlane.xlu1 %8596 }
0x6ce8   : > { %v8598_v10 = vsub.f32 %v8589_v2, %v8597_v12 }
0x6cea   : > { %v8599_v13 = vmul.f32 1.442695, %v8598_v10 }
0x6ceb   : > { %v8608_v24 = vpop.permute.xlu1 %8607 }
0x6cec   : > { %12257 = vpow2.f32 %v8599_v13  ;;  %v8613_v27 = vsel %vm2408_vm8, %v8608_v24, 0 }
0x6cef   : > { %v8755_v40 = vpop.permute.xlu1 %8754 }
0x6cf0   : > { %v8760_v45 = vsel %vm885_vm2, %v8755_v40, 0 }
0x6cf6   : > { %v12258_v14 = vpop.eup %12257 }
0x6cf7   : > { %v8601_v15 = vsel %vm2389_vm7, %v12258_v14, 0.0 }
0x6cf8   : > { %8602 = vadd.xlane.f32.xlu0 %v8601_v15 }
0x6d0e   : > { %8495 = vrot.lane.b32.xlu0 %v14416_v48, %s14872_s4  ;;  %s12705_s4 = smov [#allocation19]  }
0x6d12   : > { %8752 = vrot.lane.b32.xlu0 %v14423_v58, %s14871_s14  ;;  %v8490_v17 = vpop.xlane.xlu0 %8489 }
0x6d13   : > { %12259 = vrcp.f32 %v8490_v17 }
0x6d1d   : > { %v12260_v18 = vpop.eup %12259 }
0x6d1e   : > { %v8492_v20 = vmul.f32 %v12260_v18, %v12256_v8 }
0x6d20   : > { %v8493_v25 = vpack.c.bf16 %v8492_v20, %v8492_v20 }
0x6d85   : > { %v8603_v19 = vpop.xlane.xlu0 %8602 }
0x6d86   : > { %12261 = vrcp.f32 %v8603_v19 }
0x6d89   : > { %v8496_v22 = vpop.permute.xlu0 %8495 }
0x6d8a   : > { %v8501_v23 = vsel %vm2408_vm8, %v8496_v22, 0 }
0x6d8b   : > { %11694 = vmatpush3.bf16.msra.mxu0 %v8501_v23 }
0x6d8c   : > { %11705 = vmatprep.subr.bf16.mxu0 %v12680_v0 }
0x6d8d   : > { %v8753_v47 = vpop.permute.xlu0 %8752 }
0x6d8e   : > { %11696 = vmatmul.mubr.msk.bf16.vlgmr.msra.gmra.mrb[4].mxu0 %vm2389_vm7, %v8493_v25 }
0x6d8f   : > { %11706 = vmatpush3.bf16.msra.mxu0 %v8613_v27  ;;  %11707 = vmatprep.mubr.msk.bf16.mxu0 %vm12681_vm0, %v12680_v0 }
0x6d90   : > { %v12262_v29 = vpop.eup %12261  ;;  %11717 = vmatprep.subr.bf16.mxu0 %v12680_v0 }
0x6d91   : > { %v8605_v30 = vmul.f32 %v12262_v29, %v12258_v14  ;;  %v8429_v14 = vld [vmem:[#allocation11 + $0x24] sm:$0xf] }
0x6d92   : > { %v8867_v15 = vsel %vm1113_vm6, %v8429_v14, 0 }
0x6d93   : > { %v8606_v52 = vpack.c.bf16 %v8605_v30, %v8605_v30 }
0x6d96   : > { %11708 = vmatmul.mubr.msk.bf16.vlgmr.msra.gmra.mrb[8].mxu0 %vm2389_vm7, %v8606_v52 }
0x6d97   : > { %11719 = vmatprep.mubr.msk.bf16.mxu0 %vm12681_vm0, %v12680_v0  ;;  %11718 = vmatpush3.bf16.msra.mxu0 %v8710_v33 }
0x6d98   : > { %11729 = vmatprep.subr.bf16.mxu0 %v12680_v0 }
0x6e61   : > { %v8537_v55 = vpop.f32.mrb[4].mxu0 }
0x6e62   : > { %v8543_v9 = vpack.c.bf16 %v8537_v55, %v8537_v55  ;;  %v11697_v26 = vpop.f32.mrb[5].mxu0 }
0x6e63   : > { %v8540_v37 = vpop.f32.mrb[6].mxu0 }
0x6e64   : > { %v11698_v38 = vpop.f32.mrb[7].mxu0  ;;  %11720 = vmatmul.mubr.msk.bf16.vlgmr.msra.gmra.mrb[12].mxu0 %vm885_vm2, %v8543_v9 }
0x6e65   : > { %11731 = vmatprep.mubr.msk.bf16.mxu0 %vm12681_vm0, %v12680_v0 }
0x6e69   : > { %v8649_v41 = vpop.f32.mrb[8].mxu0 }
0x6e6a   : > { %v8655_v42 = vpack.c.bf16 %v8649_v41, %v8649_v41  ;;  %v11709_v43 = vpop.f32.mrb[9].mxu0 }
0x6e6b   : > { %v8652_v35 = vpop.f32.mrb[10].mxu0 }
0x6e6c   : > { %v11710_v46 = vpop.f32.mrb[11].mxu0  ;;  %11714 = vmatmul.mubr.msk.bf16.vlgmr.msra.gmra.mrb[24].mxu1 %vm885_vm2, %v8655_v42 }
0x6e6d   : > { %11724 = vmatpush3.bf16.xpose.msra.mxu1 %v8760_v45  ;;  %11725 = vmatprep.mubr.msk.bf16.mxu1 %vm12681_vm0, %v12680_v0 }
0x6e6e   : > { %11735 = vmatprep.subr.bf16.mxu1 %v12680_v0 }
0x6e74   : > { %11726 = vmatmul.mubr.msk.bf16.vlgmr.msra.gmra.mrb[28].mxu1 %vm885_vm2, %v8753_v47  ;;  %v10466_v47 = vcombine.low %v8429_v14, %v8429_v14 }
0x6e75   : > { %11737 = vmatprep.mubr.msk.bf16.mxu1 %vm12681_vm0, %v12680_v0  ;;  %11736 = vmatpush3.bf16.msra.mxu1 %v8867_v15 }
0x6e76   : > { %11747 = vmatprep.subr.bf16.mxu1 %v12680_v0 }
0x6f37   : > { %v8746_v49 = vpop.f32.mrb[12].mxu0 }
0x6f38   : > { %v11721_v50 = vpop.f32.mrb[13].mxu0 }
0x6f39   : > { %v8749_v51 = vpop.f32.mrb[14].mxu0 }
0x6f3a   : > { %v11722_v53 = vpop.f32.mrb[15].mxu0 }
0x6f3f   : > { %v8700_v54 = vpop.f32.mrb[24].mxu1 }
0x6f40   : > { %v14473_v56 = vadd.f32 %v8746_v49, %v8700_v54  ;;  %v11715_v57 = vpop.f32.mrb[25].mxu1  ;;  %v9024_v49 = vrot.slane %v10466_v47, 2 }
0x6f41   : > { %v8703_v21 = vpop.f32.mrb[26].mxu1 }
0x6f42   : > { %v11716_v36 = vpop.f32.mrb[27].mxu1  ;;  %v9029_v50 = vsel %vm1113_vm6, %v9024_v49, 0 }
0x6f47   : > { %v8796_v60 = vpop.f32.mrb[28].mxu1 }
0x6f48   : > { %v11727_v16 = vpop.f32.mrb[29].mxu1  ;;  %v8802_v61 = vsel %vm2389_vm7, %v8796_v60, -inf }
0x6f49   : > { %8803 = vmax.xlane.f32.xlu1 %v8802_v61  ;;  %v8799_v62 = vpop.f32.mrb[30].mxu1 }
0x6f4a   : > { %v11728_v63 = vpop.f32.mrb[31].mxu1 }
0x6f5a   : > { %8912 = vrot.lane.b32.xlu1 %v14416_v48, %s14873_s19 }
0x6f5e   : > { %8910 = vrot.lane.b32.xlu1 %v14423_v58, %s14873_s19  ;;  %s12582_s19 = sshll.u32 %s12705_s4, 4  ;;  %s12583_s19 = int_to_ptr.vmem [resolvable:$false] %s12582_s19 }
0x6fd6   : > { %v8804_v59 = vpop.xlane.xlu1 %8803 }
0x6fd7   : > { %v8805_v2 = vsub.f32 %v8796_v60, %v8804_v59 }
0x6fd9   : > { %v8806_v3 = vmul.f32 1.442695, %v8805_v2 }
0x6fda   : > { %v8913_v11 = vpop.permute.xlu1 %8912 }
0x6fdb   : > { %12263 = vpow2.f32 %v8806_v3  ;;  %v8918_v10 = vsel %vm885_vm2, %v8913_v11, 0 }
0x6fde   : > { %v8911_v13 = vpop.permute.xlu1 %8910 }
0x6fe5   : > { %v12264_v4 = vpop.eup %12263 }
0x6fe6   : > { %v8808_v5 = vsel %vm2389_vm7, %v12264_v4, 0.0 }
0x6fe7   : > { %8809 = vadd.xlane.f32.xlu0 %v8808_v5 }
0x6ffd   : > { %8814 = vrot.lane.b32.xlu0 %v14416_v48, %s14874_s30  ;;  %s12584_s30 = scalar_lea.vmem %s12583_s19, 256 }
0x7074   : > { %v8810_v28 = vpop.xlane.xlu0 %8809 }
0x7075   : > { %12265 = vrcp.f32 %v8810_v28 }
0x7078   : > { %v8815_v6 = vpop.permute.xlu0 %8814 }
0x7079   : > { %v8820_v1 = vsel %vm2408_vm8, %v8815_v6, 0 }
0x707a   : > { %11730 = vmatpush3.bf16.msra.mxu0 %v8820_v1 }
0x707b   : > { %11741 = vmatprep.subr.bf16.mxu0 %v12680_v0 }
0x707f   : > { %v12266_v7 = vpop.eup %12265 }
0x7080   : > { %v8812_v8 = vmul.f32 %v12266_v7, %v12264_v4 }
0x7082   : > { %v8813_v12 = vpack.c.bf16 %v8812_v8, %v8812_v8 }
0x7084   : > { %11732 = vmatmul.mubr.msk.bf16.vlgmr.msra.gmra.mrb[16].mxu0 %vm2389_vm7, %v8813_v12 }
0x7085   : > { %11742 = vmatpush3.bf16.xpose.msra.mxu0 %v8918_v10  ;;  %11743 = vmatprep.mubr.msk.bf16.mxu0 %vm12681_vm0, %v12680_v0 }
0x7086   : > { %11753 = vmatprep.subr.bf16.mxu0 %v12680_v0 }
0x708c   : > { %11744 = vmatmul.mubr.msk.bf16.vlgmr.msra.gmra.mrb[20].mxu0 %vm885_vm2, %v8911_v13 }
0x708d   : > { %11755 = vmatprep.mubr.msk.bf16.mxu0 %vm12681_vm0, %v12680_v0  ;;  %11754 = vmatpush3.bf16.msra.mxu0 %v9029_v50 }
0x708e   : > { %11765 = vmatprep.subr.bf16.mxu0 %v12680_v0 }
0x7157   : > { %v8856_v17 = vpop.f32.mrb[16].mxu0 }
0x7158   : > { %v8862_v18 = vpack.c.bf16 %v8856_v17, %v8856_v17  ;;  %v11733_v19 = vpop.f32.mrb[17].mxu0 }
0x7159   : > { %v8859_v20 = vpop.f32.mrb[18].mxu0 }
0x715a   : > { %v11734_v22 = vpop.f32.mrb[19].mxu0  ;;  %11738 = vmatmul.mubr.msk.bf16.vlgmr.msra.gmra.mrb[32].mxu1 %vm885_vm2, %v8862_v18  ;;  %v8430_v18 = vld [vmem:[#allocation11 + $0x28] sm:$0xf] }
0x715b   : > { %11749 = vmatprep.mubr.msk.bf16.mxu1 %vm12681_vm0, %v12680_v0  ;;  %v9187_v19 = vsel %vm1113_vm6, %v8430_v18, 0 }
0x715f   : > { %v8954_v23 = vpop.f32.mrb[20].mxu0 }
0x7160   : > { %v11745_v24 = vpop.f32.mrb[21].mxu0  ;;  %v8960_v25 = vsel %vm2389_vm7, %v8954_v23, -inf }
0x7161   : > { %8961 = vmax.xlane.f32.xlu0 %v8960_v25  ;;  %v8957_v27 = vpop.f32.mrb[22].mxu0 }
0x7162   : > { %v11746_v29 = vpop.f32.mrb[23].mxu0 }
0x7177   : > { %8972 = vrot.lane.b32.xlu0 %v14416_v48, %s14875_s17 }
0x717b   : > { %9072 = vrot.lane.b32.xlu0 %v14423_v58, %s14876_s5 }
0x71ee   : > { %v8962_v30 = vpop.xlane.xlu0 %8961 }
0x71ef   : > { %v8963_v52 = vsub.f32 %v8954_v23, %v8962_v30 }
0x71f1   : > { %v8964_v31 = vmul.f32 1.442695, %v8963_v52 }
0x71f2   : > { %v8973_v32 = vpop.permute.xlu0 %8972 }
0x71f3   : > { %12267 = vpow2.f32 %v8964_v31  ;;  %v8978_v33 = vsel %vm2408_vm8, %v8973_v32, 0 }
0x71f4   : > { %11748 = vmatpush3.bf16.msra.mxu1 %v8978_v33 }
0x71f5   : > { %11759 = vmatprep.subr.bf16.mxu1 %v12680_v0 }
0x71f6   : > { %v9073_v46 = vpop.permute.xlu0 %9072 }
0x71fd   : > { %v12268_v34 = vpop.eup %12267 }
0x71fe   : > { %v8966_v44 = vsel %vm2389_vm7, %v12268_v34, 0.0 }
0x71ff   : > { %8967 = vadd.xlane.f32.xlu1 %v8966_v44 }
0x7210   : > { %9074 = vrot.lane.b32.xlu1 %v14416_v48, %s14876_s5  ;;  %s14905_s5 = sld [smem:[#allocation56_spill]] }
0x722d   : > { %v8903_v55 = vpop.f32.mrb[32].mxu1 }
0x722e   : > { %v8909_v9 = vadd.f32 %v8903_v55, %v14473_v56  ;;  %v11739_v26 = vpop.f32.mrb[33].mxu1 }
0x722f   : > { %v8906_v37 = vpop.f32.mrb[34].mxu1 }
0x7230   : > { %v11740_v38 = vpop.f32.mrb[35].mxu1 }
0x728c   : > { %v8968_v40 = vpop.xlane.xlu1 %8967 }
0x728d   : > { %12269 = vrcp.f32 %v8968_v40 }
0x7290   : > { %v9075_v43 = vpop.permute.xlu1 %9074 }
0x7291   : > { %v9080_v45 = vsel %vm885_vm2, %v9075_v43, 0 }
0x7297   : > { %v12270_v41 = vpop.eup %12269 }
0x7298   : > { %v8970_v42 = vmul.f32 %v12270_v41, %v12268_v34 }
0x729a   : > { %v8971_v35 = vpack.c.bf16 %v8970_v42, %v8970_v42 }
0x729c   : > { %11750 = vmatmul.mubr.msk.bf16.vlgmr.msra.gmra.mrb[36].mxu1 %vm2389_vm7, %v8971_v35 }
0x729d   : > { %11760 = vmatpush3.bf16.xpose.msra.mxu1 %v9080_v45  ;;  %11761 = vmatprep.mubr.msk.bf16.mxu1 %vm12681_vm0, %v12680_v0 }
0x729e   : > { %11771 = vmatprep.subr.bf16.mxu1 %v12680_v0 }
0x72a4   : > { %11762 = vmatmul.mubr.msk.bf16.vlgmr.msra.gmra.mrb[40].mxu1 %vm885_vm2, %v9073_v46 }
0x72a5   : > { %11773 = vmatprep.mubr.msk.bf16.mxu1 %vm12681_vm0, %v12680_v0  ;;  %11772 = vmatpush3.bf16.msra.mxu1 %v9187_v19 }
0x72a6   : > { %11783 = vmatprep.subr.bf16.mxu1 %v12680_v0 }
0x736f   : > { %v9014_v51 = vpop.f32.mrb[36].mxu1 }
0x7370   : > { %v9020_v53 = vpack.c.bf16 %v9014_v51, %v9014_v51  ;;  %v11751_v54 = vpop.f32.mrb[37].mxu1  ;;  %v10473_v51 = vcombine.low %v8430_v18, %v8430_v18 }
0x7371   : > { %v9017_v56 = vpop.f32.mrb[38].mxu1 }
0x7372   : > { %v11752_v57 = vpop.f32.mrb[39].mxu1  ;;  %11756 = vmatmul.mubr.msk.bf16.vlgmr.msra.gmra.mrb[24].mxu0 %vm885_vm2, %v9020_v53  ;;  %v9344_v53 = vrot.slane %v10473_v51, 2 }
0x7373   : > { %11767 = vmatprep.mubr.msk.bf16.mxu0 %vm12681_vm0, %v12680_v0 }
0x7374   : > { %v9349_v54 = vsel %vm1113_vm6, %v9344_v53, 0 }
0x7377   : > { %v9116_v21 = vpop.f32.mrb[40].mxu1 }
0x7378   : > { %v11763_v36 = vpop.f32.mrb[41].mxu1  ;;  %v9122_v60 = vsel %vm2389_vm7, %v9116_v21, -inf }
0x7379   : > { %9123 = vmax.xlane.f32.xlu1 %v9122_v60  ;;  %v9119_v16 = vpop.f32.mrb[42].mxu1 }
0x737a   : > { %v11764_v61 = vpop.f32.mrb[43].mxu1 }
0x738a   : > { %9232 = vrot.lane.b32.xlu1 %v14416_v48, %s14877_s9 }
0x738e   : > { %9230 = vrot.lane.b32.xlu1 %v14423_v58, %s14877_s9  ;;  %s10512_s9 = sshll.u32 %s14901_s24, 7 }
0x7406   : > { %v9124_v62 = vpop.xlane.xlu1 %9123 }
0x7407   : > { %v9125_v63 = vsub.f32 %v9116_v21, %v9124_v62 }
0x7409   : > { %v9126_v59 = vmul.f32 1.442695, %v9125_v63 }
0x740a   : > { %v9233_v13 = vpop.permute.xlu1 %9232 }
0x740b   : > { %12271 = vpow2.f32 %v9126_v59  ;;  %v9238_v15 = vsel %vm885_vm2, %v9233_v13, 0 }
0x740e   : > { %v9231_v17 = vpop.permute.xlu1 %9230 }
0x7415   : > { %v12272_v2 = vpop.eup %12271 }
0x7416   : > { %v9128_v3 = vsel %vm2389_vm7, %v12272_v2, 0.0 }
0x7417   : > { %9129 = vadd.xlane.f32.xlu0 %v9128_v3 }
0x742d   : > { %9134 = vrot.lane.b32.xlu0 %v14416_v48, %s14878_s10  ;;  %s14906_s10 = sshll.u32 %s14902_s3, 3 }
0x7445   : > { %v9065_v4 = vpop.f32.mrb[24].mxu0 }
0x7446   : > { %v9071_v5 = vadd.f32 %v9065_v4, %v8909_v9  ;;  %v11757_v28 = vpop.f32.mrb[25].mxu0 }
0x7447   : > { %v9068_v6 = vpop.f32.mrb[26].mxu0 }
0x7448   : > { %v11758_v1 = vpop.f32.mrb[27].mxu0 }
0x74a4   : > { %v9130_v7 = vpop.xlane.xlu0 %9129 }
0x74a5   : > { %12273 = vrcp.f32 %v9130_v7 }
0x74a8   : > { %v9135_v8 = vpop.permute.xlu0 %9134 }
0x74a9   : > { %v9140_v11 = vsel %vm2408_vm8, %v9135_v8, 0 }
0x74aa   : > { %11766 = vmatpush3.bf16.msra.mxu0 %v9140_v11 }
0x74ab   : > { %11777 = vmatprep.subr.bf16.mxu0 %v12680_v0 }
0x74af   : > { %v12274_v12 = vpop.eup %12273 }
0x74b0   : > { %v9132_v10 = vmul.f32 %v12274_v12, %v12272_v2 }
0x74b2   : > { %v9133_v14 = vpack.c.bf16 %v9132_v10, %v9132_v10 }
0x74b4   : > { %11768 = vmatmul.mubr.msk.bf16.vlgmr.msra.gmra.mrb[28].mxu0 %vm2389_vm7, %v9133_v14 }
0x74b5   : > { %11778 = vmatpush3.bf16.xpose.msra.mxu0 %v9238_v15  ;;  %11779 = vmatprep.mubr.msk.bf16.mxu0 %vm12681_vm0, %v12680_v0 }
0x74b6   : > { %11789 = vmatprep.subr.bf16.mxu0 %v12680_v0 }
0x74bc   : > { %11780 = vmatmul.mubr.msk.bf16.vlgmr.msra.gmra.mrb[32].mxu0 %vm885_vm2, %v9231_v17 }
0x74bd   : > { %11791 = vmatprep.mubr.msk.bf16.mxu0 %vm12681_vm0, %v12680_v0  ;;  %11790 = vmatpush3.bf16.msra.mxu0 %v9349_v54 }
0x74be   : > { %11801 = vmatprep.subr.bf16.mxu0 %v12680_v0 }
0x7587   : > { %v9176_v20 = vpop.f32.mrb[28].mxu0 }
0x7588   : > { %v9182_v22 = vpack.c.bf16 %v9176_v20, %v9176_v20  ;;  %v11769_v23 = vpop.f32.mrb[29].mxu0  ;;  %v8431_v20 = vld [vmem:[#allocation11 + $0x2c] sm:$0xf] }
0x7589   : > { %v9179_v24 = vpop.f32.mrb[30].mxu0 }
0x758a   : > { %v11770_v25 = vpop.f32.mrb[31].mxu0  ;;  %11774 = vmatmul.mubr.msk.bf16.vlgmr.msra.gmra.mrb[44].mxu1 %vm885_vm2, %v9182_v22  ;;  %v9507_v22 = vsel %vm1113_vm6, %v8431_v20, 0 }
0x758b   : > { %11785 = vmatprep.mubr.msk.bf16.mxu1 %vm12681_vm0, %v12680_v0 }
0x758f   : > { %v9274_v27 = vpop.f32.mrb[32].mxu0 }
0x7590   : > { %v11781_v29 = vpop.f32.mrb[33].mxu0  ;;  %v9280_v30 = vsel %vm2389_vm7, %v9274_v27, -inf }
0x7591   : > { %9281 = vmax.xlane.f32.xlu0 %v9280_v30  ;;  %v9277_v52 = vpop.f32.mrb[34].mxu0 }
0x7592   : > { %v11782_v31 = vpop.f32.mrb[35].mxu0 }
0x75a7   : > { %9292 = vrot.lane.b32.xlu0 %v14416_v48, %s14879_s11  ;;  %s790_s11 = scalar_lea.vmem [#allocation19], %s14906_s10 }
0x75ab   : > { %9392 = vrot.lane.b32.xlu0 %v14423_v58, %s14880_s12 }
0x761e   : > { %v9282_v32 = vpop.xlane.xlu0 %9281 }
0x761f   : > { %v9283_v33 = vsub.f32 %v9274_v27, %v9282_v32 }
0x7621   : > { %v9284_v34 = vmul.f32 1.442695, %v9283_v33 }
0x7622   : > { %v9293_v44 = vpop.permute.xlu0 %9292 }
0x7623   : > { %12275 = vpow2.f32 %v9284_v34  ;;  %v9298_v55 = vsel %vm2408_vm8, %v9293_v44, 0 }
0x7624   : > { %11784 = vmatpush3.bf16.msra.mxu1 %v9298_v55 }
0x7625   : > { %11795 = vmatprep.subr.bf16.mxu1 %v12680_v0 }
0x7626   : > { %v9393_v50 = vpop.permute.xlu0 %9392 }
0x762d   : > { %v12276_v9 = vpop.eup %12275 }
0x762e   : > { %v9286_v26 = vsel %vm2389_vm7, %v12276_v9, 0.0 }
0x762f   : > { %9287 = vadd.xlane.f32.xlu1 %v9286_v26 }
0x7640   : > { %9394 = vrot.lane.b32.xlu1 %v14416_v48, %s14880_s12  ;;  %s9990_s12 = sshll.u32 %s790_s11, 4  ;;  %s14656_s12 = int_to_ptr.vmem [resolvable:$true] %s9990_s12 }
0x7641   : > { %s12578_s14 = scalar_lea.vmem %s14656_s12, 128  ;;  %p12585_p10 = scmp.lt.s32.totalorder %s14656_s12, %s12583_s19 }
0x7642   : > { %p12579_p3 = scmp.ne.s32.totalorder %s14656_s12, %s12578_s14  ;;  %p12586_p11 = scmp.lt.s32.totalorder %s12584_s30, %s12578_s14 }
0x7644   : > { %p12580_p0 = pnand %p12579_p3, %p14908_p2  ;;  %p12587_p8 = por %p12586_p11, %p12585_p10 }
0x7646   : > { %p12581_p6 = pneg %p12580_p0 }
0x7648   : > { %p12588_p5 = pnand %p12587_p8, %p12581_p6 }
0x765d   : > { %v9223_v37 = vpop.f32.mrb[44].mxu1 }
0x765e   : > { %v9229_v38 = vadd.f32 %v9223_v37, %v9071_v5  ;;  %v11775_v40 = vpop.f32.mrb[45].mxu1 }
0x765f   : > { %v9226_v41 = vpop.f32.mrb[46].mxu1 }
0x7660   : > { %v11776_v42 = vpop.f32.mrb[47].mxu1 }
0x76bc   : > { %v9288_v43 = vpop.xlane.xlu1 %9287 }
0x76bd   : > { %12277 = vrcp.f32 %v9288_v43 }
0x76c0   : > { %v9395_v46 = vpop.permute.xlu1 %9394 }
0x76c1   : > { %v9400_v49 = vsel %vm885_vm2, %v9395_v46, 0 }
0x76c7   : > { %v12278_v35 = vpop.eup %12277 }
0x76c8   : > { %v9290_v45 = vmul.f32 %v12278_v35, %v12276_v9 }
0x76ca   : > { %v9291_v47 = vpack.c.bf16 %v9290_v45, %v9290_v45 }
0x76cc   : > { %11786 = vmatmul.mubr.msk.bf16.vlgmr.msra.gmra.mrb[48].mxu1 %vm2389_vm7, %v9291_v47 }
0x76cd   : > { %11796 = vmatpush3.bf16.xpose.msra.mxu1 %v9400_v49  ;;  %11797 = vmatprep.mubr.msk.bf16.mxu1 %vm12681_vm0, %v12680_v0  ;;  %v10480_v49 = vcombine.low %v8431_v20, %v8431_v20  ;;  %v12074_v20 = vld [vmem:[%s14885_s6 + $0x48] sm:$0xff]  }
0x76ce   : > { %11807 = vmatprep.subr.bf16.mxu1 %v12680_v0 }
0x76d4   : > { %11798 = vmatmul.mubr.msk.bf16.vlgmr.msra.gmra.mrb[52].mxu1 %vm885_vm2, %v9393_v50  ;;  %v9664_v50 = vrot.slane %v10480_v49, 2 }
0x76d5   : > { %11809 = vmatprep.mubr.msk.bf16.mxu1 %vm12681_vm0, %v12680_v0  ;;  %11808 = vmatpush3.bf16.msra.mxu1 %v9507_v22  ;;  %v12075_v22 = vld [vmem:[%s14885_s6 + $0x50] sm:$0xff]  }
0x76d6   : > { %11819 = vmatprep.subr.bf16.mxu1 %v12680_v0  ;;  %v9669_v51 = vsel %vm1113_vm6, %v9664_v50, 0 }
0x779f   : > { %v9334_v56 = vpop.f32.mrb[48].mxu1 }
0x77a0   : > { %v9340_v57 = vpack.c.bf16 %v9334_v56, %v9334_v56  ;;  %v11787_v21 = vpop.f32.mrb[49].mxu1 }
0x77a1   : > { %v9337_v36 = vpop.f32.mrb[50].mxu1 }
0x77a2   : > { %v11788_v60 = vpop.f32.mrb[51].mxu1  ;;  %11792 = vmatmul.mubr.msk.bf16.vlgmr.msra.gmra.mrb[36].mxu0 %vm885_vm2, %v9340_v57  ;;  %v10482_v36 = vld [vmem:[#allocation13 + $0x2] ss:$0 sm:$0xff] }
0x77a3   : > { %11803 = vmatprep.mubr.msk.bf16.mxu0 %vm12681_vm0, %v12680_v0 }
0x77a7   : > { %v9436_v16 = vpop.f32.mrb[52].mxu1 }
0x77a8   : > { %v11799_v61 = vpop.f32.mrb[53].mxu1  ;;  %v9442_v62 = vsel %vm2389_vm7, %v9436_v16, -inf }
0x77a9   : > { %9443 = vmax.xlane.f32.xlu1 %v9442_v62  ;;  %v9439_v63 = vpop.f32.mrb[54].mxu1 }
0x77aa   : > { %v11800_v59 = vpop.f32.mrb[55].mxu1 }
0x77ba   : > { %9552 = vrot.lane.b32.xlu1 %v14416_v48, %s14881_s13 }
0x77be   : > { %9550 = vrot.lane.b32.xlu1 %v14423_v58, %s14881_s13 }
0x7836   : > { %v9444_v2 = vpop.xlane.xlu1 %9443 }
0x7837   : > { %v9445_v3 = vsub.f32 %v9436_v16, %v9444_v2 }
0x7839   : > { %v9446_v4 = vmul.f32 1.442695, %v9445_v3 }
0x783a   : > { %v9553_v15 = vpop.permute.xlu1 %9552 }
0x783b   : > { %12279 = vpow2.f32 %v9446_v4  ;;  %v9558_v18 = vsel %vm885_vm2, %v9553_v15, 0 }
0x783e   : > { %v9551_v19 = vpop.permute.xlu1 %9550 }
0x7845   : > { %v12280_v5 = vpop.eup %12279 }
0x7846   : > { %v9448_v28 = vsel %vm2389_vm7, %v12280_v5, 0.0 }
0x7847   : > { %9449 = vadd.xlane.f32.xlu0 %v9448_v28 }
0x785d   : > { %9454 = vrot.lane.b32.xlu0 %v14416_v48, %s14882_s15 }
0x7875   : > { %v9385_v6 = vpop.f32.mrb[36].mxu0 }
0x7876   : > { %v9391_v1 = vadd.f32 %v9385_v6, %v9229_v38  ;;  %v11793_v7 = vpop.f32.mrb[37].mxu0 }
0x7877   : > { %v9388_v8 = vpop.f32.mrb[38].mxu0  ;;  %v12071_v7 = vld [vmem:[#allocation14 + $0x20] sm:$0xff]  }
0x7878   : > { %v11794_v11 = vpop.f32.mrb[39].mxu0  ;;  %v12072_v8 = vld [vmem:[#allocation14 + $0x28] sm:$0xff]  }
0x78d4   : > { %v9450_v12 = vpop.xlane.xlu0 %9449 }
0x78d5   : > { %12281 = vrcp.f32 %v9450_v12 }
0x78d8   : > { %v9455_v10 = vpop.permute.xlu0 %9454 }
0x78d9   : > { %v9460_v58 = vsel %vm2408_vm8, %v9455_v10, 0 }
0x78da   : > { %11802 = vmatpush3.bf16.msra.mxu0 %v9460_v58  ;;  %v10485_v58 = vld [vmem:[%s14867_s2 + $0x7] ss:$0 sm:$0xff] }
0x78db   : > { %11813 = vmatprep.subr.bf16.mxu0 %v12680_v0 }
0x78df   : > { %v12282_v13 = vpop.eup %12281 }
0x78e0   : > { %v9452_v14 = vmul.f32 %v12282_v13, %v12280_v5 }
0x78e2   : > { %v9453_v17 = vpack.c.bf16 %v9452_v14, %v9452_v14  ;;  %v10486_v14 = vld [vmem:[%s14868_s26 + $0x7] ss:$0 sm:$0xff] }
0x78e4   : > { %11804 = vmatmul.mubr.msk.bf16.vlgmr.msra.gmra.mrb[40].mxu0 %vm2389_vm7, %v9453_v17 }
0x78e5   : > { %11814 = vmatpush3.bf16.xpose.msra.mxu0 %v9558_v18  ;;  %11815 = vmatprep.mubr.msk.bf16.mxu0 %vm12681_vm0, %v12680_v0 }
0x78e6   : > { %11825 = vmatprep.subr.bf16.mxu0 %v12680_v0 }
0x78ec   : > { %11816 = vmatmul.mubr.msk.bf16.vlgmr.msra.gmra.mrb[44].mxu0 %vm885_vm2, %v9551_v19  ;;  %v12073_v19 = vld [vmem:[%s14885_s6 + $0x40] sm:$0xff]  }
0x78ed   : > { %11827 = vmatprep.mubr.msk.bf16.mxu0 %vm12681_vm0, %v12680_v0  ;;  %11826 = vmatpush3.bf16.msra.mxu0 %v9669_v51 }
0x78ee   : > { %11839 = vmatprep.subr.bf16.mxu0 %v12680_v0 }
0x79b7   : > { %v9496_v23 = vpop.f32.mrb[40].mxu0 }
0x79b8   : > { %v9502_v24 = vpack.c.bf16 %v9496_v23, %v9496_v23  ;;  %v11805_v25 = vpop.f32.mrb[41].mxu0  ;;  %v12076_v23 = vld [vmem:[%s14885_s6 + $0x58] sm:$0xff]  }
0x79b9   : > { %v9499_v27 = vpop.f32.mrb[42].mxu0 }
0x79ba   : > { %v11806_v29 = vpop.f32.mrb[43].mxu0  ;;  %11810 = vmatmul.mubr.msk.bf16.vlgmr.msra.gmra.mrb[56].mxu1 %vm885_vm2, %v9502_v24  ;;  %v10487_v24 = vld [vmem:[#allocation16 + $0x2] ss:$0 sm:$0xff] }
0x79bb   : > { %11821 = vmatprep.mubr.msk.bf16.mxu1 %vm12681_vm0, %v12680_v0 }
0x79bf   : > { %v9594_v30 = vpop.f32.mrb[44].mxu0 }
0x79c0   : > { %v11817_v52 = vpop.f32.mrb[45].mxu0  ;;  %v9600_v31 = vsel %vm2389_vm7, %v9594_v30, -inf }
0x79c1   : > { %9601 = vmax.xlane.f32.xlu0 %v9600_v31  ;;  %v9597_v32 = vpop.f32.mrb[46].mxu0 }
0x79c2   : > { %v11818_v33 = vpop.f32.mrb[47].mxu0 }
0x79d7   : > { %9612 = vrot.lane.b32.xlu0 %v14416_v48, %s14883_s16  ;;  %s14907_s16 = sld [smem:[#allocation57_spill]] }
0x79dd   : > { %s14654_s29 = scalar_lea.hbm %s14907_s16, %s10512_s9 }
0x7a4e   : > { %v9602_v34 = vpop.xlane.xlu0 %9601 }
0x7a4f   : > { %v9603_v44 = vsub.f32 %v9594_v30, %v9602_v34 }
0x7a51   : > { %v9604_v55 = vmul.f32 1.442695, %v9603_v44 }
0x7a52   : > { %v9613_v9 = vpop.permute.xlu0 %9612 }
0x7a53   : > { %12283 = vpow2.f32 %v9604_v55  ;;  %v9618_v26 = vsel %vm2408_vm8, %v9613_v9, 0 }
0x7a54   : > { %11820 = vmatpush3.bf16.msra.mxu1 %v9618_v26 }
0x7a55   : > { %11831 = vmatprep.subr.bf16.mxu1 %v12680_v0 }
0x7a5d   : > { %v12284_v37 = vpop.eup %12283 }
0x7a5e   : > { %v9606_v38 = vsel %vm2389_vm7, %v12284_v37, 0.0 }
0x7a5f   : > { %9607 = vadd.xlane.f32.xlu1 %v9606_v38  ;;  %v10499_v38 = vld [vmem:[#allocation17 + $0x2] ss:$0 sm:$0xff] }
0x7a8d   : > { %v9543_v40 = vpop.f32.mrb[56].mxu1 }
0x7a8e   : > { %v9549_v41 = vadd.f32 %v9543_v40, %v9391_v1  ;;  %v11811_v42 = vpop.f32.mrb[57].mxu1 }
0x7a8f   : > { %v9546_v43 = vpop.f32.mrb[58].mxu1 }
0x7a90   : > { %v11812_v35 = vpop.f32.mrb[59].mxu1 }
0x7aec   : > { %v9608_v48 = vpop.xlane.xlu1 %9607 }
0x7aed   : > { %12285 = vrcp.f32 %v9608_v48 }
0x7af7   : > { %v12286_v45 = vpop.eup %12285 }
0x7af8   : > { %v9610_v46 = vmul.f32 %v12286_v45, %v12284_v37 }
0x7afa   : > { %v9611_v47 = vpack.c.bf16 %v9610_v46, %v9610_v46 }
0x7afc   : > { %11822 = vmatmul.mubr.msk.bf16.vlgmr.msra.gmra.mrb[60].mxu1 %vm2389_vm7, %v9611_v47 }
0x7afd   : > { %11835 = vmatprep.mubr.msk.bf16.mxu1 %vm12681_vm0, %v12680_v0  ;;  %11832 = vmatpush3.bf16.msra.mxu1 %v12071_v7  ;;  %v10509_v7 = vld [vmem:[%s14904_s8] ss:$0 sm:$0xff] }
0x7afe   : > { %11833 = vmatprep.subr.bf16.mxu1 %v12680_v0 }
0x7b01   : > { %11834 = vmatpush3.bf16.msra.mxu1 %v12072_v8 }
0x7bcf   : > { %v9654_v53 = vpop.f32.mrb[60].mxu1 }
0x7bd0   : > { %v9660_v54 = vpack.c.bf16 %v9654_v53, %v9654_v53  ;;  %v11823_v56 = vpop.f32.mrb[61].mxu1 }
0x7bd1   : > { %v9657_v57 = vpop.f32.mrb[62].mxu1 }
0x7bd2   : > { %v11824_v21 = vpop.f32.mrb[63].mxu1  ;;  %11828 = vmatmul.mubr.msk.bf16.vlgmr.msra.gmra.mrb[48].mxu0 %vm885_vm2, %v9660_v54 }
0x7bd3   : > { %11847 = vmatprep.mubr.msk.bf16.mxu0 %vm12681_vm0, %v12680_v0  ;;  %11840 = vmatpush3.bf16.msra.mxu0 %v12073_v19  ;;  %v10507_v21 = vld [vmem:[%s14867_s2 + $0x8] ss:$0 sm:$0xff] }
0x7bd4   : > { %11841 = vmatprep.subr.bf16.mxu0 %v12680_v0 }
0x7bd7   : > { %11842 = vmatpush3.bf16.msra.mxu0 %v12074_v20 }
0x7bd8   : > { %11843 = vmatprep.subr.bf16.mxu0 %v12680_v0 }
0x7bdb   : > { %11844 = vmatpush3.bf16.msra.mxu0 %v12075_v22 }
0x7bdc   : > { %11845 = vmatprep.subr.bf16.mxu0 %v12680_v0 }
0x7bdf   : > { %11846 = vmatpush3.bf16.msra.mxu0 %v12076_v23 }
0x7ca5   : > { %v9705_v60 = vpop.f32.mrb[48].mxu0 }
0x7ca6   : > { %v9711_v16 = vadd.f32 %v9705_v60, %v9549_v41  ;;  %v11829_v61 = vpop.f32.mrb[49].mxu0  ;;  %v10508_v60 = vld [vmem:[%s14868_s26 + $0x8] ss:$0 sm:$0xff] }
0x7ca7   : > { %v9708_v62 = vpop.f32.mrb[50].mxu0 }
0x7ca8   : > { %v9718_v63 = vadd.f32 %v10482_v36, %v9711_v16  ;;  %v11830_v59 = vpop.f32.mrb[51].mxu0 }
0x7caa   : > { %v9719_v2 = vadd.f32 %v9718_v63, %v14409_v39 }
0x7cac   : > { %v9724_v3 = vsel %vm832_vm1, %v9719_v2, 0.0 }
0x7cad   : > { %9725 = vadd.xlane.f32.xlu1 %v9724_v3 }
0x7d3a   : > { %v9726_v4 = vpop.xlane.xlu1 %9725 }
0x7d3b   : > { %v9727_v5 = vmul.f32 0.03125, %v9726_v4 }
0x7d3d   : > { %v9728_v28 = vsub.f32 %v9719_v2, %v9727_v5 }
0x7d3f   : > { %v9729_v6 = vmul.f32 %v9728_v28, %v9728_v28 }
0x7d41   : > { %v9730_v1 = vsel %vm832_vm1, %v9729_v6, 0.0 }
0x7d42   : > { %9731 = vadd.xlane.f32.xlu1 %v9730_v1 }
0x7dcf   : > { %v9732_v11 = vpop.xlane.xlu1 %9731 }
0x7dd0   : > { %v9733_v12 = vmul.f32 0.03125, %v9732_v11  ;;  %v10510_v11 = vld [vmem:[%s14905_s5] ss:$0 sm:$0xff] }
0x7dd2   : > { %v9734_v10 = vadd.f32 1e-05, %v9733_v12 }
0x7dd4   : > { %12287 = vrsqrt.f32 %v9734_v10 }
0x7dde   : > { %v12288_v39 = vpop.eup %12287 }
0x7ddf   : > { %v9736_v13 = vmul.f32 %v12288_v39, %v9728_v28 }
0x7de1   : > { %v9743_v15 = vmul.f32 %v10485_v58, %v9736_v13 }
0x7de3   : > { %v9750_v17 = vadd.f32 %v10486_v14, %v9743_v15 }
0x7de5   : > { %v9756_v18 = vpack.c.bf16 %v9750_v17, %v9750_v17 }
0x7de7   : > { %11836 = vmatmul.mubr.msk.bf16.vlgmr.msra.gmra.mrb[64].mxu1 %vm832_vm1, %v9756_v18 }
0x7eba   : > { %v9814_v25 = vpop.f32.mrb[64].mxu1 }
0x7ebb   : > { %v9815_v27 = vadd.f32 %v10487_v24, %v9814_v25  ;;  %v11837_v29 = vpop.f32.mrb[65].mxu1 }
0x7ebc   : > { %v9817_v30 = vpop.f32.mrb[66].mxu1 }
0x7ebd   : > { %v9821_v52 = vmul.f32 0.044715, %v9815_v27  ;;  %v11838_v31 = vpop.f32.mrb[67].mxu1  ;;  %v9820_v9 = vmul.f32 0.5, %v9815_v27 }
0x7ebf   : > { %v9822_v32 = vmul.f32 %v9821_v52, %v9815_v27 }
0x7ec1   : > { %v9823_v33 = vmul.f32 %v9822_v32, %v9815_v27 }
0x7ec3   : > { %v9824_v34 = vadd.f32 %v9823_v33, %v9815_v27 }
0x7ec5   : > { %v9825_v44 = vmul.f32 0.7978846, %v9824_v34 }
0x7ec7   : > { %12289 = vtanh.f32 %v9825_v44 }
0x7ed1   : > { %v12290_v55 = vpop.eup %12289 }
0x7ed2   : > { %v9827_v0 = vadd.f32 1.0, %v12290_v55 }
0x7ed4   : > { %v9828_v26 = vmul.f32 %v9827_v0, %v9820_v9 }
0x7ed6   : > { %v9838_v37 = vpack.c.bf16 %v9828_v26, %v9828_v26 }
0x7ed8   : > { %11848 = vmatmul.mubr.msk.bf16.vlgmr.msra.gmra.mrb[52].mxu0 %vm3776_vm9, %v9838_v37 }
0x7fab   : > { %v9908_v40 = vpop.f32.mrb[52].mxu0 }
0x7fac   : > { %v9909_v41 = vadd.f32 %v10499_v38, %v9908_v40  ;;  %v11849_v42 = vpop.f32.mrb[53].mxu0 }
0x7fad   : > { %v9911_v43 = vpop.f32.mrb[54].mxu0 }
0x7fae   : > { %v9914_v35 = vadd.f32 %v9909_v41, %v9750_v17  ;;  %v11850_v48 = vpop.f32.mrb[55].mxu0 }
0x7fb0   : > { %v9919_v45 = vsel %vm832_vm1, %v9914_v35, 0.0 }
0x7fb1   : > { %9920 = vadd.xlane.f32.xlu1 %v9919_v45 }
0x803e   : > { %v9921_v46 = vpop.xlane.xlu1 %9920 }
0x803f   : > { %v9922_v47 = vmul.f32 0.03125, %v9921_v46 }
0x8041   : > { %v9923_v49 = vsub.f32 %v9914_v35, %v9922_v47 }
0x8043   : > { %v9924_v50 = vmul.f32 %v9923_v49, %v9923_v49 }
0x8045   : > { %v9925_v51 = vsel %vm832_vm1, %v9924_v50, 0.0 }
0x8046   : > { %9926 = vadd.xlane.f32.xlu1 %v9925_v51 }
0x80d3   : > { %v9927_v53 = vpop.xlane.xlu1 %9926 }
0x80d4   : > { %v9928_v54 = vmul.f32 0.03125, %v9927_v53 }
0x80d6   : > { %v9929_v56 = vadd.f32 1e-05, %v9928_v54 }
0x80d8   : > { %12291 = vrsqrt.f32 %v9929_v56 }
0x80e2   : > { %v12292_v57 = vpop.eup %12291 }
0x80e3   : > { %v9931_v36 = vmul.f32 %v12292_v57, %v9923_v49 }
0x80e5   : > { %v9938_v16 = vmul.f32 %v10507_v21, %v9931_v36 }
0x80e7   : > { %v9945_v61 = vadd.f32 %v10508_v60, %v9938_v16 }
0x80e9   : > { %v9948_v62 = vsel %vm832_vm1, %v9945_v61, 0.0 }
0x80ea   : > { %9949 = vadd.xlane.f32.xlu1 %v9948_v62 }
0x8177   : > { %v9950_v63 = vpop.xlane.xlu1 %9949 }
0x8178   : > { %v9951_v59 = vmul.f32 0.03125, %v9950_v63 }
0x817a   : > { %v9952_v2 = vsub.f32 %v9945_v61, %v9951_v59 }
0x817c   : > { %v9953_v3 = vmul.f32 %v9952_v2, %v9952_v2 }
0x817e   : > { %v9954_v4 = vsel %vm832_vm1, %v9953_v3, 0.0 }
0x817f   : > { %9955 = vadd.xlane.f32.xlu0 %v9954_v4 }
0x820c   : > { %v9956_v5 = vpop.xlane.xlu0 %9955 }
0x820d   : > { %v9957_v28 = vmul.f32 0.03125, %v9956_v5 }
0x820f   : > { %v9958_v6 = vadd.f32 1e-05, %v9957_v28 }
0x8211   : > { %12293 = vrsqrt.f32 %v9958_v6 }
0x821b   : > { %v12294_v1 = vpop.eup %12293 }
0x821c   : > { %v9960_v8 = vmul.f32 %v12294_v1, %v9952_v2 }
0x821e   : > { %v9967_v12 = vmul.f32 %v10509_v7, %v9960_v8 }
0x8220   : > { %v9974_v10 = vadd.f32 %v10510_v11, %v9967_v12 }
0x8222   : > { %9975 = vst.msk [vmem:[%s790_s11] sm:$0xff] %vm832_vm1, %v9974_v10 }
0x8223   : > { %12591 = shalt.err (!%p12588_p5)
}
0x8224   : > { %s12592_s17 = scalar_lea.hbm %s14654_s29, 128  ;;  %s12596_s3 = scalar_lea.hbm %s14907_s16, 256 }
0x8225   : > { %p12593_p9 = scmp.ne.s32.totalorder %s14654_s29, %s12592_s17  ;;  %p12597_p12 = scmp.lt.u32.totalorder %s14654_s29, %s14907_s16 }
0x8226   : > { %p12598_p13 = scmp.lt.u32.totalorder %s12596_s3, %s12592_s17  ;;  %p12600_p3 = scmp.lt.u32.totalorder %s12592_s17, %s14654_s29 }
0x8227   : > { %p12594_p7 = pnand %p12593_p9, %p14908_p2 }
0x8228   : > { %p12599_p1 = por %p12598_p13, %p12597_p12 }
0x8229   : > { %p12595_p4 = pneg %p12594_p7 }
0x822a   : > { %p12601_p0 = por %p12600_p3, %p12599_p1 }
0x822c   : > { %p12602_p6 = pnand %p12601_p0, %p12595_p4 }
0x822e   : > { %12605 = shalt.err (!%p12602_p6)
}
0x822f   : > { %11889 = dma.vmem_to_hbm [thread:$0]  (%p14908_p2), %s14656_s12, 128, %s14654_s29, %s9977_s21  }
0x8230 PF: > { %s14909_s8 = sld [smem:[#allocation27_spill]]  ;;  %s14910_s0 = sld [smem:[#allocation35_spill]] }
0x8231   : > { %s14911_s7 = sld [smem:[#allocation30_spill]] }
0x8236   : > { %s10002_s5 = sand.u32 1, %s14909_s8   ;;  %p14912_p10 = scmp.ne.s32.totalorder %s14910_s0, 0 }
0x8237   : > { %p14913_p11 = scmp.ge.s32.totalorder %s14911_s7, 2  ;;  %s10003_s9 = scalar_lea.sflag [#allocation4], %s10002_s5 }
0x8239   : > { %p11924_p8 = pnand %p14913_p11, %p14912_p10 }
0x823b   : > { %12647 = dma.done.wait (!%p11924_p8), %s10003_s9, 128  }
0x823c   : > { %12649 = vsyncadd (!%p11924_p8), %s10003_s9, 4294967168  ;;  %s14914_s24 = sld [smem:[#allocation32_spill]]  ;;  %s14915_s1 = sld [smem:[#allocation28_spill]] }
0x823d   : > { %s14916_s22 = sld [smem:[#allocation29_spill]]  ;;  %s14917_s23 = sld [smem:[#allocation33_spill]] }
0x8242   : > { %p38_p5 = scmp.ge.s32.totalorder %s14914_s24, 4  }
0x8244   :  { %40 = sbr.rel (!%p38_p5) target bundleno = 32 (0x20), region = 228 }
0x824b   :  { %10008 = vsyncpa [#allocation3], 1 }
0x824c   :  { %10010 = vsyncpa [#allocation3 + $0x1], 1 }
0x824d   :  { %10011 = vsyncpa [#allocation6], 1 }
0x824e   :  { %10012 = vsyncpa [#allocation9], 1 }
0x824f   :  { %10013 = vsyncpa [#allocation12], 1 }
0x8250   :  { %10014 = vsyncpa [#allocation15], 1 }
0x8251   :  { %10015 = vsyncpa [#allocation18], 1 }
0x8252   :  { %10016 = vsyncpa [#allocation4], 1 }
0x8253   :  { %10018 = vsyncpa [#allocation4 + $0x1], 1 }

</bundles_post_ra>
